<compile_context>
chip_gen: v5e
topology: v5e:2x2
jax: 0.10.0
libtpu: 0.0.40
codegen_flags: <defaults>
</compile_context>

<pallas_src>
import functools

import jax
import jax.numpy as jnp
import numpy as np
from jax.experimental import pallas as pl
from jax.experimental.pallas import tpu as pltpu

LANES = 128      # every channel axis is zero-padded to the 128-lane axis
PAD_LEFT = 8     # sublane-aligned start of the halo'd interior in VMEM


def _round_up(x, m):
    return (x + m - 1) // m * m


# ---------------------------------------------------------------------------
# One fused conv kernel used for every layer of the synthetic backbone:
#   conv3x3(stride 1, pad 1, no bias) + folded-BN [+ residual] + ReLU
# optionally followed IN THE SAME KERNEL by
#   * the 2x2 / stride-2 maxpool           (conv1 epilogue), or
#   * avgpool + ReLU + classifier head     (last conv epilogue).
# ---------------------------------------------------------------------------

def _fused_conv_kernel(*refs, H, W, pool, residual, head):
    it = iter(refs)
    x_ref = next(it)                               # (1, H, W, CP)   bf16
    w_ref = next(it)                               # (9*CP, CP)      bf16
    scale_ref = next(it)                           # (1, CP)         f32
    shift_ref = next(it)                           # (1, CP)         f32
    r_ref = next(it) if residual else None         # (1, H, W, CP)   bf16
    fcw_ref = next(it) if head else None           # (CP, CP)        bf16
    fcb_ref = next(it) if head else None           # (1, CP)         f32
    if head:
        pooled_ref = next(it)                      # (1, 1, CP)      f32
        preds_ref = next(it)                       # (1, 1, CP)      f32
        o_ref = None
    else:
        o_ref = next(it)                           # (1, Ho, Wo, CP) or (1, H, W, CP)
    halo_ref = next(it)                            # (H+2, Wp, CP)   bf16 scratch
    col_ref = next(it)                             # (H*W, 9*CP)     bf16 scratch
    pool_ref = next(it) if pool else None          # (H*W, CP)       f32 scratch

    CP = w_ref.shape[-1]

    # ---- build the zero-padded (halo) tile in VMEM; no HBM-side jnp.pad ----
    halo_ref[...] = jnp.zeros_like(halo_ref)
    halo_ref[1:H + 1, PAD_LEFT:PAD_LEFT + W, :] = x_ref[0]   # aligned interior store

    # ---- one bf16 im2col relayout per tap, then a single big-K MXU matmul --
    for kh in range(3):
        for kw in range(3):
            t = kh * 3 + kw
            c0 = PAD_LEFT - 1 + kw
            col_ref[:, t * CP:(t + 1) * CP] = (
                halo_ref[kh:kh + H, c0:c0 + W, :].reshape(H * W, CP))
    acc = jnp.dot(col_ref[...], w_ref[...],
                  preferred_element_type=jnp.float32)        # (H*W, CP) f32

    # ---- fused epilogue: folded BN (+ residual) + ReLU ----------------------
    y = acc * scale_ref[...] + shift_ref[...]
    if residual:
        y = y + r_ref[0].reshape(H * W, CP).astype(jnp.float32)
    y = jnp.maximum(y, 0.0)

    if head:
        # avgpool + relu(view) + classifier; the post-block activation never
        # leaves VMEM - only pooled features / logits are written back.
        pooled = jnp.mean(y, axis=0, keepdims=True)           # (1, CP) f32
        pooled_ref[0] = pooled
        feat = jnp.maximum(pooled, 0.0)                       # F.relu(x.view(N,-1))
        preds_ref[0] = (jnp.dot(feat.astype(jnp.bfloat16), fcw_ref[...],
                                preferred_element_type=jnp.float32)
                        + fcb_ref[...])
    elif pool:
        # fused 2x2 / stride-2 maxpool.  Rows of y are (h, w) raster order, so
        # horizontal partners are adjacent rows (stride-2 sublane reads) and
        # vertical partners become a layout-safe outer-dim split afterwards.
        Ho, Wo = H // 2, W // 2
        pool_ref[...] = y
        wmax = jnp.maximum(pool_ref[pl.ds(0, H * Wo, stride=2), :],
                           pool_ref[pl.ds(1, H * Wo, stride=2), :])  # (H*Wo, CP)
        v = wmax.reshape(Ho, 2, Wo, CP)                       # outer split only
        o_ref[0] = jnp.maximum(v[:, 0], v[:, 1]).astype(o_ref.dtype)
    else:
        o_ref[0] = y.reshape(H, W, CP).astype(o_ref.dtype)


def fused_conv_layer(x_nhwc, w9, scale, shift, *, pool=False, residual=None,
                     fc_w=None, fc_b=None):
    """x_nhwc: (N, H, W, CP) bf16.  Returns bf16 activation, or (pooled, preds)."""
    N, H, W, CP = x_nhwc.shape
    head = fc_w is not None
    Wp = _round_up(PAD_LEFT + W + 1, 8)          # halo width, 8-sublane padded

    inputs = [x_nhwc, w9, scale, shift]
    in_specs = [
        pl.BlockSpec((1, H, W, CP), lambda n: (n, 0, 0, 0)),
        pl.BlockSpec((9 * CP, CP), lambda n: (0, 0)),
        pl.BlockSpec((1, CP), lambda n: (0, 0)),
        pl.BlockSpec((1, CP), lambda n: (0, 0)),
    ]
    if residual is not None:
        inputs.append(residual)
        in_specs.append(pl.BlockSpec((1, H, W, CP), lambda n: (n, 0, 0, 0)))
    if head:
        inputs += [fc_w, fc_b]
        in_specs += [pl.BlockSpec((CP, CP), lambda n: (0, 0)),
                     pl.BlockSpec((1, CP), lambda n: (0, 0))]

    if head:
        out_shape = (jax.ShapeDtypeStruct((N, 1, CP), jnp.float32),
                     jax.ShapeDtypeStruct((N, 1, CP), jnp.float32))
        out_specs = (pl.BlockSpec((1, 1, CP), lambda n: (n, 0, 0)),
                     pl.BlockSpec((1, 1, CP), lambda n: (n, 0, 0)))
    elif pool:
        out_shape = jax.ShapeDtypeStruct((N, H // 2, W // 2, CP), jnp.bfloat16)
        out_specs = pl.BlockSpec((1, H // 2, W // 2, CP), lambda n: (n, 0, 0, 0))
    else:
        out_shape = jax.ShapeDtypeStruct((N, H, W, CP), jnp.bfloat16)
        out_specs = pl.BlockSpec((1, H, W, CP), lambda n: (n, 0, 0, 0))

    scratch_shapes = [pltpu.VMEM((H + 2, Wp, CP), jnp.bfloat16),
                      pltpu.VMEM((H * W, 9 * CP), jnp.bfloat16)]
    if pool:
        scratch_shapes.append(pltpu.VMEM((H * W, CP), jnp.float32))

    return pl.pallas_call(
        functools.partial(_fused_conv_kernel, H=H, W=W, pool=pool,
                          residual=residual is not None, head=head),
        out_shape=out_shape,
        grid=(N,),
        in_specs=in_specs,
        out_specs=out_specs,
        scratch_shapes=scratch_shapes,
        compiler_params=pltpu.CompilerParams(
            dimension_semantics=("parallel",),       # shards over v7x's 2 TCs
            vmem_limit_bytes=32 * 1024 * 1024),
    )(*inputs)


# ---------------------------------------------------------------------------
# Parameters (PyTorch-like, unpadded) + one-time padded / bf16 preparation
# ---------------------------------------------------------------------------

def init_params(key, cin=4, c=8, num_classes=10):
    k1, k2, k3, k4 = jax.random.split(key, 4)
    ones_c = jnp.ones((c,), jnp.float32)
    zeros_c = jnp.zeros((c,), jnp.float32)
    return {
        "conv1_w": jax.random.normal(k1, (3, 3, cin, c), jnp.float32) * 0.05,
        "bn1_scale": ones_c, "bn1_shift": zeros_c,
        "l1_conv1_w": jax.random.normal(k2, (3, 3, c, c), jnp.float32) * 0.05,
        "l1_bn1_scale": ones_c, "l1_bn1_shift": zeros_c,
        "l1_conv2_w": jax.random.normal(k3, (3, 3, c, c), jnp.float32) * 0.05,
        "l1_bn2_scale": ones_c, "l1_bn2_shift": zeros_c,
        # classifier: weights_init_classifier -> normal(std=0.001), bias 0
        "fc_w": jax.random.normal(k4, (c, num_classes), jnp.float32) * 0.001,
        "fc_b": jnp.zeros((num_classes,), jnp.float32),
    }


def prepare_params(p, cp=LANES):
    """Zero-pad channels to 128 lanes; conv weights -> tap-stacked (9*cp, cp) bf16."""
    def conv_w(w):
        _, _, cin, cout = w.shape
        w9 = w.reshape(9, cin, cout)
        w9 = jnp.pad(w9, ((0, 0), (0, cp - cin), (0, cp - cout)))
        return w9.reshape(9 * cp, cp).astype(jnp.bfloat16)

    def vec(v):
        return jnp.pad(v, (0, cp - v.shape[0])).reshape(1, cp).astype(jnp.float32)

    c, nc = p["fc_w"].shape
    return {
        "conv1_w": conv_w(p["conv1_w"]),
        "bn1_scale": vec(p["bn1_scale"]), "bn1_shift": vec(p["bn1_shift"]),
        "l1_conv1_w": conv_w(p["l1_conv1_w"]),
        "l1_bn1_scale": vec(p["l1_bn1_scale"]), "l1_bn1_shift": vec(p["l1_bn1_shift"]),
        "l1_conv2_w": conv_w(p["l1_conv2_w"]),
        "l1_bn2_scale": vec(p["l1_bn2_scale"]), "l1_bn2_shift": vec(p["l1_bn2_shift"]),
        "fc_w": jnp.pad(p["fc_w"], ((0, cp - c), (0, cp - nc))).astype(jnp.bfloat16),
        "fc_b": vec(p["fc_b"]),
    }


# ---------------------------------------------------------------------------
# Full forward (mirrors ResnetClassifier.forward) - three pallas_calls total
# ---------------------------------------------------------------------------

def resnet_classifier_forward(img_nchw, kp, *, c, num_classes):
    N, cin, H, W = img_nchw.shape
    x = jnp.transpose(img_nchw, (0, 2, 3, 1)).astype(jnp.float32)   # NCHW -> NHWC
    x = jnp.pad(x, ((0, 0), (0, 0), (0, 0), (0, LANES - cin)))      # lane-dense
    x = x.astype(jnp.bfloat16)                                       # bf16 activations

    # conv1 -> bn1 -> relu -> maxpool 2x2/2     (one kernel)
    x = fused_conv_layer(x, kp["conv1_w"], kp["bn1_scale"], kp["bn1_shift"],
                         pool=True)
    # layer1 basic block, first conv -> bn -> relu     (one kernel)
    identity = x
    y = fused_conv_layer(x, kp["l1_conv1_w"], kp["l1_bn1_scale"], kp["l1_bn1_shift"])
    # second conv -> bn -> +identity -> relu -> avgpool -> relu -> fc  (one kernel)
    pooled, preds = fused_conv_layer(
        y, kp["l1_conv2_w"], kp["l1_bn2_scale"], kp["l1_bn2_shift"],
        residual=identity, fc_w=kp["fc_w"], fc_b=kp["fc_b"])

    x_out = pooled[:, 0, :c].reshape(N, c, 1, 1)    # PyTorch avgpool output layout
    preds_out = preds[:, 0, :num_classes]
    return x_out, preds_out


# ---------------------------------------------------------------------------
# Pure-jnp reference (same math, incl. bf16 activation storage / MXU operands)
# ---------------------------------------------------------------------------

def _ref_forward(img_nchw, p):
    x = jnp.transpose(img_nchw, (0, 2, 3, 1)).astype(jnp.float32)
    x = x.astype(jnp.bfloat16)                       # kernel stores input as bf16

    def conv(xb, w):                                 # xb is bf16
        N, H, W, cin = xb.shape
        xp = jnp.pad(xb, ((0, 0), (1, 1), (1, 1), (0, 0)))
        wq = w.astype(jnp.bfloat16)
        cols = [xp[:, kh:kh + H, kw:kw + W, :]
                for kh in range(3) for kw in range(3)]
        patches = jnp.stack(cols, axis=3).reshape(N * H * W, 9 * cin)
        y = jnp.dot(patches, wq.reshape(9 * cin, -1),
                    preferred_element_type=jnp.float32)
        return y.reshape(N, H, W, -1)

    h = jnp.maximum(conv(x, p["conv1_w"]) * p["bn1_scale"] + p["bn1_shift"], 0.0)
    N, H, W, C = h.shape
    h = jnp.max(h.reshape(N, H // 2, 2, W // 2, 2, C), axis=(2, 4))
    hb = h.astype(jnp.bfloat16)                      # bf16-stored pooled activation
    y = jnp.maximum(conv(hb, p["l1_conv1_w"]) * p["l1_bn1_scale"]
                    + p["l1_bn1_shift"], 0.0)
    yb = y.astype(jnp.bfloat16)                      # bf16-stored activation
    z = (conv(yb, p["l1_conv2_w"]) * p["l1_bn2_scale"] + p["l1_bn2_shift"]
         + hb.astype(jnp.float32))
    z = jnp.maximum(z, 0.0)
    pooled = jnp.mean(z, axis=(1, 2))
    feat = jnp.maximum(pooled, 0.0)
    preds = jnp.dot(feat.astype(jnp.bfloat16), p["fc_w"].astype(jnp.bfloat16),
                    preferred_element_type=jnp.float32) + p["fc_b"]
    return pooled.reshape(N, C, 1, 1), preds


if __name__ == "__main__":
    key = jax.random.PRNGKey(0)
    k_img, k_par = jax.random.split(key)

    N, CIN, HW = 2, 4, 16
    C, NUM_CLASSES = 8, 10

    img = jax.random.normal(k_img, (N, CIN, HW, HW), jnp.float32)   # NCHW input
    params = init_params(k_par, cin=CIN, c=C, num_classes=NUM_CLASSES)
    kp = prepare_params(params)        # hoisted: weights padded/cast exactly once

    fwd = jax.jit(functools.partial(resnet_classifier_forward,
                                    c=C, num_classes=NUM_CLASSES))
    x_out, preds = fwd(img, kp)
    jax.block_until_ready((x_out, preds))

    x_ref, preds_ref = _ref_forward(img, params)
    assert x_out.shape == (N, C, 1, 1) and preds.shape == (N, NUM_CLASSES)
    np.testing.assert_allclose(np.asarray(x_out), np.asarray(x_ref),
                               rtol=1e-3, atol=1e-4)
    np.testing.assert_allclose(np.asarray(preds), np.asarray(preds_ref),
                               rtol=1e-3, atol=1e-4)

    print("KERNEL_OK")
</pallas_src>

<mosaic_0001>
module attributes {stable_mosaic.version = 11 : i64} {
  func.func @_fused_conv_kernel(%arg0: i32, %arg1: memref<1x16x16x128xbf16, #tpu.memory_space<vmem>>, %arg2: memref<1152x128xbf16, #tpu.memory_space<vmem>>, %arg3: memref<1x128xf32, #tpu.memory_space<vmem>>, %arg4: memref<1x128xf32, #tpu.memory_space<vmem>>, %arg5: memref<1x8x8x128xbf16, #tpu.memory_space<vmem>>, %arg6: memref<18x32x128xbf16, #tpu.memory_space<vmem>>, %arg7: memref<256x1152xbf16, #tpu.memory_space<vmem>>, %arg8: memref<256x128xf32, #tpu.memory_space<vmem>>) attributes {dimension_semantics = [#tpu.dimension_semantics<parallel>], iteration_bounds = array<i64: 2>, scalar_prefetch = 0 : i64, scratch_operands = 3 : i64, tpu.core_type = #tpu.core_type<tc>, window_params = [{transform_indices = @transform_0, window_bounds = array<i64: 1, 16, 16, 128>}, {pipeline_mode = #tpu.pipeline_mode<synchronous>, transform_indices = @transform_1, window_bounds = array<i64: 1152, 128>}, {pipeline_mode = #tpu.pipeline_mode<synchronous>, transform_indices = @transform_2, window_bounds = array<i64: 1, 128>}, {pipeline_mode = #tpu.pipeline_mode<synchronous>, transform_indices = @transform_3, window_bounds = array<i64: 1, 128>}, {transform_indices = @transform_4, window_bounds = array<i64: 1, 8, 8, 128>}]} {
    %cst = arith.constant 0.000000e+00 : bf16
    %0 = vector.broadcast %cst : bf16 to vector<18x32x128xbf16>
    %c0 = arith.constant 0 : index
    %c0_0 = arith.constant 0 : index
    %c0_1 = arith.constant 0 : index
    %1 = vector.load %arg6[%c0, %c0_0, %c0_1] : memref<18x32x128xbf16, #tpu.memory_space<vmem>>, vector<18x32x128xbf16>
    tpu.vector_store %arg6[%c0, %c0_0, %c0_1], %0 {strides = array<i32>} : memref<18x32x128xbf16, #tpu.memory_space<vmem>>, vector<18x32x128xbf16>,
    %c0_2 = arith.constant 0 : index
    %c0_3 = arith.constant 0 : index
    %c0_4 = arith.constant 0 : index
    %c0_5 = arith.constant 0 : index
    %2 = vector.load %arg1[%c0_2, %c0_3, %c0_4, %c0_5] : memref<1x16x16x128xbf16, #tpu.memory_space<vmem>>, vector<1x16x16x128xbf16>
    %3 = vector.shape_cast %2 : vector<1x16x16x128xbf16> to vector<16x16x128xbf16>
    %c1 = arith.constant 1 : index
    %c8 = arith.constant 8 : index
    %c0_6 = arith.constant 0 : index
    %4 = vector.load %arg6[%c1, %c8, %c0_6] : memref<18x32x128xbf16, #tpu.memory_space<vmem>>, vector<16x16x128xbf16>
    tpu.vector_store %arg6[%c1, %c8, %c0_6], %3 {strides = array<i32>} : memref<18x32x128xbf16, #tpu.memory_space<vmem>>, vector<16x16x128xbf16>,
    %c0_7 = arith.constant 0 : index
    %c7 = arith.constant 7 : index
    %c0_8 = arith.constant 0 : index
    %5 = vector.load %arg6[%c0_7, %c7, %c0_8] : memref<18x32x128xbf16, #tpu.memory_space<vmem>>, vector<16x16x128xbf16>
    %6 = vector.shape_cast %5 : vector<16x16x128xbf16> to vector<256x128xbf16>
    %c0_9 = arith.constant 0 : index
    %c0_10 = arith.constant 0 : index
    %7 = vector.load %arg7[%c0_9, %c0_10] : memref<256x1152xbf16, #tpu.memory_space<vmem>>, vector<256x128xbf16>
    tpu.vector_store %arg7[%c0_9, %c0_10], %6 {strides = array<i32>} : memref<256x1152xbf16, #tpu.memory_space<vmem>>, vector<256x128xbf16>,
    %c0_11 = arith.constant 0 : index
    %c8_12 = arith.constant 8 : index
    %c0_13 = arith.constant 0 : index
    %8 = vector.load %arg6[%c0_11, %c8_12, %c0_13] : memref<18x32x128xbf16, #tpu.memory_space<vmem>>, vector<16x16x128xbf16>
    %9 = vector.shape_cast %8 : vector<16x16x128xbf16> to vector<256x128xbf16>
    %c0_14 = arith.constant 0 : index
    %c128 = arith.constant 128 : index
    %10 = vector.load %arg7[%c0_14, %c128] : memref<256x1152xbf16, #tpu.memory_space<vmem>>, vector<256x128xbf16>
    tpu.vector_store %arg7[%c0_14, %c128], %9 {strides = array<i32>} : memref<256x1152xbf16, #tpu.memory_space<vmem>>, vector<256x128xbf16>,
    %c0_15 = arith.constant 0 : index
    %c9 = arith.constant 9 : index
    %c0_16 = arith.constant 0 : index
    %11 = vector.load %arg6[%c0_15, %c9, %c0_16] : memref<18x32x128xbf16, #tpu.memory_space<vmem>>, vector<16x16x128xbf16>
    %12 = vector.shape_cast %11 : vector<16x16x128xbf16> to vector<256x128xbf16>
    %c0_17 = arith.constant 0 : index
    %c256 = arith.constant 256 : index
    %13 = vector.load %arg7[%c0_17, %c256] : memref<256x1152xbf16, #tpu.memory_space<vmem>>, vector<256x128xbf16>
    tpu.vector_store %arg7[%c0_17, %c256], %12 {strides = array<i32>} : memref<256x1152xbf16, #tpu.memory_space<vmem>>, vector<256x128xbf16>,
    %c1_18 = arith.constant 1 : index
    %c7_19 = arith.constant 7 : index
    %c0_20 = arith.constant 0 : index
    %14 = vector.load %arg6[%c1_18, %c7_19, %c0_20] : memref<18x32x128xbf16, #tpu.memory_space<vmem>>, vector<16x16x128xbf16>
    %15 = vector.shape_cast %14 : vector<16x16x128xbf16> to vector<256x128xbf16>
    %c0_21 = arith.constant 0 : index
    %c384 = arith.constant 384 : index
    %16 = vector.load %arg7[%c0_21, %c384] : memref<256x1152xbf16, #tpu.memory_space<vmem>>, vector<256x128xbf16>
    tpu.vector_store %arg7[%c0_21, %c384], %15 {strides = array<i32>} : memref<256x1152xbf16, #tpu.memory_space<vmem>>, vector<256x128xbf16>,
    %c1_22 = arith.constant 1 : index
    %c8_23 = arith.constant 8 : index
    %c0_24 = arith.constant 0 : index
    %17 = vector.load %arg6[%c1_22, %c8_23, %c0_24] : memref<18x32x128xbf16, #tpu.memory_space<vmem>>, vector<16x16x128xbf16>
    %18 = vector.shape_cast %17 : vector<16x16x128xbf16> to vector<256x128xbf16>
    %c0_25 = arith.constant 0 : index
    %c512 = arith.constant 512 : index
    %19 = vector.load %arg7[%c0_25, %c512] : memref<256x1152xbf16, #tpu.memory_space<vmem>>, vector<256x128xbf16>
    tpu.vector_store %arg7[%c0_25, %c512], %18 {strides = array<i32>} : memref<256x1152xbf16, #tpu.memory_space<vmem>>, vector<256x128xbf16>,
    %c1_26 = arith.constant 1 : index
    %c9_27 = arith.constant 9 : index
    %c0_28 = arith.constant 0 : index
    %20 = vector.load %arg6[%c1_26, %c9_27, %c0_28] : memref<18x32x128xbf16, #tpu.memory_space<vmem>>, vector<16x16x128xbf16>
    %21 = vector.shape_cast %20 : vector<16x16x128xbf16> to vector<256x128xbf16>
    %c0_29 = arith.constant 0 : index
    %c640 = arith.constant 640 : index
    %22 = vector.load %arg7[%c0_29, %c640] : memref<256x1152xbf16, #tpu.memory_space<vmem>>, vector<256x128xbf16>
    tpu.vector_store %arg7[%c0_29, %c640], %21 {strides = array<i32>} : memref<256x1152xbf16, #tpu.memory_space<vmem>>, vector<256x128xbf16>,
    %c2 = arith.constant 2 : index
    %c7_30 = arith.constant 7 : index
    %c0_31 = arith.constant 0 : index
    %23 = vector.load %arg6[%c2, %c7_30, %c0_31] : memref<18x32x128xbf16, #tpu.memory_space<vmem>>, vector<16x16x128xbf16>
    %24 = vector.shape_cast %23 : vector<16x16x128xbf16> to vector<256x128xbf16>
    %c0_32 = arith.constant 0 : index
    %c768 = arith.constant 768 : index
    %25 = vector.load %arg7[%c0_32, %c768] : memref<256x1152xbf16, #tpu.memory_space<vmem>>, vector<256x128xbf16>
    tpu.vector_store %arg7[%c0_32, %c768], %24 {strides = array<i32>} : memref<256x1152xbf16, #tpu.memory_space<vmem>>, vector<256x128xbf16>,
    %c2_33 = arith.constant 2 : index
    %c8_34 = arith.constant 8 : index
    %c0_35 = arith.constant 0 : index
    %26 = vector.load %arg6[%c2_33, %c8_34, %c0_35] : memref<18x32x128xbf16, #tpu.memory_space<vmem>>, vector<16x16x128xbf16>
    %27 = vector.shape_cast %26 : vector<16x16x128xbf16> to vector<256x128xbf16>
    %c0_36 = arith.constant 0 : index
    %c896 = arith.constant 896 : index
    %28 = vector.load %arg7[%c0_36, %c896] : memref<256x1152xbf16, #tpu.memory_space<vmem>>, vector<256x128xbf16>
    tpu.vector_store %arg7[%c0_36, %c896], %27 {strides = array<i32>} : memref<256x1152xbf16, #tpu.memory_space<vmem>>, vector<256x128xbf16>,
    %c2_37 = arith.constant 2 : index
    %c9_38 = arith.constant 9 : index
    %c0_39 = arith.constant 0 : index
    %29 = vector.load %arg6[%c2_37, %c9_38, %c0_39] : memref<18x32x128xbf16, #tpu.memory_space<vmem>>, vector<16x16x128xbf16>
    %30 = vector.shape_cast %29 : vector<16x16x128xbf16> to vector<256x128xbf16>
    %c0_40 = arith.constant 0 : index
    %c1024 = arith.constant 1024 : index
    %31 = vector.load %arg7[%c0_40, %c1024] : memref<256x1152xbf16, #tpu.memory_space<vmem>>, vector<256x128xbf16>
    tpu.vector_store %arg7[%c0_40, %c1024], %30 {strides = array<i32>} : memref<256x1152xbf16, #tpu.memory_space<vmem>>, vector<256x128xbf16>,
    %c0_41 = arith.constant 0 : index
    %c0_42 = arith.constant 0 : index
    %32 = vector.load %arg7[%c0_41, %c0_42] : memref<256x1152xbf16, #tpu.memory_space<vmem>>, vector<256x1152xbf16>
    %c0_43 = arith.constant 0 : index
    %c0_44 = arith.constant 0 : index
    %33 = vector.load %arg2[%c0_43, %c0_44] : memref<1152x128xbf16, #tpu.memory_space<vmem>>, vector<1152x128xbf16>
    %cst_45 = arith.constant dense<0.000000e+00> : vector<256x128xf32>
    %34 = tpu.matmul %32, %33, %cst_45 {dimension_numbers = #tpu.dot_dimension_numbers<[1], [0], [0], [1], [0, 0, 1, 1], [], []>} : vector<256x1152xbf16>, vector<1152x128xbf16>, vector<256x128xf32> -> vector<256x128xf32>
    %c0_46 = arith.constant 0 : index
    %c0_47 = arith.constant 0 : index
    %35 = vector.load %arg3[%c0_46, %c0_47] : memref<1x128xf32, #tpu.memory_space<vmem>>, vector<1x128xf32>
    %36 = vector.broadcast %35 : vector<1x128xf32> to vector<256x128xf32>
    %37 = arith.mulf %34, %36 : vector<256x128xf32>
    %c0_48 = arith.constant 0 : index
    %c0_49 = arith.constant 0 : index
    %38 = vector.load %arg4[%c0_48, %c0_49] : memref<1x128xf32, #tpu.memory_space<vmem>>, vector<1x128xf32>
    %39 = vector.broadcast %38 : vector<1x128xf32> to vector<256x128xf32>
    %40 = arith.addf %37, %39 : vector<256x128xf32>
    %cst_50 = arith.constant 0.000000e+00 : f32
    %41 = vector.broadcast %cst_50 : f32 to vector<256x128xf32>
    %42 = arith.maximumf %40, %41 : vector<256x128xf32>
    %c0_51 = arith.constant 0 : index
    %c0_52 = arith.constant 0 : index
    %43 = vector.load %arg8[%c0_51, %c0_52] : memref<256x128xf32, #tpu.memory_space<vmem>>, vector<256x128xf32>
    tpu.vector_store %arg8[%c0_51, %c0_52], %42 {strides = array<i32>} : memref<256x128xf32, #tpu.memory_space<vmem>>, vector<256x128xf32>,
    %c0_53 = arith.constant 0 : index
    %c0_54 = arith.constant 0 : index
    %44 = tpu.strided_load %arg8[%c0_53, %c0_54] {strides = array<i32: 2, 1>} : memref<256x128xf32, #tpu.memory_space<vmem>>, vector<128x128xf32>
    %c1_55 = arith.constant 1 : index
    %c0_56 = arith.constant 0 : index
    %45 = tpu.strided_load %arg8[%c1_55, %c0_56] {strides = array<i32: 2, 1>} : memref<256x128xf32, #tpu.memory_space<vmem>>, vector<128x128xf32>
    %46 = arith.maximumf %44, %45 : vector<128x128xf32>
    %47 = vector.shape_cast %46 : vector<128x128xf32> to vector<8x2x8x128xf32>
    %48 = vector.extract_strided_slice %47 {offsets = [0, 0, 0, 0], sizes = [8, 1, 8, 128], strides = [1, 1, 1, 1]} : vector<8x2x8x128xf32> to vector<8x1x8x128xf32>
    %49 = vector.shape_cast %48 : vector<8x1x8x128xf32> to vector<8x8x128xf32>
    %50 = vector.extract_strided_slice %47 {offsets = [0, 1, 0, 0], sizes = [8, 1, 8, 128], strides = [1, 1, 1, 1]} : vector<8x2x8x128xf32> to vector<8x1x8x128xf32>
    %51 = vector.shape_cast %50 : vector<8x1x8x128xf32> to vector<8x8x128xf32>
    %52 = arith.maximumf %49, %51 : vector<8x8x128xf32>
    %53 = arith.truncf %52 : vector<8x8x128xf32> to vector<8x8x128xbf16>
    %c0_57 = arith.constant 0 : index
    %c0_58 = arith.constant 0 : index
    %c0_59 = arith.constant 0 : index
    %c0_60 = arith.constant 0 : index
    %54 = vector.load %arg5[%c0_57, %c0_58, %c0_59, %c0_60] : memref<1x8x8x128xbf16, #tpu.memory_space<vmem>>, vector<1x8x8x128xbf16>
    %55 = vector.shape_cast %54 : vector<1x8x8x128xbf16> to vector<8x8x128xbf16>
    %56 = vector.shape_cast %53 : vector<8x8x128xbf16> to vector<1x8x8x128xbf16>
    tpu.vector_store %arg5[%c0_57, %c0_58, %c0_59, %c0_60], %56 {strides = array<i32>} : memref<1x8x8x128xbf16, #tpu.memory_space<vmem>>, vector<1x8x8x128xbf16>,
    return
  }
  func.func @transform_0(%arg0: i32) -> (i32, i32, i32, i32) {
    %c0_i32 = arith.constant 0 : i32
    %c0_i32_0 = arith.constant 0 : i32
    %c0_i32_1 = arith.constant 0 : i32
    %c0_i32_2 = arith.constant 0 : i32
    return %arg0, %c0_i32, %c0_i32_0, %c0_i32_1 : i32, i32, i32, i32
  }
  func.func @transform_1(%arg0: i32) -> (i32, i32) {
    %c0_i32 = arith.constant 0 : i32
    %c0_i32_0 = arith.constant 0 : i32
    %c0_i32_1 = arith.constant 0 : i32
    return %c0_i32, %c0_i32_0 : i32, i32
  }
  func.func @transform_2(%arg0: i32) -> (i32, i32) {
    %c0_i32 = arith.constant 0 : i32
    %c0_i32_0 = arith.constant 0 : i32
    %c0_i32_1 = arith.constant 0 : i32
    return %c0_i32, %c0_i32_0 : i32, i32
  }
  func.func @transform_3(%arg0: i32) -> (i32, i32) {
    %c0_i32 = arith.constant 0 : i32
    %c0_i32_0 = arith.constant 0 : i32
    %c0_i32_1 = arith.constant 0 : i32
    return %c0_i32, %c0_i32_0 : i32, i32
  }
  func.func @transform_4(%arg0: i32) -> (i32, i32, i32, i32) {
    %c0_i32 = arith.constant 0 : i32
    %c0_i32_0 = arith.constant 0 : i32
    %c0_i32_1 = arith.constant 0 : i32
    %c0_i32_2 = arith.constant 0 : i32
    return %arg0, %c0_i32, %c0_i32_0, %c0_i32_1 : i32, i32, i32, i32
  }
}

module attributes {stable_mosaic.version = 11 : i64} {
  func.func @_fused_conv_kernel(%arg0: i32, %arg1: memref<1x8x8x128xbf16, #tpu.memory_space<vmem>>, %arg2: memref<1152x128xbf16, #tpu.memory_space<vmem>>, %arg3: memref<1x128xf32, #tpu.memory_space<vmem>>, %arg4: memref<1x128xf32, #tpu.memory_space<vmem>>, %arg5: memref<1x8x8x128xbf16, #tpu.memory_space<vmem>>, %arg6: memref<10x24x128xbf16, #tpu.memory_space<vmem>>, %arg7: memref<64x1152xbf16, #tpu.memory_space<vmem>>) attributes {dimension_semantics = [#tpu.dimension_semantics<parallel>], iteration_bounds = array<i64: 2>, scalar_prefetch = 0 : i64, scratch_operands = 2 : i64, tpu.core_type = #tpu.core_type<tc>, window_params = [{transform_indices = @transform_0, window_bounds = array<i64: 1, 8, 8, 128>}, {pipeline_mode = #tpu.pipeline_mode<synchronous>, transform_indices = @transform_1, window_bounds = array<i64: 1152, 128>}, {pipeline_mode = #tpu.pipeline_mode<synchronous>, transform_indices = @transform_2, window_bounds = array<i64: 1, 128>}, {pipeline_mode = #tpu.pipeline_mode<synchronous>, transform_indices = @transform_3, window_bounds = array<i64: 1, 128>}, {transform_indices = @transform_4, window_bounds = array<i64: 1, 8, 8, 128>}]} {
    %cst = arith.constant 0.000000e+00 : bf16
    %0 = vector.broadcast %cst : bf16 to vector<10x24x128xbf16>
    %c0 = arith.constant 0 : index
    %c0_0 = arith.constant 0 : index
    %c0_1 = arith.constant 0 : index
    %1 = vector.load %arg6[%c0, %c0_0, %c0_1] : memref<10x24x128xbf16, #tpu.memory_space<vmem>>, vector<10x24x128xbf16>
    tpu.vector_store %arg6[%c0, %c0_0, %c0_1], %0 {strides = array<i32>} : memref<10x24x128xbf16, #tpu.memory_space<vmem>>, vector<10x24x128xbf16>,
    %c0_2 = arith.constant 0 : index
    %c0_3 = arith.constant 0 : index
    %c0_4 = arith.constant 0 : index
    %c0_5 = arith.constant 0 : index
    %2 = vector.load %arg1[%c0_2, %c0_3, %c0_4, %c0_5] : memref<1x8x8x128xbf16, #tpu.memory_space<vmem>>, vector<1x8x8x128xbf16>
    %3 = vector.shape_cast %2 : vector<1x8x8x128xbf16> to vector<8x8x128xbf16>
    %c1 = arith.constant 1 : index
    %c8 = arith.constant 8 : index
    %c0_6 = arith.constant 0 : index
    %4 = vector.load %arg6[%c1, %c8, %c0_6] : memref<10x24x128xbf16, #tpu.memory_space<vmem>>, vector<8x8x128xbf16>
    tpu.vector_store %arg6[%c1, %c8, %c0_6], %3 {strides = array<i32>} : memref<10x24x128xbf16, #tpu.memory_space<vmem>>, vector<8x8x128xbf16>,
    %c0_7 = arith.constant 0 : index
    %c7 = arith.constant 7 : index
    %c0_8 = arith.constant 0 : index
    %5 = vector.load %arg6[%c0_7, %c7, %c0_8] : memref<10x24x128xbf16, #tpu.memory_space<vmem>>, vector<8x8x128xbf16>
    %6 = vector.shape_cast %5 : vector<8x8x128xbf16> to vector<64x128xbf16>
    %c0_9 = arith.constant 0 : index
    %c0_10 = arith.constant 0 : index
    %7 = vector.load %arg7[%c0_9, %c0_10] : memref<64x1152xbf16, #tpu.memory_space<vmem>>, vector<64x128xbf16>
    tpu.vector_store %arg7[%c0_9, %c0_10], %6 {strides = array<i32>} : memref<64x1152xbf16, #tpu.memory_space<vmem>>, vector<64x128xbf16>,
    %c0_11 = arith.constant 0 : index
    %c8_12 = arith.constant 8 : index
    %c0_13 = arith.constant 0 : index
    %8 = vector.load %arg6[%c0_11, %c8_12, %c0_13] : memref<10x24x128xbf16, #tpu.memory_space<vmem>>, vector<8x8x128xbf16>
    %9 = vector.shape_cast %8 : vector<8x8x128xbf16> to vector<64x128xbf16>
    %c0_14 = arith.constant 0 : index
    %c128 = arith.constant 128 : index
    %10 = vector.load %arg7[%c0_14, %c128] : memref<64x1152xbf16, #tpu.memory_space<vmem>>, vector<64x128xbf16>
    tpu.vector_store %arg7[%c0_14, %c128], %9 {strides = array<i32>} : memref<64x1152xbf16, #tpu.memory_space<vmem>>, vector<64x128xbf16>,
    %c0_15 = arith.constant 0 : index
    %c9 = arith.constant 9 : index
    %c0_16 = arith.constant 0 : index
    %11 = vector.load %arg6[%c0_15, %c9, %c0_16] : memref<10x24x128xbf16, #tpu.memory_space<vmem>>, vector<8x8x128xbf16>
    %12 = vector.shape_cast %11 : vector<8x8x128xbf16> to vector<64x128xbf16>
    %c0_17 = arith.constant 0 : index
    %c256 = arith.constant 256 : index
    %13 = vector.load %arg7[%c0_17, %c256] : memref<64x1152xbf16, #tpu.memory_space<vmem>>, vector<64x128xbf16>
    tpu.vector_store %arg7[%c0_17, %c256], %12 {strides = array<i32>} : memref<64x1152xbf16, #tpu.memory_space<vmem>>, vector<64x128xbf16>,
    %c1_18 = arith.constant 1 : index
    %c7_19 = arith.constant 7 : index
    %c0_20 = arith.constant 0 : index
    %14 = vector.load %arg6[%c1_18, %c7_19, %c0_20] : memref<10x24x128xbf16, #tpu.memory_space<vmem>>, vector<8x8x128xbf16>
    %15 = vector.shape_cast %14 : vector<8x8x128xbf16> to vector<64x128xbf16>
    %c0_21 = arith.constant 0 : index
    %c384 = arith.constant 384 : index
    %16 = vector.load %arg7[%c0_21, %c384] : memref<64x1152xbf16, #tpu.memory_space<vmem>>, vector<64x128xbf16>
    tpu.vector_store %arg7[%c0_21, %c384], %15 {strides = array<i32>} : memref<64x1152xbf16, #tpu.memory_space<vmem>>, vector<64x128xbf16>,
    %c1_22 = arith.constant 1 : index
    %c8_23 = arith.constant 8 : index
    %c0_24 = arith.constant 0 : index
    %17 = vector.load %arg6[%c1_22, %c8_23, %c0_24] : memref<10x24x128xbf16, #tpu.memory_space<vmem>>, vector<8x8x128xbf16>
    %18 = vector.shape_cast %17 : vector<8x8x128xbf16> to vector<64x128xbf16>
    %c0_25 = arith.constant 0 : index
    %c512 = arith.constant 512 : index
    %19 = vector.load %arg7[%c0_25, %c512] : memref<64x1152xbf16, #tpu.memory_space<vmem>>, vector<64x128xbf16>
    tpu.vector_store %arg7[%c0_25, %c512], %18 {strides = array<i32>} : memref<64x1152xbf16, #tpu.memory_space<vmem>>, vector<64x128xbf16>,
    %c1_26 = arith.constant 1 : index
    %c9_27 = arith.constant 9 : index
    %c0_28 = arith.constant 0 : index
    %20 = vector.load %arg6[%c1_26, %c9_27, %c0_28] : memref<10x24x128xbf16, #tpu.memory_space<vmem>>, vector<8x8x128xbf16>
    %21 = vector.shape_cast %20 : vector<8x8x128xbf16> to vector<64x128xbf16>
    %c0_29 = arith.constant 0 : index
    %c640 = arith.constant 640 : index
    %22 = vector.load %arg7[%c0_29, %c640] : memref<64x1152xbf16, #tpu.memory_space<vmem>>, vector<64x128xbf16>
    tpu.vector_store %arg7[%c0_29, %c640], %21 {strides = array<i32>} : memref<64x1152xbf16, #tpu.memory_space<vmem>>, vector<64x128xbf16>,
    %c2 = arith.constant 2 : index
    %c7_30 = arith.constant 7 : index
    %c0_31 = arith.constant 0 : index
    %23 = vector.load %arg6[%c2, %c7_30, %c0_31] : memref<10x24x128xbf16, #tpu.memory_space<vmem>>, vector<8x8x128xbf16>
    %24 = vector.shape_cast %23 : vector<8x8x128xbf16> to vector<64x128xbf16>
    %c0_32 = arith.constant 0 : index
    %c768 = arith.constant 768 : index
    %25 = vector.load %arg7[%c0_32, %c768] : memref<64x1152xbf16, #tpu.memory_space<vmem>>, vector<64x128xbf16>
    tpu.vector_store %arg7[%c0_32, %c768], %24 {strides = array<i32>} : memref<64x1152xbf16, #tpu.memory_space<vmem>>, vector<64x128xbf16>,
    %c2_33 = arith.constant 2 : index
    %c8_34 = arith.constant 8 : index
    %c0_35 = arith.constant 0 : index
    %26 = vector.load %arg6[%c2_33, %c8_34, %c0_35] : memref<10x24x128xbf16, #tpu.memory_space<vmem>>, vector<8x8x128xbf16>
    %27 = vector.shape_cast %26 : vector<8x8x128xbf16> to vector<64x128xbf16>
    %c0_36 = arith.constant 0 : index
    %c896 = arith.constant 896 : index
    %28 = vector.load %arg7[%c0_36, %c896] : memref<64x1152xbf16, #tpu.memory_space<vmem>>, vector<64x128xbf16>
    tpu.vector_store %arg7[%c0_36, %c896], %27 {strides = array<i32>} : memref<64x1152xbf16, #tpu.memory_space<vmem>>, vector<64x128xbf16>,
    %c2_37 = arith.constant 2 : index
    %c9_38 = arith.constant 9 : index
    %c0_39 = arith.constant 0 : index
    %29 = vector.load %arg6[%c2_37, %c9_38, %c0_39] : memref<10x24x128xbf16, #tpu.memory_space<vmem>>, vector<8x8x128xbf16>
    %30 = vector.shape_cast %29 : vector<8x8x128xbf16> to vector<64x128xbf16>
    %c0_40 = arith.constant 0 : index
    %c1024 = arith.constant 1024 : index
    %31 = vector.load %arg7[%c0_40, %c1024] : memref<64x1152xbf16, #tpu.memory_space<vmem>>, vector<64x128xbf16>
    tpu.vector_store %arg7[%c0_40, %c1024], %30 {strides = array<i32>} : memref<64x1152xbf16, #tpu.memory_space<vmem>>, vector<64x128xbf16>,
    %c0_41 = arith.constant 0 : index
    %c0_42 = arith.constant 0 : index
    %32 = vector.load %arg7[%c0_41, %c0_42] : memref<64x1152xbf16, #tpu.memory_space<vmem>>, vector<64x1152xbf16>
    %c0_43 = arith.constant 0 : index
    %c0_44 = arith.constant 0 : index
    %33 = vector.load %arg2[%c0_43, %c0_44] : memref<1152x128xbf16, #tpu.memory_space<vmem>>, vector<1152x128xbf16>
    %cst_45 = arith.constant dense<0.000000e+00> : vector<64x128xf32>
    %34 = tpu.matmul %32, %33, %cst_45 {dimension_numbers = #tpu.dot_dimension_numbers<[1], [0], [0], [1], [0, 0, 1, 1], [], []>} : vector<64x1152xbf16>, vector<1152x128xbf16>, vector<64x128xf32> -> vector<64x128xf32>
    %c0_46 = arith.constant 0 : index
    %c0_47 = arith.constant 0 : index
    %35 = vector.load %arg3[%c0_46, %c0_47] : memref<1x128xf32, #tpu.memory_space<vmem>>, vector<1x128xf32>
    %36 = vector.broadcast %35 : vector<1x128xf32> to vector<64x128xf32>
    %37 = arith.mulf %34, %36 : vector<64x128xf32>
    %c0_48 = arith.constant 0 : index
    %c0_49 = arith.constant 0 : index
    %38 = vector.load %arg4[%c0_48, %c0_49] : memref<1x128xf32, #tpu.memory_space<vmem>>, vector<1x128xf32>
    %39 = vector.broadcast %38 : vector<1x128xf32> to vector<64x128xf32>
    %40 = arith.addf %37, %39 : vector<64x128xf32>
    %cst_50 = arith.constant 0.000000e+00 : f32
    %41 = vector.broadcast %cst_50 : f32 to vector<64x128xf32>
    %42 = arith.maximumf %40, %41 : vector<64x128xf32>
    %43 = vector.shape_cast %42 : vector<64x128xf32> to vector<8x8x128xf32>
    %44 = arith.truncf %43 : vector<8x8x128xf32> to vector<8x8x128xbf16>
    %c0_51 = arith.constant 0 : index
    %c0_52 = arith.constant 0 : index
    %c0_53 = arith.constant 0 : index
    %c0_54 = arith.constant 0 : index
    %45 = vector.load %arg5[%c0_51, %c0_52, %c0_53, %c0_54] : memref<1x8x8x128xbf16, #tpu.memory_space<vmem>>, vector<1x8x8x128xbf16>
    %46 = vector.shape_cast %45 : vector<1x8x8x128xbf16> to vector<8x8x128xbf16>
    %47 = vector.shape_cast %44 : vector<8x8x128xbf16> to vector<1x8x8x128xbf16>
    tpu.vector_store %arg5[%c0_51, %c0_52, %c0_53, %c0_54], %47 {strides = array<i32>} : memref<1x8x8x128xbf16, #tpu.memory_space<vmem>>, vector<1x8x8x128xbf16>,
    return
  }
  func.func @transform_0(%arg0: i32) -> (i32, i32, i32, i32) {
    %c0_i32 = arith.constant 0 : i32
    %c0_i32_0 = arith.constant 0 : i32
    %c0_i32_1 = arith.constant 0 : i32
    %c0_i32_2 = arith.constant 0 : i32
    return %arg0, %c0_i32, %c0_i32_0, %c0_i32_1 : i32, i32, i32, i32
  }
  func.func @transform_1(%arg0: i32) -> (i32, i32) {
    %c0_i32 = arith.constant 0 : i32
    %c0_i32_0 = arith.constant 0 : i32
    %c0_i32_1 = arith.constant 0 : i32
    return %c0_i32, %c0_i32_0 : i32, i32
  }
  func.func @transform_2(%arg0: i32) -> (i32, i32) {
    %c0_i32 = arith.constant 0 : i32
    %c0_i32_0 = arith.constant 0 : i32
    %c0_i32_1 = arith.constant 0 : i32
    return %c0_i32, %c0_i32_0 : i32, i32
  }
  func.func @transform_3(%arg0: i32) -> (i32, i32) {
    %c0_i32 = arith.constant 0 : i32
    %c0_i32_0 = arith.constant 0 : i32
    %c0_i32_1 = arith.constant 0 : i32
    return %c0_i32, %c0_i32_0 : i32, i32
  }
  func.func @transform_4(%arg0: i32) -> (i32, i32, i32, i32) {
    %c0_i32 = arith.constant 0 : i32
    %c0_i32_0 = arith.constant 0 : i32
    %c0_i32_1 = arith.constant 0 : i32
    %c0_i32_2 = arith.constant 0 : i32
    return %arg0, %c0_i32, %c0_i32_0, %c0_i32_1 : i32, i32, i32, i32
  }
}

module attributes {stable_mosaic.version = 11 : i64} {
  func.func @_fused_conv_kernel(%arg0: i32, %arg1: memref<1x8x8x128xbf16, #tpu.memory_space<vmem>>, %arg2: memref<1152x128xbf16, #tpu.memory_space<vmem>>, %arg3: memref<1x128xf32, #tpu.memory_space<vmem>>, %arg4: memref<1x128xf32, #tpu.memory_space<vmem>>, %arg5: memref<1x8x8x128xbf16, #tpu.memory_space<vmem>>, %arg6: memref<128x128xbf16, #tpu.memory_space<vmem>>, %arg7: memref<1x128xf32, #tpu.memory_space<vmem>>, %arg8: memref<1x1x128xf32, #tpu.memory_space<vmem>>, %arg9: memref<1x1x128xf32, #tpu.memory_space<vmem>>, %arg10: memref<10x24x128xbf16, #tpu.memory_space<vmem>>, %arg11: memref<64x1152xbf16, #tpu.memory_space<vmem>>) attributes {dimension_semantics = [#tpu.dimension_semantics<parallel>], iteration_bounds = array<i64: 2>, scalar_prefetch = 0 : i64, scratch_operands = 2 : i64, tpu.core_type = #tpu.core_type<tc>, window_params = [{transform_indices = @transform_0, window_bounds = array<i64: 1, 8, 8, 128>}, {pipeline_mode = #tpu.pipeline_mode<synchronous>, transform_indices = @transform_1, window_bounds = array<i64: 1152, 128>}, {pipeline_mode = #tpu.pipeline_mode<synchronous>, transform_indices = @transform_2, window_bounds = array<i64: 1, 128>}, {pipeline_mode = #tpu.pipeline_mode<synchronous>, transform_indices = @transform_3, window_bounds = array<i64: 1, 128>}, {transform_indices = @transform_4, window_bounds = array<i64: 1, 8, 8, 128>}, {pipeline_mode = #tpu.pipeline_mode<synchronous>, transform_indices = @transform_5, window_bounds = array<i64: 128, 128>}, {pipeline_mode = #tpu.pipeline_mode<synchronous>, transform_indices = @transform_6, window_bounds = array<i64: 1, 128>}, {transform_indices = @transform_7, window_bounds = array<i64: 1, 1, 128>}, {transform_indices = @transform_8, window_bounds = array<i64: 1, 1, 128>}]} {
    %cst = arith.constant 0.000000e+00 : bf16
    %0 = vector.broadcast %cst : bf16 to vector<10x24x128xbf16>
    %c0 = arith.constant 0 : index
    %c0_0 = arith.constant 0 : index
    %c0_1 = arith.constant 0 : index
    %1 = vector.load %arg10[%c0, %c0_0, %c0_1] : memref<10x24x128xbf16, #tpu.memory_space<vmem>>, vector<10x24x128xbf16>
    tpu.vector_store %arg10[%c0, %c0_0, %c0_1], %0 {strides = array<i32>} : memref<10x24x128xbf16, #tpu.memory_space<vmem>>, vector<10x24x128xbf16>,
    %c0_2 = arith.constant 0 : index
    %c0_3 = arith.constant 0 : index
    %c0_4 = arith.constant 0 : index
    %c0_5 = arith.constant 0 : index
    %2 = vector.load %arg1[%c0_2, %c0_3, %c0_4, %c0_5] : memref<1x8x8x128xbf16, #tpu.memory_space<vmem>>, vector<1x8x8x128xbf16>
    %3 = vector.shape_cast %2 : vector<1x8x8x128xbf16> to vector<8x8x128xbf16>
    %c1 = arith.constant 1 : index
    %c8 = arith.constant 8 : index
    %c0_6 = arith.constant 0 : index
    %4 = vector.load %arg10[%c1, %c8, %c0_6] : memref<10x24x128xbf16, #tpu.memory_space<vmem>>, vector<8x8x128xbf16>
    tpu.vector_store %arg10[%c1, %c8, %c0_6], %3 {strides = array<i32>} : memref<10x24x128xbf16, #tpu.memory_space<vmem>>, vector<8x8x128xbf16>,
    %c0_7 = arith.constant 0 : index
    %c7 = arith.constant 7 : index
    %c0_8 = arith.constant 0 : index
    %5 = vector.load %arg10[%c0_7, %c7, %c0_8] : memref<10x24x128xbf16, #tpu.memory_space<vmem>>, vector<8x8x128xbf16>
    %6 = vector.shape_cast %5 : vector<8x8x128xbf16> to vector<64x128xbf16>
    %c0_9 = arith.constant 0 : index
    %c0_10 = arith.constant 0 : index
    %7 = vector.load %arg11[%c0_9, %c0_10] : memref<64x1152xbf16, #tpu.memory_space<vmem>>, vector<64x128xbf16>
    tpu.vector_store %arg11[%c0_9, %c0_10], %6 {strides = array<i32>} : memref<64x1152xbf16, #tpu.memory_space<vmem>>, vector<64x128xbf16>,
    %c0_11 = arith.constant 0 : index
    %c8_12 = arith.constant 8 : index
    %c0_13 = arith.constant 0 : index
    %8 = vector.load %arg10[%c0_11, %c8_12, %c0_13] : memref<10x24x128xbf16, #tpu.memory_space<vmem>>, vector<8x8x128xbf16>
    %9 = vector.shape_cast %8 : vector<8x8x128xbf16> to vector<64x128xbf16>
    %c0_14 = arith.constant 0 : index
    %c128 = arith.constant 128 : index
    %10 = vector.load %arg11[%c0_14, %c128] : memref<64x1152xbf16, #tpu.memory_space<vmem>>, vector<64x128xbf16>
    tpu.vector_store %arg11[%c0_14, %c128], %9 {strides = array<i32>} : memref<64x1152xbf16, #tpu.memory_space<vmem>>, vector<64x128xbf16>,
    %c0_15 = arith.constant 0 : index
    %c9 = arith.constant 9 : index
    %c0_16 = arith.constant 0 : index
    %11 = vector.load %arg10[%c0_15, %c9, %c0_16] : memref<10x24x128xbf16, #tpu.memory_space<vmem>>, vector<8x8x128xbf16>
    %12 = vector.shape_cast %11 : vector<8x8x128xbf16> to vector<64x128xbf16>
    %c0_17 = arith.constant 0 : index
    %c256 = arith.constant 256 : index
    %13 = vector.load %arg11[%c0_17, %c256] : memref<64x1152xbf16, #tpu.memory_space<vmem>>, vector<64x128xbf16>
    tpu.vector_store %arg11[%c0_17, %c256], %12 {strides = array<i32>} : memref<64x1152xbf16, #tpu.memory_space<vmem>>, vector<64x128xbf16>,
    %c1_18 = arith.constant 1 : index
    %c7_19 = arith.constant 7 : index
    %c0_20 = arith.constant 0 : index
    %14 = vector.load %arg10[%c1_18, %c7_19, %c0_20] : memref<10x24x128xbf16, #tpu.memory_space<vmem>>, vector<8x8x128xbf16>
    %15 = vector.shape_cast %14 : vector<8x8x128xbf16> to vector<64x128xbf16>
    %c0_21 = arith.constant 0 : index
    %c384 = arith.constant 384 : index
    %16 = vector.load %arg11[%c0_21, %c384] : memref<64x1152xbf16, #tpu.memory_space<vmem>>, vector<64x128xbf16>
    tpu.vector_store %arg11[%c0_21, %c384], %15 {strides = array<i32>} : memref<64x1152xbf16, #tpu.memory_space<vmem>>, vector<64x128xbf16>,
    %c1_22 = arith.constant 1 : index
    %c8_23 = arith.constant 8 : index
    %c0_24 = arith.constant 0 : index
    %17 = vector.load %arg10[%c1_22, %c8_23, %c0_24] : memref<10x24x128xbf16, #tpu.memory_space<vmem>>, vector<8x8x128xbf16>
    %18 = vector.shape_cast %17 : vector<8x8x128xbf16> to vector<64x128xbf16>
    %c0_25 = arith.constant 0 : index
    %c512 = arith.constant 512 : index
    %19 = vector.load %arg11[%c0_25, %c512] : memref<64x1152xbf16, #tpu.memory_space<vmem>>, vector<64x128xbf16>
    tpu.vector_store %arg11[%c0_25, %c512], %18 {strides = array<i32>} : memref<64x1152xbf16, #tpu.memory_space<vmem>>, vector<64x128xbf16>,
    %c1_26 = arith.constant 1 : index
    %c9_27 = arith.constant 9 : index
    %c0_28 = arith.constant 0 : index
    %20 = vector.load %arg10[%c1_26, %c9_27, %c0_28] : memref<10x24x128xbf16, #tpu.memory_space<vmem>>, vector<8x8x128xbf16>
    %21 = vector.shape_cast %20 : vector<8x8x128xbf16> to vector<64x128xbf16>
    %c0_29 = arith.constant 0 : index
    %c640 = arith.constant 640 : index
    %22 = vector.load %arg11[%c0_29, %c640] : memref<64x1152xbf16, #tpu.memory_space<vmem>>, vector<64x128xbf16>
    tpu.vector_store %arg11[%c0_29, %c640], %21 {strides = array<i32>} : memref<64x1152xbf16, #tpu.memory_space<vmem>>, vector<64x128xbf16>,
    %c2 = arith.constant 2 : index
    %c7_30 = arith.constant 7 : index
    %c0_31 = arith.constant 0 : index
    %23 = vector.load %arg10[%c2, %c7_30, %c0_31] : memref<10x24x128xbf16, #tpu.memory_space<vmem>>, vector<8x8x128xbf16>
    %24 = vector.shape_cast %23 : vector<8x8x128xbf16> to vector<64x128xbf16>
    %c0_32 = arith.constant 0 : index
    %c768 = arith.constant 768 : index
    %25 = vector.load %arg11[%c0_32, %c768] : memref<64x1152xbf16, #tpu.memory_space<vmem>>, vector<64x128xbf16>
    tpu.vector_store %arg11[%c0_32, %c768], %24 {strides = array<i32>} : memref<64x1152xbf16, #tpu.memory_space<vmem>>, vector<64x128xbf16>,
    %c2_33 = arith.constant 2 : index
    %c8_34 = arith.constant 8 : index
    %c0_35 = arith.constant 0 : index
    %26 = vector.load %arg10[%c2_33, %c8_34, %c0_35] : memref<10x24x128xbf16, #tpu.memory_space<vmem>>, vector<8x8x128xbf16>
    %27 = vector.shape_cast %26 : vector<8x8x128xbf16> to vector<64x128xbf16>
    %c0_36 = arith.constant 0 : index
    %c896 = arith.constant 896 : index
    %28 = vector.load %arg11[%c0_36, %c896] : memref<64x1152xbf16, #tpu.memory_space<vmem>>, vector<64x128xbf16>
    tpu.vector_store %arg11[%c0_36, %c896], %27 {strides = array<i32>} : memref<64x1152xbf16, #tpu.memory_space<vmem>>, vector<64x128xbf16>,
    %c2_37 = arith.constant 2 : index
    %c9_38 = arith.constant 9 : index
    %c0_39 = arith.constant 0 : index
    %29 = vector.load %arg10[%c2_37, %c9_38, %c0_39] : memref<10x24x128xbf16, #tpu.memory_space<vmem>>, vector<8x8x128xbf16>
    %30 = vector.shape_cast %29 : vector<8x8x128xbf16> to vector<64x128xbf16>
    %c0_40 = arith.constant 0 : index
    %c1024 = arith.constant 1024 : index
    %31 = vector.load %arg11[%c0_40, %c1024] : memref<64x1152xbf16, #tpu.memory_space<vmem>>, vector<64x128xbf16>
    tpu.vector_store %arg11[%c0_40, %c1024], %30 {strides = array<i32>} : memref<64x1152xbf16, #tpu.memory_space<vmem>>, vector<64x128xbf16>,
    %c0_41 = arith.constant 0 : index
    %c0_42 = arith.constant 0 : index
    %32 = vector.load %arg11[%c0_41, %c0_42] : memref<64x1152xbf16, #tpu.memory_space<vmem>>, vector<64x1152xbf16>
    %c0_43 = arith.constant 0 : index
    %c0_44 = arith.constant 0 : index
    %33 = vector.load %arg2[%c0_43, %c0_44] : memref<1152x128xbf16, #tpu.memory_space<vmem>>, vector<1152x128xbf16>
    %cst_45 = arith.constant dense<0.000000e+00> : vector<64x128xf32>
    %34 = tpu.matmul %32, %33, %cst_45 {dimension_numbers = #tpu.dot_dimension_numbers<[1], [0], [0], [1], [0, 0, 1, 1], [], []>} : vector<64x1152xbf16>, vector<1152x128xbf16>, vector<64x128xf32> -> vector<64x128xf32>
    %c0_46 = arith.constant 0 : index
    %c0_47 = arith.constant 0 : index
    %35 = vector.load %arg3[%c0_46, %c0_47] : memref<1x128xf32, #tpu.memory_space<vmem>>, vector<1x128xf32>
    %36 = vector.broadcast %35 : vector<1x128xf32> to vector<64x128xf32>
    %37 = arith.mulf %34, %36 : vector<64x128xf32>
    %c0_48 = arith.constant 0 : index
    %c0_49 = arith.constant 0 : index
    %38 = vector.load %arg4[%c0_48, %c0_49] : memref<1x128xf32, #tpu.memory_space<vmem>>, vector<1x128xf32>
    %39 = vector.broadcast %38 : vector<1x128xf32> to vector<64x128xf32>
    %40 = arith.addf %37, %39 : vector<64x128xf32>
    %c0_50 = arith.constant 0 : index
    %c0_51 = arith.constant 0 : index
    %c0_52 = arith.constant 0 : index
    %c0_53 = arith.constant 0 : index
    %41 = vector.load %arg5[%c0_50, %c0_51, %c0_52, %c0_53] : memref<1x8x8x128xbf16, #tpu.memory_space<vmem>>, vector<1x8x8x128xbf16>
    %42 = vector.shape_cast %41 : vector<1x8x8x128xbf16> to vector<8x8x128xbf16>
    %43 = vector.shape_cast %42 : vector<8x8x128xbf16> to vector<64x128xbf16>
    %44 = arith.extf %43 : vector<64x128xbf16> to vector<64x128xf32>
    %45 = arith.addf %40, %44 : vector<64x128xf32>
    %cst_54 = arith.constant 0.000000e+00 : f32
    %46 = vector.broadcast %cst_54 : f32 to vector<64x128xf32>
    %47 = arith.maximumf %45, %46 : vector<64x128xf32>
    %cst_55 = arith.constant dense<0.000000e+00> : vector<128xf32>
    %48 = vector.multi_reduction <add>, %47, %cst_55 [0] : vector<64x128xf32> to vector<128xf32>
    %49 = vector.shape_cast %48 : vector<128xf32> to vector<1x128xf32>
    %cst_56 = arith.constant 6.400000e+01 : f32
    %50 = vector.broadcast %cst_56 : f32 to vector<1x128xf32>
    %51 = arith.divf %49, %50 : vector<1x128xf32>
    %c0_57 = arith.constant 0 : index
    %c0_58 = arith.constant 0 : index
    %c0_59 = arith.constant 0 : index
    %52 = vector.load %arg8[%c0_57, %c0_58, %c0_59] : memref<1x1x128xf32, #tpu.memory_space<vmem>>, vector<1x1x128xf32>
    %53 = vector.shape_cast %52 : vector<1x1x128xf32> to vector<1x128xf32>
    %54 = vector.shape_cast %51 : vector<1x128xf32> to vector<1x1x128xf32>
    tpu.vector_store %arg8[%c0_57, %c0_58, %c0_59], %54 {strides = array<i32>} : memref<1x1x128xf32, #tpu.memory_space<vmem>>, vector<1x1x128xf32>,
    %cst_60 = arith.constant 0.000000e+00 : f32
    %55 = vector.broadcast %cst_60 : f32 to vector<1x128xf32>
    %56 = arith.maximumf %51, %55 : vector<1x128xf32>
    %57 = arith.truncf %56 : vector<1x128xf32> to vector<1x128xbf16>
    %c0_61 = arith.constant 0 : index
    %c0_62 = arith.constant 0 : index
    %58 = vector.load %arg6[%c0_61, %c0_62] : memref<128x128xbf16, #tpu.memory_space<vmem>>, vector<128x128xbf16>
    %cst_63 = arith.constant dense<0.000000e+00> : vector<1x128xf32>
    %59 = tpu.matmul %57, %58, %cst_63 {dimension_numbers = #tpu.dot_dimension_numbers<[1], [0], [0], [1], [0, 0, 1, 1], [], []>} : vector<1x128xbf16>, vector<128x128xbf16>, vector<1x128xf32> -> vector<1x128xf32>
    %c0_64 = arith.constant 0 : index
    %c0_65 = arith.constant 0 : index
    %60 = vector.load %arg7[%c0_64, %c0_65] : memref<1x128xf32, #tpu.memory_space<vmem>>, vector<1x128xf32>
    %61 = arith.addf %59, %60 : vector<1x128xf32>
    %c0_66 = arith.constant 0 : index
    %c0_67 = arith.constant 0 : index
    %c0_68 = arith.constant 0 : index
    %62 = vector.load %arg9[%c0_66, %c0_67, %c0_68] : memref<1x1x128xf32, #tpu.memory_space<vmem>>, vector<1x1x128xf32>
    %63 = vector.shape_cast %62 : vector<1x1x128xf32> to vector<1x128xf32>
    %64 = vector.shape_cast %61 : vector<1x128xf32> to vector<1x1x128xf32>
    tpu.vector_store %arg9[%c0_66, %c0_67, %c0_68], %64 {strides = array<i32>} : memref<1x1x128xf32, #tpu.memory_space<vmem>>, vector<1x1x128xf32>,
    return
  }
  func.func @transform_0(%arg0: i32) -> (i32, i32, i32, i32) {
    %c0_i32 = arith.constant 0 : i32
    %c0_i32_0 = arith.constant 0 : i32
    %c0_i32_1 = arith.constant 0 : i32
    %c0_i32_2 = arith.constant 0 : i32
    return %arg0, %c0_i32, %c0_i32_0, %c0_i32_1 : i32, i32, i32, i32
  }
  func.func @transform_1(%arg0: i32) -> (i32, i32) {
    %c0_i32 = arith.constant 0 : i32
    %c0_i32_0 = arith.constant 0 : i32
    %c0_i32_1 = arith.constant 0 : i32
    return %c0_i32, %c0_i32_0 : i32, i32
  }
  func.func @transform_2(%arg0: i32) -> (i32, i32) {
    %c0_i32 = arith.constant 0 : i32
    %c0_i32_0 = arith.constant 0 : i32
    %c0_i32_1 = arith.constant 0 : i32
    return %c0_i32, %c0_i32_0 : i32, i32
  }
  func.func @transform_3(%arg0: i32) -> (i32, i32) {
    %c0_i32 = arith.constant 0 : i32
    %c0_i32_0 = arith.constant 0 : i32
    %c0_i32_1 = arith.constant 0 : i32
    return %c0_i32, %c0_i32_0 : i32, i32
  }
  func.func @transform_4(%arg0: i32) -> (i32, i32, i32, i32) {
    %c0_i32 = arith.constant 0 : i32
    %c0_i32_0 = arith.constant 0 : i32
    %c0_i32_1 = arith.constant 0 : i32
    %c0_i32_2 = arith.constant 0 : i32
    return %arg0, %c0_i32, %c0_i32_0, %c0_i32_1 : i32, i32, i32, i32
  }
  func.func @transform_5(%arg0: i32) -> (i32, i32) {
    %c0_i32 = arith.constant 0 : i32
    %c0_i32_0 = arith.constant 0 : i32
    %c0_i32_1 = arith.constant 0 : i32
    return %c0_i32, %c0_i32_0 : i32, i32
  }
  func.func @transform_6(%arg0: i32) -> (i32, i32) {
    %c0_i32 = arith.constant 0 : i32
    %c0_i32_0 = arith.constant 0 : i32
    %c0_i32_1 = arith.constant 0 : i32
    return %c0_i32, %c0_i32_0 : i32, i32
  }
  func.func @transform_7(%arg0: i32) -> (i32, i32, i32) {
    %c0_i32 = arith.constant 0 : i32
    %c0_i32_0 = arith.constant 0 : i32
    %c0_i32_1 = arith.constant 0 : i32
    return %arg0, %c0_i32, %c0_i32_0 : i32, i32, i32
  }
  func.func @transform_8(%arg0: i32) -> (i32, i32, i32) {
    %c0_i32 = arith.constant 0 : i32
    %c0_i32_0 = arith.constant 0 : i32
    %c0_i32_1 = arith.constant 0 : i32
    return %arg0, %c0_i32, %c0_i32_0 : i32, i32, i32
  }
}

</mosaic_0001>

<bundles_post_ra>
// kernel: resnet_classifier_forward.4
= control target key start
LH: loop header
LB: loop body
LE: loop exit
PB: predicated region body
PF: predicated region fallthrough
CT: control target
= control target key end

     0   :  { %9 = vsyncpa [#allocation5], 0  ;;  %s3047_s15 = smov 0   ;;  %s3329_s0 = inlined_call_operand.vmem [shape: bf16[2,8,8,128], index: 0, kind: input, shape index: {}]   ;;  %s3330_s1 = inlined_call_operand.hbm [shape: bf16[1152,128], index: 1, kind: input, shape index: {}]   ;;  %s3331_s2 = inlined_call_operand.vmem [shape: f32[1,128], index: 2, kind: input, shape index: {}]   ;;  %s3332_s3 = inlined_call_operand.vmem [shape: f32[1,128], index: 3, kind: input, shape index: {}]   ;;  %s3333_s4 = inlined_call_operand.vmem [shape: bf16[2,8,8,128], index: 4, kind: output, shape index: {}]  }
   0x1 LB: > { %s146_s18 = sshll.u32 %s3330_s1, 4  ;;  %s2334_s19 = sadd.s32 4294967295, %s3016_s15   ;;  %s3016_s15 = sphi %s3047_s15, %s15_s15   ;;  %s147_s18 = int_to_ptr.hbm [resolvable:$true] %s146_s18 }
   0x2   : > { %p2336_p0 = scmp.ge.s32.totalorder %s3016_s15, 1  ;;  %p135_p1 = scmp.lt.s32.totalorder %s3016_s15, 3 }
   0x3   : > { %p2960_p2 = scmp.eq.s32.totalorder %s2334_s19, 0  ;;  %s3018_s20 = smov [#allocation4]  }
   0x4   : > { %p136_p3 = pnand %p2336_p0, %p135_p1  ;;  %s148_s21 = sshll.u32 %s3018_s20, 4  ;;  %s149_s21 = int_to_ptr.vmem [resolvable:$true] %s148_s21 }
   0x5   : > { %s3019_s22 = smov 64   ;;  %s3020_s23 = smov 4  }
   0x6   : > { %p2956_p4 = pneg %p136_p3  ;;  %178 = sbr.rel (%p136_p3) target bundleno = 356 (0x164), region = 36 }
   0x8   : > { %p2957_p5 = pnand %p2960_p2, %p2956_p4 }
   0xa   : > { %2959 = dma.hbm_to_vmem [thread:$0]  (!%p2957_p5), %s147_s18, 9216, %s149_s21, [#allocation5], %s3019_s22, %s3019_s22, %s3020_s23  }
   0xb   : > { %3011 = dma.done.wait (%p2960_p2), [#allocation5], 9216  }
   0xc   : > { %3013 = vsyncadd (%p2960_p2), [#allocation5], 4294958080  ;;  %p205_p6 = scmp.lt.s32.totalorder %s2334_s19, 1  ;;  %v3021_v0 = vmov 0   ;;  %v2848_v1 = vld [vmem:[#allocation4 + $0x38] sm:$0xff]  ;;  %v2847_v3 = vld [vmem:[#allocation4 + $0x30] sm:$0xff] }
   0xd   : > { %228 = vst [vmem:[#allocation2 + $0x30] sm:$0xf] %v3021_v0  ;;  %v2864_v2 = vld [vmem:[#allocation4 + $0xb8] sm:$0xff]  ;;  %2936 = vmatpush.bf16.msra.mxu1 %v2848_v1  ;;  %1958 = vmatpush.bf16.msra.mxu0 %v2848_v1  ;;  %v2863_v4 = vld [vmem:[#allocation4 + $0xb0] sm:$0xff]  ;;  %v2846_v6 = vld [vmem:[#allocation4 + $0x28] sm:$0xff] }
   0xe   : > { %s3339_s19 = smov (!%p205_p6, %s2334_s19), 1  ;;  %229 = vst [vmem:[#allocation2 + $0x34] sm:$0xf] %v3021_v0  ;;  %2016 = vmatpush.bf16.msra.mxu2 %v2864_v2  ;;  %v2872_v5 = vld [vmem:[#allocation4 + $0xf8] sm:$0xff]  ;;  %v2871_v7 = vld [vmem:[#allocation4 + $0xf0] sm:$0xff]  ;;  %v2862_v11 = vld [vmem:[#allocation4 + $0xa8] sm:$0xff] }
   0xf   : > { %231 = vst [vmem:[#allocation2 + $0x3c] sm:$0xf] %v3021_v0  ;;  %s2803_s24 = sshll.u32 %s3339_s19, 5  ;;  %2045 = vmatpush.bf16.msra.mxu3 %v2872_v5  ;;  %vm279_vm0 = vsmask.f32 256  ;;  %v2870_v13 = vld [vmem:[#allocation4 + $0xe8] sm:$0xff] }
  0x10   : > { %232 = vst [vmem:[#allocation2 + $0x40] sm:$0xf] %v3021_v0  ;;  %s3074_s27 = scalar_lea.vmem %s3329_s0, %s2803_s24  ;;  %v2845_v15 = vld [vmem:[#allocation4 + $0x20] sm:$0xff]  ;;  %vm280_vm1 = vsmask.f32 4368  ;;  %v2844_v18 = vld [vmem:[#allocation4 + $0x18] sm:$0xff]  ;;  %s3300_s8 = scalar_lea.vmem %s3333_s4, %s2803_s24 }
  0x11   : > { %216 = vst [vmem:[#allocation2] sm:$0xf] %v3021_v0  ;;  %v249_v8 = vld [vmem:[%s3074_s27 + $0xc] sm:$0xf]  ;;  %2937 = vmatpush.bf16.msra.mxu1 %v2847_v3  ;;  %1959 = vmatpush.bf16.msra.mxu0 %v2847_v3  ;;  %v250_v9 = vld [vmem:[%s3074_s27 + $0x10] sm:$0xf]  ;;  %vm3096_vm2 = vmor %vm279_vm0, %vm280_vm1 }
  0x12   : > { %217 = vst [vmem:[#allocation2 + $0x4] sm:$0xf] %v3021_v0  ;;  %2017 = vmatpush.bf16.msra.mxu2 %v2863_v4  ;;  %v2861_v16 = vld [vmem:[#allocation4 + $0xa0] sm:$0xff]  ;;  %v2860_v23 = vld [vmem:[#allocation4 + $0x98] sm:$0xff]  ;;  %v2843_v39 = vld [vmem:[#allocation4 + $0x10] sm:$0xff] }
  0x13   : > { %218 = vst [vmem:[#allocation2 + $0x8] sm:$0xf] %v3021_v0  ;;  %2046 = vmatpush.bf16.msra.mxu3 %v2871_v7  ;;  %v2869_v21 = vld [vmem:[#allocation4 + $0xe0] sm:$0xff]  ;;  %v2859_v44 = vld [vmem:[#allocation4 + $0x90] sm:$0xff]  ;;  %v2868_v49 = vld [vmem:[#allocation4 + $0xd8] sm:$0xff] }
  0x14   : > { %219 = vst [vmem:[#allocation2 + $0xc] sm:$0xf] %v3021_v0  ;;  %v271_v10 = vld [vmem:[#allocation2 + $0x30] sm:$0x8]  ;;  %vm434_vm3 = vsmask.f32 3328 }
  0x15   : > { %220 = vst [vmem:[#allocation2 + $0x10] sm:$0xf] %v3021_v0  ;;  %v335_v12 = vshrl.u32 %v271_v10, 16  ;;  %2938 = vmatpush.bf16.msra.mxu1 %v2846_v6  ;;  %1960 = vmatpush.bf16.msra.mxu0 %v2846_v6  ;;  %vm435_vm4 = vsmask.f32 7440  ;;  %v2842_v54 = vld [vmem:[#allocation4 + $0x8] sm:$0xff] }
  0x16   : > { %221 = vst [vmem:[#allocation2 + $0x14] sm:$0xf] %v3021_v0  ;;  %v273_v14 = vld [vmem:[#allocation2 + $0x3c] sm:$0x8]  ;;  %2018 = vmatpush.bf16.msra.mxu2 %v2862_v11  ;;  %v2858_v55 = vld [vmem:[#allocation4 + $0x88] sm:$0xff]  ;;  %v2867_v61 = vld [vmem:[#allocation4 + $0xd0] sm:$0xff] }
  0x17   : > { %222 = vst [vmem:[#allocation2 + $0x18] sm:$0xf] %v3021_v0  ;;  %v2349_v19 = vrot.slane %v335_v12, 11  ;;  %v348_v20 = vshrl.u32 %v273_v14, 16  ;;  %2047 = vmatpush.bf16.msra.mxu3 %v2870_v13  ;;  %v2841_v62 = vld [vmem:[#allocation4] sm:$0xff]  ;;  %vm3113_vm5 = vmor %vm434_vm3, %vm435_vm4  ;;  %v2856_v3 = vld [vmem:[#allocation4 + $0x78] sm:$0xff] }
  0x18   : > { %223 = vst [vmem:[#allocation2 + $0x1c] sm:$0xf] %v3021_v0  ;;  %v263_v31 = vld [vmem:[#allocation2] sm:$0x8]  ;;  %v2857_v4 = vld [vmem:[#allocation4 + $0x80] sm:$0xff] }
  0x19   : > { %258 = vst [vmem:[#allocation2 + $0x34] sm:$0xf] %v249_v8  ;;  %v3086_v17 = vld [vmem:[#allocation2 + $0x4] sm:$0xf]  ;;  %2939 = vmatpush.bf16.msra.mxu1 %v2845_v15  ;;  %1961 = vmatpush.bf16.msra.mxu0 %v2845_v15  ;;  %v2350_v33 = vrot.slane %v348_v20, 11  ;;  %v283_v41 = vshrl.u32 %v263_v31, 16 }
  0x1a   : > { %259 = vst [vmem:[#allocation2 + $0x40] sm:$0xf] %v250_v9  ;;  %v288_v22 = vshrl.u32 %v3086_v17, 16  ;;  %v418_v25 = vld [vmem:[#allocation2 + $0x4] sm:$0xf]  ;;  %2019 = vmatpush.bf16.msra.mxu2 %v2861_v16  ;;  %v291_v43 = vshll.u32 %v3086_v17, 16 }
  0x1b   : > { %224 = vst [vmem:[#allocation2 + $0x20] sm:$0xf] %v3021_v0  ;;  %v265_v34 = vld [vmem:[#allocation2 + $0xc] sm:$0x8]  ;;  %2048 = vmatpush.bf16.msra.mxu3 %v2869_v21  ;;  %v419_v37 = vld [vmem:[#allocation2 + $0x8] sm:$0x1] }
  0x1c   : > { %225 = vst [vmem:[#allocation2 + $0x24] sm:$0xf] %v3021_v0  ;;  %v438_v38 = vshrl.u32 %v418_v25, 16  ;;  %v290_v42 = vrot.slane %v288_v22, 7  ;;  %v441_v47 = vshll.u32 %v418_v25, 16  ;;  %v447_v50 = vshll.u32 %v419_v37, 16 }
  0x1d   : > { %226 = vst [vmem:[#allocation2 + $0x28] sm:$0xf] %v3021_v0  ;;  %2940 = vmatpush.bf16.msra.mxu1 %v2844_v18  ;;  %1962 = vmatpush.bf16.msra.mxu0 %v2844_v18  ;;  %v296_v52 = vshrl.u32 %v265_v34, 16  ;;  %v2345_v56 = vrot.slane %v283_v41, 11  ;;  %v421_v58 = vld [vmem:[#allocation2 + $0x14] sm:$0x1] }
  0x1e   : > { %227 = vst [vmem:[#allocation2 + $0x2c] sm:$0xf] %v3021_v0  ;;  %2020 = vmatpush.bf16.msra.mxu2 %v2860_v23  ;;  %v440_v46 = vrot.slane %v438_v38, 4  ;;  %v443_v53 = vrot.slane %v441_v47, 5  ;;  %v293_v57 = vor.u32 %v291_v43, %v290_v42  ;;  %v449_v60 = vrot.slane %v447_v50, 5  ;;  %v2880_v9 = vld [vmem:[#allocation4 + $0x138] sm:$0xff] }
  0x1f   : > { %230 = vst [vmem:[#allocation2 + $0x38] sm:$0xf] %v3021_v0  ;;  %2049 = vmatpush.bf16.msra.mxu3 %v2868_v49  ;;  %v246_v5 = vld [vmem:[%s3074_s27] sm:$0xf]  ;;  %v3119_v6 = vrot.slane %v296_v52, 11  ;;  %v461_v10 = vshll.u32 %v421_v58, 16 }
  0x20   : > { %v272_v24 = vld [vmem:[#allocation2 + $0x34] sm:$0xf]  ;;  %233 = vst [vmem:[#allocation2 + $0x44] sm:$0xf] %v3021_v0  ;;  %v444_v59 = vor.u32 %v443_v53, %v440_v46  ;;  %v294_v8 = vsel %vm3096_vm2, %v2345_v56, %v293_v57  ;;  %v2866_v13 = vld [vmem:[#allocation4 + $0xc8] sm:$0xff]  ;;  %v2855_v21 = vld [vmem:[#allocation4 + $0x70] sm:$0xff] }
  0x21   : > { %v274_v26 = vld [vmem:[#allocation2 + $0x40] sm:$0xf]  ;;  %v340_v27 = vshrl.u32 %v272_v24, 16  ;;  %v343_v28 = vshll.u32 %v272_v24, 16  ;;  %234 = vst [vmem:[#allocation2 + $0x48] sm:$0xf] %v3021_v0  ;;  %2941 = vmatpush.bf16.msra.mxu1 %v2843_v39  ;;  %1963 = vmatpush.bf16.msra.mxu0 %v2843_v39 }
  0x22   : > { %v353_v29 = vshrl.u32 %v274_v26, 16  ;;  %v356_v30 = vshll.u32 %v274_v26, 16  ;;  %235 = vst [vmem:[#allocation2 + $0x4c] sm:$0xf] %v3021_v0  ;;  %2021 = vmatpush.bf16.msra.mxu2 %v2859_v44  ;;  %v445_v7 = vrot.slane %v444_v59, 4  ;;  %v2896_v17 = vld [vmem:[#allocation4 + $0x1b8] sm:$0xff] }
  0x23   : > { %v342_v32 = vrot.slane %v340_v27, 7  ;;  %236 = vst [vmem:[#allocation2 + $0x50] sm:$0xf] %v3021_v0  ;;  %v251_v11 = vld [vmem:[%s3074_s27 + $0x14] sm:$0xf]  ;;  %2050 = vmatpush.bf16.msra.mxu3 %v2867_v61  ;;  %v3130_v23 = vrot.slane %v461_v10, 5 }
  0x24   : > { %v355_v36 = vrot.slane %v353_v29, 7  ;;  %237 = vst [vmem:[#allocation2 + $0x54] sm:$0xf] %v3021_v0  ;;  %v450_v12 = vsel %vm3113_vm5, %v445_v7, %v449_v60  ;;  %v252_v14 = vld [vmem:[%s3074_s27 + $0x18] sm:$0xf]  ;;  %v2854_v31 = vld [vmem:[#allocation4 + $0x68] sm:$0xff] }
  0x25   : > { %v345_v40 = vor.u32 %v343_v28, %v342_v32  ;;  %238 = vst [vmem:[#allocation2 + $0x58] sm:$0xf] %v3021_v0  ;;  %2942 = vmatpush.bf16.msra.mxu1 %v2842_v54  ;;  %1964 = vmatpush.bf16.msra.mxu0 %v2842_v54  ;;  %v267_v22 = vld [vmem:[#allocation2 + $0x18] sm:$0x8]  ;;  %v269_v24 = vld [vmem:[#allocation2 + $0x24] sm:$0x8] }
  0x26   : > { %v358_v45 = vor.u32 %v356_v30, %v355_v36  ;;  %239 = vst [vmem:[#allocation2 + $0x5c] sm:$0xf] %v3021_v0  ;;  %2022 = vmatpush.bf16.msra.mxu2 %v2858_v55  ;;  %v309_v25 = vshrl.u32 %v267_v22, 16  ;;  %v248_v26 = vld [vmem:[%s3074_s27 + $0x8] sm:$0xf]  ;;  %v2865_v29 = vld [vmem:[#allocation4 + $0xc0] sm:$0xff] }
  0x27   : > { %v346_v48 = vsel %vm3096_vm2, %v2349_v19, %v345_v40  ;;  %240 = vst [vmem:[#allocation2 + $0x60] sm:$0xf] %v3021_v0  ;;  %v247_v19 = vld [vmem:[%s3074_s27 + $0x4] sm:$0xf]  ;;  %v565_v27 = vld [vmem:[#allocation2 + $0xc] sm:$0x8]  ;;  %2051 = vmatpush.bf16.msra.mxu3 %v2866_v13 }
  0x28   : > { %v359_v51 = vsel %vm3096_vm2, %v2350_v33, %v358_v45  ;;  %398 = vst [vmem:[#allocation3 + $0x90] sm:$0xf] %v346_v48  ;;  %v275_v1 = vld [vmem:[#allocation2 + $0x48] sm:$0x8]  ;;  %v567_v30 = vld [vmem:[#allocation2 + $0x18] sm:$0x8] }
  0x29   : > { %399 = vst [vmem:[#allocation3 + $0xb4] sm:$0xf] %v359_v51  ;;  %v361_v15 = vshrl.u32 %v275_v1, 16  ;;  %2943 = vmatpush.bf16.msra.mxu1 %v2841_v62  ;;  %1965 = vmatpush.bf16.msra.mxu0 %v2841_v62  ;;  %v2879_v28 = vld [vmem:[#allocation4 + $0x130] sm:$0xff]  ;;  %v322_v34 = vshrl.u32 %v269_v24, 16  ;;  %v582_v36 = vshrl.u32 %v565_v27, 16 }
  0x2a   : > { %241 = vst [vmem:[#allocation2 + $0x64] sm:$0xf] %v3021_v0  ;;  %2023 = vmatpush.bf16.msra.mxu2 %v2857_v4  ;;  %v3137_v37 = vrot.slane %v309_v25, 11  ;;  %v595_v38 = vshrl.u32 %v567_v30, 16  ;;  %v3139_v39 = vld [vmem:[#allocation2 + $0x20] sm:$0x1] }
  0x2b   : > { %242 = vst [vmem:[#allocation2 + $0x68] sm:$0xf] %v3021_v0  ;;  %v277_v2 = vld [vmem:[#allocation2 + $0x54] sm:$0x8]  ;;  %v3133_v32 = vrot.slane %v361_v15, 11  ;;  %v2878_v47 = vld [vmem:[#allocation4 + $0x128] sm:$0xff]  ;;  %2052 = vmatpush.bf16.msra.mxu3 %v2865_v29 }
  0x2c   : > { %243 = vst [vmem:[#allocation2 + $0x6c] sm:$0xf] %v3021_v0  ;;  %v374_v16 = vshrl.u32 %v277_v2, 16  ;;  %v2853_v48 = vld [vmem:[#allocation4 + $0x60] sm:$0xff]  ;;  %v3141_v49 = vrot.slane %v322_v34, 11  ;;  %v2353_v50 = vrot.slane %v582_v36, 11 }
  0x2d   : > { %244 = vst [vmem:[#allocation2 + $0x70] sm:$0xf] %v3021_v0  ;;  %1987 = vmatpush.bf16.msrb.mxu1 %v2856_v3  ;;  %2074 = vmatpush.bf16.msrb.mxu0 %v2880_v9  ;;  %v2877_v57 = vld [vmem:[#allocation4 + $0x120] sm:$0xff]  ;;  %v475_v58 = vshll.u32 %v3139_v39, 16  ;;  %v3144_v1 = vrot.slane %v595_v38, 11  ;;  %v2876_v29 = vld [vmem:[#allocation4 + $0x118] sm:$0xff] }
  0x2e   : > { %245 = vst [vmem:[#allocation2 + $0x74] sm:$0xf] %v3021_v0  ;;  %v3135_v33 = vrot.slane %v374_v16, 11  ;;  %2132 = vmatpush.bf16.msrb.mxu2 %v2896_v17  ;;  %v2904_v30 = vld [vmem:[#allocation4 + $0x1f8] sm:$0xff]  ;;  %v2851_v34 = vld [vmem:[#allocation4 + $0x50] sm:$0xff] }
  0x2f   : > { %v2443_v18 = vld [vmem:[#allocation3 + $0x90] sm:$0xf]  ;;  %255 = vst [vmem:[#allocation2 + $0x10] sm:$0xf] %v246_v5  ;;  %2161 = vmatpush.bf16.msrb.mxu3 %v2904_v30 }
  0x30   : > { %v2827_v20 = vld [vmem:[#allocation3 + $0xb0] sm:$0xf0]  ;;  %394 = vst [vmem:[#allocation3] sm:$0xf] %v294_v8 }
  0x31   : > { %v2444_v0 = vor.u32 %v2827_v20, %v2443_v18  ;;  %557 = vst [vmem:[#allocation3 + $0x8] sm:$0xf] %v450_v12  ;;  %1988 = vmatpush.bf16.msrb.mxu1 %v2855_v21  ;;  %2075 = vmatpush.bf16.msrb.mxu0 %v2879_v28  ;;  %v2852_v18 = vld [vmem:[#allocation4 + $0x58] sm:$0xff]  ;;  %v2903_v39 = vld [vmem:[#allocation4 + $0x1f0] sm:$0xff] }
  0x32   : > { %260 = vst [vmem:[#allocation2 + $0x4c] sm:$0xf] %v251_v11 }
  0x33   : > { %261 = vst [vmem:[#allocation2 + $0x58] sm:$0xf] %v252_v14  ;;  %1976 = vmatmul.bf16.vlgmr.msra.gmra.mxu1 %v2444_v0  ;;  %v2895_v14 = vld [vmem:[#allocation4 + $0x1b0] sm:$0xff]  ;;  %2162 = vmatpush.bf16.msrb.mxu3 %v2903_v39 }
  0x34   : > { %256 = vst [vmem:[#allocation2 + $0x1c] sm:$0xf] %v247_v19  ;;  %2133 = vmatpush.bf16.msrb.mxu2 %v2895_v14 }
  0x35   : > { %257 = vst [vmem:[#allocation2 + $0x28] sm:$0xf] %v248_v26  ;;  %1989 = vmatpush.bf16.msrb.mxu1 %v2854_v31  ;;  %2076 = vmatpush.bf16.msrb.mxu0 %v2878_v47 }
  0x36   : > { %v266_v40 = vld [vmem:[#allocation2 + $0x10] sm:$0xf] }
  0x37   : > { %v420_v41 = vld [vmem:[#allocation2 + $0x10] sm:$0xf]  ;;  %v301_v43 = vshrl.u32 %v266_v40, 16  ;;  %v304_v44 = vshll.u32 %v266_v40, 16  ;;  %v425_v40 = vld [vmem:[#allocation2 + $0x2c] sm:$0x1] }
  0x38   : > { %v566_v42 = vld [vmem:[#allocation2 + $0x10] sm:$0xf]  ;;  %v452_v45 = vshrl.u32 %v420_v41, 16  ;;  %v455_v46 = vshll.u32 %v420_v41, 16 }
  0x39   : > { %v587_v51 = vshrl.u32 %v566_v42, 16  ;;  %v590_v52 = vshll.u32 %v566_v42, 16  ;;  %v303_v53 = vrot.slane %v301_v43, 7  ;;  %v276_v56 = vld [vmem:[#allocation2 + $0x4c] sm:$0xf]  ;;  %1990 = vmatpush.bf16.msrb.mxu1 %v2853_v48  ;;  %2077 = vmatpush.bf16.msrb.mxu0 %v2877_v57 }
  0x3a   : > { %v454_v54 = vrot.slane %v452_v45, 4  ;;  %v457_v55 = vrot.slane %v455_v46, 5  ;;  %v278_v59 = vld [vmem:[#allocation2 + $0x58] sm:$0xf]  ;;  %v366_v60 = vshrl.u32 %v276_v56, 16  ;;  %v369_v61 = vshll.u32 %v276_v56, 16 }
  0x3b   : > { %v589_v62 = vrot.slane %v587_v51, 7  ;;  %v306_v2 = vor.u32 %v304_v44, %v303_v53  ;;  %v379_v4 = vshrl.u32 %v278_v59, 16  ;;  %v382_v5 = vshll.u32 %v278_v59, 16  ;;  %v268_v7 = vld [vmem:[#allocation2 + $0x1c] sm:$0xf]  ;;  %v2894_v51 = vld [vmem:[#allocation4 + $0x1a8] sm:$0xff] }
  0x3c   : > { %v458_v3 = vor.u32 %v457_v55, %v454_v54  ;;  %v568_v8 = vld [vmem:[#allocation2 + $0x1c] sm:$0xf]  ;;  %v368_v9 = vrot.slane %v366_v60, 7  ;;  %v270_v10 = vld [vmem:[#allocation2 + $0x28] sm:$0xf]  ;;  %v314_v11 = vshrl.u32 %v268_v7, 16  ;;  %2134 = vmatpush.bf16.msrb.mxu2 %v2894_v51 }
  0x3d   : > { %v317_v12 = vshll.u32 %v268_v7, 16  ;;  %v592_v13 = vor.u32 %v590_v52, %v589_v62  ;;  %v307_v15 = vsel %vm3096_vm2, %v3119_v6, %v306_v2  ;;  %v381_v17 = vrot.slane %v379_v4, 7  ;;  %v422_v20 = vld [vmem:[#allocation2 + $0x1c] sm:$0xf]  ;;  %v424_v25 = vld [vmem:[#allocation2 + $0x28] sm:$0xf]  ;;  %1991 = vmatpush.bf16.msrb.mxu1 %v2852_v18  ;;  %2078 = vmatpush.bf16.msrb.mxu0 %v2876_v29 }
  0x3e   : > { %v459_v16 = vrot.slane %v458_v3, 4  ;;  %v327_v19 = vshrl.u32 %v270_v10, 16  ;;  %395 = vst [vmem:[#allocation3 + $0x24] sm:$0xf] %v307_v15  ;;  %v371_v21 = vor.u32 %v369_v61, %v368_v9  ;;  %v316_v22 = vrot.slane %v314_v11, 7  ;;  %v2875_v56 = vld [vmem:[#allocation4 + $0x110] sm:$0xff] }
  0x3f   : > { %v330_v0 = vshll.u32 %v270_v10, 16  ;;  %v593_v24 = vsel %vm3096_vm2, %v2353_v50, %v592_v13  ;;  %v384_v6 = vor.u32 %v382_v5, %v381_v17  ;;  %v600_v28 = vshrl.u32 %v568_v8, 16  ;;  %v2371_v42 = vld [vmem:[#allocation3] sm:$0xf]  ;;  %v402_v46 = vld [vmem:[#allocation2 + $0x4] sm:$0xf] }
  0x40   : > { %v464_v26 = vsel %vm3113_vm5, %v459_v16, %v3130_v23  ;;  %v329_v27 = vrot.slane %v327_v19, 7  ;;  %693 = vst [vmem:[#allocation3 + $0xc] sm:$0xf] %v593_v24  ;;  %v372_v31 = vsel %vm3096_vm2, %v3133_v32, %v371_v21  ;;  %v319_v36 = vor.u32 %v317_v12, %v316_v22  ;;  %v2379_v52 = vld [vmem:[#allocation3 + $0x8] sm:$0xf]  ;;  %v2888_v21 = vld [vmem:[#allocation4 + $0x178] sm:$0xff] }
  0x41   : > { %558 = vst [vmem:[#allocation3 + $0x2c] sm:$0xf] %v464_v26  ;;  %v603_v38 = vshll.u32 %v568_v8, 16  ;;  %v466_v41 = vshrl.u32 %v422_v20, 16  ;;  %v385_v23 = vsel %vm3096_vm2, %v3135_v33, %v384_v6  ;;  %v602_v44 = vrot.slane %v600_v28, 7  ;;  %v2850_v62 = vld [vmem:[#allocation4 + $0x48] sm:$0xff]  ;;  %1992 = vmatpush.bf16.msrb.mxu1 %v2851_v34  ;;  %2079 = vmatpush.bf16.msrb.mxu0 %v2875_v56 }
  0x42   : > { %400 = vst [vmem:[#allocation3 + $0xd8] sm:$0xf] %v372_v31  ;;  %v332_v43 = vor.u32 %v330_v0, %v329_v27  ;;  %v469_v45 = vshll.u32 %v422_v20, 16  ;;  %v320_v32 = vsel %vm3096_vm2, %v3137_v37, %v319_v36  ;;  %v480_v48 = vshrl.u32 %v424_v25, 16  ;;  %v403_v60 = vld [vmem:[#allocation2 + $0x10] sm:$0xf] }
  0x43   : > { %401 = vst [vmem:[#allocation3 + $0xfc] sm:$0xf] %v385_v23  ;;  %v468_v47 = vrot.slane %v466_v41, 4  ;;  %v483_v50 = vshll.u32 %v424_v25, 16  ;;  %v605_v53 = vor.u32 %v603_v38, %v602_v44  ;;  %v489_v55 = vshll.u32 %v425_v40, 16  ;;  %v2874_v7 = vld [vmem:[#allocation4 + $0x108] sm:$0xff] }
  0x44   : > { %v333_v33 = vsel %vm3096_vm2, %v3141_v49, %v332_v43  ;;  %396 = vst [vmem:[#allocation3 + $0x48] sm:$0xf] %v320_v32  ;;  %v471_v54 = vrot.slane %v469_v45, 5  ;;  %v482_v57 = vrot.slane %v480_v48, 4  ;;  %v477_v49 = vrot.slane %v475_v58, 5  ;;  %v2849_v20 = vld [vmem:[#allocation4 + $0x40] sm:$0xff] }
  0x45   : > { %397 = vst [vmem:[#allocation3 + $0x6c] sm:$0xf] %v333_v33  ;;  %v485_v59 = vrot.slane %v483_v50, 5  ;;  %v2809_v37 = vld [vmem:[#allocation3 + $0x20] sm:$0xf0]  ;;  %v606_v61 = vsel %vm3096_vm2, %v3144_v1, %v605_v53  ;;  %v491_v5 = vrot.slane %v489_v55, 5  ;;  %1993 = vmatpush.bf16.msrb.mxu1 %v2850_v62  ;;  %2080 = vmatpush.bf16.msrb.mxu0 %v2874_v7 }
  0x46   : > { %v472_v2 = vor.u32 %v471_v54, %v468_v47  ;;  %410 = vst [vmem:[#allocation3 + $0x4] sm:$0xf] %v402_v46  ;;  %v2372_v3 = vor.u32 %v2809_v37, %v2371_v42  ;;  %v569_v8 = vld [vmem:[#allocation2 + $0x24] sm:$0x8]  ;;  %v570_v14 = vld [vmem:[#allocation2 + $0x28] sm:$0xf] }
  0x47   : > { %694 = vst [vmem:[#allocation3 + $0x30] sm:$0xf] %v606_v61  ;;  %v486_v4 = vor.u32 %v485_v59, %v482_v57  ;;  %v608_v11 = vshrl.u32 %v569_v8, 16  ;;  %v571_v16 = vld [vmem:[#allocation2 + $0x30] sm:$0x8]  ;;  %v2873_v22 = vld [vmem:[#allocation4 + $0x100] sm:$0xff] }
  0x48   : > { %v2810_v9 = vld [vmem:[#allocation3 + $0x28] sm:$0xf0]  ;;  %v473_v10 = vrot.slane %v472_v2, 4  ;;  %411 = vst [vmem:[#allocation3 + $0x28] sm:$0xf] %v403_v60  ;;  %1966 = vmatmul.bf16.vlgmr.msra.gmra.mxu0 %v2372_v3  ;;  %v613_v0 = vshrl.u32 %v570_v14, 16 }
  0x49   : > { %v2380_v1 = vor.u32 %v2810_v9, %v2379_v52  ;;  %v2479_v12 = vld [vmem:[#allocation3 + $0xd8] sm:$0xf]  ;;  %v487_v13 = vrot.slane %v486_v4, 4  ;;  %v572_v17 = vld [vmem:[#allocation2 + $0x34] sm:$0xf]  ;;  %v616_v25 = vshll.u32 %v570_v14, 16  ;;  %1994 = vmatpush.bf16.msrb.mxu1 %v2849_v20  ;;  %2081 = vmatpush.bf16.msrb.mxu0 %v2873_v22 }
  0x4a   : > { %v2836_v58 = vld [vmem:[#allocation3 + $0xf8] sm:$0xf0]  ;;  %v478_v15 = vsel %vm3113_vm5, %v473_v10, %v477_v49  ;;  %v2806_v24 = vld [vmem:[#allocation3 + $0xc] sm:$0xf]  ;;  %v621_v26 = vshrl.u32 %v571_v16, 16  ;;  %v2355_v6 = vrot.slane %v608_v11, 11 }
  0x4b   : > { %2024 = vmatmul.bf16.vlgmr.msra.gmra.mxu2 %v2380_v1  ;;  %v2480_v18 = vor.u32 %v2836_v58, %v2479_v12  ;;  %v492_v19 = vsel %vm3113_vm5, %v487_v13, %v491_v5  ;;  %559 = vst [vmem:[#allocation3 + $0x50] sm:$0xf] %v478_v15  ;;  %v615_v27 = vrot.slane %v613_v0, 7  ;;  %v626_v28 = vshrl.u32 %v572_v17, 16  ;;  %v701_v31 = vld [vmem:[#allocation2 + $0x10] sm:$0xf] }
  0x4c   : > { %560 = vst [vmem:[#allocation3 + $0x74] sm:$0xf] %v492_v19  ;;  %v629_v29 = vshll.u32 %v572_v17, 16  ;;  %v2893_v34 = vld [vmem:[#allocation4 + $0x1a0] sm:$0xff]  ;;  %v2356_v40 = vrot.slane %v621_v26, 11  ;;  %v2887_v23 = vld [vmem:[#allocation4 + $0x170] sm:$0xff] }
  0x4d   : > { %1981 = vmatmul.bf16.gmra.mxu1 %v2480_v18  ;;  %v618_v38 = vor.u32 %v616_v25, %v615_v27  ;;  %v628_v41 = vrot.slane %v626_v28, 7  ;;  %v702_v42 = vld [vmem:[#allocation2 + $0x1c] sm:$0xf]  ;;  %v2902_v43 = vld [vmem:[#allocation4 + $0x1e8] sm:$0xff]  ;;  %709 = vst [vmem:[#allocation3 + $0x10] sm:$0xf] %v701_v31  ;;  %2135 = vmatpush.bf16.msrb.mxu2 %v2893_v34 }
  0x4e   : > { %v2381_v30 = vld [vmem:[#allocation3 + $0x2c] sm:$0xf0]  ;;  %v2407_v44 = vld [vmem:[#allocation3 + $0x48] sm:$0xf]  ;;  %v2818_v45 = vld [vmem:[#allocation3 + $0x68] sm:$0xf0]  ;;  %2103 = vmatpush.bf16.msra.mxu1 %v2888_v21  ;;  %2163 = vmatpush.bf16.msrb.mxu3 %v2902_v43 }
  0x4f   : > { %v2384_v36 = vor.u32 %v2806_v24, %v2381_v30  ;;  %v426_v46 = vld [vmem:[#allocation2 + $0x34] sm:$0xf]  ;;  %v427_v32 = vld [vmem:[#allocation2 + $0x38] sm:$0x1]  ;;  %v619_v47 = vsel %vm3096_vm2, %v2355_v6, %v618_v38  ;;  %v631_v48 = vor.u32 %v629_v29, %v628_v41  ;;  %710 = vst [vmem:[#allocation3 + $0x34] sm:$0xf] %v702_v42  ;;  %v2408_v3 = vor.u32 %v2818_v45, %v2407_v44 }
  0x50   : > { %v428_v50 = vld [vmem:[#allocation2 + $0x40] sm:$0xf]  ;;  %v429_v51 = vld [vmem:[#allocation2 + $0x44] sm:$0x1]  ;;  %695 = vst [vmem:[#allocation3 + $0x54] sm:$0xf] %v619_v47 }
  0x51   : > { %2053 = vmatmul.bf16.vlgmr.msra.gmra.mxu3 %v2384_v36  ;;  %v494_v33 = vshrl.u32 %v426_v46, 16  ;;  %v497_v53 = vshll.u32 %v426_v46, 16  ;;  %v632_v55 = vsel %vm3096_vm2, %v2356_v40, %v631_v48  ;;  %v503_v56 = vshll.u32 %v427_v32, 16  ;;  %v2886_v60 = vld [vmem:[#allocation4 + $0x168] sm:$0xff]  ;;  %v2805_v37 = vld [vmem:[#allocation3 + $0x4] sm:$0xf] }
  0x52   : > { %v2415_v52 = vld [vmem:[#allocation3 + $0x50] sm:$0xf]  ;;  %v508_v57 = vshrl.u32 %v428_v50, 16  ;;  %v511_v59 = vshll.u32 %v428_v50, 16  ;;  %696 = vst [vmem:[#allocation3 + $0x78] sm:$0xf] %v632_v55  ;;  %2104 = vmatpush.bf16.msra.mxu1 %v2887_v23 }
  0x53   : > { %v2819_v54 = vld [vmem:[#allocation3 + $0x70] sm:$0xf0]  ;;  %v496_v61 = vrot.slane %v494_v33, 4  ;;  %v499_v62 = vrot.slane %v497_v53, 5  ;;  %v517_v2 = vshll.u32 %v429_v51, 16  ;;  %v2892_v49 = vld [vmem:[#allocation4 + $0x198] sm:$0xff] }
  0x54   : > { %v2373_v4 = vld [vmem:[#allocation3 + $0x24] sm:$0xf0]  ;;  %v510_v5 = vrot.slane %v508_v57, 4  ;;  %v513_v7 = vrot.slane %v511_v59, 5  ;;  %v404_v8 = vld [vmem:[#allocation2 + $0x1c] sm:$0xf]  ;;  %2136 = vmatpush.bf16.msrb.mxu2 %v2892_v49  ;;  %v2416_v1 = vor.u32 %v2819_v54, %v2415_v52 }
  0x55   : > { %v500_v9 = vor.u32 %v499_v62, %v496_v61  ;;  %v505_v10 = vrot.slane %v503_v56, 5  ;;  %v405_v11 = vld [vmem:[#allocation2 + $0x28] sm:$0xf]  ;;  %412 = vst [vmem:[#allocation3 + $0x4c] sm:$0xf] %v404_v8  ;;  %v519_v13 = vrot.slane %v517_v2, 5  ;;  %v2376_v16 = vor.u32 %v2805_v37, %v2373_v4 }
  0x56   : > { %v514_v12 = vor.u32 %v513_v7, %v510_v5  ;;  %413 = vst [vmem:[#allocation3 + $0x70] sm:$0xf] %v405_v11  ;;  %v573_v14 = vld [vmem:[#allocation2 + $0x3c] sm:$0x8]  ;;  %2105 = vmatpush.bf16.msra.mxu1 %v2886_v60  ;;  %v574_v58 = vld [vmem:[#allocation2 + $0x40] sm:$0xf] }
  0x57   : > { %v501_v39 = vrot.slane %v500_v9, 4  ;;  %v634_v15 = vshrl.u32 %v573_v14, 16  ;;  %v2815_v17 = vld [vmem:[#allocation3 + $0x54] sm:$0xf]  ;;  %v575_v19 = vld [vmem:[#allocation2 + $0x48] sm:$0x8] }
  0x58   : > { %1971 = vmatmul.bf16.gmra.mxu0 %v2408_v3  ;;  %v515_v18 = vrot.slane %v514_v12, 4  ;;  %v639_v20 = vshrl.u32 %v574_v58, 16  ;;  %v576_v22 = vld [vmem:[#allocation2 + $0x4c] sm:$0xf]  ;;  %v642_v24 = vshll.u32 %v574_v58, 16  ;;  %v647_v25 = vshrl.u32 %v575_v19, 16 }
  0x59   : > { %v506_v21 = vsel %vm3113_vm5, %v501_v39, %v505_v10  ;;  %v2357_v0 = vrot.slane %v634_v15, 11  ;;  %v2901_v26 = vld [vmem:[#allocation4 + $0x1e0] sm:$0xff]  ;;  %v2417_v6 = vld [vmem:[#allocation3 + $0x74] sm:$0xf0]  ;;  %v652_v29 = vshrl.u32 %v576_v22, 16  ;;  %v655_v30 = vshll.u32 %v576_v22, 16 }
  0x5a   : > { %v520_v27 = vsel %vm3113_vm5, %v515_v18, %v519_v13  ;;  %561 = vst [vmem:[#allocation3 + $0x98] sm:$0xf] %v506_v21  ;;  %v641_v28 = vrot.slane %v639_v20, 7  ;;  %v703_v31 = vld [vmem:[#allocation2 + $0x28] sm:$0xf]  ;;  %2164 = vmatpush.bf16.msrb.mxu3 %v2901_v26  ;;  %v2420_v34 = vor.u32 %v2815_v17, %v2417_v6  ;;  %v2358_v38 = vrot.slane %v647_v25, 11 }
  0x5b   : > { %2029 = vmatmul.bf16.gmra.mxu2 %v2416_v1  ;;  %562 = vst [vmem:[#allocation3 + $0xbc] sm:$0xf] %v520_v27  ;;  %v654_v40 = vrot.slane %v652_v29, 7  ;;  %v704_v41 = vld [vmem:[#allocation2 + $0x34] sm:$0xf]  ;;  %v2885_v55 = vld [vmem:[#allocation4 + $0x160] sm:$0xff] }
  0x5c   : > { %v644_v36 = vor.u32 %v642_v24, %v641_v28  ;;  %v3183_v42 = vld [vmem:[#allocation4 + $0x238] sm:$0xff]  ;;  %711 = vst [vmem:[#allocation3 + $0x58] sm:$0xf] %v703_v31  ;;  %v430_v23 = vld [vmem:[#allocation2 + $0x4c] sm:$0xf]  ;;  %2106 = vmatpush.bf16.msra.mxu1 %v2885_v55  ;;  %v2890_v39 = vld [vmem:[#allocation4 + $0x188] sm:$0xff] }
  0x5d   : > { %1995 = vmatmul.bf16.vlgmr.msrb.gmra.mxu1 %v2376_v16  ;;  %v657_v44 = vor.u32 %v655_v30, %v654_v40  ;;  %712 = vst [vmem:[#allocation3 + $0x7c] sm:$0xf] %v704_v41  ;;  %2190 = vmatpush.bf16.msra.mxu0 %v3183_v42  ;;  %v431_v45 = vld [vmem:[#allocation2 + $0x50] sm:$0x1]  ;;  %v432_v46 = vld [vmem:[#allocation2 + $0x58] sm:$0xf] }
  0x5e   : > { %v645_v43 = vsel %vm3096_vm2, %v2357_v0, %v644_v36  ;;  %v2387_v32 = vld [vmem:[#allocation3 + $0x10] sm:$0xf]  ;;  %v2811_v47 = vld [vmem:[#allocation3 + $0x30] sm:$0xf0]  ;;  %v433_v48 = vld [vmem:[#allocation2 + $0x5c] sm:$0x1] }
  0x5f   : > { %697 = vst [vmem:[#allocation3 + $0x9c] sm:$0xf] %v645_v43  ;;  %v522_v50 = vshrl.u32 %v430_v23, 16  ;;  %v525_v51 = vshll.u32 %v430_v23, 16  ;;  %v658_v52 = vsel %vm3096_vm2, %v2358_v38, %v657_v44  ;;  %v531_v33 = vshll.u32 %v431_v45, 16  ;;  %v2891_v56 = vld [vmem:[#allocation4 + $0x190] sm:$0xff] }
  0x60   : > { %v536_v53 = vshrl.u32 %v432_v46, 16  ;;  %v539_v54 = vshll.u32 %v432_v46, 16  ;;  %v2900_v57 = vld [vmem:[#allocation4 + $0x1d8] sm:$0xff]  ;;  %698 = vst [vmem:[#allocation3 + $0xc0] sm:$0xf] %v658_v52  ;;  %v545_v49 = vshll.u32 %v433_v48, 16  ;;  %2137 = vmatpush.bf16.msrb.mxu2 %v2891_v56  ;;  %v2388_v9 = vor.u32 %v2811_v47, %v2387_v32 }
  0x61   : > { %2058 = vmatmul.bf16.gmra.mxu3 %v2420_v34  ;;  %v2451_v59 = vld [vmem:[#allocation3 + $0x98] sm:$0xf]  ;;  %v524_v60 = vrot.slane %v522_v50, 4  ;;  %v527_v37 = vrot.slane %v525_v51, 5  ;;  %v533_v4 = vrot.slane %v531_v33, 5  ;;  %v3190_v5 = vld [vmem:[#allocation4 + $0x230] sm:$0xff] }
  0x62   : > { %v2828_v61 = vld [vmem:[#allocation3 + $0xb8] sm:$0xf0]  ;;  %v538_v62 = vrot.slane %v536_v53, 4  ;;  %v541_v2 = vrot.slane %v539_v54, 5  ;;  %2165 = vmatpush.bf16.msrb.mxu3 %v2900_v57  ;;  %v407_v8 = vld [vmem:[#allocation2 + $0x40] sm:$0xf]  ;;  %2191 = vmatpush.bf16.msra.mxu0 %v3190_v5 }
  0x63   : > { %v528_v3 = vor.u32 %v527_v37, %v524_v60  ;;  %v406_v7 = vld [vmem:[#allocation2 + $0x34] sm:$0xf]  ;;  %v2814_v10 = vld [vmem:[#allocation3 + $0x4c] sm:$0xf]  ;;  %v547_v1 = vrot.slane %v545_v49, 5  ;;  %v2452_v58 = vor.u32 %v2828_v61, %v2451_v59  ;;  %v2889_v16 = vld [vmem:[#allocation4 + $0x180] sm:$0xff] }
  0x64   : > { %v542_v11 = vor.u32 %v541_v2, %v538_v62  ;;  %414 = vst [vmem:[#allocation3 + $0x94] sm:$0xf] %v406_v7  ;;  %v2884_v12 = vld [vmem:[#allocation4 + $0x158] sm:$0xff]  ;;  %v2409_v13 = vld [vmem:[#allocation3 + $0x6c] sm:$0xf0]  ;;  %2138 = vmatpush.bf16.msrb.mxu2 %v2890_v39  ;;  %v3198_v31 = vld [vmem:[#allocation4 + $0x228] sm:$0xff] }
  0x65   : > { %v529_v14 = vrot.slane %v528_v3, 4  ;;  %415 = vst [vmem:[#allocation3 + $0xb8] sm:$0xf] %v407_v8  ;;  %2107 = vmatpush.bf16.msra.mxu1 %v2884_v12  ;;  %v253_v17 = vld [vmem:[%s3074_s27 + $0x1c] sm:$0xf]  ;;  %v2412_v22 = vor.u32 %v2814_v10, %v2409_v13  ;;  %v2899_v28 = vld [vmem:[#allocation4 + $0x1d0] sm:$0xff] }
  0x66   : > { %v543_v15 = vrot.slane %v542_v11, 4  ;;  %v2824_v18 = vld [vmem:[#allocation3 + $0x9c] sm:$0xf]  ;;  %262 = vst [vmem:[#allocation2 + $0x64] sm:$0xf] %v253_v17  ;;  %2166 = vmatpush.bf16.msrb.mxu3 %v2899_v28  ;;  %2192 = vmatpush.bf16.msra.mxu0 %v3198_v31  ;;  %v2883_v41 = vld [vmem:[#allocation4 + $0x150] sm:$0xff] }
  0x67   : > { %v534_v19 = vsel %vm3113_vm5, %v529_v14, %v533_v4  ;;  %v577_v20 = vld [vmem:[#allocation2 + $0x54] sm:$0x8]  ;;  %v578_v21 = vld [vmem:[#allocation2 + $0x58] sm:$0xf]  ;;  %v579_v25 = vld [vmem:[#allocation2 + $0x60] sm:$0x8] }
  0x68   : > { %2082 = vmatmul.bf16.vlgmr.msrb.gmra.mxu0 %v2388_v9  ;;  %v2453_v0 = vld [vmem:[#allocation3 + $0xbc] sm:$0xf0]  ;;  %v548_v24 = vsel %vm3113_vm5, %v543_v15, %v547_v1  ;;  %563 = vst [vmem:[#allocation3 + $0xe0] sm:$0xf] %v534_v19  ;;  %v660_v26 = vshrl.u32 %v577_v20, 16  ;;  %v665_v6 = vshrl.u32 %v578_v21, 16  ;;  %2139 = vmatpush.bf16.msrb.mxu2 %v2889_v16 }
  0x69   : > { %564 = vst [vmem:[#allocation3 + $0x104] sm:$0xf] %v548_v24  ;;  %v668_v27 = vshll.u32 %v578_v21, 16  ;;  %v705_v29 = vld [vmem:[#allocation2 + $0x40] sm:$0xf]  ;;  %v2456_v38 = vor.u32 %v2824_v18, %v2453_v0  ;;  %v673_v40 = vshrl.u32 %v579_v25, 16  ;;  %2108 = vmatpush.bf16.msra.mxu1 %v2883_v41 }
  0x6a   : > { %v706_v30 = vld [vmem:[#allocation2 + $0x4c] sm:$0xf]  ;;  %v2359_v34 = vrot.slane %v660_v26, 11  ;;  %v667_v36 = vrot.slane %v665_v6, 7  ;;  %713 = vst [vmem:[#allocation3 + $0xa0] sm:$0xf] %v705_v29 }
  0x6b   : > { %2034 = vmatmul.bf16.gmra.mxu2 %v2452_v58  ;;  %714 = vst [vmem:[#allocation3 + $0xc4] sm:$0xf] %v706_v30  ;;  %v862_v43 = vld [vmem:[#allocation2 + $0x18] sm:$0x8]  ;;  %v863_v44 = vld [vmem:[#allocation2 + $0x1c] sm:$0xf] }
  0x6c   : > { %v670_v23 = vor.u32 %v668_v27, %v667_v36  ;;  %v864_v45 = vld [vmem:[#allocation2 + $0x24] sm:$0x8]  ;;  %2944 = vmatpush.bf16.msra.mxu2 %v3183_v42  ;;  %v865_v32 = vld [vmem:[#allocation2 + $0x28] sm:$0xf]  ;;  %v879_v47 = vshrl.u32 %v862_v43, 16  ;;  %v884_v48 = vshrl.u32 %v863_v44, 16 }
  0x6d   : > { %2000 = vmatmul.bf16.gmra.mxu1 %v2412_v22  ;;  %v580_v46 = vld [vmem:[#allocation2 + $0x64] sm:$0xf]  ;;  %v2423_v50 = vld [vmem:[#allocation3 + $0x58] sm:$0xf]  ;;  %v2820_v51 = vld [vmem:[#allocation3 + $0x78] sm:$0xf0] }
  0x6e   : > { %v671_v52 = vsel %vm3096_vm2, %v2359_v34, %v670_v23  ;;  %v678_v33 = vshrl.u32 %v580_v46, 16  ;;  %v681_v53 = vshll.u32 %v580_v46, 16  ;;  %v887_v54 = vshll.u32 %v863_v44, 16  ;;  %v2898_v55 = vld [vmem:[#allocation4 + $0x1c8] sm:$0xff]  ;;  %v2909_v61 = vld [vmem:[#allocation4 + $0x220] sm:$0xff]  ;;  %v2908_v22 = vld [vmem:[#allocation4 + $0x218] sm:$0xff] }
  0x6f   : > { %v2360_v56 = vrot.slane %v673_v40, 11  ;;  %699 = vst [vmem:[#allocation3 + $0xe4] sm:$0xf] %v671_v52  ;;  %v2361_v57 = vrot.slane %v879_v47, 11  ;;  %v886_v59 = vrot.slane %v884_v48, 7  ;;  %v892_v60 = vshrl.u32 %v864_v45, 16  ;;  %2167 = vmatpush.bf16.msrb.mxu3 %v2898_v55  ;;  %2193 = vmatpush.bf16.msra.mxu0 %v2909_v61 }
  0x70   : > { %v680_v42 = vrot.slane %v678_v33, 7  ;;  %v897_v37 = vshrl.u32 %v865_v32, 16  ;;  %v408_v62 = vld [vmem:[#allocation2 + $0x4c] sm:$0xf]  ;;  %2945 = vmatpush.bf16.msra.mxu2 %v3190_v5  ;;  %v2487_v2 = vld [vmem:[#allocation3 + $0xe0] sm:$0xf]  ;;  %v2424_v12 = vor.u32 %v2820_v51, %v2423_v50 }
  0x71   : > { %2063 = vmatmul.bf16.gmra.mxu3 %v2456_v38  ;;  %v889_v49 = vor.u32 %v887_v54, %v886_v59  ;;  %v900_v3 = vshll.u32 %v865_v32, 16  ;;  %v409_v4 = vld [vmem:[#allocation2 + $0x58] sm:$0xf]  ;;  %v2882_v7 = vld [vmem:[#allocation4 + $0x148] sm:$0xff]  ;;  %v2837_v8 = vld [vmem:[#allocation3 + $0x100] sm:$0xf0] }
  0x72   : > { %v2823_v9 = vld [vmem:[#allocation3 + $0x94] sm:$0xf]  ;;  %v683_v10 = vor.u32 %v681_v53, %v680_v42  ;;  %v2362_v11 = vrot.slane %v892_v60, 11  ;;  %v899_v1 = vrot.slane %v897_v37, 7  ;;  %416 = vst [vmem:[#allocation3 + $0xdc] sm:$0xf] %v408_v62  ;;  %2109 = vmatpush.bf16.msra.mxu1 %v2882_v7  ;;  %v2488_v17 = vor.u32 %v2837_v8, %v2487_v2 }
  0x73   : > { %v890_v13 = vsel %vm3096_vm2, %v2361_v57, %v889_v49  ;;  %417 = vst [vmem:[#allocation3 + $0x100] sm:$0xf] %v409_v4  ;;  %v2897_v14 = vld [vmem:[#allocation4 + $0x1c0] sm:$0xff]  ;;  %v2445_v39 = vld [vmem:[#allocation3 + $0xb4] sm:$0xf0]  ;;  %2194 = vmatpush.bf16.msra.mxu0 %v2908_v22  ;;  %v2907_v41 = vld [vmem:[#allocation4 + $0x210] sm:$0xff] }
  0x74   : > { %v707_v5 = vld [vmem:[#allocation2 + $0x58] sm:$0xf]  ;;  %v684_v58 = vsel %vm3096_vm2, %v2360_v56, %v683_v10  ;;  %v902_v15 = vor.u32 %v900_v3, %v899_v1  ;;  %990 = vst [vmem:[#allocation3 + $0x18] sm:$0xf] %v890_v13  ;;  %v708_v16 = vld [vmem:[#allocation2 + $0x64] sm:$0xf]  ;;  %2946 = vmatpush.bf16.msra.mxu2 %v3198_v31  ;;  %2168 = vmatpush.bf16.msrb.mxu3 %v2897_v14 }
  0x75   : > { %700 = vst [vmem:[#allocation3 + $0x108] sm:$0xf] %v684_v58  ;;  %v998_v18 = vld [vmem:[#allocation2 + $0x1c] sm:$0xf]  ;;  %v866_v19 = vld [vmem:[#allocation2 + $0x30] sm:$0x8]  ;;  %v2448_v0 = vor.u32 %v2823_v9, %v2445_v39 }
  0x76   : > { %v903_v20 = vsel %vm3096_vm2, %v2362_v11, %v902_v15  ;;  %715 = vst [vmem:[#allocation3 + $0xe8] sm:$0xf] %v707_v5  ;;  %v999_v21 = vld [vmem:[#allocation2 + $0x28] sm:$0xf]  ;;  %v2881_v24 = vld [vmem:[#allocation4 + $0x140] sm:$0xff]  ;;  %v905_v26 = vshrl.u32 %v866_v19, 16 }
  0x77   : > { %991 = vst [vmem:[#allocation3 + $0x3c] sm:$0xf] %v903_v20  ;;  %v867_v25 = vld [vmem:[#allocation2 + $0x34] sm:$0xf]  ;;  %v868_v6 = vld [vmem:[#allocation2 + $0x3c] sm:$0x8]  ;;  %2110 = vmatpush.bf16.msra.mxu1 %v2881_v24  ;;  %2195 = vmatpush.bf16.msra.mxu0 %v2907_v41 }
  0x78   : > { %2087 = vmatmul.bf16.gmra.mxu0 %v2424_v12  ;;  %716 = vst [vmem:[#allocation3 + $0x10c] sm:$0xf] %v708_v16  ;;  %v869_v27 = vld [vmem:[#allocation2 + $0x40] sm:$0xf]  ;;  %2947 = vmatpush.bf16.msra.mxu2 %v2909_v61  ;;  %v910_v28 = vshrl.u32 %v867_v25, 16  ;;  %v913_v30 = vshll.u32 %v867_v25, 16 }
  0x79   : > { %1006 = vst [vmem:[#allocation3 + $0x1c] sm:$0xf] %v998_v18  ;;  %v2833_v29 = vld [vmem:[#allocation3 + $0xe4] sm:$0xf]  ;;  %v918_v31 = vshrl.u32 %v868_v6, 16  ;;  %v2363_v34 = vrot.slane %v905_v26, 11 }
  0x7a   : > { %1007 = vst [vmem:[#allocation3 + $0x40] sm:$0xf] %v999_v21  ;;  %v912_v36 = vrot.slane %v910_v28, 7  ;;  %v923_v38 = vshrl.u32 %v869_v27, 16  ;;  %v926_v40 = vshll.u32 %v869_v27, 16  ;;  %v2906_v48 = vld [vmem:[#allocation4 + $0x208] sm:$0xff] }
  0x7b   : > { %2039 = vmatmul.bf16.gmra.mxu2 %v2488_v17  ;;  %v2364_v43 = vrot.slane %v918_v31, 11  ;;  %v717_v44 = vld [vmem:[#allocation2 + $0x10] sm:$0xf]  ;;  %v2459_v46 = vld [vmem:[#allocation3 + $0xa0] sm:$0xf]  ;;  %2196 = vmatpush.bf16.msra.mxu0 %v2906_v48 }
  0x7c   : > { %v2489_v23 = vld [vmem:[#allocation3 + $0x104] sm:$0xf0]  ;;  %2948 = vmatpush.bf16.msra.mxu2 %v2908_v22  ;;  %v915_v32 = vor.u32 %v913_v30, %v912_v36  ;;  %v925_v47 = vrot.slane %v923_v38, 7  ;;  %v718_v50 = vld [vmem:[#allocation2 + $0x14] sm:$0x1]  ;;  %v734_v51 = vshrl.u32 %v717_v44, 16 }
  0x7d   : > { %2005 = vmatmul.bf16.gmra.mxu1 %v2448_v0  ;;  %v2492_v45 = vor.u32 %v2833_v29, %v2489_v23  ;;  %v2829_v52 = vld [vmem:[#allocation3 + $0xc0] sm:$0xf0]  ;;  %v720_v53 = vld [vmem:[#allocation2 + $0x20] sm:$0x1]  ;;  %v3212_v54 = vld [vmem:[#allocation3 + $0xdc] sm:$0xf] }
  0x7e   : > { %v719_v33 = vld [vmem:[#allocation2 + $0x1c] sm:$0xf]  ;;  %v3214_v55 = vld [vmem:[#allocation3 + $0xfc] sm:$0xf0]  ;;  %v916_v56 = vsel %vm3096_vm2, %v2363_v34, %v915_v32  ;;  %v928_v57 = vor.u32 %v926_v40, %v925_v47  ;;  %v736_v59 = vrot.slane %v734_v51, 4  ;;  %v737_v60 = vshll.u32 %v717_v44, 16 }
  0x7f   : > { %v2395_v42 = vld [vmem:[#allocation3 + $0x18] sm:$0xf]  ;;  %992 = vst [vmem:[#allocation3 + $0x60] sm:$0xf] %v916_v56  ;;  %v743_v37 = vshll.u32 %v718_v50, 16  ;;  %v748_v49 = vshrl.u32 %v719_v33, 16  ;;  %v2460_v8 = vor.u32 %v2829_v52, %v2459_v46  ;;  %v2484_v14 = vor.u32 %v3212_v54, %v3214_v55 }
  0x80   : > { %v1000_v61 = vld [vmem:[#allocation2 + $0x34] sm:$0xf]  ;;  %2949 = vmatpush.bf16.msra.mxu2 %v2907_v41  ;;  %v929_v2 = vsel %vm3096_vm2, %v2364_v43, %v928_v57  ;;  %v751_v3 = vshll.u32 %v719_v33, 16  ;;  %v757_v4 = vshll.u32 %v720_v53, 16  ;;  %v2905_v7 = vld [vmem:[#allocation4 + $0x200] sm:$0xff]  ;;  %v739_v9 = vrot.slane %v737_v60, 5 }
  0x81   : > { %2068 = vmatmul.bf16.gmra.mxu3 %v2492_v45  ;;  %v2812_v62 = vld [vmem:[#allocation3 + $0x38] sm:$0xf0]  ;;  %993 = vst [vmem:[#allocation3 + $0x84] sm:$0xf] %v929_v2  ;;  %v1001_v10 = vld [vmem:[#allocation2 + $0x40] sm:$0xf]  ;;  %2197 = vmatpush.bf16.msra.mxu0 %v2905_v7 }
  0x82   : > { %v745_v11 = vrot.slane %v743_v37, 5  ;;  %v750_v1 = vrot.slane %v748_v49, 4  ;;  %v753_v12 = vrot.slane %v751_v3, 5  ;;  %v759_v13 = vrot.slane %v757_v4, 5  ;;  %1008 = vst [vmem:[#allocation3 + $0x64] sm:$0xf] %v1000_v61 }
  0x83   : > { %v740_v5 = vor.u32 %v739_v9, %v736_v59  ;;  %1009 = vst [vmem:[#allocation3 + $0x88] sm:$0xf] %v1001_v10  ;;  %v1014_v39 = vld [vmem:[#allocation2 + $0x1c] sm:$0xf]  ;;  %v1015_v58 = vld [vmem:[#allocation2 + $0x20] sm:$0x1]  ;;  %v2396_v15 = vor.u32 %v2812_v62, %v2395_v42 }
  0x84   : > { %2950 = vmatpush.bf16.msra.mxu2 %v2906_v48  ;;  %v754_v16 = vor.u32 %v753_v12, %v750_v1  ;;  %v1016_v17 = vld [vmem:[#allocation2 + $0x28] sm:$0xf]  ;;  %v1017_v18 = vld [vmem:[#allocation2 + $0x2c] sm:$0x1]  ;;  %v1031_v19 = vshrl.u32 %v1014_v39, 16  ;;  %v1034_v20 = vshll.u32 %v1014_v39, 16 }
  0x85   : > { %v741_v21 = vrot.slane %v740_v5, 4  ;;  %v1040_v22 = vshll.u32 %v1015_v58, 16  ;;  %v1045_v0 = vshrl.u32 %v1016_v17, 16  ;;  %v1048_v24 = vshll.u32 %v1016_v17, 16  ;;  %v870_v25 = vld [vmem:[#allocation2 + $0x48] sm:$0x8] }
  0x86   : > { %v755_v26 = vrot.slane %v754_v16, 4  ;;  %v1033_v6 = vrot.slane %v1031_v19, 4  ;;  %v1036_v27 = vrot.slane %v1034_v20, 5  ;;  %v1054_v28 = vshll.u32 %v1017_v18, 16  ;;  %v2808_v29 = vld [vmem:[#allocation3 + $0x1c] sm:$0xf] }
  0x87   : > { %v2397_v30 = vld [vmem:[#allocation3 + $0x3c] sm:$0xf0]  ;;  %v746_v31 = vsel %vm3113_vm5, %v741_v21, %v745_v11  ;;  %v1047_v34 = vrot.slane %v1045_v0, 4  ;;  %v1050_v36 = vrot.slane %v1048_v24, 5  ;;  %v1042_v41 = vrot.slane %v1040_v22, 5 }
  0x88   : > { %2092 = vmatmul.bf16.gmra.mxu0 %v2460_v8  ;;  %2951 = vmatpush.bf16.msra.mxu2 %v2905_v7  ;;  %v760_v38 = vsel %vm3113_vm5, %v755_v26, %v759_v13  ;;  %853 = vst [vmem:[#allocation3 + $0x14] sm:$0xf] %v746_v31  ;;  %v1037_v40 = vor.u32 %v1036_v27, %v1033_v6  ;;  %v871_v23 = vld [vmem:[#allocation2 + $0x4c] sm:$0xf]  ;;  %v931_v43 = vshrl.u32 %v870_v25, 16  ;;  %v1056_v45 = vrot.slane %v1054_v28, 5 }
  0x89   : > { %854 = vst [vmem:[#allocation3 + $0x38] sm:$0xf] %v760_v38  ;;  %v1051_v44 = vor.u32 %v1050_v36, %v1047_v34  ;;  %v872_v46 = vld [vmem:[#allocation2 + $0x54] sm:$0x8]  ;;  %v2400_v32 = vor.u32 %v2808_v29, %v2397_v30  ;;  %v873_v48 = vld [vmem:[#allocation2 + $0x58] sm:$0xf] }
  0x8a   : > { %v1038_v47 = vrot.slane %v1037_v40, 4  ;;  %v2365_v51 = vrot.slane %v931_v43, 11  ;;  %v936_v52 = vshrl.u32 %v871_v23, 16  ;;  %v939_v33 = vshll.u32 %v871_v23, 16  ;;  %v721_v53 = vld [vmem:[#allocation2 + $0x28] sm:$0xf] }
  0x8b   : > { %2140 = vmatmul.bf16.vlgmr.msrb.gmra.mxu2 %v2396_v15  ;;  %v1052_v50 = vrot.slane %v1051_v44, 4  ;;  %v944_v55 = vshrl.u32 %v872_v46, 16  ;;  %v949_v56 = vshrl.u32 %v873_v48, 16  ;;  %v952_v57 = vshll.u32 %v873_v48, 16  ;;  %v722_v59 = vld [vmem:[#allocation2 + $0x2c] sm:$0x1] }
  0x8c   : > { %v1043_v54 = vsel %vm3113_vm5, %v1038_v47, %v1042_v41  ;;  %v2495_v42 = vld [vmem:[#allocation3 + $0xe8] sm:$0xf]  ;;  %v2838_v60 = vld [vmem:[#allocation3 + $0x108] sm:$0xf0]  ;;  %v938_v61 = vrot.slane %v936_v52, 7  ;;  %v762_v2 = vshrl.u32 %v721_v53, 16 }
  0x8d   : > { %2010 = vmatmul.bf16.gmra.mxu1 %v2484_v14  ;;  %v1057_v37 = vsel %vm3113_vm5, %v1052_v50, %v1056_v45  ;;  %1150 = vst [vmem:[#allocation3 + $0x20] sm:$0xf] %v1043_v54  ;;  %v723_v62 = vld [vmem:[#allocation2 + $0x34] sm:$0xf]  ;;  %v2366_v49 = vrot.slane %v944_v55, 11  ;;  %v951_v3 = vrot.slane %v949_v56, 7  ;;  %v2496_v19 = vor.u32 %v2838_v60, %v2495_v42 }
  0x8e   : > { %1151 = vst [vmem:[#allocation3 + $0x44] sm:$0xf] %v1057_v37  ;;  %v724_v4 = vld [vmem:[#allocation2 + $0x38] sm:$0x1]  ;;  %v941_v8 = vor.u32 %v939_v33, %v938_v61  ;;  %v764_v9 = vrot.slane %v762_v2, 4  ;;  %v765_v10 = vshll.u32 %v721_v53, 16 }
  0x8f   : > { %v2431_v7 = vld [vmem:[#allocation3 + $0x60] sm:$0xf]  ;;  %v771_v11 = vshll.u32 %v722_v59, 16  ;;  %v2821_v1 = vld [vmem:[#allocation3 + $0x80] sm:$0xf0]  ;;  %v954_v12 = vor.u32 %v952_v57, %v951_v3  ;;  %v776_v13 = vshrl.u32 %v723_v62, 16 }
  0x90   : > { %v779_v14 = vshll.u32 %v723_v62, 16  ;;  %v785_v5 = vshll.u32 %v724_v4, 16  ;;  %v2807_v39 = vld [vmem:[#allocation3 + $0x14] sm:$0xf]  ;;  %v2389_v58 = vld [vmem:[#allocation3 + $0x34] sm:$0xf0]  ;;  %v942_v15 = vsel %vm3096_vm2, %v2365_v51, %v941_v8  ;;  %v2432_v6 = vor.u32 %v2821_v1, %v2431_v7 }
  0x91   : > { %2169 = vmatmul.bf16.vlgmr.msrb.gmra.mxu3 %v2400_v32  ;;  %v767_v16 = vrot.slane %v765_v10, 5  ;;  %v773_v17 = vrot.slane %v771_v11, 5  ;;  %v1002_v18 = vld [vmem:[#allocation2 + $0x4c] sm:$0xf]  ;;  %v955_v20 = vsel %vm3096_vm2, %v2366_v49, %v954_v12  ;;  %994 = vst [vmem:[#allocation3 + $0xa8] sm:$0xf] %v942_v15  ;;  %v2392_v38 = vor.u32 %v2807_v39, %v2389_v58 }
  0x92   : > { %v778_v21 = vrot.slane %v776_v13, 4  ;;  %v781_v22 = vrot.slane %v779_v14, 5  ;;  %v1003_v0 = vld [vmem:[#allocation2 + $0x58] sm:$0xf]  ;;  %995 = vst [vmem:[#allocation3 + $0xcc] sm:$0xf] %v955_v20 }
  0x93   : > { %v768_v24 = vor.u32 %v767_v16, %v764_v9  ;;  %v1018_v25 = vld [vmem:[#allocation2 + $0x34] sm:$0xf]  ;;  %v1019_v26 = vld [vmem:[#allocation2 + $0x38] sm:$0x1]  ;;  %v787_v28 = vrot.slane %v785_v5, 5 }
  0x94   : > { %v782_v27 = vor.u32 %v781_v22, %v778_v21  ;;  %1010 = vst [vmem:[#allocation3 + $0xac] sm:$0xf] %v1002_v18  ;;  %v1020_v29 = vld [vmem:[#allocation2 + $0x40] sm:$0xf]  ;;  %v2817_v30 = vld [vmem:[#allocation3 + $0x64] sm:$0xf] }
  0x95   : > { %v2433_v31 = vld [vmem:[#allocation3 + $0x84] sm:$0xf0]  ;;  %v769_v34 = vrot.slane %v768_v24, 4  ;;  %1011 = vst [vmem:[#allocation3 + $0xd0] sm:$0xf] %v1003_v0  ;;  %v1059_v36 = vshrl.u32 %v1018_v25, 16 }
  0x96   : > { %v783_v40 = vrot.slane %v782_v27, 4  ;;  %v1021_v41 = vld [vmem:[#allocation2 + $0x44] sm:$0x1]  ;;  %v1062_v23 = vshll.u32 %v1018_v25, 16  ;;  %v1068_v43 = vshll.u32 %v1019_v26, 16  ;;  %v1073_v46 = vshrl.u32 %v1020_v29, 16 }
  0x97   : > { %v774_v44 = vsel %vm3113_vm5, %v769_v34, %v773_v17  ;;  %v1061_v45 = vrot.slane %v1059_v36, 4  ;;  %v1076_v32 = vshll.u32 %v1020_v29, 16  ;;  %v874_v47 = vld [vmem:[#allocation2 + $0x60] sm:$0x8]  ;;  %v1082_v51 = vshll.u32 %v1021_v41, 16 }
  0x98   : > { %2097 = vmatmul.bf16.gmra.mxu0 %v2496_v19  ;;  %v788_v48 = vsel %vm3113_vm5, %v783_v40, %v787_v28  ;;  %855 = vst [vmem:[#allocation3 + $0x5c] sm:$0xf] %v774_v44  ;;  %v1064_v50 = vrot.slane %v1062_v23, 5  ;;  %v1075_v52 = vrot.slane %v1073_v46, 4  ;;  %v2436_v53 = vor.u32 %v2817_v30, %v2433_v31  ;;  %v875_v56 = vld [vmem:[#allocation2 + $0x64] sm:$0xf] }
  0x99   : > { %856 = vst [vmem:[#allocation3 + $0x80] sm:$0xf] %v788_v48  ;;  %v1078_v33 = vrot.slane %v1076_v32, 5  ;;  %v1070_v55 = vrot.slane %v1068_v43, 5  ;;  %v957_v57 = vshrl.u32 %v874_v47, 16  ;;  %v1084_v42 = vrot.slane %v1082_v51, 5 }
  0x9a   : > { %v1065_v54 = vor.u32 %v1064_v50, %v1061_v45  ;;  %v876_v60 = vld [vmem:[#allocation2 + $0x6c] sm:$0x8]  ;;  %v877_v37 = vld [vmem:[#allocation2 + $0x70] sm:$0xf]  ;;  %v2403_v61 = vld [vmem:[#allocation3 + $0x20] sm:$0xf] }
  0x9b   : > { %2145 = vmatmul.bf16.gmra.mxu2 %v2432_v6  ;;  %v1079_v59 = vor.u32 %v1078_v33, %v1075_v52  ;;  %v962_v2 = vshrl.u32 %v875_v56, 16  ;;  %v965_v49 = vshll.u32 %v875_v56, 16  ;;  %v2813_v3 = vld [vmem:[#allocation3 + $0x40] sm:$0xf0]  ;;  %v2367_v7 = vrot.slane %v957_v57, 11 }
  0x9c   : > { %v1066_v62 = vrot.slane %v1065_v54, 4  ;;  %v970_v8 = vshrl.u32 %v876_v60, 16  ;;  %v975_v9 = vshrl.u32 %v877_v37, 16  ;;  %v978_v1 = vshll.u32 %v877_v37, 16  ;;  %v725_v12 = vld [vmem:[#allocation2 + $0x40] sm:$0xf] }
  0x9d   : > { %2111 = vmatmul.bf16.vlgmr.msra.gmra.mxu1 %v2392_v38  ;;  %v1080_v4 = vrot.slane %v1079_v59, 4  ;;  %v964_v11 = vrot.slane %v962_v2, 7  ;;  %v726_v13 = vld [vmem:[#allocation2 + $0x44] sm:$0x1]  ;;  %v2467_v14 = vld [vmem:[#allocation3 + $0xa8] sm:$0xf]  ;;  %v2404_v19 = vor.u32 %v2813_v3, %v2403_v61 }
  0x9e   : > { %v1071_v10 = vsel %vm3113_vm5, %v1066_v62, %v1070_v55  ;;  %v2368_v39 = vrot.slane %v970_v8, 11  ;;  %v977_v58 = vrot.slane %v975_v9, 7  ;;  %v727_v15 = vld [vmem:[#allocation2 + $0x4c] sm:$0xf]  ;;  %v2830_v16 = vld [vmem:[#allocation3 + $0xc8] sm:$0xf0] }
  0x9f   : > { %v1085_v5 = vsel %vm3113_vm5, %v1080_v4, %v1084_v42  ;;  %1152 = vst [vmem:[#allocation3 + $0x68] sm:$0xf] %v1071_v10  ;;  %v967_v17 = vor.u32 %v965_v49, %v964_v11  ;;  %v728_v18 = vld [vmem:[#allocation2 + $0x50] sm:$0x1]  ;;  %v2816_v20 = vld [vmem:[#allocation3 + $0x5c] sm:$0xf]  ;;  %v2468_v38 = vor.u32 %v2830_v16, %v2467_v14 }
  0xa0   : > { %1153 = vst [vmem:[#allocation3 + $0x8c] sm:$0xf] %v1085_v5  ;;  %v2425_v21 = vld [vmem:[#allocation3 + $0x7c] sm:$0xf0]  ;;  %v980_v22 = vor.u32 %v978_v1, %v977_v58  ;;  %v790_v0 = vshrl.u32 %v725_v12, 16  ;;  %v793_v24 = vshll.u32 %v725_v12, 16 }
  0xa1   : > { %2174 = vmatmul.bf16.gmra.mxu3 %v2436_v53  ;;  %v1004_v25 = vld [vmem:[#allocation2 + $0x64] sm:$0xf]  ;;  %v1005_v26 = vld [vmem:[#allocation2 + $0x70] sm:$0xf]  ;;  %v968_v6 = vsel %vm3096_vm2, %v2367_v7, %v967_v17  ;;  %v799_v27 = vshll.u32 %v726_v13, 16  ;;  %v804_v28 = vshrl.u32 %v727_v15, 16  ;;  %v2428_v45 = vor.u32 %v2816_v20, %v2425_v21 }
  0xa2   : > { %v807_v29 = vshll.u32 %v727_v15, 16  ;;  %1012 = vst [vmem:[#allocation3 + $0xf4] sm:$0xf] %v1004_v25  ;;  %v981_v30 = vsel %vm3096_vm2, %v2368_v39, %v980_v22  ;;  %v792_v31 = vrot.slane %v790_v0, 4  ;;  %v795_v34 = vrot.slane %v793_v24, 5 }
  0xa3   : > { %996 = vst [vmem:[#allocation3 + $0xf0] sm:$0xf] %v968_v6  ;;  %v813_v36 = vshll.u32 %v728_v18, 16  ;;  %v806_v40 = vrot.slane %v804_v28, 4  ;;  %v801_v43 = vrot.slane %v799_v27, 5 }
  0xa4   : > { %997 = vst [vmem:[#allocation3 + $0x114] sm:$0xf] %v981_v30  ;;  %v809_v41 = vrot.slane %v807_v29, 5  ;;  %v796_v23 = vor.u32 %v795_v34, %v792_v31  ;;  %v1022_v44 = vld [vmem:[#allocation2 + $0x4c] sm:$0xf] }
  0xa5   : > { %1013 = vst [vmem:[#allocation3 + $0x118] sm:$0xf] %v1005_v26  ;;  %v815_v32 = vrot.slane %v813_v36, 5  ;;  %v1023_v47 = vld [vmem:[#allocation2 + $0x50] sm:$0x1]  ;;  %v1087_v52 = vshrl.u32 %v1022_v44, 16 }
  0xa6   : > { %v810_v46 = vor.u32 %v809_v41, %v806_v40  ;;  %v1024_v48 = vld [vmem:[#allocation2 + $0x58] sm:$0xf]  ;;  %v2826_v35 = vld [vmem:[#allocation3 + $0xac] sm:$0xf]  ;;  %v2469_v50 = vld [vmem:[#allocation3 + $0xcc] sm:$0xf0] }
  0xa7   : > { %v797_v51 = vrot.slane %v796_v23, 4  ;;  %v1025_v53 = vld [vmem:[#allocation2 + $0x5c] sm:$0x1]  ;;  %v1090_v54 = vshll.u32 %v1022_v44, 16  ;;  %v1096_v55 = vshll.u32 %v1023_v47, 16  ;;  %v1089_v57 = vrot.slane %v1087_v52, 4 }
  0xa8   : > { %2198 = vmatmul.bf16.vlgmr.msra.gmra.mxu0 %v2404_v19  ;;  %v811_v33 = vrot.slane %v810_v46, 4  ;;  %v1101_v59 = vshrl.u32 %v1024_v48, 16  ;;  %v1104_v42 = vshll.u32 %v1024_v48, 16  ;;  %v1026_v60 = vld [vmem:[#allocation2 + $0x64] sm:$0xf]  ;;  %v2472_v37 = vor.u32 %v2826_v35, %v2469_v50 }
  0xa9   : > { %v802_v56 = vsel %vm3113_vm5, %v797_v51, %v801_v43  ;;  %v1092_v62 = vrot.slane %v1090_v54, 5  ;;  %v1098_v4 = vrot.slane %v1096_v55, 5  ;;  %v1110_v7 = vshll.u32 %v1025_v53, 16  ;;  %v1027_v8 = vld [vmem:[#allocation2 + $0x68] sm:$0x1] }
  0xaa   : > { %v816_v61 = vsel %vm3113_vm5, %v811_v33, %v815_v32  ;;  %857 = vst [vmem:[#allocation3 + $0xa4] sm:$0xf] %v802_v56  ;;  %v1103_v2 = vrot.slane %v1101_v59, 4  ;;  %v1106_v49 = vrot.slane %v1104_v42, 5  ;;  %v1115_v9 = vshrl.u32 %v1026_v60, 16 }
  0xab   : > { %2150 = vmatmul.bf16.gmra.mxu2 %v2468_v38  ;;  %858 = vst [vmem:[#allocation3 + $0xc8] sm:$0xf] %v816_v61  ;;  %v1093_v3 = vor.u32 %v1092_v62, %v1089_v57  ;;  %v2439_v10 = vld [vmem:[#allocation3 + $0x68] sm:$0xf]  ;;  %v2822_v11 = vld [vmem:[#allocation3 + $0x88] sm:$0xf0] }
  0xac   : > { %v1107_v1 = vor.u32 %v1106_v49, %v1103_v2  ;;  %v1028_v12 = vld [vmem:[#allocation2 + $0x70] sm:$0xf]  ;;  %v1029_v13 = vld [vmem:[#allocation2 + $0x74] sm:$0x1]  ;;  %v1118_v14 = vshll.u32 %v1026_v60, 16  ;;  %v1124_v5 = vshll.u32 %v1027_v8, 16  ;;  %v2440_v38 = vor.u32 %v2822_v11, %v2439_v10 }
  0xad   : > { %2116 = vmatmul.bf16.gmra.mxu1 %v2428_v45  ;;  %v2503_v39 = vld [vmem:[#allocation3 + $0xf0] sm:$0xf]  ;;  %v2839_v58 = vld [vmem:[#allocation3 + $0x110] sm:$0xf0]  ;;  %v1094_v15 = vrot.slane %v1093_v3, 4  ;;  %v1112_v16 = vrot.slane %v1110_v7, 5 }
  0xae   : > { %v1117_v17 = vrot.slane %v1115_v9, 4  ;;  %v1129_v18 = vshrl.u32 %v1028_v12, 16  ;;  %v729_v19 = vld [vmem:[#allocation2 + $0x58] sm:$0xf]  ;;  %v1108_v20 = vrot.slane %v1107_v1, 4  ;;  %v1120_v21 = vrot.slane %v1118_v14, 5 }
  0xaf   : > { %v1126_v22 = vrot.slane %v1124_v5, 5  ;;  %v1132_v0 = vshll.u32 %v1028_v12, 16  ;;  %v730_v24 = vld [vmem:[#allocation2 + $0x5c] sm:$0x1]  ;;  %v1099_v25 = vsel %vm3113_vm5, %v1094_v15, %v1098_v4  ;;  %v1138_v6 = vshll.u32 %v1029_v13, 16 }
  0xb0   : > { %v1131_v26 = vrot.slane %v1129_v18, 4  ;;  %v731_v27 = vld [vmem:[#allocation2 + $0x64] sm:$0xf]  ;;  %v732_v28 = vld [vmem:[#allocation2 + $0x68] sm:$0x1]  ;;  %v1113_v30 = vsel %vm3113_vm5, %v1108_v20, %v1112_v16  ;;  %v1121_v31 = vor.u32 %v1120_v21, %v1117_v17  ;;  %v818_v36 = vshrl.u32 %v729_v19, 16  ;;  %v3254_v44 = vpop.f32.mrf.mxu1 }
  0xb1   : > { %2179 = vmatmul.bf16.gmra.mxu3 %v2472_v37  ;;  %v2825_v29 = vld [vmem:[#allocation3 + $0xa4] sm:$0xf]  ;;  %1154 = vst [vmem:[#allocation3 + $0xb0] sm:$0xf] %v1099_v25  ;;  %v1134_v34 = vrot.slane %v1132_v0, 5  ;;  %v1140_v41 = vrot.slane %v1138_v6, 5  ;;  %v2504_v43 = vor.u32 %v2839_v58, %v2503_v39 }
  0xb2   : > { %v2461_v40 = vld [vmem:[#allocation3 + $0xc4] sm:$0xf0]  ;;  %1155 = vst [vmem:[#allocation3 + $0xd4] sm:$0xf] %v1113_v30  ;;  %v821_v23 = vshll.u32 %v729_v19, 16  ;;  %v1122_v45 = vrot.slane %v1121_v31, 4 }
  0xb3   : > { %v1135_v46 = vor.u32 %v1134_v34, %v1131_v26  ;;  %v820_v32 = vrot.slane %v818_v36, 4  ;;  %v827_v48 = vshll.u32 %v730_v24, 16  ;;  %v832_v35 = vshrl.u32 %v731_v27, 16  ;;  %v2835_v59 = vld [vmem:[#allocation3 + $0xf4] sm:$0xf] }
  0xb4   : > { %v823_v47 = vrot.slane %v821_v23, 5  ;;  %v835_v50 = vshll.u32 %v731_v27, 16  ;;  %v2464_v51 = vor.u32 %v2825_v29, %v2461_v40  ;;  %v1127_v52 = vsel %vm3113_vm5, %v1122_v45, %v1126_v22  ;;  %v2505_v42 = vld [vmem:[#allocation3 + $0x114] sm:$0xf0] }
  0xb5   : > { %v1136_v33 = vrot.slane %v1135_v46, 4  ;;  %v841_v53 = vshll.u32 %v732_v28, 16  ;;  %1156 = vst [vmem:[#allocation3 + $0xf8] sm:$0xf] %v1127_v52  ;;  %v829_v55 = vrot.slane %v827_v48, 5  ;;  %v834_v56 = vrot.slane %v832_v35, 4 }
  0xb6   : > { %v824_v54 = vor.u32 %v823_v47, %v820_v32  ;;  %v837_v57 = vrot.slane %v835_v50, 5  ;;  %v2508_v2 = vor.u32 %v2835_v59, %v2505_v42 }
  0xb7   : > { %v1141_v60 = vsel %vm3113_vm5, %v1136_v33, %v1140_v41  ;;  %v843_v62 = vrot.slane %v841_v53, 5 }
  0xb8   : > { %2203 = vmatmul.bf16.gmra.mxu0 %v2440_v38  ;;  %1157 = vst [vmem:[#allocation3 + $0x11c] sm:$0xf] %v1141_v60  ;;  %v825_v37 = vrot.slane %v824_v54, 4  ;;  %v838_v61 = vor.u32 %v837_v57, %v834_v56  ;;  %v1979_v7 = vpop.f32.mrf.mxu1  ;;  %v2475_v8 = vld [vmem:[#allocation3 + $0xb0] sm:$0xf] }
  0xb9   : > { %v2831_v9 = vld [vmem:[#allocation3 + $0xd0] sm:$0xf0] }
  0xba   : > { %v830_v49 = vsel %vm3113_vm5, %v825_v37, %v829_v55  ;;  %v839_v3 = vrot.slane %v838_v61, 4  ;;  %v2476_v1 = vor.u32 %v2831_v9, %v2475_v8 }
  0xbb   : > { %2155 = vmatmul.bf16.gmra.mxu2 %v2504_v43  ;;  %859 = vst [vmem:[#allocation3 + $0xec] sm:$0xf] %v830_v49 }
  0xbc   : > { %v844_v4 = vsel %vm3113_vm5, %v839_v3, %v843_v62  ;;  %v2511_v10 = vld [vmem:[#allocation3 + $0xf8] sm:$0xf] }
  0xbd   : > { %2121 = vmatmul.bf16.gmra.mxu1 %v2464_v51  ;;  %860 = vst [vmem:[#allocation3 + $0x110] sm:$0xf] %v844_v4 }
  0xbf   : > { %v2840_v11 = vld [vmem:[#allocation3 + $0x118] sm:$0xf0] }
  0xc0   : > { %v2512_v14 = vor.u32 %v2840_v11, %v2511_v10 }
  0xc1   : > { %2184 = vmatmul.bf16.gmra.mxu3 %v2508_v2 }
  0xc2   : > { %v2834_v13 = vld [vmem:[#allocation3 + $0xec] sm:$0xf] }
  0xc4   : > { %v2497_v5 = vld [vmem:[#allocation3 + $0x10c] sm:$0xf0] }
  0xc5   : > { %v1967_v12 = vpop.f32.mrf.mxu0  ;;  %v2500_v39 = vor.u32 %v2834_v13, %v2497_v5 }
  0xc8   : > { %2208 = vmatmul.bf16.gmra.mxu0 %v2476_v1 }
  0xca   : > { %v1982_v58 = vpop.f32.mrf.mxu1 }
  0xcb   : > { %2213 = vmatmul.bf16.vlgmr.msra.gmra.mxu2 %v2512_v14 }
  0xcd   : > { %2126 = vmatmul.bf16.gmra.mxu1 %v2500_v39  ;;  %v1969_v15 = vpop.f32.mrf.mxu0 }
  0xce   : > { %v2025_v63 = vpop.f32.mrf.mxu2 }
  0xd2   : > { %v1984_v16 = vpop.f32.mrf.mxu1 }
  0xd4   : > { %v2054_v17 = vpop.f32.mrf.mxu3 }
  0xd5   : > { %v1972_v18 = vpop.f32.mrf.mxu0 }
  0xd6   : > { %v2027_v19 = vpop.f32.mrf.mxu2 }
  0xda   : > { %v1996_v20 = vpop.f32.mrf.mxu1 }
  0xdb   : > { %v1997_v21 = vadd.f32 %v1996_v20, %v1967_v12 }
  0xdc   : > { %v2056_v22 = vpop.f32.mrf.mxu3 }
  0xdd   : > { %v2026_v0 = vadd.f32 %v2025_v63, %v1997_v21  ;;  %v1974_v24 = vpop.f32.mrf.mxu0 }
  0xde   : > { %v2030_v25 = vpop.f32.mrf.mxu2 }
  0xdf   : > { %v2055_v26 = vadd.f32 %v2054_v17, %v2026_v0 }
  0xe2   : > { %v1998_v6 = vpop.f32.mrf.mxu1 }
  0xe3   : > { %v1999_v27 = vadd.f32 %v1998_v6, %v1969_v15 }
  0xe4   : > { %v2059_v28 = vpop.f32.mrf.mxu3 }
  0xe5   : > { %v2028_v29 = vadd.f32 %v2027_v19, %v1999_v27  ;;  %v2083_v31 = vpop.f32.mrf.mxu0  ;;  %v3284_v27 = vld [vmem:[%s3331_s2] ss:$0 sm:$0xff] }
  0xe6   : > { %v2032_v30 = vpop.f32.mrf.mxu2  ;;  %v2084_v34 = vadd.f32 %v2083_v31, %v2055_v26  ;;  %v3290_v31 = vld [vmem:[%s3332_s3] ss:$0 sm:$0xff] }
  0xe7   : > { %v2057_v15 = vadd.f32 %v2056_v22, %v2028_v29 }
  0xea   : > { %v2001_v36 = vpop.f32.mrf.mxu1 }
  0xeb   : > { %v2002_v38 = vadd.f32 %v2001_v36, %v1972_v18 }
  0xec   : > { %v2061_v40 = vpop.f32.mrf.mxu3 }
  0xed   : > { %v2031_v41 = vadd.f32 %v2030_v25, %v2002_v38  ;;  %v2085_v43 = vpop.f32.mrf.mxu0 }
  0xee   : > { %v2035_v23 = vpop.f32.mrf.mxu2  ;;  %v2086_v18 = vadd.f32 %v2085_v43, %v2057_v15 }
  0xef   : > { %v2060_v45 = vadd.f32 %v2059_v28, %v2031_v41 }
  0xf2   : > { %v2003_v46 = vpop.f32.mrf.mxu1 }
  0xf3   : > { %v2004_v32 = vadd.f32 %v2003_v46, %v1974_v24 }
  0xf4   : > { %v2064_v47 = vpop.f32.mrf.mxu3 }
  0xf5   : > { %v2033_v48 = vadd.f32 %v2032_v30, %v2004_v32  ;;  %v2088_v50 = vpop.f32.mrf.mxu0 }
  0xf6   : > { %v2037_v35 = vpop.f32.mrf.mxu2  ;;  %v2089_v51 = vadd.f32 %v2088_v50, %v2060_v45 }
  0xf7   : > { %v2062_v29 = vadd.f32 %v2061_v40, %v2033_v48 }
  0xfa   : > { %v2006_v52 = vpop.f32.mrf.mxu1 }
  0xfb   : > { %v2007_v33 = vadd.f32 %v2006_v52, %v3254_v44 }
  0xfc   : > { %v3265_v53 = vpop.f32.mrf.mxu3 }
  0xfd   : > { %v2036_v54 = vadd.f32 %v2035_v23, %v2007_v33  ;;  %v2090_v56 = vpop.f32.mrf.mxu0 }
  0xfe   : > { %v2040_v55 = vpop.f32.mrf.mxu2  ;;  %v2091_v43 = vadd.f32 %v2090_v56, %v2062_v29 }
  0xff   : > { %v2065_v57 = vadd.f32 %v2064_v47, %v2036_v54 }
 0x102   : > { %v2008_v59 = vpop.f32.mrf.mxu1 }
 0x103   : > { %v2009_v42 = vadd.f32 %v2008_v59, %v1979_v7 }
 0x104   : > { %v2069_v60 = vpop.f32.mrf.mxu3 }
 0x105   : > { %v3267_v37 = vadd.f32 %v2037_v35, %v2009_v42  ;;  %v2093_v62 = vpop.f32.mrf.mxu0 }
 0x106   : > { %v2042_v61 = vpop.f32.mrf.mxu2  ;;  %v3269_v2 = vadd.f32 %v2093_v62, %v2065_v57 }
 0x10a   : > { %v2011_v49 = vpop.f32.mrf.mxu1 }
 0x10b   : > { %v2012_v3 = vadd.f32 %v2011_v49, %v1982_v58 }
 0x10c   : > { %v3271_v4 = vpop.f32.mrf.mxu3 }
 0x10d   : > { %v2041_v44 = vadd.f32 %v2040_v55, %v2012_v3  ;;  %v2095_v8 = vpop.f32.mrf.mxu0 }
 0x10e   : > { %v2141_v9 = vpop.f32.mrf.mxu2 }
 0x10f   : > { %v3273_v10 = vadd.f32 %v2069_v60, %v2041_v44  ;;  %v2067_v60 = vadd.f32 %v3265_v53, %v3267_v37 }
 0x112   : > { %v2013_v11 = vpop.f32.mrf.mxu1 }
 0x113   : > { %v2014_v1 = vadd.f32 %v2013_v11, %v1984_v16 }
 0x114   : > { %v2170_v12 = vpop.f32.mrf.mxu3 }
 0x115   : > { %v3275_v7 = vadd.f32 %v2042_v61, %v2014_v1  ;;  %v3277_v13 = vpop.f32.mrf.mxu0 }
 0x116   : > { %v2143_v14 = vpop.f32.mrf.mxu2 }
 0x11a   : > { %v2112_v5 = vpop.f32.mrf.mxu1 }
 0x11b   : > { %v2113_v63 = vadd.f32 %v2112_v5, %v2084_v34 }
 0x11c   : > { %v2172_v39 = vpop.f32.mrf.mxu3 }
 0x11d   : > { %v3279_v58 = vpop.f32.mrf.mxu0  ;;  %v2142_v19 = vadd.f32 %v2141_v9, %v2113_v63  ;;  %v2096_v9 = vadd.f32 %v2095_v8, %v2067_v60  ;;  %v2099_v8 = vadd.f32 %v3277_v13, %v3273_v10 }
 0x11e   : > { %v2146_v17 = vpop.f32.mrf.mxu2 }
 0x11f   : > { %v2171_v24 = vadd.f32 %v2170_v12, %v2142_v19 }
 0x122   : > { %v2114_v20 = vpop.f32.mrf.mxu1 }
 0x123   : > { %v2115_v21 = vadd.f32 %v2114_v20, %v2086_v18 }
 0x124   : > { %v2175_v0 = vpop.f32.mrf.mxu3 }
 0x125   : > { %v2199_v25 = vpop.f32.mrf.mxu0  ;;  %v2144_v26 = vadd.f32 %v2143_v14, %v2115_v21 }
 0x126   : > { %v2148_v16 = vpop.f32.mrf.mxu2  ;;  %v2200_v6 = vadd.f32 %v2199_v25, %v2171_v24  ;;  %v2072_v25 = vadd.f32 %v3271_v4, %v3275_v7 }
 0x127   : > { %v2173_v28 = vadd.f32 %v2172_v39, %v2144_v26 }
 0x128   : > { %v2223_v30 = vmul.f32 %v3284_v27, %v2200_v6 }
 0x12a   : > { %v2117_v22 = vpop.f32.mrf.mxu1  ;;  %v2235_v45 = vadd.f32 %v3290_v31, %v2223_v30 }
 0x12b   : > { %v2118_v34 = vadd.f32 %v2117_v22, %v2089_v51 }
 0x12c   : > { %v2177_v36 = vpop.f32.mrf.mxu3  ;;  %v2243_v35 = vmax.f32 %v2235_v45, 0.0 }
 0x12d   : > { %v2201_v41 = vpop.f32.mrf.mxu0  ;;  %v2147_v32 = vadd.f32 %v2146_v17, %v2118_v34  ;;  %v2101_v34 = vadd.f32 %v3279_v58, %v2072_v25 }
 0x12e   : > { %v2151_v38 = vpop.f32.mrf.mxu2  ;;  %v2202_v23 = vadd.f32 %v2201_v41, %v2173_v28 }
 0x12f   : > { %v2176_v52 = vadd.f32 %v2175_v0, %v2147_v32 }
 0x130   : > { %v2224_v46 = vmul.f32 %v3284_v27, %v2202_v23 }
 0x132   : > { %v2119_v40 = vpop.f32.mrf.mxu1  ;;  %v2236_v47 = vadd.f32 %v3290_v31, %v2224_v46 }
 0x133   : > { %v2120_v48 = vadd.f32 %v2119_v40, %v2091_v43 }
 0x134   : > { %v2244_v50 = vmax.f32 %v2236_v47, 0.0  ;;  %v2180_v56 = vpop.f32.mrf.mxu3 }
 0x135   : > { %v2204_v33 = vpop.f32.mrf.mxu0  ;;  %v2149_v55 = vadd.f32 %v2148_v16, %v2120_v48 }
 0x136   : > { %v2153_v51 = vpop.f32.mrf.mxu2  ;;  %v2916_v54 = vpack.c.bf16 %v2244_v50, %v2243_v35  ;;  %v2205_v57 = vadd.f32 %v2204_v33, %v2176_v52 }
 0x137   : > { %v2178_v42 = vadd.f32 %v2177_v36, %v2149_v55 }
 0x138   : > { %2917 = vst [vmem:[%s3300_s8] sm:$0xff] %v2916_v54   ;;  %v2225_v61 = vmul.f32 %v3284_v27, %v2205_v57 }
 0x13a   : > { %v2122_v59 = vpop.f32.mrf.mxu1  ;;  %v2237_v11 = vadd.f32 %v3290_v31, %v2225_v61 }
 0x13b   : > { %v2123_v62 = vadd.f32 %v2122_v59, %v3269_v2 }
 0x13c   : > { %v2182_v14 = vpop.f32.mrf.mxu3  ;;  %v2245_v53 = vmax.f32 %v2237_v11, 0.0 }
 0x13d   : > { %v2206_v3 = vpop.f32.mrf.mxu0  ;;  %v2152_v12 = vadd.f32 %v2151_v38, %v2123_v62 }
 0x13e   : > { %v2156_v49 = vpop.f32.mrf.mxu2  ;;  %v2207_v44 = vadd.f32 %v2206_v3, %v2178_v42 }
 0x13f   : > { %v2181_v63 = vadd.f32 %v2180_v56, %v2152_v12 }
 0x140   : > { %v2226_v1 = vmul.f32 %v3284_v27, %v2207_v44 }
 0x142   : > { %v2124_v5 = vpop.f32.mrf.mxu1  ;;  %v2238_v39 = vadd.f32 %v3290_v31, %v2226_v1 }
 0x143   : > { %v2125_v15 = vadd.f32 %v2124_v5, %v2096_v9 }
 0x144   : > { %v2246_v37 = vmax.f32 %v2238_v39, 0.0  ;;  %v2185_v16 = vpop.f32.mrf.mxu3 }
 0x145   : > { %v2209_v2 = vpop.f32.mrf.mxu0  ;;  %v2154_v19 = vadd.f32 %v2153_v51, %v2125_v15 }
 0x146   : > { %v2158_v17 = vpop.f32.mrf.mxu2  ;;  %v2921_v18 = vpack.c.bf16 %v2246_v37, %v2245_v53  ;;  %v2210_v20 = vadd.f32 %v2209_v2, %v2181_v63 }
 0x147   : > { %v2183_v0 = vadd.f32 %v2182_v14, %v2154_v19 }
 0x148   : > { %2933 = vst [vmem:[%s3300_s8 + $0x8] sm:$0xff] %v2921_v18   ;;  %v2227_v26 = vmul.f32 %v3284_v27, %v2210_v20 }
 0x14a   : > { %v2127_v21 = vpop.f32.mrf.mxu1  ;;  %v2239_v10 = vadd.f32 %v3290_v31, %v2227_v26 }
 0x14b   : > { %v2128_v24 = vadd.f32 %v2127_v21, %v2099_v8 }
 0x14c   : > { %v2247_v4 = vmax.f32 %v2239_v10, 0.0  ;;  %v2187_v45 = vpop.f32.mrf.mxu3 }
 0x14d   : > { %v2157_v6 = vadd.f32 %v2156_v49, %v2128_v24  ;;  %v2211_v22 = vpop.f32.mrf.mxu0 }
 0x14e   : > { %v2214_v28 = vpop.f32.mrf.mxu2  ;;  %v2212_v29 = vadd.f32 %v2211_v22, %v2183_v0 }
 0x14f   : > { %v2186_v30 = vadd.f32 %v2185_v16, %v2157_v6 }
 0x150   : > { %v2228_v13 = vmul.f32 %v3284_v27, %v2212_v29 }
 0x151   : > { %v2215_v41 = vadd.f32 %v2214_v28, %v2186_v30 }
 0x152   : > { %v2129_v36 = vpop.f32.mrf.mxu1  ;;  %v2240_v38 = vadd.f32 %v3290_v31, %v2228_v13 }
 0x153   : > { %v2130_v23 = vadd.f32 %v2129_v36, %v2101_v34  ;;  %v2229_v32 = vmul.f32 %v3284_v27, %v2215_v41 }
 0x154   : > { %v2248_v7 = vmax.f32 %v2240_v38, 0.0 }
 0x155   : > { %v2159_v43 = vadd.f32 %v2158_v17, %v2130_v23  ;;  %v2241_v48 = vadd.f32 %v3290_v31, %v2229_v32 }
 0x156   : > { %v2926_v46 = vpack.c.bf16 %v2248_v7, %v2247_v4  ;;  %v2216_v47 = vpop.f32.mrf.mxu2 }
 0x157   : > { %v2188_v40 = vadd.f32 %v2187_v45, %v2159_v43  ;;  %v2249_v52 = vmax.f32 %v2241_v48, 0.0 }
 0x158   : > { %2934 = vst [vmem:[%s3300_s8 + $0x10] sm:$0xff] %v2926_v46  }
 0x159   : > { %v2217_v58 = vadd.f32 %v2216_v47, %v2188_v40 }
 0x15b   : > { %v2230_v35 = vmul.f32 %v3284_v27, %v2217_v58 }
 0x15d   : > { %v2242_v50 = vadd.f32 %v3290_v31, %v2230_v35 }
 0x15f   : > { %v2250_v51 = vmax.f32 %v2242_v50, 0.0 }
 0x161   : > { %v2931_v33 = vpack.c.bf16 %v2250_v51, %v2249_v52 }
 0x163   : > { %2935 = vst [vmem:[%s3300_s8 + $0x18] sm:$0xff] %v2931_v33  }
 0x164 PF: > { %s15_s15 = sadd.s32 1, %s3016_s15  }
 0x165   : > { %p12_p7 = scmp.ge.s32.totalorder %s15_s15, 4  }
 0x167   :  { %14 = sbr.rel (!%p12_p7) target bundleno = 1 (0x1), region = 73 }
 0x16c   :  { %2288 = vsyncpa [#allocation5], 1 }
 0x16d   :  { %2290 = vsyncpa [#allocation5 + $0x1], 1 }

// kernel: resnet_classifier_forward.5
= control target key start
LH: loop header
LB: loop body
LE: loop exit
PB: predicated region body
PF: predicated region fallthrough
CT: control target
= control target key end

     0   :  { %14 = vsyncpa [#allocation5], 0  ;;  %s3869_s0 = inlined_call_operand.vmem [shape: bf16[2,8,8,128], index: 0, kind: input, shape index: {}]   ;;  %s3870_s1 = inlined_call_operand.hbm [shape: bf16[1152,128], index: 1, kind: input, shape index: {}]   ;;  %s3871_s2 = inlined_call_operand.vmem [shape: f32[1,128], index: 2, kind: input, shape index: {}]   ;;  %s3872_s3 = inlined_call_operand.vmem [shape: f32[1,128], index: 3, kind: input, shape index: {}]   ;;  %s3873_s4 = inlined_call_operand.vmem [shape: bf16[2,8,8,128], index: 4, kind: input, shape index: {}]   ;;  %s3874_s5 = inlined_call_operand.vmem [shape: bf16[128,128], index: 5, kind: input, shape index: {}]   ;;  %s3875_s6 = inlined_call_operand.vmem [shape: f32[1,128], index: 6, kind: input, shape index: {}]   ;;  %s3876_s7 = inlined_call_operand.vmem [shape: f32[2,1,128], index: 7, kind: output, shape index: {0}]   ;;  %s3877_s8 = inlined_call_operand.hbm [shape: f32[2,1,128], index: 8, kind: output, shape index: {1}]  }
   0x1   :  { %15 = vsyncpa [#allocation6], 0 }
   0x2   :  { %17 = vsyncpa [#allocation6 + $0x1], 0  ;;  %s3480_s27 = smov 0   ;;  %s3482_s28 = smov 0  }
   0x3   :  { %s3484_s29 = smov 0   ;;  %s3486_s30 = smov 0  }
   0x4 LB: > { %s3501_s9 = sadd.s32 4294967295, %s3428_s30   ;;  %s2629_s10 = sadd.s32 4294967294, %s3428_s30   ;;  %s3428_s30 = sphi %s3486_s30, %s3887_s30   ;;  %s3424_s29 = sphi %s3484_s29, %s3886_s29   ;;  %s3420_s28 = sphi %s3482_s28, %s3885_s28   ;;  %s3416_s27 = sphi %s3480_s27, %s3884_s27  }
   0x5   : > { %s3505_s11 = sadd.s32 1, %s3428_s30   ;;  %s213_s12 = sadd.s32 1, %s3424_s29 }
   0x6   : > { %s210_s13 = ssub.s32 %s3428_s30, %s3505_s11  ;;  %p223_p0 = scmp.ne.s32.totalorder %s3424_s29, %s3420_s28 }
   0x7   : > { %p211_p1 = scmp.eq.s32.totalorder %s210_s13, 0  ;;  %p224_p2 = scmp.eq.s32.totalorder %s3501_s9, 1 }
   0x8   : > { %p229_p3 = scmp.ne.s32.totalorder %s3420_s28, %s3416_s27  ;;  %p230_p4 = scmp.eq.s32.totalorder %s2629_s10, 1 }
   0x9   : > { %s3516_s14 = scalar_select %p211_p1, %s3424_s29, %s213_s12  }
   0xa   : > { %p3518_p5 = por %p224_p2, %p223_p0  ;;  %p3522_p6 = por %p230_p4, %p229_p3 }
   0xb   : > { %p2630_p7 = scmp.ge.s32.totalorder %s3428_s30, 1  ;;  %p237_p8 = scmp.lt.s32.totalorder %s3428_s30, 3 }
   0xc   : > { %p3288_p9 = scmp.eq.s32.totalorder %s3501_s9, 0  ;;  %s248_s19 = sshll.u32 %s3870_s1, 4  ;;  %s249_s19 = int_to_ptr.hbm [resolvable:$true] %s248_s19 }
   0xd   : > { %p238_p10 = pnand %p2630_p7, %p237_p8  ;;  %s3430_s20 = smov [#allocation4]  }
   0xe   : > { %s250_s21 = sshll.u32 %s3430_s20, 4  ;;  %s3431_s22 = smov 64   ;;  %s251_s21 = int_to_ptr.vmem [resolvable:$true] %s250_s21 }
   0xf   : > { %p3280_p11 = pneg %p238_p10  ;;  %s3432_s23 = smov 4  }
  0x10   : > { %294 = sbr.rel (%p238_p10) target bundleno = 525 (0x20d), region = 48 }
  0x11   : > { %p3281_p12 = pnand %p3288_p9, %p3280_p11 }
  0x13   : > { %3283 = dma.hbm_to_vmem [thread:$0]  (!%p3281_p12), %s249_s19, 9216, %s251_s21, [#allocation5], %s3431_s22, %s3431_s22, %s3432_s23  }
  0x15   : > { %3407 = dma.done.wait (%p3288_p9), [#allocation5], 9216  }
  0x16   : > { %3409 = vsyncadd (%p3288_p9), [#allocation5], 4294958080  ;;  %p336_p13 = scmp.lt.s32.totalorder %s3501_s9, 1  ;;  %v3433_v0 = vmov 0   ;;  %v3174_v1 = vld [vmem:[#allocation4 + $0x38] sm:$0xff]  ;;  %v3173_v3 = vld [vmem:[#allocation4 + $0x30] sm:$0xff]  ;;  %s2527_s22 = scalar_lea.hbm %s3877_s8, %s3501_s9 }
  0x17   : > { %362 = vst [vmem:[#allocation2 + $0x30] sm:$0xf] %v3433_v0  ;;  %v3182_v2 = vld [vmem:[#allocation4 + $0x78] sm:$0xff]  ;;  %3266 = vmatpush.bf16.msra.mxu2 %v3174_v1  ;;  %v3181_v4 = vld [vmem:[#allocation4 + $0x70] sm:$0xff]  ;;  %2092 = vmatpush.bf16.msra.mxu0 %v3174_v1  ;;  %v3172_v6 = vld [vmem:[#allocation4 + $0x28] sm:$0xff]  ;;  %s334_s18 = sand.u32 1, %s3420_s28  }
  0x18   : > { %363 = vst [vmem:[#allocation2 + $0x34] sm:$0xf] %v3433_v0  ;;  %s3542_s24 = scalar_select %p336_p13, %s3501_s9, 1  ;;  %2121 = vmatpush.bf16.msra.mxu1 %v3182_v2  ;;  %v3198_v5 = vld [vmem:[#allocation4 + $0xf8] sm:$0xff]  ;;  %v3180_v7 = vld [vmem:[#allocation4 + $0x68] sm:$0xff]  ;;  %v3197_v10 = vld [vmem:[#allocation4 + $0xf0] sm:$0xff] }
  0x19   : > { %365 = vst [vmem:[#allocation2 + $0x3c] sm:$0xf] %v3433_v0  ;;  %2179 = vmatpush.bf16.msra.mxu3 %v3198_v5  ;;  %v3171_v11 = vld [vmem:[#allocation4 + $0x20] sm:$0xff]  ;;  %vm413_vm0 = vsmask.f32 256  ;;  %v3170_v15 = vld [vmem:[#allocation4 + $0x18] sm:$0xff] }
  0x1a   : > { %366 = vst [vmem:[#allocation2 + $0x40] sm:$0xf] %v3433_v0  ;;  %s3129_s25 = sshll.u32 %s3542_s24, 5  ;;  %v3179_v12 = vld [vmem:[#allocation4 + $0x60] sm:$0xff]  ;;  %vm414_vm1 = vsmask.f32 4368  ;;  %s348_s17 = scalar_lea.vmem %s3876_s7, %s3542_s24 }
  0x1b   : > { %350 = vst [vmem:[#allocation2] sm:$0xf] %v3433_v0  ;;  %s3557_s12 = scalar_lea.vmem %s3869_s0, %s3129_s25  ;;  %3267 = vmatpush.bf16.msra.mxu2 %v3173_v3  ;;  %2093 = vmatpush.bf16.msra.mxu0 %v3173_v3  ;;  %v3178_v18 = vld [vmem:[#allocation4 + $0x58] sm:$0xff]  ;;  %v3169_v30 = vld [vmem:[#allocation4 + $0x10] sm:$0xff]  ;;  %vm3575_vm2 = vmor %vm413_vm0, %vm414_vm1  ;;  %vm568_vm3 = vsmask.f32 3328  ;;  %s3766_s20 = scalar_lea.vmem %s3873_s4, %s3129_s25 }
  0x1c   : > { %351 = vst [vmem:[#allocation2 + $0x4] sm:$0xf] %v3433_v0  ;;  %2122 = vmatpush.bf16.msra.mxu1 %v3181_v4  ;;  %v383_v8 = vld [vmem:[%s3557_s12 + $0xc] sm:$0xf]  ;;  %v384_v9 = vld [vmem:[%s3557_s12 + $0x10] sm:$0xf] }
  0x1d   : > { %352 = vst [vmem:[#allocation2 + $0x8] sm:$0xf] %v3433_v0  ;;  %2180 = vmatpush.bf16.msra.mxu3 %v3197_v10  ;;  %v3177_v31 = vld [vmem:[#allocation4 + $0x50] sm:$0xff]  ;;  %v3196_v41 = vld [vmem:[#allocation4 + $0xe8] sm:$0xff]  ;;  %v3195_v45 = vld [vmem:[#allocation4 + $0xe0] sm:$0xff]  ;;  %s335_s25 = scalar_lea.vmem [#allocation7], %s334_s18 }
  0x1e   : > { %353 = vst [vmem:[#allocation2 + $0xc] sm:$0xf] %v3433_v0  ;;  %v405_v13 = vld [vmem:[#allocation2 + $0x30] sm:$0x8]  ;;  %v3168_v42 = vld [vmem:[#allocation4 + $0x8] sm:$0xff]  ;;  %v3167_v49 = vld [vmem:[#allocation4] sm:$0xff] }
  0x1f   : > { %354 = vst [vmem:[#allocation2 + $0x10] sm:$0xf] %v3433_v0  ;;  %3268 = vmatpush.bf16.msra.mxu2 %v3172_v6  ;;  %2094 = vmatpush.bf16.msra.mxu0 %v3172_v6  ;;  %v469_v16 = vshrl.u32 %v405_v13, 16  ;;  %v3176_v43 = vld [vmem:[#allocation4 + $0x48] sm:$0xff]  ;;  %v3175_v50 = vld [vmem:[#allocation4 + $0x40] sm:$0xff]  ;;  %v3190_v53 = vld [vmem:[#allocation4 + $0xb8] sm:$0xff] }
  0x20   : > { %355 = vst [vmem:[#allocation2 + $0x14] sm:$0xf] %v3433_v0  ;;  %2123 = vmatpush.bf16.msra.mxu1 %v3180_v7  ;;  %v407_v14 = vld [vmem:[#allocation2 + $0x3c] sm:$0x8]  ;;  %v380_v51 = vld [vmem:[%s3557_s12] sm:$0xf] }
  0x21   : > { %356 = vst [vmem:[#allocation2 + $0x18] sm:$0xf] %v3433_v0  ;;  %v482_v20 = vshrl.u32 %v407_v14, 16  ;;  %v2643_v27 = vrot.slane %v469_v16, 11  ;;  %2181 = vmatpush.bf16.msra.mxu3 %v3196_v41  ;;  %v385_v55 = vld [vmem:[%s3557_s12 + $0x14] sm:$0xf] }
  0x22   : > { %357 = vst [vmem:[#allocation2 + $0x1c] sm:$0xf] %v3433_v0  ;;  %v397_v29 = vld [vmem:[#allocation2] sm:$0x8]  ;;  %v3206_v57 = vld [vmem:[#allocation4 + $0x138] sm:$0xff]  ;;  %v3189_v62 = vld [vmem:[#allocation4 + $0xb0] sm:$0xff] }
  0x23   : > { %392 = vst [vmem:[#allocation2 + $0x34] sm:$0xf] %v383_v8  ;;  %v398_v17 = vld [vmem:[#allocation2 + $0x4] sm:$0xf]  ;;  %3269 = vmatpush.bf16.msra.mxu2 %v3171_v11  ;;  %2095 = vmatpush.bf16.msra.mxu0 %v3171_v11  ;;  %v2644_v33 = vrot.slane %v482_v20, 11  ;;  %v417_v37 = vshrl.u32 %v397_v29, 16 }
  0x24   : > { %393 = vst [vmem:[#allocation2 + $0x40] sm:$0xf] %v384_v9  ;;  %2124 = vmatpush.bf16.msra.mxu1 %v3179_v12  ;;  %v422_v26 = vshrl.u32 %v398_v17, 16  ;;  %v425_v39 = vshll.u32 %v398_v17, 16  ;;  %v536_v52 = vld [vmem:[#allocation2 + $0x4] sm:$0xf] }
  0x25   : > { %358 = vst [vmem:[#allocation2 + $0x20] sm:$0xf] %v3433_v0  ;;  %v399_v46 = vld [vmem:[#allocation2 + $0xc] sm:$0x8]  ;;  %v2639_v47 = vrot.slane %v417_v37, 11  ;;  %2182 = vmatpush.bf16.msra.mxu3 %v3195_v45  ;;  %v3194_v58 = vld [vmem:[#allocation4 + $0xd8] sm:$0xff] }
  0x26   : > { %359 = vst [vmem:[#allocation2 + $0x24] sm:$0xf] %v3433_v0  ;;  %v424_v38 = vrot.slane %v422_v26, 7  ;;  %v430_v54 = vshrl.u32 %v399_v46, 16  ;;  %v386_v59 = vld [vmem:[%s3557_s12 + $0x18] sm:$0xf] }
  0x27   : > { %360 = vst [vmem:[#allocation2 + $0x28] sm:$0xf] %v3433_v0  ;;  %3270 = vmatpush.bf16.msra.mxu2 %v3170_v15  ;;  %2096 = vmatpush.bf16.msra.mxu0 %v3170_v15  ;;  %v381_v1 = vld [vmem:[%s3557_s12 + $0x4] sm:$0xf]  ;;  %v382_v3 = vld [vmem:[%s3557_s12 + $0x8] sm:$0xf] }
  0x28   : > { %361 = vst [vmem:[#allocation2 + $0x2c] sm:$0xf] %v3433_v0  ;;  %2125 = vmatpush.bf16.msra.mxu1 %v3178_v18  ;;  %v427_v48 = vor.u32 %v425_v39, %v424_v38  ;;  %v401_v4 = vld [vmem:[#allocation2 + $0x18] sm:$0x8]  ;;  %v699_v6 = vld [vmem:[#allocation2 + $0xc] sm:$0x8] }
  0x29   : > { %364 = vst [vmem:[#allocation2 + $0x38] sm:$0xf] %v3433_v0  ;;  %v3205_v7 = vld [vmem:[#allocation4 + $0x130] sm:$0xff]  ;;  %2183 = vmatpush.bf16.msra.mxu3 %v3194_v58  ;;  %v701_v9 = vld [vmem:[#allocation2 + $0x18] sm:$0x8]  ;;  %v2640_v13 = vrot.slane %v430_v54, 11 }
  0x2a   : > { %v406_v19 = vld [vmem:[#allocation2 + $0x34] sm:$0xf]  ;;  %367 = vst [vmem:[#allocation2 + $0x44] sm:$0xf] %v3433_v0  ;;  %v428_v56 = vsel %vm3575_vm2, %v2639_v47, %v427_v48  ;;  %v3193_v8 = vld [vmem:[#allocation4 + $0xd0] sm:$0xff]  ;;  %v443_v14 = vshrl.u32 %v401_v4, 16 }
  0x2b   : > { %v408_v21 = vld [vmem:[#allocation2 + $0x40] sm:$0xf]  ;;  %v474_v22 = vshrl.u32 %v406_v19, 16  ;;  %v477_v23 = vshll.u32 %v406_v19, 16  ;;  %368 = vst [vmem:[#allocation2 + $0x48] sm:$0xf] %v3433_v0  ;;  %3271 = vmatpush.bf16.msra.mxu2 %v3169_v30  ;;  %2097 = vmatpush.bf16.msra.mxu0 %v3169_v30 }
  0x2c   : > { %v487_v24 = vshrl.u32 %v408_v21, 16  ;;  %v490_v25 = vshll.u32 %v408_v21, 16  ;;  %369 = vst [vmem:[#allocation2 + $0x4c] sm:$0xf] %v3433_v0  ;;  %2126 = vmatpush.bf16.msra.mxu1 %v3177_v31  ;;  %v3599_v12 = vld [vmem:[#allocation2 + $0x4] sm:$0xf] }
  0x2d   : > { %v476_v28 = vrot.slane %v474_v22, 7  ;;  %370 = vst [vmem:[#allocation2 + $0x50] sm:$0xf] %v3433_v0  ;;  %v403_v5 = vld [vmem:[#allocation2 + $0x24] sm:$0x8]  ;;  %v716_v16 = vshrl.u32 %v699_v6, 16  ;;  %2184 = vmatpush.bf16.msra.mxu3 %v3193_v8 }
  0x2e   : > { %v489_v34 = vrot.slane %v487_v24, 7  ;;  %371 = vst [vmem:[#allocation2 + $0x54] sm:$0xf] %v3433_v0  ;;  %v456_v15 = vshrl.u32 %v403_v5, 16  ;;  %v3188_v17 = vld [vmem:[#allocation4 + $0xa8] sm:$0xff]  ;;  %v729_v19 = vshrl.u32 %v701_v9, 16 }
  0x2f   : > { %v479_v35 = vor.u32 %v477_v23, %v476_v28  ;;  %372 = vst [vmem:[#allocation2 + $0x58] sm:$0xf] %v3433_v0  ;;  %3272 = vmatpush.bf16.msra.mxu2 %v3168_v42  ;;  %2098 = vmatpush.bf16.msra.mxu0 %v3168_v42  ;;  %v3204_v18 = vld [vmem:[#allocation4 + $0x128] sm:$0xff]  ;;  %v572_v20 = vshrl.u32 %v3599_v12, 16  ;;  %v3187_v26 = vld [vmem:[#allocation4 + $0xa0] sm:$0xff]  ;;  %v3606_v30 = vrot.slane %v443_v14, 11 }
  0x30   : > { %v492_v36 = vor.u32 %v490_v25, %v489_v34  ;;  %373 = vst [vmem:[#allocation2 + $0x5c] sm:$0xf] %v3433_v0  ;;  %2127 = vmatpush.bf16.msra.mxu1 %v3176_v43  ;;  %v3203_v29 = vld [vmem:[#allocation4 + $0x120] sm:$0xff]  ;;  %v3608_v31 = vrot.slane %v456_v15, 11  ;;  %v3610_v34 = vrot.slane %v716_v16, 11  ;;  %s2529_s10 = sshll.u32 %s335_s25, 4  ;;  %s2530_s10 = int_to_ptr.vmem [resolvable:$true] %s2529_s10 }
  0x31   : > { %v480_v40 = vsel %vm3575_vm2, %v2643_v27, %v479_v35  ;;  %374 = vst [vmem:[#allocation2 + $0x60] sm:$0xf] %v3433_v0  ;;  %v575_v35 = vshll.u32 %v3599_v12, 16  ;;  %v3191_v45 = vld [vmem:[#allocation4 + $0xc0] sm:$0xff]  ;;  %v3617_v46 = vrot.slane %v572_v20, 4  ;;  %v3185_v12 = vld [vmem:[#allocation4 + $0x90] sm:$0xff] }
  0x32   : > { %v493_v44 = vsel %vm3575_vm2, %v2644_v33, %v492_v36  ;;  %532 = vst [vmem:[#allocation3 + $0x90] sm:$0xf] %v480_v40  ;;  %v409_v60 = vld [vmem:[#allocation2 + $0x48] sm:$0x8]  ;;  %v3192_v33 = vld [vmem:[#allocation4 + $0xc8] sm:$0xff]  ;;  %v3615_v40 = vrot.slane %v729_v19, 11 }
  0x33   : > { %533 = vst [vmem:[#allocation3 + $0xb4] sm:$0xf] %v493_v44  ;;  %3273 = vmatpush.bf16.msra.mxu2 %v3167_v49  ;;  %2099 = vmatpush.bf16.msra.mxu0 %v3167_v49  ;;  %v495_v10 = vshrl.u32 %v409_v60, 16  ;;  %v577_v15 = vrot.slane %v575_v35, 5  ;;  %v540_v20 = vld [vmem:[#allocation2 + $0x34] sm:$0xf] }
  0x34   : > { %375 = vst [vmem:[#allocation2 + $0x64] sm:$0xf] %v3433_v0  ;;  %2128 = vmatpush.bf16.msra.mxu1 %v3175_v50  ;;  %2185 = vmatpush.bf16.msra.mxu3 %v3192_v33  ;;  %vm569_vm4 = vsmask.f32 7440  ;;  %s2516_s24 = scalar_lea.sflag [#allocation6], %s334_s18  ;;  %s3382_s19 = scalar_lea.hbm %s3877_s8, 2 }
  0x35   : > { %376 = vst [vmem:[#allocation2 + $0x68] sm:$0xf] %v3433_v0  ;;  %v411_v63 = vld [vmem:[#allocation2 + $0x54] sm:$0x8]  ;;  %v2645_v27 = vrot.slane %v495_v10, 11  ;;  %vm3640_vm5 = vmor %vm568_vm3, %vm569_vm4 }
  0x36   : > { %377 = vst [vmem:[#allocation2 + $0x6c] sm:$0xf] %v3433_v0  ;;  %v508_v11 = vshrl.u32 %v411_v63, 16 }
  0x37   : > { %378 = vst [vmem:[#allocation2 + $0x70] sm:$0xf] %v3433_v0  ;;  %2150 = vmatpush.bf16.msrb.mxu2 %v3190_v53  ;;  %2208 = vmatpush.bf16.msrb.mxu0 %v3206_v57 }
  0x38   : > { %379 = vst [vmem:[#allocation2 + $0x74] sm:$0xf] %v3433_v0  ;;  %v3604_v28 = vrot.slane %v508_v11, 11  ;;  %2186 = vmatpush.bf16.msra.mxu3 %v3191_v45  ;;  %v3199_v45 = vld [vmem:[#allocation4 + $0x100] sm:$0xff] }
  0x39   : > { %v2737_v61 = vld [vmem:[#allocation3 + $0x90] sm:$0xf]  ;;  %389 = vst [vmem:[#allocation2 + $0x10] sm:$0xf] %v380_v51  ;;  %v3186_v51 = vld [vmem:[#allocation4 + $0x98] sm:$0xff] }
  0x3a   : > { %v3153_v2 = vld [vmem:[#allocation3 + $0xb0] sm:$0xf0]  ;;  %544 = vst [vmem:[#allocation3 + $0x4] sm:$0xf] %v536_v52 }
  0x3b   : > { %v2738_v0 = vor.u32 %v3153_v2, %v2737_v61  ;;  %528 = vst [vmem:[#allocation3] sm:$0xf] %v428_v56  ;;  %2151 = vmatpush.bf16.msrb.mxu2 %v3189_v62  ;;  %2209 = vmatpush.bf16.msrb.mxu0 %v3205_v7  ;;  %v3202_v56 = vld [vmem:[#allocation4 + $0x118] sm:$0xff] }
  0x3c   : > { %394 = vst [vmem:[#allocation2 + $0x4c] sm:$0xf] %v385_v55 }
  0x3d   : > { %2110 = vmatmul.bf16.vlgmr.msra.gmra.mxu2 %v2738_v0  ;;  %395 = vst [vmem:[#allocation2 + $0x58] sm:$0xf] %v386_v59 }
  0x3e   : > { %390 = vst [vmem:[#allocation2 + $0x1c] sm:$0xf] %v381_v1 }
  0x3f   : > { %391 = vst [vmem:[#allocation2 + $0x28] sm:$0xf] %v382_v3  ;;  %2152 = vmatpush.bf16.msrb.mxu2 %v3188_v17  ;;  %2210 = vmatpush.bf16.msrb.mxu0 %v3204_v18  ;;  %v3201_v18 = vld [vmem:[#allocation4 + $0x110] sm:$0xff] }
  0x40   : > { %v537_v21 = vld [vmem:[#allocation2 + $0x10] sm:$0xf]  ;;  %548 = vst [vmem:[#allocation3 + $0x94] sm:$0xf] %v540_v20 }
  0x41   : > { %v400_v22 = vld [vmem:[#allocation2 + $0x10] sm:$0xf]  ;;  %545 = vst [vmem:[#allocation3 + $0x28] sm:$0xf] %v537_v21  ;;  %v3131_v41 = vld [vmem:[#allocation3 + $0x4] sm:$0xf] }
  0x42   : > { %v3602_v23 = vld [vmem:[#allocation2 + $0x10] sm:$0xf]  ;;  %v435_v24 = vshrl.u32 %v400_v22, 16  ;;  %v438_v25 = vshll.u32 %v400_v22, 16  ;;  %v2665_v10 = vld [vmem:[#allocation3] sm:$0xf] }
  0x43   : > { %v410_v37 = vld [vmem:[#allocation2 + $0x4c] sm:$0xf]  ;;  %v721_v38 = vshrl.u32 %v3602_v23, 16  ;;  %v724_v39 = vshll.u32 %v3602_v23, 16  ;;  %2153 = vmatpush.bf16.msrb.mxu2 %v3187_v26  ;;  %2211 = vmatpush.bf16.msrb.mxu0 %v3203_v29  ;;  %v3184_v21 = vld [vmem:[#allocation4 + $0x88] sm:$0xff] }
  0x44   : > { %v437_v36 = vrot.slane %v435_v24, 7  ;;  %v412_v42 = vld [vmem:[#allocation2 + $0x58] sm:$0xf]  ;;  %v500_v43 = vshrl.u32 %v410_v37, 16  ;;  %v503_v44 = vshll.u32 %v410_v37, 16  ;;  %v3214_v37 = vld [vmem:[#allocation4 + $0x178] sm:$0xff] }
  0x45   : > { %v513_v48 = vshrl.u32 %v412_v42, 16  ;;  %v516_v49 = vshll.u32 %v412_v42, 16  ;;  %v538_v50 = vld [vmem:[#allocation2 + $0x1c] sm:$0xf]  ;;  %v723_v5 = vrot.slane %v721_v38, 7  ;;  %2237 = vmatpush.bf16.msrb.mxu1 %v3214_v37 }
  0x46   : > { %v440_v47 = vor.u32 %v438_v25, %v437_v36  ;;  %v402_v52 = vld [vmem:[#allocation2 + $0x1c] sm:$0xf]  ;;  %v502_v53 = vrot.slane %v500_v43, 7  ;;  %v539_v54 = vld [vmem:[#allocation2 + $0x28] sm:$0xf]  ;;  %v578_v25 = vor.u32 %v577_v15, %v3617_v46  ;;  %v3238_v15 = vld [vmem:[#allocation4 + $0x238] sm:$0xff] }
  0x47   : > { %546 = vst [vmem:[#allocation3 + $0x4c] sm:$0xf] %v538_v50  ;;  %v448_v55 = vshrl.u32 %v402_v52, 16  ;;  %v515_v58 = vrot.slane %v513_v48, 7  ;;  %v404_v59 = vld [vmem:[#allocation2 + $0x28] sm:$0xf]  ;;  %2154 = vmatpush.bf16.msrb.mxu2 %v3186_v51  ;;  %2212 = vmatpush.bf16.msrb.mxu0 %v3202_v56 }
  0x48   : > { %v441_v57 = vsel %vm3575_vm2, %v2640_v13, %v440_v47  ;;  %547 = vst [vmem:[#allocation3 + $0x70] sm:$0xf] %v539_v54  ;;  %v451_v60 = vshll.u32 %v402_v52, 16  ;;  %v2667_v61 = vld [vmem:[#allocation3 + $0x24] sm:$0xf0]  ;;  %v505_v62 = vor.u32 %v503_v44, %v502_v53  ;;  %v461_v1 = vshrl.u32 %v404_v59, 16 }
  0x49   : > { %529 = vst [vmem:[#allocation3 + $0x24] sm:$0xf] %v441_v57  ;;  %v450_v63 = vrot.slane %v448_v55, 7  ;;  %v2670_v2 = vor.u32 %v3131_v41, %v2667_v61  ;;  %v518_v3 = vor.u32 %v516_v49, %v515_v58  ;;  %v464_v4 = vshll.u32 %v404_v59, 16  ;;  %v702_v0 = vld [vmem:[#allocation2 + $0x1c] sm:$0xf] }
  0x4a   : > { %v506_v6 = vsel %vm3575_vm2, %v2645_v27, %v505_v62  ;;  %v463_v8 = vrot.slane %v461_v1, 7  ;;  %v734_v9 = vshrl.u32 %v702_v0, 16  ;;  %v726_v13 = vor.u32 %v724_v39, %v723_v5  ;;  %v541_v23 = vld [vmem:[#allocation2 + $0x40] sm:$0xf]  ;;  %v553_v24 = vld [vmem:[#allocation2 + $0x8] sm:$0x1] }
  0x4b   : > { %v453_v7 = vor.u32 %v451_v60, %v450_v63  ;;  %2129 = vmatmul.bf16.vlgmr.msra.gmra.mxu1 %v2670_v2  ;;  %v519_v11 = vsel %vm3575_vm2, %v3604_v28, %v518_v3  ;;  %534 = vst [vmem:[#allocation3 + $0xd8] sm:$0xf] %v506_v6  ;;  %v737_v14 = vshll.u32 %v702_v0, 16  ;;  %v3200_v28 = vld [vmem:[#allocation4 + $0x108] sm:$0xff]  ;;  %v554_v29 = vld [vmem:[#allocation2 + $0x10] sm:$0xf]  ;;  %2155 = vmatpush.bf16.msrb.mxu2 %v3185_v12 }
  0x4c   : > { %535 = vst [vmem:[#allocation3 + $0xfc] sm:$0xf] %v519_v11  ;;  %v466_v17 = vor.u32 %v464_v4, %v463_v8  ;;  %v736_v19 = vrot.slane %v734_v9, 7  ;;  %v727_v22 = vsel %vm3575_vm2, %v3610_v34, %v726_v13  ;;  %2213 = vmatpush.bf16.msrb.mxu0 %v3201_v18  ;;  %v579_v36 = vrot.slane %v578_v25, 4  ;;  %v3222_v51 = vld [vmem:[#allocation4 + $0x1b8] sm:$0xff]  ;;  %v3213_v59 = vld [vmem:[#allocation4 + $0x170] sm:$0xff] }
  0x4d   : > { %v454_v16 = vsel %vm3575_vm2, %v3606_v30, %v453_v7  ;;  %827 = vst [vmem:[#allocation3 + $0xc] sm:$0xf] %v727_v22  ;;  %v555_v30 = vld [vmem:[#allocation2 + $0x14] sm:$0x1]  ;;  %v581_v38 = vshll.u32 %v553_v24, 16  ;;  %v586_v39 = vshrl.u32 %v554_v29, 16  ;;  %2238 = vmatpush.bf16.msrb.mxu1 %v3213_v59 }
  0x4e   : > { %530 = vst [vmem:[#allocation3 + $0x48] sm:$0xf] %v454_v16  ;;  %v467_v26 = vsel %vm3575_vm2, %v3608_v31, %v466_v17  ;;  %v739_v27 = vor.u32 %v737_v14, %v736_v19  ;;  %v3183_v31 = vld [vmem:[#allocation4 + $0x80] sm:$0xff]  ;;  %v589_v41 = vshll.u32 %v554_v29, 16  ;;  %v595_v42 = vshll.u32 %v555_v30, 16  ;;  %v3230_v58 = vld [vmem:[#allocation4 + $0x1f8] sm:$0xff] }
  0x4f   : > { %531 = vst [vmem:[#allocation3 + $0x6c] sm:$0xf] %v467_v26  ;;  %v3140_v44 = vld [vmem:[#allocation3 + $0x4c] sm:$0xf]  ;;  %2156 = vmatpush.bf16.msrb.mxu2 %v3184_v21  ;;  %v583_v48 = vrot.slane %v581_v38, 5  ;;  %v588_v49 = vrot.slane %v586_v39, 4  ;;  %2295 = vmatpush.bf16.msrb.mxu3 %v3230_v58 }
  0x50   : > { %v3135_v33 = vld [vmem:[#allocation3 + $0x20] sm:$0xf0]  ;;  %v740_v34 = vsel %vm3575_vm2, %v3615_v40, %v739_v27  ;;  %549 = vst [vmem:[#allocation3 + $0xb8] sm:$0xf] %v541_v23  ;;  %v835_v40 = vld [vmem:[#allocation2 + $0x10] sm:$0xf]  ;;  %2214 = vmatpush.bf16.msrb.mxu0 %v3200_v28 }
  0x51   : > { %v2666_v35 = vor.u32 %v3135_v33, %v2665_v10  ;;  %828 = vst [vmem:[#allocation3 + $0x30] sm:$0xf] %v740_v34  ;;  %v591_v50 = vrot.slane %v589_v41, 5  ;;  %v2703_v53 = vld [vmem:[#allocation3 + $0x6c] sm:$0xf0]  ;;  %v584_v55 = vsel %vm3640_vm5, %v579_v36, %v583_v48  ;;  %v597_v57 = vrot.slane %v595_v42, 5 }
  0x52   : > { %v2773_v43 = vld [vmem:[#allocation3 + $0xd8] sm:$0xf]  ;;  %v836_v54 = vld [vmem:[#allocation2 + $0x1c] sm:$0xf]  ;;  %843 = vst [vmem:[#allocation3 + $0x10] sm:$0xf] %v835_v40  ;;  %v2706_v61 = vor.u32 %v3140_v44, %v2703_v53 }
  0x53   : > { %2100 = vmatmul.bf16.vlgmr.msra.gmra.mxu0 %v2666_v35  ;;  %v3162_v47 = vld [vmem:[#allocation3 + $0xf8] sm:$0xf0]  ;;  %v592_v56 = vor.u32 %v591_v50, %v588_v49  ;;  %844 = vst [vmem:[#allocation3 + $0x34] sm:$0xf] %v836_v54  ;;  %2157 = vmatpush.bf16.msrb.mxu2 %v3183_v31  ;;  %v3221_v63 = vld [vmem:[#allocation4 + $0x1b0] sm:$0xff]  ;;  %v3212_v8 = vld [vmem:[#allocation4 + $0x168] sm:$0xff] }
  0x54   : > { %v2774_v52 = vor.u32 %v3162_v47, %v2773_v43  ;;  %v3132_v60 = vld [vmem:[#allocation3 + $0xc] sm:$0xf]  ;;  %691 = vst [vmem:[#allocation3 + $0x8] sm:$0xf] %v584_v55  ;;  %v3229_v2 = vld [vmem:[#allocation4 + $0x1f0] sm:$0xff]  ;;  %2215 = vmatpush.bf16.msrb.mxu0 %v3199_v45  ;;  %v3211_v22 = vld [vmem:[#allocation4 + $0x160] sm:$0xff]  ;;  %2239 = vmatpush.bf16.msrb.mxu1 %v3212_v8 }
  0x55   : > { %v593_v62 = vrot.slane %v592_v56, 4  ;;  %v703_v1 = vld [vmem:[#allocation2 + $0x24] sm:$0x8]  ;;  %v704_v4 = vld [vmem:[#allocation2 + $0x28] sm:$0xf]  ;;  %2296 = vmatpush.bf16.msrb.mxu3 %v3229_v2 }
  0x56   : > { %2115 = vmatmul.bf16.gmra.mxu2 %v2774_v52  ;;  %v705_v0 = vld [vmem:[#allocation2 + $0x30] sm:$0x8]  ;;  %v2701_v5 = vld [vmem:[#allocation3 + $0x48] sm:$0xf]  ;;  %v706_v9 = vld [vmem:[#allocation2 + $0x34] sm:$0xf] }
  0x57   : > { %2266 = vmatpush.bf16.msra.mxu2 %v3222_v51  ;;  %v598_v7 = vsel %vm3640_vm5, %v593_v62, %v597_v57  ;;  %v742_v10 = vshrl.u32 %v703_v1, 16  ;;  %v747_v11 = vshrl.u32 %v704_v4, 16  ;;  %v750_v12 = vshll.u32 %v704_v4, 16  ;;  %v3144_v16 = vld [vmem:[#allocation3 + $0x68] sm:$0xf0]  ;;  %v3210_v51 = vld [vmem:[#allocation4 + $0x158] sm:$0xff] }
  0x58   : > { %v2675_v3 = vld [vmem:[#allocation3 + $0x2c] sm:$0xf0]  ;;  %692 = vst [vmem:[#allocation3 + $0x2c] sm:$0xf] %v598_v7  ;;  %v755_v13 = vshrl.u32 %v705_v0, 16  ;;  %v760_v14 = vshrl.u32 %v706_v9, 16  ;;  %2324 = vmatpush.bf16.msra.mxu0 %v3238_v15  ;;  %v2702_v27 = vor.u32 %v3144_v16, %v2701_v5  ;;  %2240 = vmatpush.bf16.msrb.mxu1 %v3211_v22 }
  0x59   : > { %v2678_v6 = vor.u32 %v3132_v60, %v2675_v3  ;;  %v2649_v17 = vrot.slane %v742_v10, 11  ;;  %v749_v18 = vrot.slane %v747_v11, 7  ;;  %v763_v19 = vshll.u32 %v706_v9, 16  ;;  %v542_v23 = vld [vmem:[#allocation2 + $0x4c] sm:$0xf]  ;;  %v3220_v42 = vld [vmem:[#allocation4 + $0x1a8] sm:$0xff] }
  0x5a   : > { %v2650_v20 = vrot.slane %v755_v13, 11  ;;  %v762_v21 = vrot.slane %v760_v14, 7  ;;  %v543_v26 = vld [vmem:[#allocation2 + $0x58] sm:$0xf]  ;;  %550 = vst [vmem:[#allocation3 + $0xdc] sm:$0xf] %v542_v23 }
  0x5b   : > { %2134 = vmatmul.bf16.gmra.mxu1 %v2706_v61  ;;  %2187 = vmatmul.bf16.vlgmr.msra.gmra.mxu3 %v2678_v6  ;;  %v2673_v24 = vld [vmem:[#allocation3 + $0x8] sm:$0xf]  ;;  %v752_v25 = vor.u32 %v750_v12, %v749_v18  ;;  %551 = vst [vmem:[#allocation3 + $0x100] sm:$0xf] %v543_v26  ;;  %v556_v29 = vld [vmem:[#allocation2 + $0x1c] sm:$0xf] }
  0x5c   : > { %2267 = vmatpush.bf16.msra.mxu2 %v3221_v63  ;;  %v765_v28 = vor.u32 %v763_v19, %v762_v21  ;;  %v557_v30 = vld [vmem:[#allocation2 + $0x20] sm:$0x1]  ;;  %v558_v35 = vld [vmem:[#allocation2 + $0x28] sm:$0xf]  ;;  %v559_v34 = vld [vmem:[#allocation2 + $0x2c] sm:$0x1]  ;;  %2241 = vmatpush.bf16.msrb.mxu1 %v3210_v51 }
  0x5d   : > { %v753_v33 = vsel %vm3575_vm2, %v2649_v17, %v752_v25  ;;  %v600_v36 = vshrl.u32 %v556_v29, 16  ;;  %v603_v37 = vshll.u32 %v556_v29, 16  ;;  %v609_v38 = vshll.u32 %v557_v30, 16  ;;  %v3149_v40 = vld [vmem:[#allocation3 + $0x94] sm:$0xf]  ;;  %v3228_v56 = vld [vmem:[#allocation4 + $0x1e8] sm:$0xff] }
  0x5e   : > { %v766_v31 = vsel %vm3575_vm2, %v2650_v20, %v765_v28  ;;  %829 = vst [vmem:[#allocation3 + $0x54] sm:$0xf] %v753_v33  ;;  %v614_v39 = vshrl.u32 %v558_v35, 16  ;;  %v617_v41 = vshll.u32 %v558_v35, 16  ;;  %v837_v52 = vld [vmem:[#allocation2 + $0x28] sm:$0xf]  ;;  %2297 = vmatpush.bf16.msrb.mxu3 %v3228_v56 }
  0x5f   : > { %v3136_v43 = vld [vmem:[#allocation3 + $0x28] sm:$0xf0]  ;;  %830 = vst [vmem:[#allocation3 + $0x78] sm:$0xf] %v766_v31  ;;  %v602_v44 = vrot.slane %v600_v36, 4  ;;  %v605_v45 = vrot.slane %v603_v37, 5 }
  0x60   : > { %v2674_v47 = vor.u32 %v3136_v43, %v2673_v24  ;;  %v611_v48 = vrot.slane %v609_v38, 5  ;;  %v616_v49 = vrot.slane %v614_v39, 4  ;;  %v619_v50 = vrot.slane %v617_v41, 5  ;;  %2268 = vmatpush.bf16.msra.mxu2 %v3220_v42  ;;  %v838_v55 = vld [vmem:[#allocation2 + $0x34] sm:$0xf]  ;;  %v3237_v59 = vld [vmem:[#allocation4 + $0x230] sm:$0xff] }
  0x61   : > { %v606_v53 = vor.u32 %v605_v45, %v602_v44  ;;  %v623_v54 = vshll.u32 %v559_v34, 16  ;;  %845 = vst [vmem:[#allocation3 + $0x58] sm:$0xf] %v837_v52  ;;  %v2739_v57 = vld [vmem:[#allocation3 + $0xb4] sm:$0xf0]  ;;  %v3209_v62 = vld [vmem:[#allocation4 + $0x150] sm:$0xff]  ;;  %2325 = vmatpush.bf16.msra.mxu0 %v3237_v59 }
  0x62   : > { %v620_v58 = vor.u32 %v619_v50, %v616_v49  ;;  %846 = vst [vmem:[#allocation3 + $0x7c] sm:$0xf] %v838_v55  ;;  %v3219_v63 = vld [vmem:[#allocation4 + $0x1a0] sm:$0xff]  ;;  %v708_v3 = vld [vmem:[#allocation2 + $0x40] sm:$0xf]  ;;  %v2742_v0 = vor.u32 %v3149_v40, %v2739_v57  ;;  %2242 = vmatpush.bf16.msrb.mxu1 %v3209_v62  ;;  %v3218_v39 = vld [vmem:[#allocation4 + $0x198] sm:$0xff] }
  0x63   : > { %2105 = vmatmul.bf16.gmra.mxu0 %v2702_v27  ;;  %v607_v60 = vrot.slane %v606_v53, 4  ;;  %v625_v61 = vrot.slane %v623_v54, 5  ;;  %v707_v2 = vld [vmem:[#allocation2 + $0x3c] sm:$0x8]  ;;  %v3652_v5 = vld [vmem:[#allocation3 + $0x10] sm:$0xf] }
  0x64   : > { %v621_v1 = vrot.slane %v620_v58, 4  ;;  %v3227_v4 = vld [vmem:[#allocation4 + $0x1e0] sm:$0xff]  ;;  %v3654_v6 = vld [vmem:[#allocation3 + $0x30] sm:$0xf0]  ;;  %2269 = vmatpush.bf16.msra.mxu2 %v3219_v63  ;;  %v3208_v9 = vld [vmem:[#allocation4 + $0x148] sm:$0xff]  ;;  %v768_v14 = vshrl.u32 %v707_v2, 16 }
  0x65   : > { %v3141_v7 = vld [vmem:[#allocation3 + $0x54] sm:$0xf]  ;;  %v612_v8 = vsel %vm3640_vm5, %v607_v60, %v611_v48  ;;  %v709_v10 = vld [vmem:[#allocation2 + $0x48] sm:$0x8]  ;;  %v773_v15 = vshrl.u32 %v708_v3, 16  ;;  %v776_v17 = vshll.u32 %v708_v3, 16  ;;  %2298 = vmatpush.bf16.msrb.mxu3 %v3227_v4  ;;  %v2682_v28 = vor.u32 %v3654_v6, %v3652_v5 }
  0x66   : > { %2158 = vmatmul.bf16.vlgmr.msrb.gmra.mxu2 %v2674_v47  ;;  %v710_v11 = vld [vmem:[#allocation2 + $0x4c] sm:$0xf]  ;;  %v2711_v12 = vld [vmem:[#allocation3 + $0x74] sm:$0xf0]  ;;  %v626_v13 = vsel %vm3640_vm5, %v621_v1, %v625_v61  ;;  %693 = vst [vmem:[#allocation3 + $0x50] sm:$0xf] %v612_v8  ;;  %2243 = vmatpush.bf16.msrb.mxu1 %v3208_v9 }
  0x67   : > { %v2714_v16 = vor.u32 %v3141_v7, %v2711_v12  ;;  %694 = vst [vmem:[#allocation3 + $0x74] sm:$0xf] %v626_v13  ;;  %v781_v18 = vshrl.u32 %v709_v10, 16  ;;  %v786_v19 = vshrl.u32 %v710_v11, 16  ;;  %v3236_v20 = vld [vmem:[#allocation4 + $0x228] sm:$0xff]  ;;  %v2651_v21 = vrot.slane %v768_v14, 11 }
  0x68   : > { %v775_v22 = vrot.slane %v773_v15, 7  ;;  %v789_v23 = vshll.u32 %v710_v11, 16  ;;  %v3207_v26 = vld [vmem:[#allocation4 + $0x140] sm:$0xff]  ;;  %v560_v27 = vld [vmem:[#allocation2 + $0x34] sm:$0xf]  ;;  %2326 = vmatpush.bf16.msra.mxu0 %v3236_v20  ;;  %2270 = vmatpush.bf16.msra.mxu2 %v3218_v39  ;;  %v3225_v20 = vld [vmem:[#allocation4 + $0x1d0] sm:$0xff] }
  0x69   : > { %v2652_v24 = vrot.slane %v781_v18, 11  ;;  %v788_v25 = vrot.slane %v786_v19, 7  ;;  %v561_v30 = vld [vmem:[#allocation2 + $0x38] sm:$0x1]  ;;  %v562_v33 = vld [vmem:[#allocation2 + $0x40] sm:$0xf] }
  0x6a   : > { %v778_v29 = vor.u32 %v776_v17, %v775_v22  ;;  %v563_v35 = vld [vmem:[#allocation2 + $0x44] sm:$0x1]  ;;  %v628_v36 = vshrl.u32 %v560_v27, 16  ;;  %v631_v37 = vshll.u32 %v560_v27, 16  ;;  %v637_v31 = vshll.u32 %v561_v30, 16  ;;  %2244 = vmatpush.bf16.msrb.mxu1 %v3207_v26  ;;  %v3226_v7 = vld [vmem:[#allocation4 + $0x1d8] sm:$0xff] }
  0x6b   : > { %2139 = vmatmul.bf16.gmra.mxu1 %v2742_v0  ;;  %2192 = vmatmul.bf16.gmra.mxu3 %v2714_v16  ;;  %v791_v34 = vor.u32 %v789_v23, %v788_v25  ;;  %v851_v38 = vld [vmem:[#allocation2 + $0x10] sm:$0xf]  ;;  %v642_v42 = vshrl.u32 %v562_v33, 16  ;;  %v645_v43 = vshll.u32 %v562_v33, 16  ;;  %v651_v44 = vshll.u32 %v563_v35, 16  ;;  %v3235_v16 = vld [vmem:[#allocation4 + $0x220] sm:$0xff] }
  0x6c   : > { %v779_v41 = vsel %vm3575_vm2, %v2651_v21, %v778_v29  ;;  %v852_v45 = vld [vmem:[#allocation2 + $0x14] sm:$0x1]  ;;  %v630_v48 = vrot.slane %v628_v36, 4  ;;  %v633_v49 = vrot.slane %v631_v37, 5  ;;  %v639_v51 = vrot.slane %v637_v31, 5  ;;  %2299 = vmatpush.bf16.msrb.mxu3 %v3226_v7  ;;  %v3217_v19 = vld [vmem:[#allocation4 + $0x190] sm:$0xff]  ;;  %2327 = vmatpush.bf16.msra.mxu0 %v3235_v16 }
  0x6d   : > { %v2709_v40 = vld [vmem:[#allocation3 + $0x50] sm:$0xf]  ;;  %v792_v47 = vsel %vm3575_vm2, %v2652_v24, %v791_v34  ;;  %831 = vst [vmem:[#allocation3 + $0x9c] sm:$0xf] %v779_v41  ;;  %v644_v52 = vrot.slane %v642_v42, 4  ;;  %v647_v55 = vrot.slane %v645_v43, 5  ;;  %2271 = vmatpush.bf16.msra.mxu2 %v3217_v19 }
  0x6e   : > { %v3145_v50 = vld [vmem:[#allocation3 + $0x70] sm:$0xf0]  ;;  %832 = vst [vmem:[#allocation3 + $0xc0] sm:$0xf] %v792_v47  ;;  %v634_v54 = vor.u32 %v633_v49, %v630_v48  ;;  %v653_v56 = vrot.slane %v651_v44, 5  ;;  %v868_v61 = vshrl.u32 %v851_v38, 16 }
  0x6f   : > { %v2710_v53 = vor.u32 %v3145_v50, %v2709_v40  ;;  %v853_v57 = vld [vmem:[#allocation2 + $0x1c] sm:$0xf]  ;;  %v854_v58 = vld [vmem:[#allocation2 + $0x20] sm:$0x1]  ;;  %v3158_v59 = vld [vmem:[#allocation3 + $0xdc] sm:$0xf]  ;;  %v648_v4 = vor.u32 %v647_v55, %v644_v52 }
  0x70   : > { %v2775_v60 = vld [vmem:[#allocation3 + $0xfc] sm:$0xf0]  ;;  %v871_v62 = vshll.u32 %v851_v38, 16  ;;  %v877_v63 = vshll.u32 %v852_v45, 16  ;;  %v882_v1 = vshrl.u32 %v853_v57, 16  ;;  %v635_v3 = vrot.slane %v634_v54, 4  ;;  %2300 = vmatpush.bf16.msrb.mxu3 %v3225_v20 }
  0x71   : > { %v839_v2 = vld [vmem:[#allocation2 + $0x40] sm:$0xf]  ;;  %v885_v0 = vshll.u32 %v853_v57, 16  ;;  %v891_v5 = vshll.u32 %v854_v58, 16  ;;  %v840_v6 = vld [vmem:[#allocation2 + $0x4c] sm:$0xf]  ;;  %v2778_v21 = vor.u32 %v3158_v59, %v2775_v60 }
  0x72   : > { %v870_v8 = vrot.slane %v868_v61, 4  ;;  %v873_v9 = vrot.slane %v871_v62, 5  ;;  %v879_v10 = vrot.slane %v877_v63, 5  ;;  %v884_v11 = vrot.slane %v882_v1, 4  ;;  %847 = vst [vmem:[#allocation3 + $0xa0] sm:$0xf] %v839_v2 }
  0x73   : > { %2216 = vmatmul.bf16.vlgmr.msrb.gmra.mxu0 %v2682_v28  ;;  %v640_v12 = vsel %vm3640_vm5, %v635_v3, %v639_v51  ;;  %v649_v13 = vrot.slane %v648_v4, 4  ;;  %v887_v14 = vrot.slane %v885_v0, 5  ;;  %v893_v15 = vrot.slane %v891_v5, 5  ;;  %848 = vst [vmem:[#allocation3 + $0xc4] sm:$0xf] %v840_v6  ;;  %v3234_v41 = vld [vmem:[#allocation4 + $0x218] sm:$0xff] }
  0x74   : > { %v3150_v17 = vld [vmem:[#allocation3 + $0x9c] sm:$0xf]  ;;  %695 = vst [vmem:[#allocation3 + $0x98] sm:$0xf] %v640_v12  ;;  %v874_v18 = vor.u32 %v873_v9, %v870_v8  ;;  %v387_v25 = vld [vmem:[%s3557_s12 + $0x1c] sm:$0xf]  ;;  %2328 = vmatpush.bf16.msra.mxu0 %v3234_v41 }
  0x75   : > { %v2747_v22 = vld [vmem:[#allocation3 + $0xbc] sm:$0xf0]  ;;  %v654_v23 = vsel %vm3640_vm5, %v649_v13, %v653_v56  ;;  %v888_v24 = vor.u32 %v887_v14, %v884_v11  ;;  %v711_v26 = vld [vmem:[#allocation2 + $0x54] sm:$0x8]  ;;  %v2717_v27 = vld [vmem:[#allocation3 + $0x58] sm:$0xf] }
  0x76   : > { %2163 = vmatmul.bf16.gmra.mxu2 %v2710_v53  ;;  %v3146_v28 = vld [vmem:[#allocation3 + $0x78] sm:$0xf0]  ;;  %v2750_v29 = vor.u32 %v3150_v17, %v2747_v22  ;;  %696 = vst [vmem:[#allocation3 + $0xbc] sm:$0xf] %v654_v23  ;;  %v875_v30 = vrot.slane %v874_v18, 4  ;;  %v794_v35 = vshrl.u32 %v711_v26, 16 }
  0x77   : > { %v712_v33 = vld [vmem:[#allocation2 + $0x58] sm:$0xf]  ;;  %v889_v34 = vrot.slane %v888_v24, 4  ;;  %396 = vst [vmem:[#allocation2 + $0x64] sm:$0xf] %v387_v25  ;;  %v2718_v49 = vor.u32 %v3146_v28, %v2717_v27  ;;  %v3216_v22 = vld [vmem:[#allocation4 + $0x188] sm:$0xff] }
  0x78   : > { %v713_v36 = vld [vmem:[#allocation2 + $0x60] sm:$0x8]  ;;  %v799_v37 = vshrl.u32 %v712_v33, 16  ;;  %v880_v31 = vsel %vm3640_vm5, %v875_v30, %v879_v10  ;;  %v802_v38 = vshll.u32 %v712_v33, 16  ;;  %v564_v42 = vld [vmem:[#allocation2 + $0x4c] sm:$0xf]  ;;  %2272 = vmatpush.bf16.msra.mxu2 %v3216_v22 }
  0x79   : > { %v807_v39 = vshrl.u32 %v713_v36, 16  ;;  %v894_v43 = vsel %vm3640_vm5, %v889_v34, %v893_v15  ;;  %987 = vst [vmem:[#allocation3 + $0x14] sm:$0xf] %v880_v31  ;;  %v2653_v44 = vrot.slane %v794_v35, 11  ;;  %v656_v40 = vshrl.u32 %v564_v42, 16  ;;  %v3224_v24 = vld [vmem:[#allocation4 + $0x1c8] sm:$0xff] }
  0x7a   : > { %v801_v45 = vrot.slane %v799_v37, 7  ;;  %988 = vst [vmem:[#allocation3 + $0x38] sm:$0xf] %v894_v43  ;;  %v659_v48 = vshll.u32 %v564_v42, 16  ;;  %v565_v52 = vld [vmem:[#allocation2 + $0x50] sm:$0x1]  ;;  %2301 = vmatpush.bf16.msrb.mxu3 %v3224_v24 }
  0x7b   : > { %2144 = vmatmul.bf16.gmra.mxu1 %v2778_v21  ;;  %2197 = vmatmul.bf16.gmra.mxu3 %v2750_v29  ;;  %v3675_v47 = vrot.slane %v807_v39, 11  ;;  %v2745_v50 = vld [vmem:[#allocation3 + $0x98] sm:$0xf]  ;;  %v566_v53 = vld [vmem:[#allocation2 + $0x58] sm:$0xf]  ;;  %v658_v55 = vrot.slane %v656_v40, 4 }
  0x7c   : > { %v804_v51 = vor.u32 %v802_v38, %v801_v45  ;;  %v567_v54 = vld [vmem:[#allocation2 + $0x5c] sm:$0x1]  ;;  %v661_v56 = vrot.slane %v659_v48, 5  ;;  %v665_v57 = vshll.u32 %v565_v52, 16  ;;  %v670_v58 = vshrl.u32 %v566_v53, 16  ;;  %v3233_v29 = vld [vmem:[#allocation4 + $0x210] sm:$0xff] }
  0x7d   : > { %v3154_v59 = vld [vmem:[#allocation3 + $0xb8] sm:$0xf0]  ;;  %v673_v61 = vshll.u32 %v566_v53, 16  ;;  %v679_v62 = vshll.u32 %v567_v54, 16  ;;  %v855_v63 = vld [vmem:[#allocation2 + $0x28] sm:$0xf]  ;;  %2329 = vmatpush.bf16.msra.mxu0 %v3233_v29 }
  0x7e   : > { %v805_v60 = vsel %vm3575_vm2, %v2653_v44, %v804_v51  ;;  %v714_v1 = vld [vmem:[#allocation2 + $0x64] sm:$0xf]  ;;  %v662_v2 = vor.u32 %v661_v56, %v658_v55  ;;  %v667_v3 = vrot.slane %v665_v57, 5  ;;  %v672_v4 = vrot.slane %v670_v58, 4  ;;  %v856_v8 = vld [vmem:[#allocation2 + $0x2c] sm:$0x1] }
  0x7f   : > { %833 = vst [vmem:[#allocation3 + $0xe4] sm:$0xf] %v805_v60  ;;  %v812_v0 = vshrl.u32 %v714_v1, 16  ;;  %v815_v5 = vshll.u32 %v714_v1, 16  ;;  %v675_v6 = vrot.slane %v673_v61, 5  ;;  %v681_v7 = vrot.slane %v679_v62, 5 }
  0x80   : > { %v2746_v9 = vor.u32 %v3154_v59, %v2745_v50  ;;  %v3133_v10 = vld [vmem:[#allocation3 + $0x14] sm:$0xf]  ;;  %v663_v11 = vrot.slane %v662_v2, 4  ;;  %v857_v12 = vld [vmem:[#allocation2 + $0x34] sm:$0xf]  ;;  %v896_v13 = vshrl.u32 %v855_v63, 16 }
  0x81   : > { %v2683_v14 = vld [vmem:[#allocation3 + $0x34] sm:$0xf0]  ;;  %v814_v15 = vrot.slane %v812_v0, 7  ;;  %v676_v16 = vor.u32 %v675_v6, %v672_v4  ;;  %v858_v17 = vld [vmem:[#allocation2 + $0x38] sm:$0x1]  ;;  %v899_v18 = vshll.u32 %v855_v63, 16 }
  0x82   : > { %v668_v19 = vsel %vm3640_vm5, %v663_v11, %v667_v3  ;;  %v898_v20 = vrot.slane %v896_v13, 4  ;;  %v905_v21 = vshll.u32 %v856_v8, 16  ;;  %v841_v23 = vld [vmem:[#allocation2 + $0x58] sm:$0xf]  ;;  %v910_v28 = vshrl.u32 %v857_v12, 16  ;;  %v3232_v50 = vld [vmem:[#allocation4 + $0x208] sm:$0xff] }
  0x83   : > { %2221 = vmatmul.bf16.gmra.mxu0 %v2718_v49  ;;  %v817_v25 = vor.u32 %v815_v5, %v814_v15  ;;  %v677_v26 = vrot.slane %v676_v16, 4  ;;  %697 = vst [vmem:[#allocation3 + $0xe0] sm:$0xf] %v668_v19  ;;  %v901_v27 = vrot.slane %v899_v18, 5  ;;  %v2686_v30 = vor.u32 %v3133_v10, %v2683_v14  ;;  %v3223_v36 = vld [vmem:[#allocation4 + $0x1c0] sm:$0xff]  ;;  %s2531_s12 = sshll.u32 %s2527_s22, 4  ;;  %s2532_s12 = int_to_ptr.hbm [resolvable:$true] %s2531_s12 }
  0x84   : > { %v907_v33 = vrot.slane %v905_v21, 5  ;;  %v913_v35 = vshll.u32 %v857_v12, 16  ;;  %v919_v34 = vshll.u32 %v858_v17, 16  ;;  %v912_v39 = vrot.slane %v910_v28, 4  ;;  %v842_v41 = vld [vmem:[#allocation2 + $0x64] sm:$0xf]  ;;  %2302 = vmatpush.bf16.msrb.mxu3 %v3223_v36  ;;  %2330 = vmatpush.bf16.msra.mxu0 %v3232_v50 }
  0x85   : > { %v818_v37 = vsel %vm3575_vm2, %v3675_v47, %v817_v25  ;;  %v682_v31 = vsel %vm3640_vm5, %v677_v26, %v681_v7  ;;  %v902_v38 = vor.u32 %v901_v27, %v898_v20  ;;  %849 = vst [vmem:[#allocation3 + $0xe8] sm:$0xf] %v841_v23  ;;  %v3215_v42 = vld [vmem:[#allocation4 + $0x180] sm:$0xff]  ;;  %v1133_v51 = vld [vmem:[#allocation2 + $0x28] sm:$0xf] }
  0x86   : > { %2168 = vmatmul.bf16.gmra.mxu2 %v2746_v9  ;;  %v2753_v43 = vld [vmem:[#allocation3 + $0xa0] sm:$0xf]  ;;  %v3155_v44 = vld [vmem:[#allocation3 + $0xc0] sm:$0xf0]  ;;  %834 = vst [vmem:[#allocation3 + $0x108] sm:$0xf] %v818_v37 }
  0x87   : > { %v915_v45 = vrot.slane %v913_v35, 5  ;;  %v1132_v40 = vld [vmem:[#allocation2 + $0x1c] sm:$0xf]  ;;  %698 = vst [vmem:[#allocation3 + $0x104] sm:$0xf] %v682_v31  ;;  %v903_v48 = vrot.slane %v902_v38, 4  ;;  %2273 = vmatpush.bf16.msra.mxu2 %v3215_v42  ;;  %v2754_v60 = vor.u32 %v3155_v44, %v2753_v43 }
  0x88   : > { %v921_v49 = vrot.slane %v919_v34, 5  ;;  %850 = vst [vmem:[#allocation3 + $0x10c] sm:$0xf] %v842_v41  ;;  %v859_v52 = vld [vmem:[#allocation2 + $0x40] sm:$0xf]  ;;  %v3231_v58 = vld [vmem:[#allocation4 + $0x200] sm:$0xff] }
  0x89   : > { %v916_v47 = vor.u32 %v915_v45, %v912_v39  ;;  %v3159_v53 = vld [vmem:[#allocation3 + $0xe4] sm:$0xf]  ;;  %v908_v54 = vsel %vm3640_vm5, %v903_v48, %v907_v33  ;;  %1140 = vst [vmem:[#allocation3 + $0x1c] sm:$0xf] %v1132_v40  ;;  %v860_v55 = vld [vmem:[#allocation2 + $0x44] sm:$0x1]  ;;  %2331 = vmatpush.bf16.msra.mxu0 %v3231_v58 }
  0x8a   : > { %v861_v56 = vld [vmem:[#allocation2 + $0x4c] sm:$0xf]  ;;  %989 = vst [vmem:[#allocation3 + $0x5c] sm:$0xf] %v908_v54  ;;  %v924_v59 = vshrl.u32 %v859_v52, 16  ;;  %v927_v62 = vshll.u32 %v859_v52, 16 }
  0x8b   : > { %2245 = vmatmul.bf16.vlgmr.msrb.gmra.mxu1 %v2686_v30  ;;  %v917_v57 = vrot.slane %v916_v47, 4  ;;  %1141 = vst [vmem:[#allocation3 + $0x40] sm:$0xf] %v1133_v51  ;;  %v862_v61 = vld [vmem:[#allocation2 + $0x50] sm:$0x1]  ;;  %v933_v63 = vshll.u32 %v860_v55, 16 }
  0x8c   : > { %v2781_v1 = vld [vmem:[#allocation3 + $0xe0] sm:$0xf]  ;;  %v926_v3 = vrot.slane %v924_v59, 4  ;;  %v938_v4 = vshrl.u32 %v861_v56, 16  ;;  %v941_v0 = vshll.u32 %v861_v56, 16  ;;  %v929_v6 = vrot.slane %v927_v62, 5 }
  0x8d   : > { %v922_v2 = vsel %vm3640_vm5, %v917_v57, %v921_v49  ;;  %v2783_v5 = vld [vmem:[#allocation3 + $0x104] sm:$0xf0]  ;;  %v947_v11 = vshll.u32 %v862_v61, 16  ;;  %v935_v13 = vrot.slane %v933_v63, 5  ;;  %v996_v14 = vld [vmem:[#allocation2 + $0x18] sm:$0x8] }
  0x8e   : > { %990 = vst [vmem:[#allocation3 + $0x80] sm:$0xf] %v922_v2  ;;  %v2786_v7 = vor.u32 %v3159_v53, %v2783_v5  ;;  %v3163_v8 = vld [vmem:[#allocation3 + $0x100] sm:$0xf0]  ;;  %v940_v9 = vrot.slane %v938_v4, 4  ;;  %v943_v10 = vrot.slane %v941_v0, 5  ;;  %v930_v12 = vor.u32 %v929_v6, %v926_v3 }
  0x8f   : > { %v997_v15 = vld [vmem:[#allocation2 + $0x1c] sm:$0xf]  ;;  %v2782_v16 = vor.u32 %v3163_v8, %v2781_v1  ;;  %v949_v18 = vrot.slane %v947_v11, 5  ;;  %v998_v19 = vld [vmem:[#allocation2 + $0x24] sm:$0x8]  ;;  %v1013_v20 = vshrl.u32 %v996_v14, 16 }
  0x90   : > { %2202 = vmatmul.bf16.gmra.mxu3 %v2786_v7  ;;  %v944_v17 = vor.u32 %v943_v10, %v940_v9  ;;  %v931_v21 = vrot.slane %v930_v12, 4  ;;  %v999_v22 = vld [vmem:[#allocation2 + $0x28] sm:$0xf]  ;;  %v1018_v23 = vshrl.u32 %v997_v15, 16  ;;  %v1021_v27 = vshll.u32 %v997_v15, 16 }
  0x91   : > { %v3142_v24 = vld [vmem:[#allocation3 + $0x5c] sm:$0xf]  ;;  %v2655_v26 = vrot.slane %v1013_v20, 11  ;;  %v1026_v28 = vshrl.u32 %v998_v19, 16  ;;  %v1031_v33 = vshrl.u32 %v999_v22, 16  ;;  %v1034_v38 = vshll.u32 %v999_v22, 16 }
  0x92   : > { %v945_v25 = vrot.slane %v944_v17, 4  ;;  %v936_v29 = vsel %vm3640_vm5, %v931_v21, %v935_v13  ;;  %v1020_v30 = vrot.slane %v1018_v23, 7  ;;  %v1148_v35 = vld [vmem:[#allocation2 + $0x1c] sm:$0xf]  ;;  %v1149_v34 = vld [vmem:[#allocation2 + $0x20] sm:$0x1] }
  0x93   : > { %2226 = vmatmul.bf16.gmra.mxu0 %v2754_v60  ;;  %991 = vst [vmem:[#allocation3 + $0xa4] sm:$0xf] %v936_v29  ;;  %v2656_v31 = vrot.slane %v1026_v28, 11  ;;  %v1033_v42 = vrot.slane %v1031_v33, 7  ;;  %v1150_v43 = vld [vmem:[#allocation2 + $0x28] sm:$0xf] }
  0x94   : > { %v950_v37 = vsel %vm3640_vm5, %v945_v25, %v949_v18  ;;  %v1023_v41 = vor.u32 %v1021_v27, %v1020_v30  ;;  %v1165_v44 = vshrl.u32 %v1148_v35, 16  ;;  %v2789_v45 = vld [vmem:[#allocation3 + $0xe8] sm:$0xf]  ;;  %v3164_v40 = vld [vmem:[#allocation3 + $0x108] sm:$0xf0]  ;;  %v1168_v47 = vshll.u32 %v1148_v35, 16 }
  0x95   : > { %v2719_v36 = vld [vmem:[#allocation3 + $0x7c] sm:$0xf0]  ;;  %992 = vst [vmem:[#allocation3 + $0xc8] sm:$0xf] %v950_v37  ;;  %v3134_v48 = vld [vmem:[#allocation3 + $0x1c] sm:$0xf]  ;;  %v1036_v55 = vor.u32 %v1034_v38, %v1033_v42  ;;  %v2790_v7 = vor.u32 %v3164_v40, %v2789_v45 }
  0x96   : > { %2173 = vmatmul.bf16.gmra.mxu2 %v2782_v16  ;;  %v2722_v39 = vor.u32 %v3142_v24, %v2719_v36  ;;  %v2691_v49 = vld [vmem:[#allocation3 + $0x3c] sm:$0xf0]  ;;  %v1151_v50 = vld [vmem:[#allocation2 + $0x2c] sm:$0x1]  ;;  %v1174_v51 = vshll.u32 %v1149_v34, 16  ;;  %v1179_v52 = vshrl.u32 %v1150_v43, 16  ;;  %v1024_v54 = vsel %vm3575_vm2, %v2655_v26, %v1023_v41 }
  0x97   : > { %v1182_v53 = vshll.u32 %v1150_v43, 16  ;;  %v1167_v56 = vrot.slane %v1165_v44, 4  ;;  %v1188_v57 = vshll.u32 %v1151_v50, 16  ;;  %v1134_v58 = vld [vmem:[#allocation2 + $0x34] sm:$0xf]  ;;  %v1170_v60 = vrot.slane %v1168_v47, 5 }
  0x98   : > { %v1135_v59 = vld [vmem:[#allocation2 + $0x40] sm:$0xf]  ;;  %1124 = vst [vmem:[#allocation3 + $0x18] sm:$0xf] %v1024_v54  ;;  %v1181_v61 = vrot.slane %v1179_v52, 4  ;;  %v1037_v63 = vsel %vm3575_vm2, %v2656_v31, %v1036_v55  ;;  %v1176_v1 = vrot.slane %v1174_v51, 5  ;;  %v2694_v8 = vor.u32 %v3134_v48, %v2691_v49 }
  0x99   : > { %v1184_v62 = vrot.slane %v1182_v53, 5  ;;  %v1190_v2 = vrot.slane %v1188_v57, 5  ;;  %1142 = vst [vmem:[#allocation3 + $0x64] sm:$0xf] %v1134_v58  ;;  %v863_v3 = vld [vmem:[#allocation2 + $0x58] sm:$0xf]  ;;  %v1171_v4 = vor.u32 %v1170_v60, %v1167_v56 }
  0x9a   : > { %1125 = vst [vmem:[#allocation3 + $0x3c] sm:$0xf] %v1037_v63  ;;  %v864_v5 = vld [vmem:[#allocation2 + $0x5c] sm:$0x1]  ;;  %v865_v6 = vld [vmem:[#allocation2 + $0x64] sm:$0xf] }
  0x9b   : > { %2250 = vmatmul.bf16.gmra.mxu1 %v2722_v39  ;;  %v1185_v0 = vor.u32 %v1184_v62, %v1181_v61  ;;  %1143 = vst [vmem:[#allocation3 + $0x88] sm:$0xf] %v1135_v59  ;;  %v1172_v9 = vrot.slane %v1171_v4, 4  ;;  %v952_v11 = vshrl.u32 %v863_v3, 16  ;;  %v955_v12 = vshll.u32 %v863_v3, 16 }
  0x9c   : > { %v866_v13 = vld [vmem:[#allocation2 + $0x68] sm:$0x1]  ;;  %v961_v14 = vshll.u32 %v864_v5, 16  ;;  %v966_v15 = vshrl.u32 %v865_v6, 16  ;;  %v969_v16 = vshll.u32 %v865_v6, 16 }
  0x9d   : > { %v1186_v10 = vrot.slane %v1185_v0, 4  ;;  %v1177_v17 = vsel %vm3640_vm5, %v1172_v9, %v1176_v1  ;;  %v954_v19 = vrot.slane %v952_v11, 4  ;;  %v957_v20 = vrot.slane %v955_v12, 5  ;;  %v1000_v21 = vld [vmem:[#allocation2 + $0x30] sm:$0x8] }
  0x9e   : > { %v1001_v22 = vld [vmem:[#allocation2 + $0x34] sm:$0xf]  ;;  %1284 = vst [vmem:[#allocation3 + $0x20] sm:$0xf] %v1177_v17  ;;  %v968_v24 = vrot.slane %v966_v15, 4  ;;  %v963_v28 = vrot.slane %v961_v14, 5 }
  0x9f   : > { %v1191_v18 = vsel %vm3640_vm5, %v1186_v10, %v1190_v2  ;;  %v2689_v23 = vld [vmem:[#allocation3 + $0x18] sm:$0xf]  ;;  %v1002_v25 = vld [vmem:[#allocation2 + $0x3c] sm:$0x8]  ;;  %v958_v27 = vor.u32 %v957_v20, %v954_v19  ;;  %v971_v29 = vrot.slane %v969_v16, 5  ;;  %v975_v30 = vshll.u32 %v866_v13, 16 }
  0xa0   : > { %2303 = vmatmul.bf16.vlgmr.msrb.gmra.mxu3 %v2694_v8  ;;  %v3151_v26 = vld [vmem:[#allocation3 + $0xa4] sm:$0xf]  ;;  %1285 = vst [vmem:[#allocation3 + $0x44] sm:$0xf] %v1191_v18  ;;  %v1003_v35 = vld [vmem:[#allocation2 + $0x40] sm:$0xf] }
  0xa1   : > { %v3138_v33 = vld [vmem:[#allocation3 + $0x38] sm:$0xf0]  ;;  %v1039_v34 = vshrl.u32 %v1000_v21, 16  ;;  %v1044_v36 = vshrl.u32 %v1001_v22, 16  ;;  %v2755_v37 = vld [vmem:[#allocation3 + $0xc4] sm:$0xf0]  ;;  %v972_v39 = vor.u32 %v971_v29, %v968_v24 }
  0xa2   : > { %v2690_v31 = vor.u32 %v3138_v33, %v2689_v23  ;;  %v959_v38 = vrot.slane %v958_v27, 4  ;;  %v977_v41 = vrot.slane %v975_v30, 5  ;;  %v1152_v42 = vld [vmem:[#allocation2 + $0x34] sm:$0xf]  ;;  %v1047_v45 = vshll.u32 %v1001_v22, 16 }
  0xa3   : > { %2231 = vmatmul.bf16.gmra.mxu0 %v2790_v7  ;;  %v2657_v43 = vrot.slane %v1039_v34, 11  ;;  %v1046_v44 = vrot.slane %v1044_v36, 7  ;;  %v973_v48 = vrot.slane %v972_v39, 4  ;;  %v1052_v49 = vshrl.u32 %v1002_v25, 16  ;;  %v1153_v47 = vld [vmem:[#allocation2 + $0x38] sm:$0x1] }
  0xa4   : > { %v964_v40 = vsel %vm3640_vm5, %v959_v38, %v963_v28  ;;  %v1057_v50 = vshrl.u32 %v1003_v35, 16  ;;  %v2758_v51 = vor.u32 %v3151_v26, %v2755_v37  ;;  %v1060_v53 = vshll.u32 %v1003_v35, 16  ;;  %v1154_v54 = vld [vmem:[#allocation2 + $0x40] sm:$0xf]  ;;  %v3143_v56 = vld [vmem:[#allocation3 + $0x64] sm:$0xf] }
  0xa5   : > { %993 = vst [vmem:[#allocation3 + $0xec] sm:$0xf] %v964_v40  ;;  %v1049_v52 = vor.u32 %v1047_v45, %v1046_v44  ;;  %v1193_v55 = vshrl.u32 %v1152_v42, 16  ;;  %v2727_v57 = vld [vmem:[#allocation3 + $0x84] sm:$0xf0]  ;;  %v978_v58 = vsel %vm3640_vm5, %v973_v48, %v977_v41  ;;  %v2658_v59 = vrot.slane %v1052_v49, 11 }
  0xa6   : > { %2274 = vmatmul.bf16.vlgmr.msra.gmra.mxu2 %v2690_v31  ;;  %v1059_v60 = vrot.slane %v1057_v50, 7  ;;  %v1155_v61 = vld [vmem:[#allocation2 + $0x44] sm:$0x1]  ;;  %v1196_v62 = vshll.u32 %v1152_v42, 16  ;;  %v2697_v63 = vld [vmem:[#allocation3 + $0x20] sm:$0xf]  ;;  %v2730_v16 = vor.u32 %v3143_v56, %v2727_v57 }
  0xa7   : > { %994 = vst [vmem:[#allocation3 + $0x110] sm:$0xf] %v978_v58  ;;  %v1050_v1 = vsel %vm3575_vm2, %v2657_v43, %v1049_v52  ;;  %v1195_v2 = vrot.slane %v1193_v55, 4  ;;  %v1202_v3 = vshll.u32 %v1153_v47, 16  ;;  %v1207_v5 = vshrl.u32 %v1154_v54, 16 }
  0xa8   : > { %v1062_v4 = vor.u32 %v1060_v53, %v1059_v60  ;;  %1126 = vst [vmem:[#allocation3 + $0x60] sm:$0xf] %v1050_v1  ;;  %v1198_v0 = vrot.slane %v1196_v62, 5  ;;  %v1136_v6 = vld [vmem:[#allocation2 + $0x4c] sm:$0xf]  ;;  %v1210_v8 = vshll.u32 %v1154_v54, 16 }
  0xa9   : > { %v3139_v7 = vld [vmem:[#allocation3 + $0x40] sm:$0xf0]  ;;  %v1216_v9 = vshll.u32 %v1155_v61, 16  ;;  %v1137_v10 = vld [vmem:[#allocation2 + $0x58] sm:$0xf]  ;;  %v1204_v13 = vrot.slane %v1202_v3, 5 }
  0xaa   : > { %v1063_v11 = vsel %vm3575_vm2, %v2658_v59, %v1062_v4  ;;  %v1199_v12 = vor.u32 %v1198_v0, %v1195_v2  ;;  %v1209_v14 = vrot.slane %v1207_v5, 4  ;;  %1144 = vst [vmem:[#allocation3 + $0xac] sm:$0xf] %v1136_v6  ;;  %v1004_v15 = vld [vmem:[#allocation2 + $0x48] sm:$0x8]  ;;  %v1212_v17 = vrot.slane %v1210_v8, 5 }
  0xab   : > { %2255 = vmatmul.bf16.gmra.mxu1 %v2758_v51  ;;  %1127 = vst [vmem:[#allocation3 + $0x84] sm:$0xf] %v1063_v11  ;;  %v1005_v18 = vld [vmem:[#allocation2 + $0x4c] sm:$0xf]  ;;  %v2698_v19 = vor.u32 %v3139_v7, %v2697_v63  ;;  %v1218_v21 = vrot.slane %v1216_v9, 5  ;;  %v1065_v22 = vshrl.u32 %v1004_v15, 16 }
  0xac   : > { %v1200_v20 = vrot.slane %v1199_v12, 4  ;;  %1145 = vst [vmem:[#allocation3 + $0xd0] sm:$0xf] %v1137_v10  ;;  %v1213_v23 = vor.u32 %v1212_v17, %v1209_v14  ;;  %v1006_v24 = vld [vmem:[#allocation2 + $0x54] sm:$0x8]  ;;  %v1070_v26 = vshrl.u32 %v1005_v18, 16 }
  0xad   : > { %v1007_v25 = vld [vmem:[#allocation2 + $0x58] sm:$0xf]  ;;  %v1073_v27 = vshll.u32 %v1005_v18, 16  ;;  %v2659_v29 = vrot.slane %v1065_v22, 11  ;;  %v1078_v30 = vshrl.u32 %v1006_v24, 16 }
  0xae   : > { %v1205_v28 = vsel %vm3640_vm5, %v1200_v20, %v1204_v13  ;;  %v1083_v33 = vshrl.u32 %v1007_v25, 16  ;;  %v3160_v35 = vld [vmem:[#allocation3 + $0xec] sm:$0xf]  ;;  %v1214_v36 = vrot.slane %v1213_v23, 4  ;;  %v1072_v37 = vrot.slane %v1070_v26, 7 }
  0xaf   : > { %v2725_v34 = vld [vmem:[#allocation3 + $0x60] sm:$0xf]  ;;  %1286 = vst [vmem:[#allocation3 + $0x68] sm:$0xf] %v1205_v28  ;;  %v2660_v31 = vrot.slane %v1078_v30, 11  ;;  %v1086_v39 = vshll.u32 %v1007_v25, 16 }
  0xb0   : > { %2308 = vmatmul.bf16.gmra.mxu3 %v2730_v16  ;;  %v1085_v38 = vrot.slane %v1083_v33, 7  ;;  %v1156_v41 = vld [vmem:[#allocation2 + $0x4c] sm:$0xf]  ;;  %v2791_v42 = vld [vmem:[#allocation3 + $0x10c] sm:$0xf0]  ;;  %v1219_v43 = vsel %vm3640_vm5, %v1214_v36, %v1218_v21  ;;  %v1075_v44 = vor.u32 %v1073_v27, %v1072_v37 }
  0xb1   : > { %v1157_v45 = vld [vmem:[#allocation2 + $0x50] sm:$0x1]  ;;  %v1158_v40 = vld [vmem:[#allocation2 + $0x58] sm:$0xf]  ;;  %1287 = vst [vmem:[#allocation3 + $0x8c] sm:$0xf] %v1219_v43  ;;  %v2794_v55 = vor.u32 %v3160_v35, %v2791_v42 }
  0xb2   : > { %v3147_v48 = vld [vmem:[#allocation3 + $0x80] sm:$0xf0]  ;;  %v1088_v49 = vor.u32 %v1086_v39, %v1085_v38  ;;  %v1076_v51 = vsel %vm3575_vm2, %v2659_v29, %v1075_v44  ;;  %v1221_v52 = vshrl.u32 %v1156_v41, 16  ;;  %v1224_v53 = vshll.u32 %v1156_v41, 16  ;;  %v1138_v54 = vld [vmem:[#allocation2 + $0x64] sm:$0xf] }
  0xb3   : > { %2332 = vmatmul.bf16.vlgmr.msra.gmra.mxu0 %v2698_v19  ;;  %v1159_v50 = vld [vmem:[#allocation2 + $0x5c] sm:$0x1]  ;;  %v2726_v47 = vor.u32 %v3147_v48, %v2725_v34  ;;  %1128 = vst [vmem:[#allocation3 + $0xa8] sm:$0xf] %v1076_v51  ;;  %v1230_v57 = vshll.u32 %v1157_v45, 16  ;;  %v1235_v58 = vshrl.u32 %v1158_v40, 16 }
  0xb4   : > { %v1089_v56 = vsel %vm3575_vm2, %v2660_v31, %v1088_v49  ;;  %v1139_v59 = vld [vmem:[#allocation2 + $0x70] sm:$0xf]  ;;  %v1223_v60 = vrot.slane %v1221_v52, 4  ;;  %v1226_v61 = vrot.slane %v1224_v53, 5  ;;  %v1238_v62 = vshll.u32 %v1158_v40, 16 }
  0xb5   : > { %1129 = vst [vmem:[#allocation3 + $0xcc] sm:$0xf] %v1089_v56  ;;  %v1244_v63 = vshll.u32 %v1159_v50, 16  ;;  %v1232_v1 = vrot.slane %v1230_v57, 5  ;;  %v1237_v2 = vrot.slane %v1235_v58, 4 }
  0xb6   : > { %2279 = vmatmul.bf16.gmra.mxu2 %v2726_v47  ;;  %1146 = vst [vmem:[#allocation3 + $0xf4] sm:$0xf] %v1138_v54  ;;  %v2733_v3 = vld [vmem:[#allocation3 + $0x68] sm:$0xf]  ;;  %v3152_v4 = vld [vmem:[#allocation3 + $0xac] sm:$0xf]  ;;  %v1227_v5 = vor.u32 %v1226_v61, %v1223_v60 }
  0xb7   : > { %v2763_v0 = vld [vmem:[#allocation3 + $0xcc] sm:$0xf0]  ;;  %v1240_v6 = vrot.slane %v1238_v62, 5  ;;  %v1246_v7 = vrot.slane %v1244_v63, 5  ;;  %1147 = vst [vmem:[#allocation3 + $0x118] sm:$0xf] %v1139_v59 }
  0xb8   : > { %v1008_v8 = vld [vmem:[#allocation2 + $0x60] sm:$0x8]  ;;  %v1009_v9 = vld [vmem:[#allocation2 + $0x64] sm:$0xf]  ;;  %v1010_v10 = vld [vmem:[#allocation2 + $0x6c] sm:$0x8]  ;;  %v2766_v25 = vor.u32 %v3152_v4, %v2763_v0 }
  0xb9   : > { %v1011_v11 = vld [vmem:[#allocation2 + $0x70] sm:$0xf]  ;;  %v3148_v12 = vld [vmem:[#allocation3 + $0x88] sm:$0xf0]  ;;  %v1228_v13 = vrot.slane %v1227_v5, 4  ;;  %v1241_v14 = vor.u32 %v1240_v6, %v1237_v2  ;;  %v1091_v15 = vshrl.u32 %v1008_v8, 16 }
  0xba   : > { %v1096_v16 = vshrl.u32 %v1009_v9, 16  ;;  %v1099_v17 = vshll.u32 %v1009_v9, 16  ;;  %v1104_v18 = vshrl.u32 %v1010_v10, 16  ;;  %v1109_v19 = vshrl.u32 %v1011_v11, 16  ;;  %v1160_v27 = vld [vmem:[#allocation2 + $0x64] sm:$0xf] }
  0xbb   : > { %2260 = vmatmul.bf16.gmra.mxu1 %v2794_v55  ;;  %v1233_v20 = vsel %vm3640_vm5, %v1228_v13, %v1232_v1  ;;  %v1242_v21 = vrot.slane %v1241_v14, 4  ;;  %v2661_v22 = vrot.slane %v1091_v15, 11  ;;  %v2734_v24 = vor.u32 %v3148_v12, %v2733_v3  ;;  %v2761_v28 = vld [vmem:[#allocation3 + $0xa8] sm:$0xf]  ;;  %v1161_v34 = vld [vmem:[#allocation2 + $0x68] sm:$0x1] }
  0xbc   : > { %v1098_v23 = vrot.slane %v1096_v16, 7  ;;  %1288 = vst [vmem:[#allocation3 + $0xb0] sm:$0xf] %v1233_v20  ;;  %v1111_v26 = vrot.slane %v1109_v19, 7  ;;  %v2662_v33 = vrot.slane %v1104_v18, 11  ;;  %v1112_v35 = vshll.u32 %v1011_v11, 16 }
  0xbd   : > { %v1247_v29 = vsel %vm3640_vm5, %v1242_v21, %v1246_v7  ;;  %v3156_v36 = vld [vmem:[#allocation3 + $0xc8] sm:$0xf0]  ;;  %v1162_v37 = vld [vmem:[#allocation2 + $0x70] sm:$0xf]  ;;  %v1163_v39 = vld [vmem:[#allocation2 + $0x74] sm:$0x1] }
  0xbe   : > { %v1101_v30 = vor.u32 %v1099_v17, %v1098_v23  ;;  %1289 = vst [vmem:[#allocation3 + $0xd4] sm:$0xf] %v1247_v29  ;;  %v1114_v38 = vor.u32 %v1112_v35, %v1111_v26  ;;  %v1249_v41 = vshrl.u32 %v1160_v27, 16  ;;  %v1252_v42 = vshll.u32 %v1160_v27, 16  ;;  %v3161_v61 = vld [vmem:[#allocation3 + $0xf4] sm:$0xf] }
  0xbf   : > { %v1258_v43 = vshll.u32 %v1161_v34, 16  ;;  %v1263_v44 = vshrl.u32 %v1162_v37, 16  ;;  %v1266_v45 = vshll.u32 %v1162_v37, 16  ;;  %v2762_v40 = vor.u32 %v3156_v36, %v2761_v28  ;;  %v2799_v62 = vld [vmem:[#allocation3 + $0x114] sm:$0xf0] }
  0xc0   : > { %v1102_v31 = vsel %vm3575_vm2, %v2661_v22, %v1101_v30  ;;  %2313 = vmatmul.bf16.gmra.mxu3 %v2766_v25  ;;  %v1115_v48 = vsel %vm3575_vm2, %v2662_v33, %v1114_v38  ;;  %v1251_v49 = vrot.slane %v1249_v41, 4  ;;  %v1272_v50 = vshll.u32 %v1163_v39, 16  ;;  %v2111_v53 = vpop.f32.mrf.mxu2 }
  0xc1   : > { %1130 = vst [vmem:[#allocation3 + $0xf0] sm:$0xf] %v1102_v31  ;;  %v1254_v47 = vrot.slane %v1252_v42, 5  ;;  %v1265_v51 = vrot.slane %v1263_v44, 4  ;;  %v1268_v52 = vrot.slane %v1266_v45, 5  ;;  %v1260_v55 = vrot.slane %v1258_v43, 5 }
  0xc2   : > { %1131 = vst [vmem:[#allocation3 + $0x114] sm:$0xf] %v1115_v48  ;;  %v1274_v57 = vrot.slane %v1272_v50, 5  ;;  %v2802_v4 = vor.u32 %v3161_v61, %v2799_v62 }
  0xc3   : > { %2337 = vmatmul.bf16.gmra.mxu0 %v2734_v24  ;;  %v1255_v54 = vor.u32 %v1254_v47, %v1251_v49  ;;  %v1269_v56 = vor.u32 %v1268_v52, %v1265_v51  ;;  %v2769_v1 = vld [vmem:[#allocation3 + $0xb0] sm:$0xf] }
  0xc5   : > { %v1256_v59 = vrot.slane %v1255_v54, 4  ;;  %v1270_v60 = vrot.slane %v1269_v56, 4  ;;  %v3157_v2 = vld [vmem:[#allocation3 + $0xd0] sm:$0xf0] }
  0xc6   : > { %2284 = vmatmul.bf16.gmra.mxu2 %v2762_v40  ;;  %v2770_v3 = vor.u32 %v3157_v2, %v2769_v1 }
  0xc7   : > { %v1261_v32 = vsel %vm3640_vm5, %v1256_v59, %v1260_v55  ;;  %v1275_v63 = vsel %vm3640_vm5, %v1270_v60, %v1274_v57 }
  0xc8   : > { %v2130_v58 = vpop.f32.mrf.mxu1  ;;  %1290 = vst [vmem:[#allocation3 + $0xf8] sm:$0xf] %v1261_v32  ;;  %v2113_v5 = vpop.f32.mrf.mxu2  ;;  %v2797_v8 = vld [vmem:[#allocation3 + $0xf0] sm:$0xf] }
  0xc9   : > { %1291 = vst [vmem:[#allocation3 + $0x11c] sm:$0xf] %v1275_v63  ;;  %v3165_v9 = vld [vmem:[#allocation3 + $0x110] sm:$0xf0] }
  0xca   : > { %v2798_v10 = vor.u32 %v3165_v9, %v2797_v8 }
  0xcf   : > { %v2805_v14 = vld [vmem:[#allocation3 + $0xf8] sm:$0xf] }
  0xd0   : > { %v2101_v0 = vpop.f32.mrf.mxu0  ;;  %v2132_v7 = vpop.f32.mrf.mxu1  ;;  %2318 = vmatmul.bf16.gmra.mxu3 %v2802_v4  ;;  %v3166_v15 = vld [vmem:[#allocation3 + $0x118] sm:$0xf0] }
  0xd1   : > { %v2131_v6 = vadd.f32 %v2130_v58, %v2101_v0  ;;  %v2806_v16 = vor.u32 %v3166_v15, %v2805_v14 }
  0xd3   : > { %2342 = vmatmul.bf16.gmra.mxu0 %v2770_v3 }
  0xd6   : > { %2289 = vmatmul.bf16.gmra.mxu2 %v2798_v10 }
  0xd8   : > { %v2103_v11 = vpop.f32.mrf.mxu0  ;;  %v2135_v46 = vpop.f32.mrf.mxu1 }
  0xd9   : > { %v2133_v12 = vadd.f32 %v2132_v7, %v2103_v11  ;;  %v3730_v13 = vpop.f32.mrf.mxu2 }
  0xde   : > { %v2188_v17 = vpop.f32.mrf.mxu3 }
  0xe0   : > { %v2106_v18 = vpop.f32.mrf.mxu0  ;;  %v2137_v20 = vpop.f32.mrf.mxu1 }
  0xe1   : > { %v2136_v19 = vadd.f32 %v2135_v46, %v2106_v18  ;;  %v3732_v21 = vpop.f32.mrf.mxu2 }
  0xe3   : > { %2347 = vmatmul.bf16.gmra.mxu0 %v2806_v16 }
  0xe6   : > { %v2190_v22 = vpop.f32.mrf.mxu3 }
  0xe8   : > { %v2108_v23 = vpop.f32.mrf.mxu0  ;;  %v2140_v25 = vpop.f32.mrf.mxu1 }
  0xe9   : > { %v2138_v24 = vadd.f32 %v2137_v20, %v2108_v23  ;;  %v2141_v26 = vadd.f32 %v2140_v25, %v2111_v53  ;;  %v2159_v27 = vpop.f32.mrf.mxu2  ;;  %v3759_v20 = vld [vmem:[%s3871_s2] ss:$0 sm:$0xff] }
  0xea   : > { %v2160_v28 = vadd.f32 %v2159_v27, %v2131_v6 }
  0xec   : > { %v2189_v29 = vadd.f32 %v2188_v17, %v2160_v28  ;;  %v3248_v28 = vld [vmem:[%s3766_s20] sm:$0xff]  }
  0xee   : > { %v2193_v30 = vpop.f32.mrf.mxu3 }
  0xf0   : > { %v2217_v33 = vpop.f32.mrf.mxu0  ;;  %v2142_v35 = vpop.f32.mrf.mxu1 }
  0xf1   : > { %v2218_v34 = vadd.f32 %v2217_v33, %v2189_v29  ;;  %v2143_v36 = vadd.f32 %v2142_v35, %v2113_v5  ;;  %v2161_v37 = vpop.f32.mrf.mxu2 }
  0xf2   : > { %v2162_v31 = vadd.f32 %v2161_v37, %v2133_v12 }
  0xf4   : > { %v2191_v38 = vadd.f32 %v2190_v22, %v2162_v31 }
  0xf6   : > { %v2195_v41 = vpop.f32.mrf.mxu3 }
  0xf8   : > { %v2219_v39 = vpop.f32.mrf.mxu0  ;;  %v3734_v51 = vpop.f32.mrf.mxu1 }
  0xf9   : > { %v2220_v42 = vadd.f32 %v2219_v39, %v2191_v38  ;;  %v2164_v43 = vpop.f32.mrf.mxu2  ;;  %v3250_v38 = vunpack.c.h.bf16 %v3248_v28 }
  0xfa   : > { %v2165_v44 = vadd.f32 %v2164_v43, %v2136_v19 }
  0xfc   : > { %v2194_v45 = vadd.f32 %v2193_v30, %v2165_v44 }
  0xfe   : > { %v2198_v50 = vpop.f32.mrf.mxu3 }
 0x100   : > { %v2222_v40 = vpop.f32.mrf.mxu0  ;;  %v3738_v59 = vpop.f32.mrf.mxu1 }
 0x101   : > { %v2223_v48 = vadd.f32 %v2222_v40, %v2194_v45  ;;  %v2166_v49 = vpop.f32.mrf.mxu2 }
 0x102   : > { %v2167_v47 = vadd.f32 %v2166_v49, %v2138_v24  ;;  %v3246_v24 = vld [vmem:[%s3874_s5 + $0x38] sm:$0xff] }
 0x103   : > { %2498 = vmatpush.bf16.msra.mxu1 %v3246_v24  ;;  %v2146_v24 = vadd.f32 %v3734_v51, %v3730_v13 }
 0x104   : > { %v2196_v52 = vadd.f32 %v2195_v41, %v2167_v47  ;;  %v3245_v41 = vld [vmem:[%s3874_s5 + $0x30] sm:$0xff]  ;;  %v3263_v47 = vld [vmem:[%s3766_s20 + $0x8] sm:$0xff]  }
 0x106   : > { %v2200_v57 = vpop.f32.mrf.mxu3 }
 0x107   : > { %2499 = vmatpush.bf16.msra.mxu1 %v3245_v41 }
 0x108   : > { %v2224_v53 = vpop.f32.mrf.mxu0  ;;  %v2246_v3 = vpop.f32.mrf.mxu1 }
 0x109   : > { %v3736_v54 = vadd.f32 %v2224_v53, %v2196_v52  ;;  %v2169_v55 = vpop.f32.mrf.mxu2  ;;  %v2247_v11 = vadd.f32 %v2246_v3, %v2218_v34  ;;  %v3249_v34 = vunpack.c.l.bf16 %v3248_v28 }
 0x10a   : > { %v2170_v56 = vadd.f32 %v2169_v55, %v2141_v26  ;;  %v3775_v26 = vld [vmem:[%s3872_s3] ss:$0 sm:$0xff] }
 0x10c   : > { %v2199_v58 = vadd.f32 %v2198_v50, %v2170_v56 }
 0x110   : > { %v2227_v60 = vpop.f32.mrf.mxu0  ;;  %v2248_v8 = vpop.f32.mrf.mxu1 }
 0x111   : > { %v3740_v61 = vadd.f32 %v2227_v60, %v2199_v58  ;;  %v2171_v62 = vpop.f32.mrf.mxu2  ;;  %v2249_v18 = vadd.f32 %v2248_v8, %v2220_v42  ;;  %v3253_v60 = vunpack.c.l.bf16 %v3263_v47 }
 0x112   : > { %v2172_v32 = vadd.f32 %v2171_v62, %v2143_v36 }
 0x113   : > { %v3742_v1 = vpop.f32.mrf.mxu3 }
 0x114   : > { %v2201_v63 = vadd.f32 %v2200_v57, %v2172_v32  ;;  %v3244_v32 = vld [vmem:[%s3874_s5 + $0x28] sm:$0xff] }
 0x115   : > { %2500 = vmatpush.bf16.msra.mxu1 %v3244_v32 }
 0x118   : > { %v2229_v2 = vpop.f32.mrf.mxu0  ;;  %v2251_v14 = vpop.f32.mrf.mxu1 }
 0x119   : > { %v3744_v4 = vadd.f32 %v2229_v2, %v2201_v63  ;;  %v3746_v0 = vpop.f32.mrf.mxu2  ;;  %v2252_v37 = vadd.f32 %v2251_v14, %v2223_v48 }
 0x11b   : > { %v3748_v5 = vpop.f32.mrf.mxu3 }
 0x120   : > { %v3750_v6 = vpop.f32.mrf.mxu0  ;;  %v2253_v30 = vpop.f32.mrf.mxu1 }
 0x121   : > { %v3752_v7 = vpop.f32.mrf.mxu2  ;;  %v2254_v56 = vadd.f32 %v2253_v30, %v3736_v54 }
 0x123   : > { %v2304_v9 = vpop.f32.mrf.mxu3 }
 0x128   : > { %v3754_v10 = vpop.f32.mrf.mxu0  ;;  %v2256_v52 = vpop.f32.mrf.mxu1 }
 0x129   : > { %v2275_v12 = vpop.f32.mrf.mxu2  ;;  %v2257_v54 = vadd.f32 %v2256_v52, %v3740_v61  ;;  %v2175_v61 = vadd.f32 %v3746_v0, %v2146_v24  ;;  %v2148_v0 = vadd.f32 %v3738_v59, %v3732_v21 }
 0x12a   : > { %v2276_v46 = vadd.f32 %v2275_v12, %v2247_v11 }
 0x12b   : > { %v2306_v16 = vpop.f32.mrf.mxu3 }
 0x12c   : > { %v2305_v15 = vadd.f32 %v2304_v9, %v2276_v46 }
 0x130   : > { %v2333_v17 = vpop.f32.mrf.mxu0  ;;  %v2258_v14 = vpop.f32.mrf.mxu1 }
 0x131   : > { %v2334_v19 = vadd.f32 %v2333_v17, %v2305_v15  ;;  %v2277_v22 = vpop.f32.mrf.mxu2  ;;  %v3254_v17 = vunpack.c.h.bf16 %v3263_v47 }
 0x132   : > { %v2278_v23 = vadd.f32 %v2277_v22, %v2249_v18 }
 0x133   : > { %v2357_v25 = vmul.f32 %v3759_v20, %v2334_v19  ;;  %v2309_v29 = vpop.f32.mrf.mxu3  ;;  %v3243_v19 = vld [vmem:[%s3874_s5 + $0x20] sm:$0xff] }
 0x134   : > { %v2307_v27 = vadd.f32 %v2306_v16, %v2278_v23  ;;  %2501 = vmatpush.bf16.msra.mxu1 %v3243_v19 }
 0x135   : > { %v2369_v35 = vadd.f32 %v3775_v26, %v2357_v25 }
 0x137   : > { %v2393_v43 = vadd.f32 %v3249_v34, %v2369_v35  ;;  %v2259_v34 = vadd.f32 %v2258_v14, %v3744_v4  ;;  %v3242_v4 = vld [vmem:[%s3874_s5 + $0x18] sm:$0xff] }
 0x138   : > { %v2335_v33 = vpop.f32.mrf.mxu0  ;;  %v2261_v13 = vpop.f32.mrf.mxu1  ;;  %2502 = vmatpush.bf16.msra.mxu1 %v3242_v4 }
 0x139   : > { %v2336_v36 = vadd.f32 %v2335_v33, %v2307_v27  ;;  %v2280_v39 = vpop.f32.mrf.mxu2  ;;  %v2401_v48 = vmax.f32 %v2393_v43, 0.0 }
 0x13a   : > { %v2281_v42 = vadd.f32 %v2280_v39, %v2252_v37  ;;  %v2204_v39 = vadd.f32 %v3742_v1, %v2175_v61 }
 0x13b   : > { %v2358_v31 = vmul.f32 %v3759_v20, %v2336_v36  ;;  %v2311_v40 = vpop.f32.mrf.mxu3 }
 0x13c   : > { %v2310_v45 = vadd.f32 %v2309_v29, %v2281_v42  ;;  %v3264_v29 = vld [vmem:[%s3766_s20 + $0x10] sm:$0xff]  }
 0x13d   : > { %v2370_v44 = vadd.f32 %v3775_v26, %v2358_v31  ;;  %v3257_v31 = vunpack.c.l.bf16 %v3264_v29  ;;  %v3258_v52 = vunpack.c.h.bf16 %v3264_v29 }
 0x13f   : > { %v2394_v49 = vadd.f32 %v3250_v38, %v2370_v44  ;;  %v2177_v44 = vadd.f32 %v3752_v7, %v2148_v0 }
 0x140   : > { %v2338_v50 = vpop.f32.mrf.mxu0 }
 0x141   : > { %v2402_v53 = vmax.f32 %v2394_v49, 0.0  ;;  %v2339_v55 = vadd.f32 %v2338_v50, %v2310_v45  ;;  %v2282_v62 = vpop.f32.mrf.mxu2  ;;  %v2233_v45 = vadd.f32 %v3750_v6, %v2204_v39  ;;  %v3241_v50 = vld [vmem:[%s3874_s5 + $0x10] sm:$0xff]  ;;  %v2206_v7 = vadd.f32 %v3748_v5, %v2177_v44  ;;  %v3239_v5 = vld [vmem:[%s3874_s5] sm:$0xff] }
 0x142   : > { %v2283_v63 = vadd.f32 %v2282_v62, %v2254_v56  ;;  %2503 = vmatpush.bf16.msra.mxu1 %v3241_v50  ;;  %v3240_v56 = vld [vmem:[%s3874_s5 + $0x8] sm:$0xff] }
 0x143   : > { %v2409_v57 = vadd.f32 %v2402_v53, %v2401_v48  ;;  %v2359_v58 = vmul.f32 %v3759_v20, %v2339_v55  ;;  %v2314_v9 = vpop.f32.mrf.mxu3  ;;  %v2262_v47 = vadd.f32 %v2261_v13, %v2233_v45  ;;  %v2235_v62 = vadd.f32 %v3754_v10, %v2206_v7 }
 0x144   : > { %v2312_v3 = vadd.f32 %v2311_v40, %v2283_v63  ;;  %v3265_v63 = vld [vmem:[%s3766_s20 + $0x18] sm:$0xff]   ;;  %v3434_v10 = vmov 64.0   ;;  %s3376_s20 = sshra.s32 %s2532_s12, 4  ;;  %s3377_s20 = int_to_ptr.hbm [resolvable:$true] %s3376_s20 }
 0x145   : > { %v2371_v2 = vadd.f32 %v3775_v26, %v2359_v58  ;;  %v2263_v58 = vpop.f32.mrf.mxu1  ;;  %3330 = vrcp.f32 %v3434_v10  ;;  %s3378_s13 = scalar_lea.hbm %s3377_s20, 1  ;;  %p3383_p3 = scmp.lt.s32.totalorder %s3377_s20, %s3877_s8 }
 0x146   : > { %2504 = vmatpush.bf16.msra.mxu1 %v3240_v56  ;;  %p3379_p0 = scmp.ne.s32.totalorder %s3377_s20, %s3378_s13  ;;  %p3384_p4 = scmp.lt.s32.totalorder %s3382_s19, %s3378_s13 }
 0x147   : > { %v2395_v8 = vadd.f32 %v3253_v60, %v2371_v2 }
 0x148   : > { %v2340_v11 = vpop.f32.mrf.mxu0  ;;  %p3380_p1 = pnand %p3379_p0, %p3518_p5  ;;  %p3385_p7 = por %p3384_p4, %p3383_p3 }
 0x149   : > { %v2403_v12 = vmax.f32 %v2395_v8, 0.0  ;;  %v2341_v46 = vadd.f32 %v2340_v11, %v2312_v3  ;;  %v2285_v18 = vpop.f32.mrf.mxu2  ;;  %v2264_v8 = vadd.f32 %v2263_v58, %v2235_v62 }
 0x14a   : > { %v2286_v22 = vadd.f32 %v2285_v18, %v2257_v54  ;;  %2505 = vmatpush.bf16.msra.mxu1 %v3239_v5  ;;  %p3381_p2 = pneg %p3380_p1 }
 0x14b   : > { %v2410_v15 = vadd.f32 %v2409_v57, %v2403_v12  ;;  %v2360_v16 = vmul.f32 %v3759_v20, %v2341_v46  ;;  %v2316_v35 = vpop.f32.mrf.mxu3  ;;  %v3261_v12 = vunpack.c.l.bf16 %v3265_v63 }
 0x14c   : > { %v2315_v25 = vadd.f32 %v2314_v9, %v2286_v22  ;;  %p3386_p8 = pnand %p3385_p7, %p3381_p2 }
 0x14d   : > { %v2372_v23 = vadd.f32 %v3775_v26, %v2360_v16 }
 0x14f   : > { %v2396_v27 = vadd.f32 %v3254_v17, %v2372_v23  ;;  %v3331_v23 = vpop.eup %3330 }
 0x150   : > { %v2343_v28 = vpop.f32.mrf.mxu0  ;;  %vm2427_vm6 = vweird.f32 %v3331_v23 }
 0x151   : > { %v2404_v30 = vmax.f32 %v2396_v27, 0.0  ;;  %v2344_v33 = vadd.f32 %v2343_v28, %v2315_v25  ;;  %v2287_v38 = vpop.f32.mrf.mxu2  ;;  %v3262_v27 = vunpack.c.h.bf16 %v3265_v63  ;;  %v2423_v28 = vmul.f32 64.0, %v3331_v23 }
 0x152   : > { %v2288_v41 = vadd.f32 %v2287_v38, %v2259_v34 }
 0x153   : > { %v2411_v36 = vadd.f32 %v2410_v15, %v2404_v30  ;;  %v2361_v37 = vmul.f32 %v3759_v20, %v2344_v33  ;;  %v2319_v48 = vpop.f32.mrf.mxu3  ;;  %v2424_v33 = vsub.f32 1.0, %v2423_v28 }
 0x154   : > { %v2317_v42 = vadd.f32 %v2316_v35, %v2288_v41 }
 0x155   : > { %v2373_v51 = vadd.f32 %v3775_v26, %v2361_v37 }
 0x157   : > { %v2397_v43 = vadd.f32 %v3257_v31, %v2373_v51 }
 0x158   : > { %v2345_v40 = vpop.f32.mrf.mxu0 }
 0x159   : > { %v2405_v49 = vmax.f32 %v2397_v43, 0.0  ;;  %v2346_v1 = vadd.f32 %v2345_v40, %v2317_v42  ;;  %v2290_v53 = vpop.f32.mrf.mxu2  ;;  %v2449_v42 = vld [vmem:[%s3875_s6] sm:$0x1] }
 0x15a   : > { %v2291_v55 = vadd.f32 %v2290_v53, %v2262_v47 }
 0x15b   : > { %v2412_v21 = vadd.f32 %v2411_v36, %v2405_v49  ;;  %v2362_v59 = vmul.f32 %v3759_v20, %v2346_v1  ;;  %v2321_v15 = vpop.f32.mrf.mxu3  ;;  %v2425_v36 = vmul.f32 %v3331_v23, %v2424_v33 }
 0x15c   : > { %v2320_v57 = vadd.f32 %v2319_v48, %v2291_v55 }
 0x15d   : > { %v2374_v6 = vadd.f32 %v3775_v26, %v2362_v59  ;;  %v2426_v38 = vadd.f32 %v3331_v23, %v2425_v36 }
 0x15f   : > { %v2398_v60 = vadd.f32 %v3258_v52, %v2374_v6 }
 0x160   : > { %v2348_v32 = vpop.f32.mrf.mxu0 }
 0x161   : > { %v2406_v2 = vmax.f32 %v2398_v60, 0.0  ;;  %v2349_v3 = vadd.f32 %v2348_v32, %v2320_v57  ;;  %v2292_v46 = vpop.f32.mrf.mxu2 }
 0x162   : > { %v2293_v54 = vadd.f32 %v2292_v46, %v2264_v8 }
 0x163   : > { %v2413_v9 = vadd.f32 %v2412_v21, %v2406_v2  ;;  %v2363_v11 = vmul.f32 %v3759_v20, %v2349_v3 }
 0x164   : > { %v2322_v16 = vadd.f32 %v2321_v15, %v2293_v54 }
 0x165   : > { %v2375_v14 = vadd.f32 %v3775_v26, %v2363_v11 }
 0x167   : > { %v2399_v17 = vadd.f32 %v3261_v12, %v2375_v14 }
 0x168   : > { %v2350_v18 = vpop.f32.mrf.mxu0 }
 0x169   : > { %v2407_v19 = vmax.f32 %v2399_v17, 0.0  ;;  %v2351_v22 = vadd.f32 %v2350_v18, %v2322_v16 }
 0x16b   : > { %v2414_v24 = vadd.f32 %v2413_v9, %v2407_v19  ;;  %v2364_v25 = vmul.f32 %v3759_v20, %v2351_v22  ;;  %v2428_v20 = vsel %vm2427_vm6, %v3331_v23, %v2426_v38 }
 0x16d   : > { %v2376_v61 = vadd.f32 %v3775_v26, %v2364_v25 }
 0x16f   : > { %v2400_v29 = vadd.f32 %v3262_v27, %v2376_v61 }
 0x171   : > { %v2408_v30 = vmax.f32 %v2400_v29, 0.0 }
 0x173   : > { %v2415_v35 = vadd.f32 %v2414_v24, %v2408_v30 }
 0x175   : > { %v2416_v34 = vrot.slane %v2415_v35, 4 }
 0x177   : > { %v2417_v37 = vadd.f32 %v2416_v34, %v2415_v35 }
 0x179   : > { %v2418_v31 = vrot.slane %v2417_v37, 2 }
 0x17b   : > { %v2419_v39 = vadd.f32 %v2418_v31, %v2417_v37 }
 0x17d   : > { %v2420_v41 = vrot.slane %v2419_v39, 1 }
 0x17f   : > { %v2421_v13 = vadd.f32 %v2420_v41, %v2419_v39 }
 0x181   : > { %v2429_v26 = vmul.f32 %v2428_v20, %v2421_v13 }
 0x183   : > { %2430 = vst [vmem:[%s348_s17] sm:$0x1] %v2429_v26  ;;  %v2431_v51 = vmax.f32 %v2429_v26, 0.0 }
 0x185   : > { %v2432_v0 = vpack.c.bf16 %v2431_v51, %v2431_v51 }
 0x187   : > { %2506 = vmatmul.bf16.vlgmr.msra.gmra.mxu1 %v2432_v0 }
 0x204   : > { %v2507_v43 = vpop.f32.mrf.mxu1 }
 0x205   : > { %v2508_v4 = vadd.f32 %v2507_v43, %v2449_v42 }
 0x207   : > { %2511 = vst [vmem:[%s335_s25] sm:$0x1] %v2508_v4 }
 0x208   : > { %3389 = shalt.err (!%p3386_p8)
}
 0x209   : > { %3278 = dma.vmem_to_hbm [thread:$0]  (%p3518_p5), %s2530_s10, 16, %s2532_s12, %s2516_s24  }
 0x20c   : > { %v2509_v44 = vpop.f32.mrf.mxu1 }
 0x20d PF: > { %p3290_p9 = scmp.ge.s32.totalorder %s3428_s30, 2  ;;  %s2549_s18 = sand.u32 1, %s3416_s27  }
 0x20e   : > { %s2550_s22 = scalar_lea.sflag [#allocation6], %s2549_s18 }
 0x20f   : > { %p3285_p10 = pnand %p3290_p9, %p3522_p6 }
 0x211   : > { %p3286_p11 = pneg %p3285_p10 }
 0x213   : > { %3411 = dma.done.wait (%p3286_p11), %s2550_s22, 16  }
 0x214   : > { %3413 = vsyncadd (%p3286_p11), %s2550_s22, 4294967280  ;;  %p20_p12 = scmp.ge.s32.totalorder %s3505_s11, 4   ;;  %s3884_s27 = smov %s3420_s28 }
 0x215   : > { %s3885_s28 = smov %s3424_s29  ;;  %s3886_s29 = smov %s3516_s14 }
 0x216   : > { %s3887_s30 = smov %s3505_s11  ;;  %22 = sbr.rel (!%p20_p12) target bundleno = 4 (0x4), region = 105 }
 0x21b   :  { %2555 = vsyncpa [#allocation5], 1 }
 0x21c   :  { %2557 = vsyncpa [#allocation5 + $0x1], 1 }
 0x21d   :  { %2558 = vsyncpa [#allocation6], 1 }
 0x21e   :  { %2560 = vsyncpa [#allocation6 + $0x1], 1 }

// kernel: resnet_classifier_forward.3
= control target key start
LH: loop header
LB: loop body
LE: loop exit
PB: predicated region body
PF: predicated region fallthrough
CT: control target
= control target key end

     0   :  { %s7217_s15 = smov 0   ;;  %s8529_s0 = inlined_call_operand.vmem [shape: bf16[2,16,16,128], index: 0, kind: input, shape index: {}]   ;;  %s8530_s1 = inlined_call_operand.vmem [shape: bf16[1152,128], index: 1, kind: input, shape index: {}]   ;;  %s8531_s2 = inlined_call_operand.vmem [shape: f32[1,128], index: 2, kind: input, shape index: {}]   ;;  %s8532_s3 = inlined_call_operand.vmem [shape: f32[1,128], index: 3, kind: input, shape index: {}]   ;;  %s8533_s4 = inlined_call_operand.vmem [shape: bf16[2,8,8,128], index: 4, kind: output, shape index: {}]  }
   0x1 LB: > { %s5982_s16 = sadd.s32 4294967295, %s7189_s15   ;;  %p5986_p0 = scmp.ge.s32.totalorder %s7189_s15, 1  ;;  %s7189_s15 = sphi %s7217_s15, %s14_s15  }
   0x2   : > { %p162_p1 = scmp.lt.s32.totalorder %s7189_s15, 3 }
   0x4   : > { %p163_p2 = pnand %p5986_p0, %p162_p1 }
   0x6   : > { %166 = sbr.rel (%p163_p2) target bundleno = 840 (0x348), region = 36 }
   0xb   : > { %v7058_v0 = vld [vmem:[%s8530_s1 + $0x38] sm:$0xff]  ;;  %p188_p3 = scmp.lt.s32.totalorder %s5982_s16, 1  ;;  %v7191_v1 = vmov 0   ;;  %v7057_v2 = vld [vmem:[%s8530_s1 + $0x30] sm:$0xff]  ;;  %v7056_v3 = vld [vmem:[%s8530_s1 + $0x28] sm:$0xff] }
   0xc   : > { %215 = vst [vmem:[#allocation2 + $0x40] sm:$0xf] %v7191_v1  ;;  %7146 = vmatpush.bf16.msra.mxu1 %v7058_v0  ;;  %7147 = vmatpush.bf16.msra.mxu2 %v7058_v0  ;;  %v7055_v5 = vld [vmem:[%s8530_s1 + $0x20] sm:$0xff]  ;;  %vm384_vm0 = vsmask.f32 256  ;;  %v7054_v7 = vld [vmem:[%s8530_s1 + $0x18] sm:$0xff] }
   0xd   : > { %s8559_s16 = smov (!%p188_p3, %s5982_s16), 1  ;;  %216 = vst [vmem:[#allocation2 + $0x44] sm:$0xf] %v7191_v1  ;;  %7148 = vmatpush.bf16.msra.mxu3 %v7058_v0  ;;  %4887 = vmatpush.bf16.msra.mxu0 %v7058_v0  ;;  %vm385_vm1 = vsmask.f32 4368  ;;  %v7053_v18 = vld [vmem:[%s8530_s1 + $0x10] sm:$0xff] }
   0xe   : > { %217 = vst [vmem:[#allocation2 + $0x48] sm:$0xf] %v7191_v1  ;;  %s6905_s21 = sshll.u32 %s8559_s16, 7  ;;  %vm7270_vm2 = vmor %vm384_vm0, %vm385_vm1  ;;  %v7052_v25 = vld [vmem:[%s8530_s1 + $0x8] sm:$0xff]  ;;  %v7051_v26 = vld [vmem:[%s8530_s1] sm:$0xff]  ;;  %s6906_s30 = sshll.u32 %s8559_s16, 5 }
   0xf   : > { %199 = vst [vmem:[#allocation2] sm:$0xf] %v7191_v1  ;;  %s7241_s24 = scalar_lea.vmem %s8529_s0, %s6905_s21  ;;  %v7074_v44 = vld [vmem:[%s8530_s1 + $0xb8] sm:$0xff]  ;;  %v7073_v52 = vld [vmem:[%s8530_s1 + $0xb0] sm:$0xff]  ;;  %vm915_vm3 = vsmask.f32 3328  ;;  %s8433_s6 = scalar_lea.vmem %s8533_s4, %s6906_s30 }
  0x10   : > { %200 = vst [vmem:[#allocation2 + $0x4] sm:$0xf] %v7191_v1  ;;  %7149 = vmatpush.bf16.msra.mxu1 %v7057_v2  ;;  %7150 = vmatpush.bf16.msra.mxu2 %v7057_v2  ;;  %v277_v4 = vld [vmem:[%s7241_s24 + $0x18] sm:$0xff]   ;;  %v7081_v53 = vld [vmem:[%s8530_s1 + $0xf0] sm:$0xff]  ;;  %v279_v63 = vld [vmem:[%s7241_s24 + $0x20] sm:$0xff]  }
  0x11   : > { %201 = vst [vmem:[#allocation2 + $0x8] sm:$0xf] %v7191_v1  ;;  %7151 = vmatpush.bf16.msra.mxu3 %v7057_v2  ;;  %4888 = vmatpush.bf16.msra.mxu0 %v7057_v2  ;;  %v285_v40 = vld [vmem:[%s7241_s24 + $0x38] sm:$0xff]   ;;  %v7065_v54 = vld [vmem:[%s8530_s1 + $0x70] sm:$0xff]  ;;  %vm916_vm4 = vsmask.f32 7440 }
  0x12   : > { %310 = vst [vmem:[#allocation2 + $0x44] sm:$0xff] %v277_v4   ;;  %v7082_v47 = vld [vmem:[%s8530_s1 + $0xf8] sm:$0xff]  ;;  %v295_v4 = vld [vmem:[%s7241_s24 + $0x60] sm:$0xff]   ;;  %vm7558_vm5 = vmor %vm915_vm3, %vm916_vm4 }
  0x13   : > { %202 = vst [vmem:[#allocation2 + $0xc] sm:$0xf] %v7191_v1  ;;  %v348_v6 = vld [vmem:[#allocation2 + $0x40] sm:$0x8]  ;;  %v7066_v48 = vld [vmem:[%s8530_s1 + $0x78] sm:$0xff] }
  0x14   : > { %203 = vst [vmem:[#allocation2 + $0x10] sm:$0xf] %v7191_v1  ;;  %7152 = vmatpush.bf16.msra.mxu1 %v7056_v3  ;;  %7153 = vmatpush.bf16.msra.mxu2 %v7056_v3  ;;  %v476_v8 = vshrl.u32 %v348_v6, 16  ;;  %v293_v49 = vld [vmem:[%s7241_s24 + $0x58] sm:$0xff]   ;;  %v271_v6 = vld [vmem:[%s7241_s24] sm:$0xff]  }
  0x15   : > { %204 = vst [vmem:[#allocation2 + $0x14] sm:$0xf] %v7191_v1  ;;  %7154 = vmatpush.bf16.msra.mxu3 %v7056_v3  ;;  %4889 = vmatpush.bf16.msra.mxu0 %v7056_v3  ;;  %v7090_v51 = vld [vmem:[%s8530_s1 + $0x138] sm:$0xff] }
  0x16   : > { %205 = vst [vmem:[#allocation2 + $0x18] sm:$0xf] %v7191_v1  ;;  %v5995_v15 = vrot.slane %v476_v8, 11  ;;  %v336_v33 = vld [vmem:[#allocation2] sm:$0x8] }
  0x17   : > { %206 = vst [vmem:[#allocation2 + $0x1c] sm:$0xf] %v7191_v1  ;;  %v337_v30 = vld [vmem:[#allocation2 + $0x4] sm:$0xf]  ;;  %v388_v35 = vshrl.u32 %v336_v33, 16 }
  0x18   : > { %207 = vst [vmem:[#allocation2 + $0x20] sm:$0xf] %v7191_v1  ;;  %7155 = vmatpush.bf16.msra.mxu1 %v7055_v5  ;;  %7156 = vmatpush.bf16.msra.mxu2 %v7055_v5  ;;  %v338_v31 = vld [vmem:[#allocation2 + $0x8] sm:$0xf]  ;;  %v393_v32 = vshrl.u32 %v337_v30, 16  ;;  %v396_v37 = vshll.u32 %v337_v30, 16 }
  0x19   : > { %v349_v9 = vld [vmem:[#allocation2 + $0x44] sm:$0xf]  ;;  %v350_v10 = vld [vmem:[#allocation2 + $0x48] sm:$0xf]  ;;  %208 = vst [vmem:[#allocation2 + $0x24] sm:$0xf] %v7191_v1  ;;  %7157 = vmatpush.bf16.msra.mxu3 %v7055_v5  ;;  %4890 = vmatpush.bf16.msra.mxu0 %v7055_v5 }
  0x1a   : > { %v481_v11 = vshrl.u32 %v349_v9, 16  ;;  %v484_v12 = vshll.u32 %v349_v9, 16  ;;  %v490_v13 = vshrl.u32 %v350_v10, 16  ;;  %v493_v14 = vshll.u32 %v350_v10, 16  ;;  %209 = vst [vmem:[#allocation2 + $0x28] sm:$0xf] %v7191_v1 }
  0x1b   : > { %210 = vst [vmem:[#allocation2 + $0x2c] sm:$0xf] %v7191_v1  ;;  %v402_v34 = vshrl.u32 %v338_v31, 16  ;;  %v395_v36 = vrot.slane %v393_v32, 7  ;;  %v405_v39 = vshll.u32 %v338_v31, 16  ;;  %v5991_v41 = vrot.slane %v388_v35, 11 }
  0x1c   : > { %v483_v16 = vrot.slane %v481_v11, 7  ;;  %v492_v17 = vrot.slane %v490_v13, 7  ;;  %211 = vst [vmem:[#allocation2 + $0x30] sm:$0xf] %v7191_v1  ;;  %7158 = vmatpush.bf16.msra.mxu1 %v7054_v7  ;;  %7159 = vmatpush.bf16.msra.mxu2 %v7054_v7  ;;  %v339_v60 = vld [vmem:[#allocation2 + $0x10] sm:$0x8] }
  0x1d   : > { %212 = vst [vmem:[#allocation2 + $0x34] sm:$0xf] %v7191_v1  ;;  %7160 = vmatpush.bf16.msra.mxu3 %v7054_v7  ;;  %4891 = vmatpush.bf16.msra.mxu0 %v7054_v7  ;;  %v404_v38 = vrot.slane %v402_v34, 7  ;;  %v398_v42 = vor.u32 %v396_v37, %v395_v36  ;;  %v400_v45 = vrot.slane %v395_v36, 4  ;;  %v410_v5 = vshrl.u32 %v339_v60, 16 }
  0x1e   : > { %v486_v20 = vor.u32 %v484_v12, %v483_v16  ;;  %v488_v21 = vrot.slane %v483_v16, 4  ;;  %v495_v22 = vor.u32 %v493_v14, %v492_v17  ;;  %213 = vst [vmem:[#allocation2 + $0x38] sm:$0xf] %v7191_v1  ;;  %v281_v12 = vld [vmem:[%s7241_s24 + $0x28] sm:$0xff]  }
  0x1f   : > { %214 = vst [vmem:[#allocation2 + $0x3c] sm:$0xf] %v7191_v1  ;;  %v407_v46 = vor.u32 %v405_v39, %v404_v38  ;;  %v399_v55 = vsel %vm7270_vm2, %v5991_v41, %v398_v42 }
  0x20   : > { %v487_v23 = vsel %vm7270_vm2, %v5995_v15, %v486_v20  ;;  %v496_v24 = vsel %vm7270_vm2, %v488_v21, %v495_v22  ;;  %218 = vst [vmem:[#allocation2 + $0x4c] sm:$0xf] %v7191_v1  ;;  %7161 = vmatpush.bf16.msra.mxu1 %v7053_v18  ;;  %7162 = vmatpush.bf16.msra.mxu2 %v7053_v18  ;;  %v7380_v15 = vrot.slane %v410_v5, 11 }
  0x21   : > { %779 = vst [vmem:[#allocation3 + $0x120] sm:$0xf] %v487_v23  ;;  %7163 = vmatpush.bf16.msra.mxu3 %v7053_v18  ;;  %4892 = vmatpush.bf16.msra.mxu0 %v7053_v18  ;;  %v408_v58 = vsel %vm7270_vm2, %v400_v45, %v407_v46  ;;  %v7072_v45 = vld [vmem:[%s8530_s1 + $0xa8] sm:$0xff] }
  0x22   : > { %780 = vst [vmem:[#allocation3 + $0x144] sm:$0xf] %v496_v24 }
  0x23   : > { %219 = vst [vmem:[#allocation2 + $0x50] sm:$0xf] %v7191_v1 }
  0x24   : > { %220 = vst [vmem:[#allocation2 + $0x54] sm:$0xf] %v7191_v1  ;;  %7164 = vmatpush.bf16.msra.mxu1 %v7052_v25  ;;  %7165 = vmatpush.bf16.msra.mxu2 %v7052_v25 }
  0x25   : > { %221 = vst [vmem:[#allocation2 + $0x58] sm:$0xf] %v7191_v1  ;;  %7166 = vmatpush.bf16.msra.mxu3 %v7052_v25  ;;  %4893 = vmatpush.bf16.msra.mxu0 %v7052_v25 }
  0x26   : > { %222 = vst [vmem:[#allocation2 + $0x5c] sm:$0xf] %v7191_v1 }
  0x27   : > { %223 = vst [vmem:[#allocation2 + $0x60] sm:$0xf] %v7191_v1 }
  0x28   : > { %v6185_v27 = vld [vmem:[#allocation3 + $0x120] sm:$0xf]  ;;  %224 = vst [vmem:[#allocation2 + $0x64] sm:$0xf] %v7191_v1  ;;  %7167 = vmatpush.bf16.msra.mxu1 %v7051_v26  ;;  %7168 = vmatpush.bf16.msra.mxu2 %v7051_v26 }
  0x29   : > { %v6947_v28 = vld [vmem:[#allocation3 + $0x140] sm:$0xf0]  ;;  %225 = vst [vmem:[#allocation2 + $0x68] sm:$0xf] %v7191_v1  ;;  %7169 = vmatpush.bf16.msra.mxu3 %v7051_v26  ;;  %4894 = vmatpush.bf16.msra.mxu0 %v7051_v26 }
  0x2a   : > { %v6186_v29 = vor.u32 %v6947_v28, %v6185_v27  ;;  %226 = vst [vmem:[#allocation2 + $0x6c] sm:$0xf] %v7191_v1  ;;  %v351_v56 = vld [vmem:[#allocation2 + $0x50] sm:$0x8] }
  0x2b   : > { %227 = vst [vmem:[#allocation2 + $0x70] sm:$0xf] %v7191_v1  ;;  %v498_v0 = vshrl.u32 %v351_v56, 16 }
  0x2c   : > { %4915 = vmatmul.bf16.vlgmr.msra.gmra.mxu1 %v6186_v29  ;;  %228 = vst [vmem:[#allocation2 + $0x74] sm:$0xf] %v7191_v1  ;;  %5065 = vmatpush.bf16.msrb.mxu2 %v7074_v44 }
  0x2d   : > { %229 = vst [vmem:[#allocation2 + $0x78] sm:$0xf] %v7191_v1  ;;  %5154 = vmatpush.bf16.msrb.mxu3 %v7082_v47  ;;  %4976 = vmatpush.bf16.msrb.mxu1 %v7066_v48  ;;  %v7373_v9 = vrot.slane %v498_v0, 11 }
  0x2e   : > { %230 = vst [vmem:[#allocation2 + $0x7c] sm:$0xf] %v7191_v1  ;;  %5243 = vmatpush.bf16.msrb.mxu0 %v7090_v51 }
  0x2f   : > { %231 = vst [vmem:[#allocation2 + $0x80] sm:$0xf] %v7191_v1 }
  0x30   : > { %232 = vst [vmem:[#allocation2 + $0x84] sm:$0xf] %v7191_v1  ;;  %5066 = vmatpush.bf16.msrb.mxu2 %v7073_v52  ;;  %v7080_v52 = vld [vmem:[%s8530_s1 + $0xe8] sm:$0xff] }
  0x31   : > { %233 = vst [vmem:[#allocation2 + $0x88] sm:$0xf] %v7191_v1  ;;  %5155 = vmatpush.bf16.msrb.mxu3 %v7081_v53  ;;  %4977 = vmatpush.bf16.msrb.mxu1 %v7065_v54 }
  0x32   : > { %234 = vst [vmem:[#allocation2 + $0x8c] sm:$0xf] %v7191_v1 }
  0x33   : > { %235 = vst [vmem:[#allocation2 + $0x90] sm:$0xf] %v7191_v1 }
  0x34   : > { %236 = vst [vmem:[#allocation2 + $0x94] sm:$0xf] %v7191_v1  ;;  %5067 = vmatpush.bf16.msrb.mxu2 %v7072_v45 }
  0x35   : > { %237 = vst [vmem:[#allocation2 + $0x98] sm:$0xf] %v7191_v1  ;;  %5156 = vmatpush.bf16.msrb.mxu3 %v7080_v52 }
  0x36   : > { %238 = vst [vmem:[#allocation2 + $0x9c] sm:$0xf] %v7191_v1  ;;  %v360_v43 = vld [vmem:[#allocation2 + $0x80] sm:$0x8] }
  0x37   : > { %239 = vst [vmem:[#allocation2 + $0xa0] sm:$0xf] %v7191_v1  ;;  %v564_v61 = vshrl.u32 %v360_v43, 16 }
  0x38   : > { %240 = vst [vmem:[#allocation2 + $0xa4] sm:$0xf] %v7191_v1 }
  0x39   : > { %241 = vst [vmem:[#allocation2 + $0xa8] sm:$0xf] %v7191_v1  ;;  %v5999_v7 = vrot.slane %v564_v61, 11 }
  0x3a   : > { %242 = vst [vmem:[#allocation2 + $0xac] sm:$0xf] %v7191_v1  ;;  %v363_v57 = vld [vmem:[#allocation2 + $0x90] sm:$0x8] }
  0x3b   : > { %243 = vst [vmem:[#allocation2 + $0xb0] sm:$0xf] %v7191_v1  ;;  %v586_v2 = vshrl.u32 %v363_v57, 16  ;;  %v7089_v57 = vld [vmem:[%s8530_s1 + $0x130] sm:$0xff] }
  0x3c   : > { %244 = vst [vmem:[#allocation2 + $0xb4] sm:$0xf] %v7191_v1  ;;  %5244 = vmatpush.bf16.msrb.mxu0 %v7089_v57 }
  0x3d   : > { %245 = vst [vmem:[#allocation2 + $0xb8] sm:$0xf] %v7191_v1  ;;  %v7375_v10 = vrot.slane %v586_v2, 11 }
  0x3e   : > { %246 = vst [vmem:[#allocation2 + $0xbc] sm:$0xf] %v7191_v1 }
  0x3f   : > { %247 = vst [vmem:[#allocation2 + $0xc0] sm:$0xf] %v7191_v1 }
  0x40   : > { %248 = vst [vmem:[#allocation2 + $0xc4] sm:$0xf] %v7191_v1 }
  0x41   : > { %249 = vst [vmem:[#allocation2 + $0xc8] sm:$0xf] %v7191_v1 }
  0x42   : > { %250 = vst [vmem:[#allocation2 + $0xcc] sm:$0xf] %v7191_v1 }
  0x43   : > { %251 = vst [vmem:[#allocation2 + $0xd0] sm:$0xf] %v7191_v1 }
  0x44   : > { %252 = vst [vmem:[#allocation2 + $0xd4] sm:$0xf] %v7191_v1 }
  0x45   : > { %253 = vst [vmem:[#allocation2 + $0xd8] sm:$0xf] %v7191_v1 }
  0x46   : > { %254 = vst [vmem:[#allocation2 + $0xdc] sm:$0xf] %v7191_v1  ;;  %v372_v50 = vld [vmem:[#allocation2 + $0xc0] sm:$0x8] }
  0x47   : > { %255 = vst [vmem:[#allocation2 + $0xe0] sm:$0xf] %v7191_v1  ;;  %v652_v62 = vshrl.u32 %v372_v50, 16 }
  0x48   : > { %256 = vst [vmem:[#allocation2 + $0xe4] sm:$0xf] %v7191_v1 }
  0x49   : > { %257 = vst [vmem:[#allocation2 + $0xe8] sm:$0xf] %v7191_v1  ;;  %v7371_v8 = vrot.slane %v652_v62, 11 }
  0x4a   : > { %258 = vst [vmem:[#allocation2 + $0xec] sm:$0xf] %v7191_v1  ;;  %v375_v59 = vld [vmem:[#allocation2 + $0xd0] sm:$0x8] }
  0x4b   : > { %259 = vst [vmem:[#allocation2 + $0xf0] sm:$0xf] %v7191_v1  ;;  %v674_v3 = vshrl.u32 %v375_v59, 16 }
  0x4c   : > { %260 = vst [vmem:[#allocation2 + $0xf4] sm:$0xf] %v7191_v1 }
  0x4d   : > { %261 = vst [vmem:[#allocation2 + $0xf8] sm:$0xf] %v7191_v1  ;;  %v7377_v11 = vrot.slane %v674_v3, 11 }
  0x4e   : > { %262 = vst [vmem:[#allocation2 + $0xfc] sm:$0xf] %v7191_v1 }
  0x4f   : > { %263 = vst [vmem:[#allocation2 + $0x100] sm:$0xf] %v7191_v1 }
  0x50   : > { %264 = vst [vmem:[#allocation2 + $0x104] sm:$0xf] %v7191_v1 }
  0x51   : > { %265 = vst [vmem:[#allocation2 + $0x108] sm:$0xf] %v7191_v1 }
  0x52   : > { %266 = vst [vmem:[#allocation2 + $0x10c] sm:$0xf] %v7191_v1 }
  0x53   : > { %267 = vst [vmem:[#allocation2 + $0x110] sm:$0xf] %v7191_v1 }
  0x54   : > { %268 = vst [vmem:[#allocation2 + $0x114] sm:$0xf] %v7191_v1 }
  0x55   : > { %269 = vst [vmem:[#allocation2 + $0x118] sm:$0xf] %v7191_v1 }
  0x56   : > { %270 = vst [vmem:[#allocation2 + $0x11c] sm:$0xf] %v7191_v1  ;;  %v287_v1 = vld [vmem:[%s7241_s24 + $0x40] sm:$0xff]  }
  0x57   : > { %318 = vst [vmem:[#allocation2 + $0x84] sm:$0xff] %v285_v40  }
  0x58   : > { %326 = vst [vmem:[#allocation2 + $0xc4] sm:$0xff] %v293_v49  }
  0x59   : > { %771 = vst [vmem:[#allocation3] sm:$0xf] %v399_v55 }
  0x5a   : > { %772 = vst [vmem:[#allocation3 + $0x24] sm:$0xf] %v408_v58 }
  0x5b   : > { %312 = vst [vmem:[#allocation2 + $0x54] sm:$0xff] %v279_v63   ;;  %v7064_v63 = vld [vmem:[%s8530_s1 + $0x68] sm:$0xff] }
  0x5c   : > { %320 = vst [vmem:[#allocation2 + $0x94] sm:$0xff] %v287_v1   ;;  %4978 = vmatpush.bf16.msrb.mxu1 %v7064_v63  ;;  %v366_v63 = vld [vmem:[#allocation2 + $0xa0] sm:$0x8] }
  0x5d   : > { %328 = vst [vmem:[#allocation2 + $0xd4] sm:$0xff] %v295_v4   ;;  %v7071_v4 = vld [vmem:[%s8530_s1 + $0xa0] sm:$0xff] }
  0x5e   : > { %v361_v13 = vld [vmem:[#allocation2 + $0x84] sm:$0xf]  ;;  %v362_v14 = vld [vmem:[#allocation2 + $0x88] sm:$0xf]  ;;  %304 = vst [vmem:[#allocation2 + $0x14] sm:$0xff] %v271_v6   ;;  %5068 = vmatpush.bf16.msrb.mxu2 %v7071_v4  ;;  %v608_v4 = vshrl.u32 %v366_v63, 16 }
  0x5f   : > { %v569_v16 = vshrl.u32 %v361_v13, 16  ;;  %v572_v17 = vshll.u32 %v361_v13, 16  ;;  %v578_v18 = vshrl.u32 %v362_v14, 16  ;;  %v581_v20 = vshll.u32 %v362_v14, 16  ;;  %v373_v21 = vld [vmem:[#allocation2 + $0xc4] sm:$0xf] }
  0x60   : > { %v374_v22 = vld [vmem:[#allocation2 + $0xc8] sm:$0xf]  ;;  %v657_v23 = vshrl.u32 %v373_v21, 16  ;;  %v660_v24 = vshll.u32 %v373_v21, 16  ;;  %v6041_v25 = vld [vmem:[#allocation3] sm:$0xf] }
  0x61   : > { %v571_v26 = vrot.slane %v569_v16, 7  ;;  %v580_v27 = vrot.slane %v578_v18, 7  ;;  %v666_v28 = vshrl.u32 %v374_v22, 16  ;;  %v669_v29 = vshll.u32 %v374_v22, 16  ;;  %v6911_v30 = vld [vmem:[#allocation3 + $0x20] sm:$0xf0] }
  0x62   : > { %v659_v31 = vrot.slane %v657_v23, 7  ;;  %v6042_v32 = vor.u32 %v6911_v30, %v6041_v25  ;;  %v352_v33 = vld [vmem:[#allocation2 + $0x54] sm:$0xf]  ;;  %v353_v34 = vld [vmem:[#allocation2 + $0x58] sm:$0xf]  ;;  %314 = vst [vmem:[#allocation2 + $0x64] sm:$0xff] %v281_v12  }
  0x63   : > { %v574_v35 = vor.u32 %v572_v17, %v571_v26  ;;  %v576_v36 = vrot.slane %v571_v26, 4  ;;  %v583_v37 = vor.u32 %v581_v20, %v580_v27  ;;  %v668_v38 = vrot.slane %v666_v28, 7  ;;  %v364_v39 = vld [vmem:[#allocation2 + $0x94] sm:$0xf]  ;;  %v365_v44 = vld [vmem:[#allocation2 + $0x98] sm:$0xf] }
  0x64   : > { %v662_v40 = vor.u32 %v660_v24, %v659_v31  ;;  %v664_v41 = vrot.slane %v659_v31, 4  ;;  %4895 = vmatmul.bf16.vlgmr.msra.gmra.mxu0 %v6042_v32  ;;  %v503_v42 = vshrl.u32 %v352_v33, 16  ;;  %v506_v43 = vshll.u32 %v352_v33, 16  ;;  %v376_v50 = vld [vmem:[#allocation2 + $0xd4] sm:$0xf]  ;;  %v7079_v12 = vld [vmem:[%s8530_s1 + $0xe0] sm:$0xff] }
  0x65   : > { %v575_v46 = vsel %vm7270_vm2, %v5999_v7, %v574_v35  ;;  %v584_v47 = vsel %vm7270_vm2, %v576_v36, %v583_v37  ;;  %v671_v48 = vor.u32 %v669_v29, %v668_v38  ;;  %v512_v49 = vshrl.u32 %v353_v34, 16  ;;  %v7389_v51 = vld [vmem:[#allocation2 + $0xd8] sm:$0xf]  ;;  %v340_v62 = vld [vmem:[#allocation2 + $0x14] sm:$0xf]  ;;  %v7088_v20 = vld [vmem:[%s8530_s1 + $0x128] sm:$0xff]  ;;  %5157 = vmatpush.bf16.msrb.mxu3 %v7079_v12 }
  0x66   : > { %787 = vst [vmem:[#allocation3 + $0x240] sm:$0xf] %v575_v46  ;;  %v663_v53 = vsel %vm7270_vm2, %v7371_v8, %v662_v40  ;;  %v505_v54 = vrot.slane %v503_v42, 7  ;;  %v515_v55 = vshll.u32 %v353_v34, 16  ;;  %v591_v56 = vshrl.u32 %v364_v39, 16  ;;  %v7063_v21 = vld [vmem:[%s8530_s1 + $0x60] sm:$0xff]  ;;  %5245 = vmatpush.bf16.msrb.mxu0 %v7088_v20 }
  0x67   : > { %788 = vst [vmem:[#allocation3 + $0x264] sm:$0xf] %v584_v47  ;;  %v672_v58 = vsel %vm7270_vm2, %v664_v41, %v671_v48  ;;  %v514_v59 = vrot.slane %v512_v49, 7  ;;  %v594_v60 = vshll.u32 %v364_v39, 16  ;;  %v600_v61 = vshrl.u32 %v365_v44, 16  ;;  %4979 = vmatpush.bf16.msrb.mxu1 %v7063_v21  ;;  %v289_v35 = vld [vmem:[%s7241_s24 + $0x48] sm:$0xff]  }
  0x68   : > { %795 = vst [vmem:[#allocation3 + $0x360] sm:$0xf] %v663_v53  ;;  %v508_v0 = vor.u32 %v506_v43, %v505_v54  ;;  %v510_v1 = vrot.slane %v505_v54, 4  ;;  %v593_v2 = vrot.slane %v591_v56, 7  ;;  %v603_v3 = vshll.u32 %v365_v44, 16 }
  0x69   : > { %796 = vst [vmem:[#allocation3 + $0x384] sm:$0xf] %v672_v58  ;;  %v517_v5 = vor.u32 %v515_v55, %v514_v59  ;;  %v602_v6 = vrot.slane %v600_v61, 7  ;;  %v679_v7 = vshrl.u32 %v376_v50, 16  ;;  %v682_v8 = vshll.u32 %v376_v50, 16  ;;  %v297_v50 = vld [vmem:[%s7241_s24 + $0x68] sm:$0xff]  }
  0x6a   : > { %v509_v13 = vsel %vm7270_vm2, %v7373_v9, %v508_v0  ;;  %v596_v14 = vor.u32 %v594_v60, %v593_v2  ;;  %v598_v16 = vrot.slane %v593_v2, 4  ;;  %v688_v17 = vshrl.u32 %v7389_v51, 16  ;;  %v341_v18 = vld [vmem:[#allocation2 + $0x18] sm:$0xf]  ;;  %v354_v25 = vld [vmem:[#allocation2 + $0x60] sm:$0x8] }
  0x6b   : > { %v518_v22 = vsel %vm7270_vm2, %v510_v1, %v517_v5  ;;  %781 = vst [vmem:[#allocation3 + $0x168] sm:$0xf] %v509_v13  ;;  %v605_v23 = vor.u32 %v603_v3, %v602_v6  ;;  %v681_v9 = vrot.slane %v679_v7, 7  ;;  %v691_v24 = vshll.u32 %v7389_v51, 16  ;;  %v355_v43 = vld [vmem:[#allocation2 + $0x64] sm:$0xf] }
  0x6c   : > { %782 = vst [vmem:[#allocation3 + $0x18c] sm:$0xf] %v518_v22  ;;  %v597_v26 = vsel %vm7270_vm2, %v7375_v10, %v596_v14  ;;  %v690_v27 = vrot.slane %v688_v17, 7  ;;  %v415_v28 = vshrl.u32 %v340_v62, 16  ;;  %v418_v29 = vshll.u32 %v340_v62, 16  ;;  %v273_v55 = vld [vmem:[%s7241_s24 + $0x8] sm:$0xff]  }
  0x6d   : > { %v6329_v30 = vld [vmem:[#allocation3 + $0x240] sm:$0xf]  ;;  %v606_v31 = vsel %vm7270_vm2, %v598_v16, %v605_v23  ;;  %789 = vst [vmem:[#allocation3 + $0x288] sm:$0xf] %v597_v26  ;;  %v684_v32 = vor.u32 %v682_v8, %v681_v9  ;;  %v686_v33 = vrot.slane %v681_v9, 4  ;;  %v424_v34 = vshrl.u32 %v341_v18, 16 }
  0x6e   : > { %v6983_v36 = vld [vmem:[#allocation3 + $0x260] sm:$0xf0]  ;;  %790 = vst [vmem:[#allocation3 + $0x2ac] sm:$0xf] %v606_v31  ;;  %v693_v37 = vor.u32 %v691_v24, %v690_v27  ;;  %v417_v38 = vrot.slane %v415_v28, 7  ;;  %v427_v10 = vshll.u32 %v341_v18, 16 }
  0x6f   : > { %v6330_v39 = vor.u32 %v6983_v36, %v6329_v30  ;;  %v6473_v40 = vld [vmem:[#allocation3 + $0x360] sm:$0xf]  ;;  %v685_v41 = vsel %vm7270_vm2, %v7377_v11, %v684_v32  ;;  %v426_v42 = vrot.slane %v424_v34, 7  ;;  %v520_v44 = vshrl.u32 %v354_v25, 16  ;;  %v356_v53 = vld [vmem:[#allocation2 + $0x68] sm:$0xf] }
  0x70   : > { %v7019_v45 = vld [vmem:[#allocation3 + $0x380] sm:$0xf0]  ;;  %v694_v46 = vsel %vm7270_vm2, %v686_v33, %v693_v37  ;;  %797 = vst [vmem:[#allocation3 + $0x3a8] sm:$0xf] %v685_v41  ;;  %v420_v47 = vor.u32 %v418_v29, %v417_v38  ;;  %v422_v48 = vrot.slane %v417_v38, 4  ;;  %v525_v49 = vshrl.u32 %v355_v43, 16 }
  0x71   : > { %4935 = vmatmul.bf16.vlgmr.msra.gmra.mxu2 %v6330_v39  ;;  %v6474_v51 = vor.u32 %v7019_v45, %v6473_v40  ;;  %798 = vst [vmem:[#allocation3 + $0x3cc] sm:$0xf] %v694_v46  ;;  %v429_v52 = vor.u32 %v427_v10, %v426_v42  ;;  %v5997_v54 = vrot.slane %v520_v44, 11  ;;  %v528_v11 = vshll.u32 %v355_v43, 16  ;;  %v283_v5 = vld [vmem:[%s7241_s24 + $0x30] sm:$0xff]   ;;  %v7070_v13 = vld [vmem:[%s8530_s1 + $0x98] sm:$0xff] }
  0x72   : > { %v6221_v56 = vld [vmem:[#allocation3 + $0x168] sm:$0xf]  ;;  %v421_v57 = vsel %vm7270_vm2, %v7380_v15, %v420_v47  ;;  %v527_v58 = vrot.slane %v525_v49, 7  ;;  %v534_v59 = vshrl.u32 %v356_v53, 16  ;;  %v537_v60 = vshll.u32 %v356_v53, 16  ;;  %322 = vst [vmem:[#allocation2 + $0xa4] sm:$0xff] %v289_v35   ;;  %5069 = vmatpush.bf16.msrb.mxu2 %v7070_v13 }
  0x73   : > { %4955 = vmatmul.bf16.vlgmr.msra.gmra.mxu3 %v6474_v51  ;;  %v6956_v61 = vld [vmem:[#allocation3 + $0x188] sm:$0xf0]  ;;  %v430_v62 = vsel %vm7270_vm2, %v422_v48, %v429_v52  ;;  %773 = vst [vmem:[#allocation3 + $0x48] sm:$0xf] %v421_v57  ;;  %v378_v15 = vld [vmem:[#allocation2 + $0xe0] sm:$0x8] }
  0x74   : > { %v6222_v0 = vor.u32 %v6956_v61, %v6221_v56  ;;  %774 = vst [vmem:[#allocation3 + $0x6c] sm:$0xf] %v430_v62  ;;  %v530_v1 = vor.u32 %v528_v11, %v527_v58  ;;  %v532_v2 = vrot.slane %v527_v58, 4  ;;  %v536_v3 = vrot.slane %v534_v59, 7  ;;  %v7443_v6 = vld [vmem:[#allocation3 + $0x288] sm:$0xf] }
  0x75   : > { %330 = vst [vmem:[#allocation2 + $0xe4] sm:$0xff] %v297_v50   ;;  %v7445_v7 = vld [vmem:[#allocation3 + $0x2a8] sm:$0xf0]  ;;  %v342_v14 = vld [vmem:[#allocation2 + $0x20] sm:$0x8]  ;;  %v7078_v16 = vld [vmem:[%s8530_s1 + $0xd8] sm:$0xff] }
  0x76   : > { %4920 = vmatmul.bf16.gmra.mxu1 %v6222_v0  ;;  %v531_v8 = vsel %vm7270_vm2, %v5997_v54, %v530_v1  ;;  %v539_v12 = vor.u32 %v537_v60, %v536_v3  ;;  %306 = vst [vmem:[#allocation2 + $0x24] sm:$0xff] %v273_v55   ;;  %v696_v18 = vshrl.u32 %v378_v15, 16  ;;  %v432_v20 = vshrl.u32 %v342_v14, 16  ;;  %5158 = vmatpush.bf16.msrb.mxu3 %v7078_v16  ;;  %v7087_v9 = vld [vmem:[%s8530_s1 + $0x120] sm:$0xff]  ;;  %v7062_v24 = vld [vmem:[%s8530_s1 + $0x58] sm:$0xff]  ;;  %v7069_v36 = vld [vmem:[%s8530_s1 + $0x90] sm:$0xff] }
  0x77   : > { %v7455_v17 = vld [vmem:[#allocation3 + $0x3a8] sm:$0xf]  ;;  %783 = vst [vmem:[#allocation3 + $0x1b0] sm:$0xf] %v531_v8  ;;  %v6001_v23 = vrot.slane %v608_v4, 11  ;;  %5246 = vmatpush.bf16.msrb.mxu0 %v7087_v9  ;;  %4980 = vmatpush.bf16.msrb.mxu1 %v7062_v24  ;;  %v6366_v32 = vor.u32 %v7445_v7, %v7443_v6  ;;  %v7077_v37 = vld [vmem:[%s8530_s1 + $0xd0] sm:$0xff] }
  0x78   : > { %v7457_v21 = vld [vmem:[#allocation3 + $0x3c8] sm:$0xf0]  ;;  %v540_v22 = vsel %vm7270_vm2, %v532_v2, %v539_v12  ;;  %316 = vst [vmem:[#allocation2 + $0x74] sm:$0xff] %v283_v5   ;;  %v6005_v34 = vrot.slane %v696_v18, 11  ;;  %v7469_v35 = vrot.slane %v432_v20, 11  ;;  %5070 = vmatpush.bf16.msrb.mxu2 %v7069_v36  ;;  %v7086_v57 = vld [vmem:[%s8530_s1 + $0x118] sm:$0xff] }
  0x79   : > { %784 = vst [vmem:[#allocation3 + $0x1d4] sm:$0xf] %v540_v22  ;;  %v367_v25 = vld [vmem:[#allocation2 + $0xa4] sm:$0xf]  ;;  %v368_v26 = vld [vmem:[#allocation2 + $0xa8] sm:$0xf]  ;;  %v6510_v38 = vor.u32 %v7457_v21, %v7455_v17 }
  0x7a   : > { %v6077_v27 = vld [vmem:[#allocation3 + $0x48] sm:$0xf]  ;;  %v613_v28 = vshrl.u32 %v367_v25, 16  ;;  %v616_v29 = vshll.u32 %v367_v25, 16  ;;  %v622_v30 = vshrl.u32 %v368_v26, 16  ;;  %v625_v31 = vshll.u32 %v368_v26, 16  ;;  %5159 = vmatpush.bf16.msrb.mxu3 %v7077_v37 }
  0x7b   : > { %v6920_v33 = vld [vmem:[#allocation3 + $0x68] sm:$0xf0]  ;;  %v7061_v58 = vld [vmem:[%s8530_s1 + $0x50] sm:$0xff]  ;;  %5247 = vmatpush.bf16.msrb.mxu0 %v7086_v57  ;;  %v7075_v57 = vld [vmem:[%s8530_s1 + $0xc0] sm:$0xff] }
  0x7c   : > { %v6078_v10 = vor.u32 %v6920_v33, %v6077_v27  ;;  %v615_v39 = vrot.slane %v613_v28, 7  ;;  %v624_v40 = vrot.slane %v622_v30, 7  ;;  %v379_v41 = vld [vmem:[#allocation2 + $0xe4] sm:$0xf]  ;;  %v380_v42 = vld [vmem:[#allocation2 + $0xe8] sm:$0xf]  ;;  %4981 = vmatpush.bf16.msrb.mxu1 %v7061_v58 }
  0x7d   : > { %v701_v43 = vshrl.u32 %v379_v41, 16  ;;  %v704_v44 = vshll.u32 %v379_v41, 16  ;;  %v710_v45 = vshrl.u32 %v380_v42, 16  ;;  %v713_v46 = vshll.u32 %v380_v42, 16  ;;  %v343_v47 = vld [vmem:[#allocation2 + $0x24] sm:$0xf] }
  0x7e   : > { %4900 = vmatmul.bf16.gmra.mxu0 %v6078_v10  ;;  %v6257_v48 = vld [vmem:[#allocation3 + $0x1b0] sm:$0xf]  ;;  %v618_v49 = vor.u32 %v616_v29, %v615_v39  ;;  %v620_v50 = vrot.slane %v615_v39, 4  ;;  %v627_v51 = vor.u32 %v625_v31, %v624_v40  ;;  %v344_v52 = vld [vmem:[#allocation2 + $0x28] sm:$0xf]  ;;  %v437_v53 = vshrl.u32 %v343_v47, 16 }
  0x7f   : > { %v703_v54 = vrot.slane %v701_v43, 7  ;;  %v712_v11 = vrot.slane %v710_v45, 7  ;;  %v440_v55 = vshll.u32 %v343_v47, 16  ;;  %v446_v56 = vshrl.u32 %v344_v52, 16  ;;  %v357_v0 = vld [vmem:[#allocation2 + $0x70] sm:$0x8] }
  0x80   : > { %v6965_v59 = vld [vmem:[#allocation3 + $0x1d0] sm:$0xf0]  ;;  %v619_v60 = vsel %vm7270_vm2, %v6001_v23, %v618_v49  ;;  %v628_v61 = vsel %vm7270_vm2, %v620_v50, %v627_v51  ;;  %v439_v62 = vrot.slane %v437_v53, 7  ;;  %v449_v63 = vshll.u32 %v344_v52, 16  ;;  %v359_v12 = vld [vmem:[#allocation2 + $0x78] sm:$0xf] }
  0x81   : > { %4940 = vmatmul.bf16.gmra.mxu2 %v6366_v32  ;;  %791 = vst [vmem:[#allocation3 + $0x2d0] sm:$0xf] %v619_v60  ;;  %v706_v1 = vor.u32 %v704_v44, %v703_v54  ;;  %v708_v2 = vrot.slane %v703_v54, 4  ;;  %v715_v3 = vor.u32 %v713_v46, %v712_v11  ;;  %v358_v4 = vld [vmem:[#allocation2 + $0x74] sm:$0xf]  ;;  %v6258_v5 = vor.u32 %v6965_v59, %v6257_v48  ;;  %v7068_v30 = vld [vmem:[%s8530_s1 + $0x88] sm:$0xff] }
  0x82   : > { %v291_v15 = vld [vmem:[%s7241_s24 + $0x50] sm:$0xff]   ;;  %792 = vst [vmem:[#allocation3 + $0x2f4] sm:$0xf] %v628_v61  ;;  %v442_v6 = vor.u32 %v440_v55, %v439_v62  ;;  %v444_v7 = vrot.slane %v439_v62, 4  ;;  %v448_v8 = vrot.slane %v446_v56, 7  ;;  %v542_v16 = vshrl.u32 %v357_v0, 16  ;;  %5071 = vmatpush.bf16.msrb.mxu2 %v7068_v30 }
  0x83   : > { %4960 = vmatmul.bf16.gmra.mxu3 %v6510_v38  ;;  %v707_v13 = vsel %vm7270_vm2, %v6005_v34, %v706_v1  ;;  %v716_v14 = vsel %vm7270_vm2, %v708_v2, %v715_v3  ;;  %v547_v17 = vshrl.u32 %v358_v4, 16  ;;  %324 = vst [vmem:[#allocation2 + $0xb4] sm:$0xff] %v291_v15   ;;  %v369_v18 = vld [vmem:[#allocation2 + $0xb0] sm:$0x8]  ;;  %v550_v22 = vshll.u32 %v358_v4, 16  ;;  %v7076_v10 = vld [vmem:[%s8530_s1 + $0xc8] sm:$0xff] }
  0x84   : > { %799 = vst [vmem:[#allocation3 + $0x3f0] sm:$0xf] %v707_v13  ;;  %v443_v20 = vsel %vm7270_vm2, %v7469_v35, %v442_v6  ;;  %v451_v21 = vor.u32 %v449_v63, %v448_v8  ;;  %v556_v23 = vshrl.u32 %v359_v12, 16  ;;  %v381_v9 = vld [vmem:[#allocation2 + $0xf0] sm:$0x8]  ;;  %v5998_v24 = vrot.slane %v542_v16, 11  ;;  %5160 = vmatpush.bf16.msrb.mxu3 %v7076_v10 }
  0x85   : > { %800 = vst [vmem:[#allocation3 + $0x414] sm:$0xf] %v716_v14  ;;  %v549_v25 = vrot.slane %v547_v17, 7  ;;  %v559_v26 = vshll.u32 %v359_v12, 16  ;;  %v299_v27 = vld [vmem:[%s7241_s24 + $0x70] sm:$0xff]   ;;  %v630_v37 = vshrl.u32 %v369_v18, 16 }
  0x86   : > { %4925 = vmatmul.bf16.gmra.mxu1 %v6258_v5  ;;  %v452_v28 = vsel %vm7270_vm2, %v444_v7, %v451_v21  ;;  %775 = vst [vmem:[#allocation3 + $0x90] sm:$0xf] %v443_v20  ;;  %v558_v29 = vrot.slane %v556_v23, 7  ;;  %v275_v31 = vld [vmem:[%s7241_s24 + $0x10] sm:$0xff]   ;;  %v718_v38 = vshrl.u32 %v381_v9, 16  ;;  %v7060_v43 = vld [vmem:[%s8530_s1 + $0x48] sm:$0xff] }
  0x87   : > { %776 = vst [vmem:[#allocation3 + $0xb4] sm:$0xf] %v452_v28  ;;  %v552_v32 = vor.u32 %v550_v22, %v549_v25  ;;  %v554_v33 = vrot.slane %v549_v25, 4  ;;  %v345_v34 = vld [vmem:[#allocation2 + $0x30] sm:$0x8]  ;;  %4982 = vmatpush.bf16.msrb.mxu1 %v7060_v43  ;;  %v7067_v53 = vld [vmem:[%s8530_s1 + $0x80] sm:$0xff] }
  0x88   : > { %v6401_v35 = vld [vmem:[#allocation3 + $0x2d0] sm:$0xf]  ;;  %v561_v36 = vor.u32 %v559_v26, %v558_v29  ;;  %332 = vst [vmem:[#allocation2 + $0xf4] sm:$0xff] %v299_v27   ;;  %v454_v41 = vshrl.u32 %v345_v34, 16  ;;  %v6002_v55 = vrot.slane %v630_v37, 11  ;;  %v7084_v58 = vld [vmem:[%s8530_s1 + $0x108] sm:$0xff]  ;;  %5072 = vmatpush.bf16.msrb.mxu2 %v7067_v53  ;;  %5161 = vmatpush.bf16.msrb.mxu3 %v7075_v57 }
  0x89   : > { %v7001_v39 = vld [vmem:[#allocation3 + $0x2f0] sm:$0xf0]  ;;  %v553_v40 = vsel %vm7270_vm2, %v5998_v24, %v552_v32  ;;  %308 = vst [vmem:[#allocation2 + $0x34] sm:$0xff] %v275_v31   ;;  %v6006_v61 = vrot.slane %v718_v38, 11  ;;  %v7059_v63 = vld [vmem:[%s8530_s1 + $0x40] sm:$0xff]  ;;  %v7106_v28 = vld [vmem:[%s8530_s1 + $0x1b8] sm:$0xff] }
  0x8a   : > { %v7085_v42 = vld [vmem:[%s8530_s1 + $0x110] sm:$0xff]  ;;  %v562_v44 = vsel %vm7270_vm2, %v554_v33, %v561_v36  ;;  %785 = vst [vmem:[#allocation3 + $0x1f8] sm:$0xf] %v553_v40  ;;  %v371_v46 = vld [vmem:[#allocation2 + $0xb8] sm:$0xf]  ;;  %v6402_v54 = vor.u32 %v7001_v39, %v6401_v35  ;;  %v7526_v62 = vrot.slane %v454_v41, 11 }
  0x8b   : > { %v370_v45 = vld [vmem:[#allocation2 + $0xb4] sm:$0xf]  ;;  %v6545_v47 = vld [vmem:[#allocation3 + $0x3f0] sm:$0xf]  ;;  %786 = vst [vmem:[#allocation3 + $0x21c] sm:$0xf] %v562_v44  ;;  %5248 = vmatpush.bf16.msrb.mxu0 %v7085_v42  ;;  %4983 = vmatpush.bf16.msrb.mxu1 %v7059_v63 }
  0x8c   : > { %v635_v48 = vshrl.u32 %v370_v45, 16  ;;  %v638_v49 = vshll.u32 %v370_v45, 16  ;;  %v7037_v50 = vld [vmem:[#allocation3 + $0x410] sm:$0xf0]  ;;  %v644_v51 = vshrl.u32 %v371_v46, 16  ;;  %v647_v52 = vshll.u32 %v371_v46, 16  ;;  %5421 = vmatpush.bf16.msra.mxu2 %v7106_v28 }
  0x8d   : > { %v6113_v11 = vld [vmem:[#allocation3 + $0x90] sm:$0xf]  ;;  %v6546_v0 = vor.u32 %v7037_v50, %v6545_v47  ;;  %v7083_v5 = vld [vmem:[%s8530_s1 + $0x100] sm:$0xff]  ;;  %v804_v34 = vld [vmem:[#allocation2 + $0x8] sm:$0xf] }
  0x8e   : > { %v637_v56 = vrot.slane %v635_v48, 7  ;;  %v6929_v59 = vld [vmem:[#allocation3 + $0xb0] sm:$0xf0]  ;;  %v646_v60 = vrot.slane %v644_v51, 7  ;;  %v803_v33 = vld [vmem:[#allocation2 + $0x4] sm:$0xf] }
  0x8f   : > { %v6114_v1 = vor.u32 %v6929_v59, %v6113_v11  ;;  %v382_v4 = vld [vmem:[#allocation2 + $0xf4] sm:$0xf]  ;;  %v383_v15 = vld [vmem:[#allocation2 + $0xf8] sm:$0xf]  ;;  %5249 = vmatpush.bf16.msrb.mxu0 %v7084_v58  ;;  %835 = vst [vmem:[#allocation3 + $0x4] sm:$0xf] %v803_v33 }
  0x90   : > { %v640_v2 = vor.u32 %v638_v49, %v637_v56  ;;  %v642_v3 = vrot.slane %v637_v56, 4  ;;  %v649_v6 = vor.u32 %v647_v52, %v646_v60  ;;  %v723_v7 = vshrl.u32 %v382_v4, 16  ;;  %v346_v13 = vld [vmem:[#allocation2 + $0x34] sm:$0xf]  ;;  %v347_v18 = vld [vmem:[#allocation2 + $0x38] sm:$0xf] }
  0x91   : > { %v726_v8 = vshll.u32 %v382_v4, 16  ;;  %v732_v12 = vshrl.u32 %v383_v15, 16  ;;  %4945 = vmatmul.bf16.gmra.mxu2 %v6402_v54  ;;  %4905 = vmatmul.bf16.gmra.mxu0 %v6114_v1  ;;  %v6293_v14 = vld [vmem:[#allocation3 + $0x1f8] sm:$0xf]  ;;  %v735_v17 = vshll.u32 %v383_v15, 16  ;;  %v459_v20 = vshrl.u32 %v346_v13, 16 }
  0x92   : > { %v641_v16 = vsel %vm7270_vm2, %v6002_v55, %v640_v2  ;;  %v6974_v21 = vld [vmem:[#allocation3 + $0x218] sm:$0xf0]  ;;  %v650_v22 = vsel %vm7270_vm2, %v642_v3, %v649_v6  ;;  %v725_v23 = vrot.slane %v723_v7, 7  ;;  %v462_v26 = vshll.u32 %v346_v13, 16  ;;  %v867_v38 = vld [vmem:[#allocation2 + $0x4] sm:$0xf] }
  0x93   : > { %793 = vst [vmem:[#allocation3 + $0x318] sm:$0xf] %v641_v16  ;;  %v734_v9 = vrot.slane %v732_v12, 7  ;;  %4965 = vmatmul.bf16.gmra.mxu3 %v6546_v0  ;;  %v6294_v24 = vor.u32 %v6974_v21, %v6293_v14  ;;  %v461_v25 = vrot.slane %v459_v20, 7  ;;  %v468_v27 = vshrl.u32 %v347_v18, 16  ;;  %5250 = vmatpush.bf16.msrb.mxu0 %v7083_v5  ;;  %v7114_v51 = vld [vmem:[%s8530_s1 + $0x1f8] sm:$0xff] }
  0x94   : > { %794 = vst [vmem:[#allocation3 + $0x33c] sm:$0xf] %v650_v22  ;;  %v728_v29 = vor.u32 %v726_v8, %v725_v23  ;;  %v730_v30 = vrot.slane %v725_v23, 4  ;;  %v471_v32 = vshll.u32 %v347_v18, 16  ;;  %v868_v40 = vld [vmem:[#allocation2 + $0x8] sm:$0xf]  ;;  %5510 = vmatpush.bf16.msra.mxu3 %v7114_v51 }
  0x95   : > { %v737_v31 = vor.u32 %v735_v17, %v734_v9  ;;  %v464_v35 = vor.u32 %v462_v26, %v461_v25  ;;  %v466_v36 = vrot.slane %v461_v25, 4  ;;  %v470_v37 = vrot.slane %v468_v27, 7  ;;  %836 = vst [vmem:[#allocation3 + $0x28] sm:$0xf] %v804_v34  ;;  %v869_v41 = vld [vmem:[#allocation2 + $0xc] sm:$0x1] }
  0x96   : > { %4930 = vmatmul.bf16.gmra.mxu1 %v6294_v24  ;;  %v729_v10 = vsel %vm7270_vm2, %v6006_v61, %v728_v29  ;;  %v919_v44 = vshrl.u32 %v867_v38, 16  ;;  %v922_v45 = vshll.u32 %v867_v38, 16  ;;  %v928_v46 = vshll.u32 %v868_v40, 16  ;;  %v1366_v56 = vld [vmem:[#allocation2 + $0x10] sm:$0x8]  ;;  %v7098_v57 = vld [vmem:[%s8530_s1 + $0x178] sm:$0xff] }
  0x97   : > { %v738_v39 = vsel %vm7270_vm2, %v730_v30, %v737_v31  ;;  %801 = vst [vmem:[#allocation3 + $0x438] sm:$0xf] %v729_v10  ;;  %v465_v42 = vsel %vm7270_vm2, %v7526_v62, %v464_v35  ;;  %v473_v43 = vor.u32 %v471_v32, %v470_v37  ;;  %v932_v47 = vshrl.u32 %v868_v40, 16  ;;  %v1367_v61 = vld [vmem:[#allocation2 + $0x14] sm:$0xf]  ;;  %5332 = vmatpush.bf16.msra.mxu1 %v7098_v57  ;;  %v7122_v5 = vld [vmem:[%s8530_s1 + $0x238] sm:$0xff] }
  0x98   : > { %802 = vst [vmem:[#allocation3 + $0x45c] sm:$0xf] %v738_v39  ;;  %v938_v50 = vshll.u32 %v869_v41, 16  ;;  %v921_v53 = vrot.slane %v919_v44, 4  ;;  %v924_v54 = vrot.slane %v922_v45, 5  ;;  %v930_v11 = vrot.slane %v928_v46, 5  ;;  %5599 = vmatpush.bf16.msra.mxu0 %v7122_v5 }
  0x99   : > { %v474_v49 = vsel %vm7270_vm2, %v466_v36, %v473_v43  ;;  %777 = vst [vmem:[#allocation3 + $0xd8] sm:$0xf] %v465_v42  ;;  %v934_v55 = vrot.slane %v932_v47, 4  ;;  %v1368_v62 = vld [vmem:[#allocation2 + $0x18] sm:$0xf]  ;;  %v1415_v3 = vshrl.u32 %v1366_v56, 16 }
  0x9a   : > { %v6437_v48 = vld [vmem:[#allocation3 + $0x318] sm:$0xf]  ;;  %778 = vst [vmem:[#allocation3 + $0xfc] sm:$0xf] %v474_v49  ;;  %v925_v59 = vor.u32 %v924_v54, %v921_v53  ;;  %v940_v60 = vrot.slane %v938_v50, 5  ;;  %v1420_v4 = vshrl.u32 %v1367_v61, 16 }
  0x9b   : > { %v7010_v52 = vld [vmem:[#allocation3 + $0x338] sm:$0xf0]  ;;  %v6907_v63 = vld [vmem:[#allocation3 + $0x4] sm:$0xf]  ;;  %v935_v2 = vor.u32 %v934_v55, %v930_v11  ;;  %v1423_v15 = vshll.u32 %v1367_v61, 16  ;;  %v1429_v8 = vshrl.u32 %v1368_v62, 16 }
  0x9c   : > { %v6438_v58 = vor.u32 %v7010_v52, %v6437_v48  ;;  %v6043_v0 = vld [vmem:[#allocation3 + $0x24] sm:$0xf0]  ;;  %v926_v7 = vrot.slane %v925_v59, 4  ;;  %v1432_v12 = vshll.u32 %v1368_v62, 16  ;;  %v6007_v16 = vrot.slane %v1415_v3, 11 }
  0x9d   : > { %v936_v14 = vrot.slane %v935_v2, 4  ;;  %v1422_v17 = vrot.slane %v1420_v4, 7  ;;  %v1431_v22 = vrot.slane %v1429_v8, 7  ;;  %v1830_v23 = vld [vmem:[#allocation2 + $0x14] sm:$0xf]  ;;  %v6046_v28 = vor.u32 %v6907_v63, %v6043_v0 }
  0x9e   : > { %v6581_v6 = vld [vmem:[#allocation3 + $0x438] sm:$0xf]  ;;  %v931_v21 = vsel %vm7558_vm5, %v926_v7, %v930_v11  ;;  %v805_v31 = vld [vmem:[#allocation2 + $0x14] sm:$0xf]  ;;  %1862 = vst [vmem:[#allocation3 + $0x10] sm:$0xf] %v1830_v23 }
  0x9f   : > { %v7046_v13 = vld [vmem:[#allocation3 + $0x458] sm:$0xf0]  ;;  %v941_v24 = vsel %vm7558_vm5, %v936_v14, %v940_v60  ;;  %1334 = vst [vmem:[#allocation3 + $0x8] sm:$0xf] %v931_v21  ;;  %v1425_v25 = vor.u32 %v1423_v15, %v1422_v17  ;;  %v1427_v26 = vrot.slane %v1422_v17, 4  ;;  %v1434_v29 = vor.u32 %v1432_v12, %v1431_v22 }
  0xa0   : > { %v6582_v18 = vor.u32 %v7046_v13, %v6581_v6  ;;  %v6149_v20 = vld [vmem:[#allocation3 + $0xd8] sm:$0xf]  ;;  %1335 = vst [vmem:[#allocation3 + $0x2c] sm:$0xf] %v941_v24  ;;  %v870_v34 = vld [vmem:[#allocation2 + $0x14] sm:$0xf] }
  0xa1   : > { %4950 = vmatmul.bf16.gmra.mxu2 %v6438_v58  ;;  %v6938_v9 = vld [vmem:[#allocation3 + $0xf8] sm:$0xf0]  ;;  %v1831_v30 = vld [vmem:[#allocation2 + $0x18] sm:$0xf]  ;;  %v1426_v32 = vsel %vm7270_vm2, %v6007_v16, %v1425_v25  ;;  %v1435_v35 = vsel %vm7270_vm2, %v1427_v26, %v1434_v29  ;;  %v943_v38 = vshrl.u32 %v870_v34, 16  ;;  %v946_v10 = vshll.u32 %v870_v34, 16 }
  0xa2   : > { %v6150_v27 = vor.u32 %v6938_v9, %v6149_v20  ;;  %v806_v33 = vld [vmem:[#allocation2 + $0x18] sm:$0xf]  ;;  %1798 = vst [vmem:[#allocation3 + $0xc] sm:$0xf] %v1426_v32  ;;  %v872_v37 = vld [vmem:[#allocation2 + $0x1c] sm:$0x1] }
  0xa3   : > { %4970 = vmatmul.bf16.gmra.mxu3 %v6582_v18  ;;  %v871_v36 = vld [vmem:[#allocation2 + $0x18] sm:$0xf]  ;;  %1799 = vst [vmem:[#allocation3 + $0x30] sm:$0xf] %v1435_v35  ;;  %v962_v41 = vshll.u32 %v872_v37, 16  ;;  %v945_v43 = vrot.slane %v943_v38, 4 }
  0xa4   : > { %4910 = vmatmul.bf16.gmra.mxu0 %v6150_v27  ;;  %v952_v39 = vshll.u32 %v871_v36, 16  ;;  %v956_v40 = vshrl.u32 %v871_v36, 16  ;;  %1863 = vst [vmem:[#allocation3 + $0x34] sm:$0xf] %v1831_v30  ;;  %v1369_v42 = vld [vmem:[#allocation2 + $0x20] sm:$0x8] }
  0xa5   : > { %837 = vst [vmem:[#allocation3 + $0x4c] sm:$0xf] %v805_v31  ;;  %v948_v44 = vrot.slane %v946_v10, 5  ;;  %v1437_v47 = vshrl.u32 %v1369_v42, 16  ;;  %v964_v50 = vrot.slane %v962_v41, 5 }
  0xa6   : > { %4984 = vmatmul.bf16.vlgmr.msrb.gmra.mxu1 %v6046_v28  ;;  %v954_v45 = vrot.slane %v952_v39, 5  ;;  %v958_v46 = vrot.slane %v956_v40, 4  ;;  %838 = vst [vmem:[#allocation3 + $0x70] sm:$0xf] %v806_v33  ;;  %v1370_v51 = vld [vmem:[#allocation2 + $0x24] sm:$0xf] }
  0xa7   : > { %v949_v48 = vor.u32 %v948_v44, %v945_v43  ;;  %v1371_v52 = vld [vmem:[#allocation2 + $0x28] sm:$0xf]  ;;  %v6912_v54 = vld [vmem:[#allocation3 + $0x28] sm:$0xf0]  ;;  %v1442_v11 = vshrl.u32 %v1370_v51, 16  ;;  %v1445_v55 = vshll.u32 %v1370_v51, 16 }
  0xa8   : > { %v959_v49 = vor.u32 %v958_v46, %v954_v45  ;;  %v6049_v53 = vld [vmem:[#allocation3 + $0x8] sm:$0xf]  ;;  %v6057_v56 = vld [vmem:[#allocation3 + $0x10] sm:$0xf]  ;;  %v1451_v59 = vshrl.u32 %v1371_v52, 16  ;;  %v1454_v60 = vshll.u32 %v1371_v52, 16 }
  0xa9   : > { %v950_v57 = vrot.slane %v949_v48, 4  ;;  %v6908_v61 = vld [vmem:[#allocation3 + $0xc] sm:$0xf]  ;;  %v6008_v63 = vrot.slane %v1437_v47, 11  ;;  %v1444_v0 = vrot.slane %v1442_v11, 7  ;;  %v6050_v2 = vor.u32 %v6912_v54, %v6049_v53  ;;  %v7105_v33 = vld [vmem:[%s8530_s1 + $0x1b0] sm:$0xff] }
  0xaa   : > { %v960_v58 = vrot.slane %v959_v49, 4  ;;  %v6051_v62 = vld [vmem:[#allocation3 + $0x2c] sm:$0xf0]  ;;  %v1453_v5 = vrot.slane %v1451_v59, 7  ;;  %v1832_v6 = vld [vmem:[#allocation2 + $0x24] sm:$0xf]  ;;  %5422 = vmatpush.bf16.msra.mxu2 %v7105_v33 }
  0xab   : > { %v6913_v3 = vld [vmem:[#allocation3 + $0x30] sm:$0xf0]  ;;  %v955_v4 = vsel %vm7558_vm5, %v950_v57, %v954_v45  ;;  %v1447_v8 = vor.u32 %v1445_v55, %v1444_v0  ;;  %v1449_v12 = vrot.slane %v1444_v0, 4  ;;  %v1833_v13 = vld [vmem:[#allocation2 + $0x28] sm:$0xf]  ;;  %v6054_v14 = vor.u32 %v6908_v61, %v6051_v62 }
  0xac   : > { %v965_v15 = vsel %vm7558_vm5, %v960_v58, %v964_v50  ;;  %v6916_v7 = vld [vmem:[#allocation3 + $0x4c] sm:$0xf]  ;;  %1336 = vst [vmem:[#allocation3 + $0x50] sm:$0xf] %v955_v4  ;;  %v1456_v17 = vor.u32 %v1454_v60, %v1453_v5  ;;  %v807_v18 = vld [vmem:[#allocation2 + $0x24] sm:$0xf]  ;;  %v6058_v20 = vor.u32 %v6913_v3, %v6057_v56 }
  0xad   : > { %v6079_v16 = vld [vmem:[#allocation3 + $0x6c] sm:$0xf0]  ;;  %1337 = vst [vmem:[#allocation3 + $0x74] sm:$0xf] %v965_v15  ;;  %v1448_v21 = vsel %vm7270_vm2, %v6008_v63, %v1447_v8  ;;  %v808_v22 = vld [vmem:[#allocation2 + $0x28] sm:$0xf] }
  0xae   : > { %1864 = vst [vmem:[#allocation3 + $0x58] sm:$0xf] %v1832_v6  ;;  %v873_v23 = vld [vmem:[#allocation2 + $0x24] sm:$0xf]  ;;  %v6082_v9 = vor.u32 %v6916_v7, %v6079_v16  ;;  %v1457_v24 = vsel %vm7270_vm2, %v1449_v12, %v1456_v17  ;;  %v874_v25 = vld [vmem:[#allocation2 + $0x28] sm:$0xf] }
  0xaf   : > { %1800 = vst [vmem:[#allocation3 + $0x54] sm:$0xf] %v1448_v21  ;;  %v875_v26 = vld [vmem:[#allocation2 + $0x2c] sm:$0x1]  ;;  %v967_v27 = vshrl.u32 %v873_v23, 16  ;;  %v970_v28 = vshll.u32 %v873_v23, 16 }
  0xb0   : > { %1801 = vst [vmem:[#allocation3 + $0x78] sm:$0xf] %v1457_v24  ;;  %v976_v29 = vshll.u32 %v874_v25, 16  ;;  %v980_v30 = vshrl.u32 %v874_v25, 16  ;;  %v986_v31 = vshll.u32 %v875_v26, 16  ;;  %v7113_v45 = vld [vmem:[%s8530_s1 + $0x1f0] sm:$0xff] }
  0xb1   : > { %5073 = vmatmul.bf16.vlgmr.msrb.gmra.mxu2 %v6050_v2  ;;  %1865 = vst [vmem:[#allocation3 + $0x7c] sm:$0xf] %v1833_v13  ;;  %v1372_v32 = vld [vmem:[#allocation2 + $0x30] sm:$0x8]  ;;  %v969_v34 = vrot.slane %v967_v27, 4  ;;  %v972_v35 = vrot.slane %v970_v28, 5  ;;  %5511 = vmatpush.bf16.msra.mxu3 %v7113_v45 }
  0xb2   : > { %839 = vst [vmem:[#allocation3 + $0x94] sm:$0xf] %v807_v18  ;;  %v978_v36 = vrot.slane %v976_v29, 5  ;;  %v982_v37 = vrot.slane %v980_v30, 4  ;;  %v1459_v38 = vshrl.u32 %v1372_v32, 16  ;;  %v988_v40 = vrot.slane %v986_v31, 5 }
  0xb3   : > { %5162 = vmatmul.bf16.vlgmr.msrb.gmra.mxu3 %v6054_v14  ;;  %840 = vst [vmem:[#allocation3 + $0xb8] sm:$0xf] %v808_v22  ;;  %v973_v10 = vor.u32 %v972_v35, %v969_v34  ;;  %v1373_v41 = vld [vmem:[#allocation2 + $0x34] sm:$0xf]  ;;  %v1374_v42 = vld [vmem:[#allocation2 + $0x38] sm:$0xf] }
  0xb4   : > { %5251 = vmatmul.bf16.vlgmr.msrb.gmra.mxu0 %v6058_v20  ;;  %v983_v39 = vor.u32 %v982_v37, %v978_v36  ;;  %v1464_v43 = vshrl.u32 %v1373_v41, 16  ;;  %v1467_v44 = vshll.u32 %v1373_v41, 16  ;;  %v6085_v46 = vld [vmem:[#allocation3 + $0x50] sm:$0xf]  ;;  %v6921_v47 = vld [vmem:[#allocation3 + $0x70] sm:$0xf0] }
  0xb5   : > { %v974_v48 = vrot.slane %v973_v10, 4  ;;  %v1473_v50 = vshrl.u32 %v1374_v42, 16  ;;  %v1476_v51 = vshll.u32 %v1374_v42, 16  ;;  %v6009_v53 = vrot.slane %v1459_v38, 11  ;;  %v7097_v11 = vld [vmem:[%s8530_s1 + $0x170] sm:$0xff] }
  0xb6   : > { %4989 = vmatmul.bf16.gmra.mxu1 %v6082_v9  ;;  %v984_v49 = vrot.slane %v983_v39, 4  ;;  %v6917_v52 = vld [vmem:[#allocation3 + $0x54] sm:$0xf]  ;;  %v1466_v54 = vrot.slane %v1464_v43, 7  ;;  %v6093_v61 = vld [vmem:[#allocation3 + $0x58] sm:$0xf]  ;;  %v6086_v15 = vor.u32 %v6921_v47, %v6085_v46 }
  0xb7   : > { %v6087_v55 = vld [vmem:[#allocation3 + $0x74] sm:$0xf0]  ;;  %v979_v56 = vsel %vm7558_vm5, %v974_v48, %v978_v36  ;;  %v1475_v58 = vrot.slane %v1473_v50, 7  ;;  %v1834_v59 = vld [vmem:[#allocation2 + $0x34] sm:$0xf]  ;;  %5333 = vmatpush.bf16.msra.mxu1 %v7097_v11 }
  0xb8   : > { %v989_v57 = vsel %vm7558_vm5, %v984_v49, %v988_v40  ;;  %v7121_v60 = vld [vmem:[%s8530_s1 + $0x230] sm:$0xff]  ;;  %v6922_v62 = vld [vmem:[#allocation3 + $0x78] sm:$0xf0]  ;;  %1338 = vst [vmem:[#allocation3 + $0x98] sm:$0xf] %v979_v56  ;;  %v1469_v63 = vor.u32 %v1467_v44, %v1466_v54  ;;  %v1471_v0 = vrot.slane %v1466_v54, 4  ;;  %v6090_v13 = vor.u32 %v6917_v52, %v6087_v55 }
  0xb9   : > { %1339 = vst [vmem:[#allocation3 + $0xbc] sm:$0xf] %v989_v57  ;;  %v1478_v2 = vor.u32 %v1476_v51, %v1475_v58  ;;  %v1835_v3 = vld [vmem:[#allocation2 + $0x38] sm:$0xf]  ;;  %5600 = vmatpush.bf16.msra.mxu0 %v7121_v60  ;;  %v809_v4 = vld [vmem:[#allocation2 + $0x34] sm:$0xf]  ;;  %v6094_v23 = vor.u32 %v6922_v62, %v6093_v61 }
  0xba   : > { %v6925_v5 = vld [vmem:[#allocation3 + $0x94] sm:$0xf]  ;;  %v6115_v6 = vld [vmem:[#allocation3 + $0xb4] sm:$0xf0]  ;;  %v1470_v7 = vsel %vm7270_vm2, %v6009_v53, %v1469_v63  ;;  %1866 = vst [vmem:[#allocation3 + $0xa0] sm:$0xf] %v1834_v59 }
  0xbb   : > { %v810_v8 = vld [vmem:[#allocation2 + $0x38] sm:$0xf]  ;;  %v876_v12 = vld [vmem:[#allocation2 + $0x34] sm:$0xf]  ;;  %v1479_v14 = vsel %vm7270_vm2, %v1471_v0, %v1478_v2  ;;  %1802 = vst [vmem:[#allocation3 + $0x9c] sm:$0xf] %v1470_v7  ;;  %v6118_v29 = vor.u32 %v6925_v5, %v6115_v6 }
  0xbc   : > { %v877_v16 = vld [vmem:[#allocation2 + $0x38] sm:$0xf]  ;;  %v878_v17 = vld [vmem:[#allocation2 + $0x3c] sm:$0x1]  ;;  %1803 = vst [vmem:[#allocation3 + $0xc0] sm:$0xf] %v1479_v14 }
  0xbd   : > { %v991_v18 = vshrl.u32 %v876_v12, 16  ;;  %v994_v20 = vshll.u32 %v876_v12, 16  ;;  %v1000_v21 = vshll.u32 %v877_v16, 16  ;;  %v1004_v22 = vshrl.u32 %v877_v16, 16  ;;  %1867 = vst [vmem:[#allocation3 + $0xc4] sm:$0xf] %v1835_v3 }
  0xbe   : > { %v1010_v9 = vshll.u32 %v878_v17, 16  ;;  %v1375_v24 = vld [vmem:[#allocation2 + $0x40] sm:$0x8]  ;;  %841 = vst [vmem:[#allocation3 + $0xdc] sm:$0xf] %v809_v4 }
  0xbf   : > { %v993_v25 = vrot.slane %v991_v18, 4  ;;  %v996_v26 = vrot.slane %v994_v20, 5  ;;  %v1002_v27 = vrot.slane %v1000_v21, 5  ;;  %v1006_v28 = vrot.slane %v1004_v22, 4  ;;  %842 = vst [vmem:[#allocation3 + $0x100] sm:$0xf] %v810_v8 }
  0xc0   : > { %v1481_v30 = vshrl.u32 %v1375_v24, 16  ;;  %v1012_v33 = vrot.slane %v1010_v9, 5  ;;  %v1376_v34 = vld [vmem:[#allocation2 + $0x44] sm:$0xf]  ;;  %v1377_v35 = vld [vmem:[#allocation2 + $0x48] sm:$0xf] }
  0xc1   : > { %5078 = vmatmul.bf16.gmra.mxu2 %v6086_v15  ;;  %v997_v31 = vor.u32 %v996_v26, %v993_v25  ;;  %v1007_v32 = vor.u32 %v1006_v28, %v1002_v27  ;;  %v1486_v36 = vshrl.u32 %v1376_v34, 16  ;;  %v1489_v37 = vshll.u32 %v1376_v34, 16  ;;  %v1836_v46 = vld [vmem:[#allocation2 + $0x44] sm:$0xf]  ;;  %v6121_v47 = vld [vmem:[#allocation3 + $0x98] sm:$0xf] }
  0xc2   : > { %v1495_v39 = vshrl.u32 %v1377_v35, 16  ;;  %v1498_v40 = vshll.u32 %v1377_v35, 16  ;;  %v6010_v41 = vrot.slane %v1481_v30, 11  ;;  %v6930_v48 = vld [vmem:[#allocation3 + $0xb8] sm:$0xf0] }
  0xc3   : > { %5167 = vmatmul.bf16.gmra.mxu3 %v6090_v13  ;;  %v998_v38 = vrot.slane %v997_v31, 4  ;;  %v1008_v10 = vrot.slane %v1007_v32, 4  ;;  %v1488_v42 = vrot.slane %v1486_v36, 7  ;;  %v1837_v52 = vld [vmem:[#allocation2 + $0x48] sm:$0xf]  ;;  %v6122_v5 = vor.u32 %v6930_v48, %v6121_v47 }
  0xc4   : > { %5256 = vmatmul.bf16.gmra.mxu0 %v6094_v23  ;;  %v1497_v45 = vrot.slane %v1495_v39, 7  ;;  %v811_v53 = vld [vmem:[#allocation2 + $0x44] sm:$0xf]  ;;  %v6926_v54 = vld [vmem:[#allocation3 + $0x9c] sm:$0xf] }
  0xc5   : > { %v1003_v43 = vsel %vm7558_vm5, %v998_v38, %v1002_v27  ;;  %v1013_v44 = vsel %vm7558_vm5, %v1008_v10, %v1012_v33  ;;  %v1491_v49 = vor.u32 %v1489_v37, %v1488_v42  ;;  %v1493_v50 = vrot.slane %v1488_v42, 4  ;;  %v6123_v11 = vld [vmem:[#allocation3 + $0xbc] sm:$0xf0]  ;;  %1868 = vst [vmem:[#allocation3 + $0xe8] sm:$0xf] %v1836_v46  ;;  %v7104_v33 = vld [vmem:[%s8530_s1 + $0x1a8] sm:$0xff] }
  0xc6   : > { %4994 = vmatmul.bf16.gmra.mxu1 %v6118_v29  ;;  %1340 = vst [vmem:[#allocation3 + $0xe0] sm:$0xf] %v1003_v43  ;;  %v1500_v51 = vor.u32 %v1498_v40, %v1497_v45  ;;  %v812_v56 = vld [vmem:[#allocation2 + $0x48] sm:$0xf]  ;;  %v879_v57 = vld [vmem:[#allocation2 + $0x44] sm:$0xf]  ;;  %v6126_v16 = vor.u32 %v6926_v54, %v6123_v11  ;;  %5423 = vmatpush.bf16.msra.mxu2 %v7104_v33 }
  0xc7   : > { %1341 = vst [vmem:[#allocation3 + $0x104] sm:$0xf] %v1013_v44  ;;  %v1492_v55 = vsel %vm7270_vm2, %v6010_v41, %v1491_v49  ;;  %v6129_v58 = vld [vmem:[#allocation3 + $0xa0] sm:$0xf]  ;;  %v6931_v59 = vld [vmem:[#allocation3 + $0xc0] sm:$0xf0] }
  0xc8   : > { %v1501_v60 = vsel %vm7270_vm2, %v1493_v50, %v1500_v51  ;;  %1804 = vst [vmem:[#allocation3 + $0xe4] sm:$0xf] %v1492_v55  ;;  %v880_v61 = vld [vmem:[#allocation2 + $0x48] sm:$0xf]  ;;  %v881_v62 = vld [vmem:[#allocation2 + $0x4c] sm:$0x1]  ;;  %v6130_v18 = vor.u32 %v6931_v59, %v6129_v58 }
  0xc9   : > { %v6934_v63 = vld [vmem:[#allocation3 + $0xdc] sm:$0xf]  ;;  %v6151_v0 = vld [vmem:[#allocation3 + $0xfc] sm:$0xf0]  ;;  %1805 = vst [vmem:[#allocation3 + $0x108] sm:$0xf] %v1501_v60 }
  0xca   : > { %v1015_v2 = vshrl.u32 %v879_v57, 16  ;;  %v1018_v3 = vshll.u32 %v879_v57, 16  ;;  %v1024_v4 = vshll.u32 %v880_v61, 16  ;;  %v1028_v15 = vshrl.u32 %v880_v61, 16  ;;  %1869 = vst [vmem:[#allocation3 + $0x10c] sm:$0xf] %v1837_v52 }
  0xcb   : > { %v1034_v6 = vshll.u32 %v881_v62, 16  ;;  %v1378_v7 = vld [vmem:[#allocation2 + $0x50] sm:$0x8]  ;;  %843 = vst [vmem:[#allocation3 + $0x124] sm:$0xf] %v811_v53  ;;  %v6154_v24 = vor.u32 %v6934_v63, %v6151_v0  ;;  %v7112_v38 = vld [vmem:[%s8530_s1 + $0x1e8] sm:$0xff] }
  0xcc   : > { %v1017_v8 = vrot.slane %v1015_v2, 4  ;;  %v1020_v12 = vrot.slane %v1018_v3, 5  ;;  %v1026_v13 = vrot.slane %v1024_v4, 5  ;;  %v1030_v14 = vrot.slane %v1028_v15, 4  ;;  %844 = vst [vmem:[#allocation3 + $0x148] sm:$0xf] %v812_v56  ;;  %5512 = vmatpush.bf16.msra.mxu3 %v7112_v38 }
  0xcd   : > { %v1503_v17 = vshrl.u32 %v1378_v7, 16  ;;  %v1036_v22 = vrot.slane %v1034_v6, 5  ;;  %v1379_v23 = vld [vmem:[#allocation2 + $0x54] sm:$0xf]  ;;  %v1380_v9 = vld [vmem:[#allocation2 + $0x58] sm:$0xf] }
  0xce   : > { %v1021_v20 = vor.u32 %v1020_v12, %v1017_v8  ;;  %v1031_v21 = vor.u32 %v1030_v14, %v1026_v13  ;;  %v1508_v25 = vshrl.u32 %v1379_v23, 16  ;;  %v1511_v26 = vshll.u32 %v1379_v23, 16  ;;  %v1838_v37 = vld [vmem:[#allocation2 + $0x54] sm:$0xf]  ;;  %v1839_v41 = vld [vmem:[#allocation2 + $0x58] sm:$0xf] }
  0xcf   : > { %v1517_v29 = vshrl.u32 %v1380_v9, 16  ;;  %v1520_v30 = vshll.u32 %v1380_v9, 16  ;;  %v6011_v31 = vrot.slane %v1503_v17, 11  ;;  %v7096_v42 = vld [vmem:[%s8530_s1 + $0x168] sm:$0xff]  ;;  %1870 = vst [vmem:[#allocation3 + $0x130] sm:$0xf] %v1838_v37  ;;  %v7629_v17 = vpop.f32.mrf.mxu1 }
  0xd0   : > { %v1022_v27 = vrot.slane %v1021_v20, 4  ;;  %v1032_v28 = vrot.slane %v1031_v21, 4  ;;  %v1510_v32 = vrot.slane %v1508_v25, 7  ;;  %v7120_v43 = vld [vmem:[%s8530_s1 + $0x228] sm:$0xff]  ;;  %v882_v45 = vld [vmem:[#allocation2 + $0x54] sm:$0xf]  ;;  %5334 = vmatpush.bf16.msra.mxu1 %v7096_v42 }
  0xd1   : > { %5083 = vmatmul.bf16.gmra.mxu2 %v6122_v5  ;;  %v1519_v36 = vrot.slane %v1517_v29, 7  ;;  %v883_v46 = vld [vmem:[#allocation2 + $0x58] sm:$0xf]  ;;  %v6157_v47 = vld [vmem:[#allocation3 + $0xe0] sm:$0xf]  ;;  %5601 = vmatpush.bf16.msra.mxu0 %v7120_v43  ;;  %v1039_v53 = vshrl.u32 %v882_v45, 16 }
  0xd2   : > { %v1027_v34 = vsel %vm7558_vm5, %v1022_v27, %v1026_v13  ;;  %v1037_v35 = vsel %vm7558_vm5, %v1032_v28, %v1036_v22  ;;  %v1513_v10 = vor.u32 %v1511_v26, %v1510_v32  ;;  %v1515_v39 = vrot.slane %v1510_v32, 4  ;;  %v6939_v48 = vld [vmem:[#allocation3 + $0x100] sm:$0xf0]  ;;  %v813_v50 = vld [vmem:[#allocation2 + $0x54] sm:$0xf] }
  0xd3   : > { %5172 = vmatmul.bf16.gmra.mxu3 %v6126_v16  ;;  %1342 = vst [vmem:[#allocation3 + $0x128] sm:$0xf] %v1027_v34  ;;  %v1522_v40 = vor.u32 %v1520_v30, %v1519_v36  ;;  %v814_v51 = vld [vmem:[#allocation2 + $0x58] sm:$0xf]  ;;  %v884_v52 = vld [vmem:[#allocation2 + $0x5c] sm:$0x1]  ;;  %v6158_v3 = vor.u32 %v6939_v48, %v6157_v47 }
  0xd4   : > { %5261 = vmatmul.bf16.gmra.mxu0 %v6130_v18  ;;  %1343 = vst [vmem:[#allocation3 + $0x14c] sm:$0xf] %v1037_v35  ;;  %v1514_v44 = vsel %vm7270_vm2, %v6011_v31, %v1513_v10  ;;  %v1042_v54 = vshll.u32 %v882_v45, 16  ;;  %v6935_v11 = vld [vmem:[#allocation3 + $0xe4] sm:$0xf]  ;;  %v1048_v56 = vshll.u32 %v883_v46, 16 }
  0xd5   : > { %v1523_v49 = vsel %vm7270_vm2, %v1515_v39, %v1522_v40  ;;  %1806 = vst [vmem:[#allocation3 + $0x12c] sm:$0xf] %v1514_v44  ;;  %v6159_v55 = vld [vmem:[#allocation3 + $0x104] sm:$0xf0]  ;;  %v1052_v57 = vshrl.u32 %v883_v46, 16  ;;  %v1058_v58 = vshll.u32 %v884_v52, 16 }
  0xd6   : > { %4999 = vmatmul.bf16.gmra.mxu1 %v6154_v24  ;;  %1807 = vst [vmem:[#allocation3 + $0x150] sm:$0xf] %v1523_v49  ;;  %v6165_v59 = vld [vmem:[#allocation3 + $0xe8] sm:$0xf]  ;;  %v1041_v60 = vrot.slane %v1039_v53, 4  ;;  %v1044_v61 = vrot.slane %v1042_v54, 5  ;;  %v6162_v16 = vor.u32 %v6935_v11, %v6159_v55 }
  0xd7   : > { %1871 = vst [vmem:[#allocation3 + $0x154] sm:$0xf] %v1839_v41  ;;  %v1381_v62 = vld [vmem:[#allocation2 + $0x60] sm:$0x8]  ;;  %v6940_v63 = vld [vmem:[#allocation3 + $0x108] sm:$0xf0]  ;;  %v7641_v54 = vpop.f32.mrf.mxu1 }
  0xd8   : > { %845 = vst [vmem:[#allocation3 + $0x16c] sm:$0xf] %v813_v50  ;;  %v1050_v0 = vrot.slane %v1048_v56, 5  ;;  %v1054_v2 = vrot.slane %v1052_v57, 4  ;;  %v6943_v4 = vld [vmem:[#allocation3 + $0x124] sm:$0xf]  ;;  %v1045_v15 = vor.u32 %v1044_v61, %v1041_v60  ;;  %v6166_v23 = vor.u32 %v6940_v63, %v6165_v59 }
  0xd9   : > { %846 = vst [vmem:[#allocation3 + $0x190] sm:$0xf] %v814_v51  ;;  %v1382_v5 = vld [vmem:[#allocation2 + $0x64] sm:$0xf]  ;;  %v1525_v6 = vshrl.u32 %v1381_v62, 16  ;;  %v1060_v8 = vrot.slane %v1058_v58, 5 }
  0xda   : > { %v1055_v7 = vor.u32 %v1054_v2, %v1050_v0  ;;  %v1383_v12 = vld [vmem:[#allocation2 + $0x68] sm:$0xf]  ;;  %v1530_v13 = vshrl.u32 %v1382_v5, 16  ;;  %v1533_v14 = vshll.u32 %v1382_v5, 16  ;;  %v1046_v20 = vrot.slane %v1045_v15, 4 }
  0xdb   : > { %v6187_v18 = vld [vmem:[#allocation3 + $0x144] sm:$0xf0]  ;;  %v1539_v21 = vshrl.u32 %v1383_v12, 16  ;;  %v1542_v22 = vshll.u32 %v1383_v12, 16  ;;  %v6012_v24 = vrot.slane %v1525_v6, 11 }
  0xdc   : > { %v1056_v9 = vrot.slane %v1055_v7, 4  ;;  %v1532_v25 = vrot.slane %v1530_v13, 7  ;;  %v1051_v26 = vsel %vm7558_vm5, %v1046_v20, %v1050_v0  ;;  %v1840_v28 = vld [vmem:[#allocation2 + $0x64] sm:$0xf]  ;;  %v6190_v29 = vor.u32 %v6943_v4, %v6187_v18  ;;  %v1841_v34 = vld [vmem:[#allocation2 + $0x68] sm:$0xf] }
  0xdd   : > { %v1541_v27 = vrot.slane %v1539_v21, 7  ;;  %1344 = vst [vmem:[#allocation3 + $0x170] sm:$0xf] %v1051_v26  ;;  %v885_v35 = vld [vmem:[#allocation2 + $0x64] sm:$0xf] }
  0xde   : > { %v1061_v30 = vsel %vm7558_vm5, %v1056_v9, %v1060_v8  ;;  %v1535_v31 = vor.u32 %v1533_v14, %v1532_v25  ;;  %v1537_v32 = vrot.slane %v1532_v25, 4  ;;  %1872 = vst [vmem:[#allocation3 + $0x178] sm:$0xf] %v1840_v28  ;;  %v886_v37 = vld [vmem:[#allocation2 + $0x68] sm:$0xf]  ;;  %v1063_v39 = vshrl.u32 %v885_v35, 16 }
  0xdf   : > { %1345 = vst [vmem:[#allocation3 + $0x194] sm:$0xf] %v1061_v30  ;;  %v1544_v33 = vor.u32 %v1542_v22, %v1541_v27  ;;  %v887_v38 = vld [vmem:[#allocation2 + $0x6c] sm:$0x1]  ;;  %v1066_v40 = vshll.u32 %v885_v35, 16  ;;  %v1072_v41 = vshll.u32 %v886_v37, 16 }
  0xe0   : > { %v1536_v36 = vsel %vm7270_vm2, %v6012_v24, %v1535_v31  ;;  %v1076_v42 = vshrl.u32 %v886_v37, 16  ;;  %v1082_v43 = vshll.u32 %v887_v38, 16  ;;  %v1384_v44 = vld [vmem:[#allocation2 + $0x70] sm:$0x8]  ;;  %1873 = vst [vmem:[#allocation3 + $0x19c] sm:$0xf] %v1841_v34 }
  0xe1   : > { %5088 = vmatmul.bf16.gmra.mxu2 %v6158_v3  ;;  %v1545_v10 = vsel %vm7270_vm2, %v1537_v32, %v1544_v33  ;;  %1808 = vst [vmem:[#allocation3 + $0x174] sm:$0xf] %v1536_v36  ;;  %v7639_v45 = vpop.f32.mrf.mxu0  ;;  %v1065_v46 = vrot.slane %v1063_v39, 4  ;;  %v1068_v47 = vrot.slane %v1066_v40, 5  ;;  %v1074_v48 = vrot.slane %v1072_v41, 5  ;;  %v7103_v36 = vld [vmem:[%s8530_s1 + $0x1a0] sm:$0xff] }
  0xe2   : > { %1809 = vst [vmem:[#allocation3 + $0x198] sm:$0xf] %v1545_v10  ;;  %v6193_v49 = vld [vmem:[#allocation3 + $0x128] sm:$0xf]  ;;  %v6948_v50 = vld [vmem:[#allocation3 + $0x148] sm:$0xf0]  ;;  %5424 = vmatpush.bf16.msra.mxu2 %v7103_v36 }
  0xe3   : > { %5177 = vmatmul.bf16.gmra.mxu3 %v6162_v16  ;;  %v815_v51 = vld [vmem:[#allocation2 + $0x64] sm:$0xf]  ;;  %v816_v52 = vld [vmem:[#allocation2 + $0x68] sm:$0xf]  ;;  %v1078_v53 = vrot.slane %v1076_v42, 4  ;;  %v1069_v11 = vor.u32 %v1068_v47, %v1065_v46  ;;  %v1547_v56 = vshrl.u32 %v1384_v44, 16  ;;  %v6194_v6 = vor.u32 %v6948_v50, %v6193_v49 }
  0xe4   : > { %5266 = vmatmul.bf16.gmra.mxu0 %v6166_v23  ;;  %847 = vst [vmem:[#allocation3 + $0x1b4] sm:$0xf] %v815_v51  ;;  %v1385_v55 = vld [vmem:[#allocation2 + $0x74] sm:$0xf]  ;;  %v1084_v58 = vrot.slane %v1082_v43, 5  ;;  %v7111_v39 = vld [vmem:[%s8530_s1 + $0x1e0] sm:$0xff] }
  0xe5   : > { %848 = vst [vmem:[#allocation3 + $0x1d8] sm:$0xf] %v816_v52  ;;  %v1079_v57 = vor.u32 %v1078_v53, %v1074_v48  ;;  %v1386_v59 = vld [vmem:[#allocation2 + $0x78] sm:$0xf]  ;;  %v6944_v60 = vld [vmem:[#allocation3 + $0x12c] sm:$0xf]  ;;  %5513 = vmatpush.bf16.msra.mxu3 %v7111_v39 }
  0xe6   : > { %5004 = vmatmul.bf16.gmra.mxu1 %v6190_v29  ;;  %v6195_v61 = vld [vmem:[#allocation3 + $0x14c] sm:$0xf0]  ;;  %v1070_v63 = vrot.slane %v1069_v11, 4  ;;  %v1552_v0 = vshrl.u32 %v1385_v55, 16  ;;  %v6949_v2 = vld [vmem:[#allocation3 + $0x150] sm:$0xf0] }
  0xe7   : > { %v6201_v62 = vld [vmem:[#allocation3 + $0x130] sm:$0xf]  ;;  %v1080_v3 = vrot.slane %v1079_v57, 4  ;;  %v1555_v4 = vshll.u32 %v1385_v55, 16  ;;  %v1561_v15 = vshrl.u32 %v1386_v59, 16  ;;  %v1564_v5 = vshll.u32 %v1386_v59, 16 }
  0xe8   : > { %v6952_v7 = vld [vmem:[#allocation3 + $0x16c] sm:$0xf]  ;;  %v1075_v8 = vsel %vm7558_vm5, %v1070_v63, %v1074_v48  ;;  %v6013_v12 = vrot.slane %v1547_v56, 11  ;;  %v1554_v13 = vrot.slane %v1552_v0, 7  ;;  %v1842_v14 = vld [vmem:[#allocation2 + $0x74] sm:$0xf]  ;;  %v6198_v21 = vor.u32 %v6944_v60, %v6195_v61 }
  0xe9   : > { %v6223_v16 = vld [vmem:[#allocation3 + $0x18c] sm:$0xf0]  ;;  %v1085_v18 = vsel %vm7558_vm5, %v1080_v3, %v1084_v58  ;;  %1346 = vst [vmem:[#allocation3 + $0x1b8] sm:$0xf] %v1075_v8  ;;  %v1563_v20 = vrot.slane %v1561_v15, 7  ;;  %v6202_v24 = vor.u32 %v6949_v2, %v6201_v62  ;;  %v7647_v27 = vpop.f32.mrf.mxu0  ;;  %v7095_v49 = vld [vmem:[%s8530_s1 + $0x160] sm:$0xff] }
  0xea   : > { %1347 = vst [vmem:[#allocation3 + $0x1dc] sm:$0xf] %v1085_v18  ;;  %v1557_v22 = vor.u32 %v1555_v4, %v1554_v13  ;;  %v1559_v23 = vrot.slane %v1554_v13, 4  ;;  %v1843_v9 = vld [vmem:[#allocation2 + $0x78] sm:$0xf]  ;;  %v6226_v30 = vor.u32 %v6952_v7, %v6223_v16  ;;  %v7119_v50 = vld [vmem:[%s8530_s1 + $0x220] sm:$0xff]  ;;  %5335 = vmatpush.bf16.msra.mxu1 %v7095_v49 }
  0xeb   : > { %v1566_v25 = vor.u32 %v1564_v5, %v1563_v20  ;;  %1874 = vst [vmem:[#allocation3 + $0x1c0] sm:$0xf] %v1842_v14  ;;  %v888_v26 = vld [vmem:[#allocation2 + $0x74] sm:$0xf]  ;;  %v889_v29 = vld [vmem:[#allocation2 + $0x78] sm:$0xf]  ;;  %5602 = vmatpush.bf16.msra.mxu0 %v7119_v50 }
  0xec   : > { %v1558_v28 = vsel %vm7270_vm2, %v6013_v12, %v1557_v22  ;;  %1875 = vst [vmem:[#allocation3 + $0x1e4] sm:$0xf] %v1843_v9  ;;  %v1087_v32 = vshrl.u32 %v888_v26, 16  ;;  %v1090_v33 = vshll.u32 %v888_v26, 16  ;;  %v1388_v34 = vld [vmem:[#allocation2 + $0x84] sm:$0xf] }
  0xed   : > { %v1567_v31 = vsel %vm7270_vm2, %v1559_v23, %v1566_v25  ;;  %1810 = vst [vmem:[#allocation3 + $0x1bc] sm:$0xf] %v1558_v28  ;;  %v890_v37 = vld [vmem:[#allocation2 + $0x7c] sm:$0x1]  ;;  %v1096_v38 = vshll.u32 %v889_v29, 16  ;;  %v1100_v42 = vshrl.u32 %v889_v29, 16 }
  0xee   : > { %1811 = vst [vmem:[#allocation3 + $0x1e0] sm:$0xf] %v1567_v31  ;;  %v1089_v40 = vrot.slane %v1087_v32, 4  ;;  %v1092_v41 = vrot.slane %v1090_v33, 5  ;;  %v1106_v43 = vshll.u32 %v890_v37, 16  ;;  %v1574_v47 = vshrl.u32 %v1388_v34, 16 }
  0xef   : > { %v1098_v44 = vrot.slane %v1096_v38, 5  ;;  %v1387_v46 = vld [vmem:[#allocation2 + $0x80] sm:$0x8]  ;;  %v1102_v52 = vrot.slane %v1100_v42, 4  ;;  %v1389_v53 = vld [vmem:[#allocation2 + $0x88] sm:$0xf] }
  0xf0   : > { %v1093_v51 = vor.u32 %v1092_v41, %v1089_v40  ;;  %v1569_v11 = vshrl.u32 %v1387_v46, 16  ;;  %v6229_v55 = vld [vmem:[#allocation3 + $0x170] sm:$0xf]  ;;  %v817_v56 = vld [vmem:[#allocation2 + $0x74] sm:$0xf]  ;;  %v1108_v59 = vrot.slane %v1106_v43, 5 }
  0xf1   : > { %5093 = vmatmul.bf16.gmra.mxu2 %v6194_v6  ;;  %v818_v57 = vld [vmem:[#allocation2 + $0x78] sm:$0xf]  ;;  %v1103_v58 = vor.u32 %v1102_v52, %v1098_v44  ;;  %v1576_v60 = vrot.slane %v1574_v47, 7  ;;  %v6957_v61 = vld [vmem:[#allocation3 + $0x190] sm:$0xf0]  ;;  %v1577_v3 = vshll.u32 %v1388_v34, 16 }
  0xf2   : > { %849 = vst [vmem:[#allocation3 + $0x1fc] sm:$0xf] %v817_v56  ;;  %v1094_v62 = vrot.slane %v1093_v51, 4  ;;  %v6953_v63 = vld [vmem:[#allocation3 + $0x174] sm:$0xf]  ;;  %v6014_v2 = vrot.slane %v1569_v11, 11 }
  0xf3   : > { %5182 = vmatmul.bf16.gmra.mxu3 %v6198_v21  ;;  %v7653_v35 = vpop.f32.mrf.mxu1  ;;  %850 = vst [vmem:[#allocation3 + $0x220] sm:$0xf] %v818_v57  ;;  %v1104_v0 = vrot.slane %v1103_v58, 4  ;;  %v6231_v15 = vld [vmem:[#allocation3 + $0x194] sm:$0xf0]  ;;  %v1583_v8 = vshrl.u32 %v1389_v53, 16  ;;  %v1579_v18 = vor.u32 %v1577_v3, %v1576_v60  ;;  %v6230_v21 = vor.u32 %v6957_v61, %v6229_v55 }
  0xf4   : > { %5271 = vmatmul.bf16.gmra.mxu0 %v6202_v24  ;;  %v7658_v10 = vpop.f32.mrf.mxu2  ;;  %v6237_v5 = vld [vmem:[#allocation3 + $0x178] sm:$0xf]  ;;  %v1099_v7 = vsel %vm7558_vm5, %v1094_v62, %v1098_v44  ;;  %v1844_v12 = vld [vmem:[#allocation2 + $0x84] sm:$0xf]  ;;  %v6958_v14 = vld [vmem:[#allocation3 + $0x198] sm:$0xf0]  ;;  %v6234_v29 = vor.u32 %v6953_v63, %v6231_v15 }
  0xf5   : > { %v1109_v16 = vsel %vm7558_vm5, %v1104_v0, %v1108_v59  ;;  %1348 = vst [vmem:[#allocation3 + $0x200] sm:$0xf] %v1099_v7  ;;  %v1586_v20 = vshll.u32 %v1389_v53, 16  ;;  %v1581_v22 = vrot.slane %v1576_v60, 4  ;;  %v1585_v23 = vrot.slane %v1583_v8, 7 }
  0xf6   : > { %v7663_v48 = vpop.f32.mrf.mxu3  ;;  %5009 = vmatmul.bf16.gmra.mxu1 %v6226_v30  ;;  %1349 = vst [vmem:[#allocation3 + $0x224] sm:$0xf] %v1109_v16  ;;  %v1845_v9 = vld [vmem:[#allocation2 + $0x88] sm:$0xf]  ;;  %v6961_v25 = vld [vmem:[#allocation3 + $0x1b4] sm:$0xf]  ;;  %v1580_v28 = vsel %vm7270_vm2, %v6014_v2, %v1579_v18  ;;  %v6238_v33 = vor.u32 %v6958_v14, %v6237_v5 }
  0xf7   : > { %v6259_v26 = vld [vmem:[#allocation3 + $0x1d4] sm:$0xf0]  ;;  %1876 = vst [vmem:[#allocation3 + $0x208] sm:$0xf] %v1844_v12  ;;  %v1588_v30 = vor.u32 %v1586_v20, %v1585_v23  ;;  %v891_v31 = vld [vmem:[#allocation2 + $0x84] sm:$0xf] }
  0xf8   : > { %1812 = vst [vmem:[#allocation3 + $0x204] sm:$0xf] %v1580_v28  ;;  %v892_v32 = vld [vmem:[#allocation2 + $0x88] sm:$0xf]  ;;  %v1111_v34 = vshrl.u32 %v891_v31, 16  ;;  %v1114_v36 = vshll.u32 %v891_v31, 16  ;;  %v6262_v41 = vor.u32 %v6961_v25, %v6259_v26 }
  0xf9   : > { %1877 = vst [vmem:[#allocation3 + $0x22c] sm:$0xf] %v1845_v9  ;;  %v1589_v37 = vsel %vm7270_vm2, %v1581_v22, %v1588_v30  ;;  %v1120_v38 = vshll.u32 %v892_v32, 16  ;;  %v1124_v39 = vshrl.u32 %v892_v32, 16  ;;  %v1391_v40 = vld [vmem:[#allocation2 + $0x94] sm:$0xf] }
  0xfa   : > { %1813 = vst [vmem:[#allocation3 + $0x228] sm:$0xf] %v1589_v37  ;;  %v1113_v42 = vrot.slane %v1111_v34, 4  ;;  %v1116_v43 = vrot.slane %v1114_v36, 5  ;;  %v893_v46 = vld [vmem:[#allocation2 + $0x8c] sm:$0x1] }
  0xfb   : > { %v7671_v4 = vpop.f32.mrf.mxu0  ;;  %v7673_v6 = vpop.f32.mrf.mxu1  ;;  %v1122_v47 = vrot.slane %v1120_v38, 5  ;;  %v1126_v49 = vrot.slane %v1124_v39, 4  ;;  %v1392_v50 = vld [vmem:[#allocation2 + $0x98] sm:$0xf]  ;;  %v1130_v11 = vshll.u32 %v893_v46, 16  ;;  %v1596_v56 = vshrl.u32 %v1391_v40, 16 }
  0xfc   : > { %v7677_v13 = vpop.f32.mrf.mxu2  ;;  %v1117_v53 = vor.u32 %v1116_v43, %v1113_v42  ;;  %v1390_v55 = vld [vmem:[#allocation2 + $0x90] sm:$0x8]  ;;  %v1599_v59 = vshll.u32 %v1391_v40, 16  ;;  %v1605_v0 = vshrl.u32 %v1392_v50, 16  ;;  %v1608_v15 = vshll.u32 %v1392_v50, 16 }
  0xfd   : > { %v1127_v57 = vor.u32 %v1126_v49, %v1122_v47  ;;  %v1591_v58 = vshrl.u32 %v1390_v55, 16  ;;  %v1132_v62 = vrot.slane %v1130_v11, 5  ;;  %v1598_v63 = vrot.slane %v1596_v56, 7  ;;  %v819_v5 = vld [vmem:[#allocation2 + $0x84] sm:$0xf] }
  0xfe   : > { %v7681_v24 = vpop.f32.mrf.mxu3  ;;  %v1118_v61 = vrot.slane %v1117_v53, 4  ;;  %v820_v7 = vld [vmem:[#allocation2 + $0x88] sm:$0xf]  ;;  %851 = vst [vmem:[#allocation3 + $0x244] sm:$0xf] %v819_v5  ;;  %v1607_v18 = vrot.slane %v1605_v0, 7 }
  0xff   : > { %v1128_v2 = vrot.slane %v1127_v57, 4  ;;  %v6015_v3 = vrot.slane %v1591_v58, 11  ;;  %v1601_v12 = vor.u32 %v1599_v59, %v1598_v63  ;;  %v1603_v16 = vrot.slane %v1598_v63, 4  ;;  %v6265_v20 = vld [vmem:[#allocation3 + $0x1b8] sm:$0xf] }
 0x100   : > { %v1123_v8 = vsel %vm7558_vm5, %v1118_v61, %v1122_v47  ;;  %852 = vst [vmem:[#allocation3 + $0x268] sm:$0xf] %v820_v7  ;;  %v6962_v23 = vld [vmem:[#allocation3 + $0x1bc] sm:$0xf]  ;;  %v6273_v9 = vld [vmem:[#allocation3 + $0x1c0] sm:$0xf]  ;;  %v1610_v26 = vor.u32 %v1608_v15, %v1607_v18 }
 0x101   : > { %5098 = vmatmul.bf16.gmra.mxu2 %v6230_v21  ;;  %v1133_v14 = vsel %vm7558_vm5, %v1128_v2, %v1132_v62  ;;  %v6966_v21 = vld [vmem:[#allocation3 + $0x1d8] sm:$0xf0]  ;;  %v1602_v22 = vsel %vm7270_vm2, %v6015_v3, %v1601_v12  ;;  %1350 = vst [vmem:[#allocation3 + $0x248] sm:$0xf] %v1123_v8  ;;  %v1846_v30 = vld [vmem:[#allocation2 + $0x94] sm:$0xf] }
 0x102   : > { %1351 = vst [vmem:[#allocation3 + $0x26c] sm:$0xf] %v1133_v14  ;;  %v6266_v31 = vor.u32 %v6966_v21, %v6265_v20  ;;  %v6967_v32 = vld [vmem:[#allocation3 + $0x1e0] sm:$0xf0]  ;;  %v1847_v34 = vld [vmem:[#allocation2 + $0x98] sm:$0xf] }
 0x103   : > { %5187 = vmatmul.bf16.gmra.mxu3 %v6234_v29  ;;  %v7687_v44 = vpop.f32.mrf.mxu1  ;;  %v7691_v52 = vpop.f32.mrf.mxu0  ;;  %v6267_v29 = vld [vmem:[#allocation3 + $0x1dc] sm:$0xf0]  ;;  %1814 = vst [vmem:[#allocation3 + $0x24c] sm:$0xf] %v1602_v22  ;;  %v6970_v38 = vld [vmem:[#allocation3 + $0x1fc] sm:$0xf]  ;;  %v6274_v43 = vor.u32 %v6967_v32, %v6273_v9 }
 0x104   : > { %5276 = vmatmul.bf16.gmra.mxu0 %v6238_v33  ;;  %v7689_v51 = vpop.f32.mrf.mxu2  ;;  %v1611_v33 = vsel %vm7270_vm2, %v1603_v16, %v1610_v26  ;;  %v6295_v39 = vld [vmem:[#allocation3 + $0x21c] sm:$0xf0]  ;;  %v6270_v40 = vor.u32 %v6962_v23, %v6267_v29  ;;  %1878 = vst [vmem:[#allocation3 + $0x250] sm:$0xf] %v1846_v30  ;;  %v895_v42 = vld [vmem:[#allocation2 + $0x98] sm:$0xf] }
 0x105   : > { %1815 = vst [vmem:[#allocation3 + $0x270] sm:$0xf] %v1611_v33  ;;  %v1144_v49 = vshll.u32 %v895_v42, 16  ;;  %v1148_v50 = vshrl.u32 %v895_v42, 16  ;;  %v6298_v53 = vor.u32 %v6970_v38, %v6295_v39  ;;  %v1394_v56 = vld [vmem:[#allocation2 + $0xa4] sm:$0xf] }
 0x106   : > { %v7693_v60 = vpop.f32.mrf.mxu3  ;;  %5014 = vmatmul.bf16.gmra.mxu1 %v6262_v41  ;;  %v894_v41 = vld [vmem:[#allocation2 + $0x94] sm:$0xf]  ;;  %1879 = vst [vmem:[#allocation3 + $0x274] sm:$0xf] %v1847_v34  ;;  %v7102_v58 = vld [vmem:[%s8530_s1 + $0x198] sm:$0xff]  ;;  %v1618_v7 = vshrl.u32 %v1394_v56, 16 }
 0x107   : > { %v1135_v46 = vshrl.u32 %v894_v41, 16  ;;  %v1138_v47 = vshll.u32 %v894_v41, 16  ;;  %v896_v59 = vld [vmem:[#allocation2 + $0x9c] sm:$0x1]  ;;  %v1146_v61 = vrot.slane %v1144_v49, 5  ;;  %v1150_v2 = vrot.slane %v1148_v50, 4  ;;  %5425 = vmatpush.bf16.msra.mxu2 %v7102_v58 }
 0x108   : > { %v7110_v63 = vld [vmem:[%s8530_s1 + $0x1d8] sm:$0xff]  ;;  %v1154_v3 = vshll.u32 %v896_v59, 16  ;;  %v1395_v15 = vld [vmem:[#allocation2 + $0xa8] sm:$0xf]  ;;  %v1393_v5 = vld [vmem:[#allocation2 + $0xa0] sm:$0x8] }
 0x109   : > { %v1137_v11 = vrot.slane %v1135_v46, 4  ;;  %v1140_v55 = vrot.slane %v1138_v47, 5  ;;  %v1621_v8 = vshll.u32 %v1394_v56, 16  ;;  %5514 = vmatpush.bf16.msra.mxu3 %v7110_v63  ;;  %v1151_v16 = vor.u32 %v1150_v2, %v1146_v61  ;;  %v7094_v21 = vld [vmem:[%s8530_s1 + $0x158] sm:$0xff]  ;;  %v821_v26 = vld [vmem:[#allocation2 + $0x94] sm:$0xf] }
 0x10a   : > { %v1156_v18 = vrot.slane %v1154_v3, 5  ;;  %v1613_v22 = vshrl.u32 %v1393_v5, 16  ;;  %v1620_v23 = vrot.slane %v1618_v7, 7  ;;  %v1627_v9 = vshrl.u32 %v1395_v15, 16  ;;  %v822_v29 = vld [vmem:[#allocation2 + $0x98] sm:$0xf]  ;;  %5336 = vmatpush.bf16.msra.mxu1 %v7094_v21 }
 0x10b   : > { %v7701_v25 = vpop.f32.mrf.mxu1  ;;  %v1141_v0 = vor.u32 %v1140_v55, %v1137_v11  ;;  %v1630_v32 = vshll.u32 %v1395_v15, 16  ;;  %v7118_v33 = vld [vmem:[%s8530_s1 + $0x218] sm:$0xff]  ;;  %853 = vst [vmem:[#allocation3 + $0x28c] sm:$0xf] %v821_v26  ;;  %v6301_v41 = vld [vmem:[#allocation3 + $0x200] sm:$0xf] }
 0x10c   : > { %v7703_v28 = vpop.f32.mrf.mxu2  ;;  %v6016_v34 = vrot.slane %v1613_v22, 11  ;;  %v1623_v38 = vor.u32 %v1621_v8, %v1620_v23  ;;  %v1625_v39 = vrot.slane %v1620_v23, 4  ;;  %v6975_v42 = vld [vmem:[#allocation3 + $0x220] sm:$0xf0]  ;;  %854 = vst [vmem:[#allocation3 + $0x2b0] sm:$0xf] %v822_v29  ;;  %5603 = vmatpush.bf16.msra.mxu0 %v7118_v33 }
 0x10d   : > { %v1142_v14 = vrot.slane %v1141_v0, 4  ;;  %v6971_v46 = vld [vmem:[#allocation3 + $0x204] sm:$0xf]  ;;  %v6309_v47 = vld [vmem:[#allocation3 + $0x208] sm:$0xf]  ;;  %v6302_v58 = vor.u32 %v6975_v42, %v6301_v41 }
 0x10e   : > { %v7707_v36 = vpop.f32.mrf.mxu3  ;;  %v7709_v37 = vpop.f32.mrf.mxu0  ;;  %v1624_v50 = vsel %vm7270_vm2, %v6016_v34, %v1623_v38  ;;  %v6303_v55 = vld [vmem:[#allocation3 + $0x224] sm:$0xf0]  ;;  %v1848_v56 = vld [vmem:[#allocation2 + $0xa4] sm:$0xf]  ;;  %v6976_v59 = vld [vmem:[#allocation3 + $0x228] sm:$0xf0] }
 0x10f   : > { %v1147_v30 = vsel %vm7558_vm5, %v1142_v14, %v1146_v61  ;;  %1816 = vst [vmem:[#allocation3 + $0x294] sm:$0xf] %v1624_v50  ;;  %v1849_v63 = vld [vmem:[#allocation2 + $0xa8] sm:$0xf]  ;;  %v6979_v2 = vld [vmem:[#allocation3 + $0x244] sm:$0xf]  ;;  %v6306_v15 = vor.u32 %v6971_v46, %v6303_v55  ;;  %v6310_v8 = vor.u32 %v6976_v59, %v6309_v47 }
 0x110   : > { %1352 = vst [vmem:[#allocation3 + $0x290] sm:$0xf] %v1147_v30  ;;  %v6331_v3 = vld [vmem:[#allocation3 + $0x264] sm:$0xf0]  ;;  %v897_v5 = vld [vmem:[#allocation2 + $0xa4] sm:$0xf] }
 0x111   : > { %5103 = vmatmul.bf16.gmra.mxu2 %v6266_v31  ;;  %v1152_v31 = vrot.slane %v1151_v16, 4  ;;  %1880 = vst [vmem:[#allocation3 + $0x298] sm:$0xf] %v1848_v56  ;;  %v898_v7 = vld [vmem:[#allocation2 + $0xa8] sm:$0xf]  ;;  %v1159_v14 = vshrl.u32 %v897_v5, 16  ;;  %v6334_v23 = vor.u32 %v6979_v2, %v6331_v3 }
 0x112   : > { %1881 = vst [vmem:[#allocation3 + $0x2bc] sm:$0xf] %v1849_v63  ;;  %v1162_v16 = vshll.u32 %v897_v5, 16  ;;  %v1168_v21 = vshll.u32 %v898_v7, 16  ;;  %v1172_v22 = vshrl.u32 %v898_v7, 16 }
 0x113   : > { %5192 = vmatmul.bf16.gmra.mxu3 %v6270_v40  ;;  %v7711_v57 = vpop.f32.mrf.mxu1  ;;  %v1629_v40 = vrot.slane %v1627_v9, 7  ;;  %v1161_v9 = vrot.slane %v1159_v14, 4  ;;  %v1397_v29 = vld [vmem:[#allocation2 + $0xb4] sm:$0xf]  ;;  %v1398_v34 = vld [vmem:[#allocation2 + $0xb8] sm:$0xf] }
 0x114   : > { %5281 = vmatmul.bf16.gmra.mxu0 %v6274_v43  ;;  %v7716_v62 = vpop.f32.mrf.mxu2  ;;  %v1157_v43 = vsel %vm7558_vm5, %v1152_v31, %v1156_v18  ;;  %v1164_v26 = vrot.slane %v1162_v16, 5  ;;  %v899_v31 = vld [vmem:[#allocation2 + $0xac] sm:$0x1]  ;;  %v1174_v33 = vrot.slane %v1172_v22, 4  ;;  %v1396_v42 = vld [vmem:[#allocation2 + $0xb0] sm:$0x8] }
 0x115   : > { %1353 = vst [vmem:[#allocation3 + $0x2b4] sm:$0xf] %v1157_v43  ;;  %v1178_v41 = vshll.u32 %v899_v31, 16  ;;  %v1635_v46 = vshrl.u32 %v1396_v42, 16  ;;  %v1640_v47 = vshrl.u32 %v1397_v29, 16  ;;  %v1643_v50 = vshll.u32 %v1397_v29, 16 }
 0x116   : > { %v7721_v12 = vpop.f32.mrf.mxu3  ;;  %5019 = vmatmul.bf16.gmra.mxu1 %v6298_v53  ;;  %v7723_v20 = vpop.f32.mrf.mxu0  ;;  %v1632_v53 = vor.u32 %v1630_v32, %v1629_v40  ;;  %v1170_v32 = vrot.slane %v1168_v21, 5  ;;  %v1165_v40 = vor.u32 %v1164_v26, %v1161_v9  ;;  %v1652_v2 = vshll.u32 %v1398_v34, 16  ;;  %v823_v3 = vld [vmem:[#allocation2 + $0xa4] sm:$0xf]  ;;  %v6337_v21 = vld [vmem:[#allocation3 + $0x248] sm:$0xf] }
 0x117   : > { %v1180_v56 = vrot.slane %v1178_v41, 5  ;;  %v1642_v63 = vrot.slane %v1640_v47, 7  ;;  %855 = vst [vmem:[#allocation3 + $0x2d4] sm:$0xf] %v823_v3  ;;  %v6984_v22 = vld [vmem:[#allocation3 + $0x268] sm:$0xf0] }
 0x118   : > { %v1633_v61 = vsel %vm7270_vm2, %v1625_v39, %v1632_v53  ;;  %v1175_v43 = vor.u32 %v1174_v33, %v1170_v32  ;;  %v1166_v55 = vrot.slane %v1165_v40, 4  ;;  %v6980_v9 = vld [vmem:[#allocation3 + $0x24c] sm:$0xf]  ;;  %v6339_v26 = vld [vmem:[#allocation3 + $0x26c] sm:$0xf0]  ;;  %v6338_v41 = vor.u32 %v6984_v22, %v6337_v21 }
 0x119   : > { %1817 = vst [vmem:[#allocation3 + $0x2b8] sm:$0xf] %v1633_v61  ;;  %v6017_v61 = vrot.slane %v1635_v46, 11  ;;  %v1645_v14 = vor.u32 %v1643_v50, %v1642_v63  ;;  %v1647_v16 = vrot.slane %v1642_v63, 4  ;;  %v1850_v40 = vld [vmem:[#allocation2 + $0xb4] sm:$0xf] }
 0x11a   : > { %v1176_v59 = vrot.slane %v1175_v43, 4  ;;  %v6985_v42 = vld [vmem:[#allocation3 + $0x270] sm:$0xf0]  ;;  %v1851_v43 = vld [vmem:[#allocation2 + $0xb8] sm:$0xf] }
 0x11b   : > { %v7735_v49 = vpop.f32.mrf.mxu1  ;;  %v6988_v47 = vld [vmem:[#allocation3 + $0x28c] sm:$0xf]  ;;  %v6367_v50 = vld [vmem:[#allocation3 + $0x2ac] sm:$0xf0]  ;;  %1882 = vst [vmem:[#allocation3 + $0x2e0] sm:$0xf] %v1850_v40 }
 0x11c   : > { %v7739_v11 = vpop.f32.mrf.mxu2  ;;  %1883 = vst [vmem:[#allocation3 + $0x304] sm:$0xf] %v1851_v43  ;;  %v902_v21 = vld [vmem:[#allocation2 + $0xbc] sm:$0x1] }
 0x11d   : > { %v1202_v40 = vshll.u32 %v902_v21, 16 }
 0x11e   : > { %v7743_v0 = vpop.f32.mrf.mxu3 }
 0x121   : > { %v7745_v18 = vpop.f32.mrf.mxu0  ;;  %5108 = vmatmul.bf16.gmra.mxu2 %v6302_v58  ;;  %v1649_v58 = vshrl.u32 %v1398_v34, 16 }
 0x123   : > { %5197 = vmatmul.bf16.gmra.mxu3 %v6306_v15  ;;  %v4985_v30 = vpop.f32.mrf.mxu1  ;;  %v1171_v15 = vsel %vm7558_vm5, %v1166_v55, %v1170_v32  ;;  %v1651_v5 = vrot.slane %v1649_v58, 7  ;;  %v6345_v32 = vld [vmem:[#allocation3 + $0x250] sm:$0xf]  ;;  %v6342_v55 = vor.u32 %v6980_v9, %v6339_v26  ;;  %v901_v58 = vld [vmem:[#allocation2 + $0xb8] sm:$0xf] }
 0x124   : > { %5286 = vmatmul.bf16.gmra.mxu0 %v6310_v8  ;;  %v7747_v38 = vpop.f32.mrf.mxu2  ;;  %v7750_v39 = vadd.f32 %v4985_v30, %v7639_v45  ;;  %v824_v45 = vld [vmem:[#allocation2 + $0xa8] sm:$0xf]  ;;  %v1181_v8 = vsel %vm7558_vm5, %v1176_v59, %v1180_v56  ;;  %1354 = vst [vmem:[#allocation3 + $0x2d8] sm:$0xf] %v1171_v15  ;;  %v1646_v30 = vsel %vm7270_vm2, %v6017_v61, %v1645_v14  ;;  %v900_v56 = vld [vmem:[#allocation2 + $0xb4] sm:$0xf] }
 0x125   : > { %856 = vst [vmem:[#allocation3 + $0x2f8] sm:$0xf] %v824_v45  ;;  %v1183_v59 = vshrl.u32 %v900_v56, 16  ;;  %v1186_v61 = vshll.u32 %v900_v56, 16  ;;  %v1196_v3 = vshrl.u32 %v901_v58, 16  ;;  %v6370_v45 = vor.u32 %v6988_v47, %v6367_v50  ;;  %v7109_v26 = vld [vmem:[%s8530_s1 + $0x1d0] sm:$0xff] }
 0x126   : > { %v7752_v53 = vpop.f32.mrf.mxu3  ;;  %5024 = vmatmul.bf16.gmra.mxu1 %v6334_v23  ;;  %v1654_v23 = vor.u32 %v1652_v2, %v1651_v5  ;;  %1355 = vst [vmem:[#allocation3 + $0x2fc] sm:$0xf] %v1181_v8  ;;  %v1192_v2 = vshll.u32 %v901_v58, 16  ;;  %v1400_v8 = vld [vmem:[#allocation2 + $0xc4] sm:$0xf]  ;;  %5515 = vmatpush.bf16.msra.mxu3 %v7109_v26  ;;  %v7093_v58 = vld [vmem:[%s8530_s1 + $0x150] sm:$0xff] }
 0x127   : > { %1818 = vst [vmem:[#allocation3 + $0x2dc] sm:$0xf] %v1646_v30  ;;  %v1185_v15 = vrot.slane %v1183_v59, 4  ;;  %v1188_v5 = vrot.slane %v1186_v61, 5  ;;  %v1198_v30 = vrot.slane %v1196_v3, 4  ;;  %v1662_v43 = vshrl.u32 %v1400_v8, 16  ;;  %5337 = vmatpush.bf16.msra.mxu1 %v7093_v58 }
 0x128   : > { %v1655_v34 = vsel %vm7270_vm2, %v1647_v16, %v1654_v23  ;;  %v7101_v16 = vld [vmem:[%s8530_s1 + $0x190] sm:$0xff]  ;;  %v1194_v22 = vrot.slane %v1192_v2, 5  ;;  %v826_v2 = vld [vmem:[#allocation2 + $0xb8] sm:$0xf]  ;;  %v1853_v58 = vld [vmem:[#allocation2 + $0xc8] sm:$0xf] }
 0x129   : > { %v7756_v7 = vpop.f32.mrf.mxu0  ;;  %1819 = vst [vmem:[#allocation3 + $0x300] sm:$0xf] %v1655_v34  ;;  %5426 = vmatpush.bf16.msra.mxu2 %v7101_v16  ;;  %v1664_v61 = vrot.slane %v1662_v43, 7  ;;  %v6993_v26 = vld [vmem:[#allocation3 + $0x2b0] sm:$0xf0] }
 0x12a   : > { %858 = vst [vmem:[#allocation3 + $0x340] sm:$0xf] %v826_v2 }
 0x12b   : > { %v4987_v29 = vpop.f32.mrf.mxu1  ;;  %1885 = vst [vmem:[#allocation3 + $0x34c] sm:$0xf] %v1853_v58 }
 0x12c   : > { %v7762_v31 = vpop.f32.mrf.mxu2  ;;  %v7765_v33 = vadd.f32 %v4987_v29, %v7647_v27  ;;  %v6346_v27 = vor.u32 %v6985_v42, %v6345_v32  ;;  %v1189_v29 = vor.u32 %v1188_v5, %v1185_v15  ;;  %v1399_v32 = vld [vmem:[#allocation2 + $0xc0] sm:$0x8] }
 0x12d   : > { %v1657_v42 = vshrl.u32 %v1399_v32, 16  ;;  %v6989_v32 = vld [vmem:[#allocation3 + $0x294] sm:$0xf] }
 0x12e   : > { %v7769_v46 = vpop.f32.mrf.mxu3  ;;  %v1190_v50 = vrot.slane %v1189_v29, 4 }
 0x12f   : > { %v6018_v59 = vrot.slane %v1657_v42, 11  ;;  %v1852_v42 = vld [vmem:[#allocation2 + $0xc4] sm:$0xf] }
 0x130   : > { %v1195_v3 = vsel %vm7558_vm5, %v1190_v50, %v1194_v22  ;;  %1884 = vst [vmem:[#allocation3 + $0x328] sm:$0xf] %v1852_v42 }
 0x131   : > { %v5252_v63 = vpop.f32.mrf.mxu0  ;;  %5113 = vmatmul.bf16.gmra.mxu2 %v6338_v41  ;;  %v1401_v41 = vld [vmem:[#allocation2 + $0xc8] sm:$0xf]  ;;  %1356 = vst [vmem:[#allocation3 + $0x320] sm:$0xf] %v1195_v3 }
 0x132   : > { %v1671_v5 = vshrl.u32 %v1401_v41, 16  ;;  %v1674_v21 = vshll.u32 %v1401_v41, 16  ;;  %v6381_v41 = vld [vmem:[#allocation3 + $0x298] sm:$0xf] }
 0x133   : > { %5202 = vmatmul.bf16.gmra.mxu3 %v6342_v55  ;;  %v4990_v14 = vpop.f32.mrf.mxu1  ;;  %v1665_v55 = vshll.u32 %v1400_v8, 16  ;;  %v7117_v8 = vld [vmem:[%s8530_s1 + $0x210] sm:$0xff] }
 0x134   : > { %5291 = vmatmul.bf16.gmra.mxu0 %v6346_v27  ;;  %v5074_v23 = vpop.f32.mrf.mxu2  ;;  %v7775_v9 = vadd.f32 %v4990_v14, %v7671_v4  ;;  %v1199_v4 = vor.u32 %v1198_v30, %v1194_v22  ;;  %v1204_v27 = vrot.slane %v1202_v40, 5  ;;  %v6373_v14 = vld [vmem:[#allocation3 + $0x290] sm:$0xf]  ;;  %v1669_v22 = vrot.slane %v1664_v61, 4 }
 0x135   : > { %v5075_v34 = vadd.f32 %v5074_v23, %v7750_v39  ;;  %v825_v39 = vld [vmem:[#allocation2 + $0xb4] sm:$0xf]  ;;  %v1667_v16 = vor.u32 %v1665_v55, %v1664_v61  ;;  %v1673_v30 = vrot.slane %v1671_v5, 7  ;;  %5604 = vmatpush.bf16.msra.mxu0 %v7117_v8  ;;  %v6374_v55 = vor.u32 %v6993_v26, %v6373_v14 }
 0x136   : > { %v5163_v47 = vpop.f32.mrf.mxu3  ;;  %5029 = vmatmul.bf16.gmra.mxu1 %v6370_v45  ;;  %v1200_v15 = vrot.slane %v1199_v4, 4  ;;  %857 = vst [vmem:[#allocation3 + $0x31c] sm:$0xf] %v825_v39  ;;  %v6997_v61 = vld [vmem:[#allocation3 + $0x2d4] sm:$0xf] }
 0x137   : > { %v5164_v56 = vadd.f32 %v5163_v47, %v5075_v34  ;;  %v1668_v40 = vsel %vm7270_vm2, %v6018_v59, %v1667_v16  ;;  %v6375_v47 = vld [vmem:[#allocation3 + $0x2b4] sm:$0xf0]  ;;  %v1676_v50 = vor.u32 %v1674_v21, %v1673_v30 }
 0x138   : > { %v1205_v29 = vsel %vm7558_vm5, %v1200_v15, %v1204_v27  ;;  %1820 = vst [vmem:[#allocation3 + $0x324] sm:$0xf] %v1668_v40  ;;  %v6403_v39 = vld [vmem:[#allocation3 + $0x2f4] sm:$0xf0]  ;;  %v6378_v3 = vor.u32 %v6989_v32, %v6375_v47  ;;  %v904_v15 = vld [vmem:[#allocation2 + $0xc8] sm:$0xf] }
 0x139   : > { %v5254_v45 = vpop.f32.mrf.mxu0  ;;  %v7789_v23 = vadd.f32 %v5252_v63, %v5164_v56  ;;  %1357 = vst [vmem:[#allocation3 + $0x344] sm:$0xf] %v1205_v29  ;;  %v6994_v56 = vld [vmem:[#allocation3 + $0x2b8] sm:$0xf0]  ;;  %v1677_v59 = vsel %vm7270_vm2, %v1669_v22, %v1676_v50  ;;  %v1216_v16 = vshll.u32 %v904_v15, 16  ;;  %v1220_v21 = vshrl.u32 %v904_v15, 16 }
 0x13a   : > { %1821 = vst [vmem:[#allocation3 + $0x348] sm:$0xf] %v1677_v59  ;;  %v6382_v5 = vor.u32 %v6994_v56, %v6381_v41  ;;  %v6406_v29 = vor.u32 %v6997_v61, %v6403_v39  ;;  %v1403_v22 = vld [vmem:[#allocation2 + $0xd4] sm:$0xf]  ;;  %v905_v32 = vld [vmem:[#allocation2 + $0xcc] sm:$0x1] }
 0x13b   : > { %v4992_v34 = vpop.f32.mrf.mxu1  ;;  %v1218_v42 = vrot.slane %v1216_v16, 5  ;;  %v1404_v47 = vld [vmem:[#allocation2 + $0xd8] sm:$0xf]  ;;  %v1402_v56 = vld [vmem:[#allocation2 + $0xd0] sm:$0x8]  ;;  %v1684_v61 = vshrl.u32 %v1403_v22, 16 }
 0x13c   : > { %v5076_v43 = vpop.f32.mrf.mxu2  ;;  %v7796_v63 = vadd.f32 %v4992_v34, %v7691_v52  ;;  %v903_v52 = vld [vmem:[#allocation2 + $0xc4] sm:$0xf] }
 0x13d   : > { %v5077_v4 = vadd.f32 %v5076_v43, %v7765_v33  ;;  %v1207_v8 = vshrl.u32 %v903_v52, 16  ;;  %v1210_v33 = vshll.u32 %v903_v52, 16  ;;  %v1222_v43 = vrot.slane %v1220_v21, 4 }
 0x13e   : > { %v5165_v27 = vpop.f32.mrf.mxu3  ;;  %v1693_v52 = vshrl.u32 %v1404_v47, 16  ;;  %v1686_v21 = vrot.slane %v1684_v61, 7 }
 0x13f   : > { %v5166_v2 = vadd.f32 %v5165_v27, %v5077_v4  ;;  %v1209_v30 = vrot.slane %v1207_v8, 4  ;;  %v1212_v34 = vrot.slane %v1210_v33, 5  ;;  %v1223_v58 = vor.u32 %v1222_v43, %v1218_v42  ;;  %v827_v33 = vld [vmem:[#allocation2 + $0xc4] sm:$0xf] }
 0x140   : > { %v1679_v27 = vshrl.u32 %v1402_v56, 16  ;;  %859 = vst [vmem:[#allocation3 + $0x364] sm:$0xf] %v827_v33 }
 0x141   : > { %v5257_v14 = vpop.f32.mrf.mxu0  ;;  %5118 = vmatmul.bf16.gmra.mxu2 %v6374_v55  ;;  %v7801_v26 = vadd.f32 %v5254_v45, %v5166_v2  ;;  %v1213_v4 = vor.u32 %v1212_v34, %v1209_v30  ;;  %v1226_v55 = vshll.u32 %v905_v32, 16  ;;  %v1695_v30 = vrot.slane %v1693_v52, 7  ;;  %v6409_v34 = vld [vmem:[#allocation3 + $0x2d8] sm:$0xf] }
 0x142   : > { %v6019_v8 = vrot.slane %v1679_v27, 11 }
 0x143   : > { %5207 = vmatmul.bf16.gmra.mxu3 %v6378_v3  ;;  %v4995_v40 = vpop.f32.mrf.mxu1  ;;  %v1214_v59 = vrot.slane %v1213_v4, 4  ;;  %v1228_v2 = vrot.slane %v1226_v55, 5  ;;  %v1687_v3 = vshll.u32 %v1403_v22, 16  ;;  %v7002_v22 = vld [vmem:[#allocation3 + $0x2f8] sm:$0xf0] }
 0x144   : > { %5296 = vmatmul.bf16.gmra.mxu0 %v6382_v5  ;;  %v5079_v41 = vpop.f32.mrf.mxu2  ;;  %v7804_v50 = vadd.f32 %v4995_v40, %v7709_v37  ;;  %v1224_v5 = vrot.slane %v1223_v58, 4  ;;  %v828_v37 = vld [vmem:[#allocation2 + $0xc8] sm:$0xf]  ;;  %v1696_v40 = vshll.u32 %v1404_v47, 16  ;;  %v6998_v4 = vld [vmem:[#allocation3 + $0x2dc] sm:$0xf] }
 0x145   : > { %v5080_v45 = vadd.f32 %v5079_v41, %v7775_v9  ;;  %v1219_v16 = vsel %vm7558_vm5, %v1214_v59, %v1218_v42  ;;  %860 = vst [vmem:[#allocation3 + $0x388] sm:$0xf] %v828_v37  ;;  %v1689_v43 = vor.u32 %v1687_v3, %v1686_v21  ;;  %v1691_v41 = vrot.slane %v1686_v21, 4  ;;  %v6411_v55 = vld [vmem:[#allocation3 + $0x2fc] sm:$0xf0] }
 0x146   : > { %v5168_v39 = vpop.f32.mrf.mxu3  ;;  %5034 = vmatmul.bf16.gmra.mxu1 %v6406_v29  ;;  %v1229_v29 = vsel %vm7558_vm5, %v1224_v5, %v1228_v2  ;;  %1358 = vst [vmem:[#allocation3 + $0x368] sm:$0xf] %v1219_v16  ;;  %v1698_v42 = vor.u32 %v1696_v40, %v1695_v30  ;;  %v6417_v58 = vld [vmem:[#allocation3 + $0x2e0] sm:$0xf]  ;;  %v7003_v59 = vld [vmem:[#allocation3 + $0x300] sm:$0xf0]  ;;  %v6414_v33 = vor.u32 %v6998_v4, %v6411_v55 }
 0x147   : > { %v5169_v15 = vadd.f32 %v5168_v39, %v5080_v45  ;;  %1359 = vst [vmem:[#allocation3 + $0x38c] sm:$0xf] %v1229_v29  ;;  %v1690_v47 = vsel %vm7270_vm2, %v6019_v8, %v1689_v43  ;;  %v6410_v39 = vor.u32 %v7002_v22, %v6409_v34  ;;  %v1855_v3 = vld [vmem:[#allocation2 + $0xd8] sm:$0xf]  ;;  %v6439_v5 = vld [vmem:[#allocation3 + $0x33c] sm:$0xf0]  ;;  %v6418_v8 = vor.u32 %v7003_v59, %v6417_v58 }
 0x148   : > { %v1699_v2 = vsel %vm7270_vm2, %v1691_v41, %v1698_v42  ;;  %1822 = vst [vmem:[#allocation3 + $0x36c] sm:$0xf] %v1690_v47  ;;  %v906_v37 = vld [vmem:[#allocation2 + $0xd4] sm:$0xf]  ;;  %v907_v16 = vld [vmem:[#allocation2 + $0xd8] sm:$0xf] }
 0x149   : > { %v5259_v9 = vpop.f32.mrf.mxu0  ;;  %v7811_v32 = vadd.f32 %v5257_v14, %v5169_v15  ;;  %v1854_v14 = vld [vmem:[#allocation2 + $0xd4] sm:$0xf]  ;;  %v7006_v15 = vld [vmem:[#allocation3 + $0x31c] sm:$0xf]  ;;  %1823 = vst [vmem:[#allocation3 + $0x390] sm:$0xf] %v1699_v2 }
 0x14a   : > { %1886 = vst [vmem:[#allocation3 + $0x370] sm:$0xf] %v1854_v14  ;;  %v1231_v21 = vshrl.u32 %v906_v37, 16  ;;  %v1240_v34 = vshll.u32 %v907_v16, 16  ;;  %v1244_v29 = vshrl.u32 %v907_v16, 16  ;;  %v6442_v22 = vor.u32 %v7006_v15, %v6439_v5  ;;  %v7100_v4 = vld [vmem:[%s8530_s1 + $0x188] sm:$0xff] }
 0x14b   : > { %v4997_v56 = vpop.f32.mrf.mxu1  ;;  %1887 = vst [vmem:[#allocation3 + $0x394] sm:$0xf] %v1855_v3  ;;  %v908_v55 = vld [vmem:[#allocation2 + $0xdc] sm:$0x1]  ;;  %5427 = vmatpush.bf16.msra.mxu2 %v7100_v4  ;;  %v1407_v3 = vld [vmem:[#allocation2 + $0xe8] sm:$0xf] }
 0x14c   : > { %v5081_v45 = vpop.f32.mrf.mxu2  ;;  %v7814_v27 = vadd.f32 %v4997_v56, %v7723_v20  ;;  %v1233_v43 = vrot.slane %v1231_v21, 4  ;;  %v1406_v56 = vld [vmem:[#allocation2 + $0xe4] sm:$0xf]  ;;  %v1250_v2 = vshll.u32 %v908_v55, 16  ;;  %v7092_v16 = vld [vmem:[%s8530_s1 + $0x148] sm:$0xff]  ;;  %v1718_v55 = vshll.u32 %v1407_v3, 16 }
 0x14d   : > { %v5082_v61 = vadd.f32 %v5081_v45, %v7796_v63  ;;  %v1234_v63 = vshll.u32 %v906_v37, 16  ;;  %v1242_v45 = vrot.slane %v1240_v34, 5  ;;  %v1706_v15 = vshrl.u32 %v1406_v56, 16  ;;  %v830_v34 = vld [vmem:[#allocation2 + $0xd8] sm:$0xf]  ;;  %5338 = vmatpush.bf16.msra.mxu1 %v7092_v16 }
 0x14e   : > { %v5170_v52 = vpop.f32.mrf.mxu3  ;;  %862 = vst [vmem:[#allocation3 + $0x3d0] sm:$0xf] %v830_v34  ;;  %v1857_v16 = vld [vmem:[#allocation2 + $0xe8] sm:$0xf] }
 0x14f   : > { %v5171_v20 = vadd.f32 %v5170_v52, %v5082_v61  ;;  %v1236_v41 = vrot.slane %v1234_v63, 5  ;;  %v1246_v61 = vrot.slane %v1244_v29, 4  ;;  %v1708_v63 = vrot.slane %v1706_v15, 7  ;;  %1889 = vst [vmem:[#allocation3 + $0x3dc] sm:$0xf] %v1857_v16 }
 0x151   : > { %v5262_v30 = vpop.f32.mrf.mxu0  ;;  %5123 = vmatmul.bf16.gmra.mxu2 %v6410_v39  ;;  %v7821_v40 = vadd.f32 %v5259_v9, %v5171_v20  ;;  %v7108_v9 = vld [vmem:[%s8530_s1 + $0x1c8] sm:$0xff]  ;;  %v1237_v14 = vor.u32 %v1236_v41, %v1233_v43  ;;  %v1405_v39 = vld [vmem:[#allocation2 + $0xe0] sm:$0x8]  ;;  %v1715_v41 = vshrl.u32 %v1407_v3, 16 }
 0x152   : > { %v1701_v52 = vshrl.u32 %v1405_v39, 16  ;;  %5516 = vmatpush.bf16.msra.mxu3 %v7108_v9  ;;  %v7011_v9 = vld [vmem:[#allocation3 + $0x340] sm:$0xf0]  ;;  %v6453_v3 = vld [vmem:[#allocation3 + $0x328] sm:$0xf] }
 0x153   : > { %5212 = vmatmul.bf16.gmra.mxu3 %v6414_v33  ;;  %v5000_v42 = vpop.f32.mrf.mxu1  ;;  %v1238_v20 = vrot.slane %v1237_v14, 4  ;;  %v1709_v33 = vshll.u32 %v1406_v56, 16  ;;  %v7116_v56 = vld [vmem:[%s8530_s1 + $0x208] sm:$0xff]  ;;  %v7007_v39 = vld [vmem:[#allocation3 + $0x324] sm:$0xf] }
 0x154   : > { %5301 = vmatmul.bf16.gmra.mxu0 %v6418_v8  ;;  %v5084_v58 = vpop.f32.mrf.mxu2  ;;  %v7827_v47 = vadd.f32 %v5000_v42, %v7745_v18  ;;  %v1247_v18 = vor.u32 %v1246_v61, %v1242_v45  ;;  %v1252_v8 = vrot.slane %v1250_v2, 5  ;;  %v6020_v21 = vrot.slane %v1701_v52, 11  ;;  %v6445_v42 = vld [vmem:[#allocation3 + $0x320] sm:$0xf]  ;;  %v1856_v52 = vld [vmem:[#allocation2 + $0xe4] sm:$0xf] }
 0x155   : > { %v5085_v59 = vadd.f32 %v5084_v58, %v7804_v50  ;;  %v829_v50 = vld [vmem:[#allocation2 + $0xd4] sm:$0xf]  ;;  %v1243_v29 = vsel %vm7558_vm5, %v1238_v20, %v1242_v45  ;;  %v1711_v4 = vor.u32 %v1709_v33, %v1708_v63  ;;  %v1713_v45 = vrot.slane %v1708_v63, 4  ;;  %5605 = vmatpush.bf16.msra.mxu0 %v7116_v56  ;;  %v7015_v63 = vld [vmem:[#allocation3 + $0x364] sm:$0xf] }
 0x156   : > { %v5173_v5 = vpop.f32.mrf.mxu3  ;;  %5039 = vmatmul.bf16.gmra.mxu1 %v6442_v22  ;;  %v1248_v43 = vrot.slane %v1247_v18, 4  ;;  %861 = vst [vmem:[#allocation3 + $0x3ac] sm:$0xf] %v829_v50  ;;  %v1717_v61 = vrot.slane %v1715_v41, 7  ;;  %v6446_v33 = vor.u32 %v7011_v9, %v6445_v42  ;;  %v6475_v50 = vld [vmem:[#allocation3 + $0x384] sm:$0xf0] }
 0x157   : > { %v5174_v37 = vadd.f32 %v5173_v5, %v5085_v59  ;;  %1360 = vst [vmem:[#allocation3 + $0x3b0] sm:$0xf] %v1243_v29  ;;  %v1712_v2 = vsel %vm7270_vm2, %v6020_v21, %v1711_v4  ;;  %v6447_v5 = vld [vmem:[#allocation3 + $0x344] sm:$0xf0] }
 0x158   : > { %v1253_v14 = vsel %vm7558_vm5, %v1248_v43, %v1252_v8  ;;  %v1720_v20 = vor.u32 %v1718_v55, %v1717_v61  ;;  %1824 = vst [vmem:[#allocation3 + $0x3b4] sm:$0xf] %v1712_v2  ;;  %v6450_v29 = vor.u32 %v7007_v39, %v6447_v5  ;;  %v910_v43 = vld [vmem:[#allocation2 + $0xe8] sm:$0xf]  ;;  %v911_v39 = vld [vmem:[#allocation2 + $0xec] sm:$0x1] }
 0x159   : > { %v5264_v22 = vpop.f32.mrf.mxu0  ;;  %v7841_v58 = vadd.f32 %v5262_v30, %v5174_v37  ;;  %1361 = vst [vmem:[#allocation3 + $0x3d4] sm:$0xf] %v1253_v14  ;;  %v7012_v37 = vld [vmem:[#allocation3 + $0x348] sm:$0xf0]  ;;  %v1264_v4 = vshll.u32 %v910_v43, 16  ;;  %v1268_v55 = vshrl.u32 %v910_v43, 16  ;;  %v6478_v14 = vor.u32 %v7015_v63, %v6475_v50 }
 0x15a   : > { %v1721_v21 = vsel %vm7270_vm2, %v1713_v45, %v1720_v20  ;;  %1888 = vst [vmem:[#allocation3 + $0x3b8] sm:$0xf] %v1856_v52  ;;  %v6454_v41 = vor.u32 %v7012_v37, %v6453_v3  ;;  %v1409_v45 = vld [vmem:[#allocation2 + $0xf4] sm:$0xf]  ;;  %v1410_v5 = vld [vmem:[#allocation2 + $0xf8] sm:$0xf] }
 0x15b   : > { %v5002_v59 = vpop.f32.mrf.mxu1  ;;  %1825 = vst [vmem:[#allocation3 + $0x3d8] sm:$0xf] %v1721_v21  ;;  %v1266_v52 = vrot.slane %v1264_v4, 5  ;;  %v832_v4 = vld [vmem:[#allocation2 + $0xe8] sm:$0xf] }
 0x15c   : > { %v5086_v15 = vpop.f32.mrf.mxu2  ;;  %v7848_v30 = vadd.f32 %v5002_v59, %v7756_v7  ;;  %v909_v7 = vld [vmem:[#allocation2 + $0xe4] sm:$0xf]  ;;  %864 = vst [vmem:[#allocation3 + $0x418] sm:$0xf] %v832_v4 }
 0x15d   : > { %v5087_v18 = vadd.f32 %v5086_v15, %v7814_v27  ;;  %v1255_v56 = vshrl.u32 %v909_v7, 16  ;;  %v1258_v27 = vshll.u32 %v909_v7, 16  ;;  %v1270_v15 = vrot.slane %v1268_v55, 4 }
 0x15e   : > { %v5175_v8 = vpop.f32.mrf.mxu3 }
 0x15f   : > { %v5176_v34 = vadd.f32 %v5175_v8, %v5087_v18  ;;  %v1257_v61 = vrot.slane %v1255_v56, 4  ;;  %v1260_v59 = vrot.slane %v1258_v27, 5  ;;  %v1274_v18 = vshll.u32 %v911_v39, 16  ;;  %v6481_v27 = vld [vmem:[#allocation3 + $0x368] sm:$0xf] }
 0x160   : > { %v1728_v8 = vshrl.u32 %v1409_v45, 16  ;;  %v7020_v39 = vld [vmem:[#allocation3 + $0x388] sm:$0xf0] }
 0x161   : > { %v5267_v42 = vpop.f32.mrf.mxu0  ;;  %5128 = vmatmul.bf16.gmra.mxu2 %v6446_v33  ;;  %v7853_v9 = vadd.f32 %v5264_v22, %v5176_v34  ;;  %v1261_v20 = vor.u32 %v1260_v59, %v1257_v61  ;;  %v1408_v33 = vld [vmem:[#allocation2 + $0xf0] sm:$0x8]  ;;  %v1271_v22 = vor.u32 %v1270_v15, %v1266_v52  ;;  %v1276_v21 = vrot.slane %v1274_v18, 5 }
 0x162   : > { %v1723_v16 = vshrl.u32 %v1408_v33, 16  ;;  %v1731_v34 = vshll.u32 %v1409_v45, 16  ;;  %v1730_v61 = vrot.slane %v1728_v8, 7  ;;  %v1740_v15 = vshll.u32 %v1410_v5, 16  ;;  %v6483_v33 = vld [vmem:[#allocation3 + $0x38c] sm:$0xf0] }
 0x163   : > { %8538 = vst [vmem:[#allocation5_spill] sm:$0xff] %v7853_v9  ;;  %5217 = vmatmul.bf16.gmra.mxu3 %v6450_v29  ;;  %v7855_v2 = vpop.f32.mrf.mxu1  ;;  %v1262_v50 = vrot.slane %v1261_v20, 4  ;;  %v1737_v29 = vshrl.u32 %v1410_v5, 16  ;;  %v1272_v43 = vrot.slane %v1271_v22, 4  ;;  %v7021_v8 = vld [vmem:[#allocation3 + $0x390] sm:$0xf0] }
 0x164   : > { %5306 = vmatmul.bf16.gmra.mxu0 %v6454_v41  ;;  %v5089_v3 = vpop.f32.mrf.mxu2  ;;  %v6021_v56 = vrot.slane %v1723_v16, 11  ;;  %v831_v41 = vld [vmem:[#allocation2 + $0xe4] sm:$0xf]  ;;  %v1733_v20 = vor.u32 %v1731_v34, %v1730_v61  ;;  %v1735_v18 = vrot.slane %v1730_v61, 4  ;;  %v1858_v5 = vld [vmem:[#allocation2 + $0xf4] sm:$0xf] }
 0x165   : > { %v5090_v37 = vadd.f32 %v5089_v3, %v7827_v47  ;;  %v1267_v55 = vsel %vm7558_vm5, %v1262_v50, %v1266_v52  ;;  %v1739_v47 = vrot.slane %v1737_v29, 7  ;;  %863 = vst [vmem:[#allocation3 + $0x3f4] sm:$0xf] %v831_v41  ;;  %v7016_v3 = vld [vmem:[#allocation3 + $0x36c] sm:$0xf]  ;;  %v6482_v50 = vor.u32 %v7020_v39, %v6481_v27  ;;  %v301_v41 = vld [vmem:[%s7241_s24 + $0x78] sm:$0xff]  }
 0x166   : > { %v5178_v63 = vpop.f32.mrf.mxu3  ;;  %5044 = vmatmul.bf16.gmra.mxu1 %v6478_v14  ;;  %v1277_v14 = vsel %vm7558_vm5, %v1272_v43, %v1276_v21  ;;  %1362 = vst [vmem:[#allocation3 + $0x3f8] sm:$0xf] %v1267_v55  ;;  %v7024_v21 = vld [vmem:[#allocation3 + $0x3ac] sm:$0xf]  ;;  %v1859_v29 = vld [vmem:[#allocation2 + $0xf8] sm:$0xf]  ;;  %v6486_v55 = vor.u32 %v7016_v3, %v6483_v33  ;;  %v5006_v3 = vadd.f32 %v7855_v2, %v7629_v17 }
 0x167   : > { %v5179_v7 = vadd.f32 %v5178_v63, %v5090_v37  ;;  %v6489_v37 = vld [vmem:[#allocation3 + $0x370] sm:$0xf]  ;;  %v1742_v52 = vor.u32 %v1740_v15, %v1739_v47  ;;  %1363 = vst [vmem:[#allocation3 + $0x41c] sm:$0xf] %v1277_v14  ;;  %v1734_v63 = vsel %vm7270_vm2, %v6021_v56, %v1733_v20  ;;  %v912_v61 = vld [vmem:[#allocation2 + $0xf4] sm:$0xf] }
 0x168   : > { %1826 = vst [vmem:[#allocation3 + $0x3fc] sm:$0xf] %v1734_v63  ;;  %v6511_v43 = vld [vmem:[#allocation3 + $0x3cc] sm:$0xf0]  ;;  %v913_v47 = vld [vmem:[#allocation2 + $0xf8] sm:$0xf]  ;;  %v6490_v56 = vor.u32 %v7021_v8, %v6489_v37 }
 0x169   : > { %v5269_v59 = vpop.f32.mrf.mxu0  ;;  %v7862_v45 = vadd.f32 %v5267_v42, %v5179_v7  ;;  %v1743_v34 = vsel %vm7270_vm2, %v1735_v18, %v1742_v52  ;;  %1890 = vst [vmem:[#allocation3 + $0x400] sm:$0xf] %v1858_v5  ;;  %v1279_v14 = vshrl.u32 %v912_v61, 16  ;;  %v1288_v39 = vshll.u32 %v913_v47, 16  ;;  %v7099_v37 = vld [vmem:[%s8530_s1 + $0x180] sm:$0xff] }
 0x16a   : > { %1827 = vst [vmem:[#allocation3 + $0x420] sm:$0xf] %v1743_v34  ;;  %v1292_v15 = vshrl.u32 %v913_v47, 16  ;;  %v6514_v18 = vor.u32 %v7024_v21, %v6511_v43  ;;  %v914_v8 = vld [vmem:[#allocation2 + $0xfc] sm:$0x1]  ;;  %5428 = vmatpush.bf16.msra.mxu2 %v7099_v37 }
 0x16b   : > { %8539 = vst [vmem:[#allocation6_spill] sm:$0xff] %v7862_v45  ;;  %v7864_v22 = vpop.f32.mrf.mxu1  ;;  %v1281_v52 = vrot.slane %v1279_v14, 4  ;;  %v1290_v63 = vrot.slane %v1288_v39, 5  ;;  %v1298_v17 = vshll.u32 %v914_v8, 16  ;;  %v1411_v2 = vld [vmem:[#allocation2 + $0x100] sm:$0x8] }
 0x16c   : > { %v5091_v16 = vpop.f32.mrf.mxu2  ;;  %1891 = vst [vmem:[#allocation3 + $0x424] sm:$0xf] %v1859_v29  ;;  %v833_v47 = vld [vmem:[#allocation2 + $0xf4] sm:$0xf]  ;;  %v1745_v39 = vshrl.u32 %v1411_v2, 16 }
 0x16d   : > { %v5092_v42 = vadd.f32 %v5091_v16, %v7848_v30  ;;  %v1282_v30 = vshll.u32 %v912_v61, 16  ;;  %334 = vst [vmem:[#allocation2 + $0x104] sm:$0xff] %v301_v41   ;;  %v7091_v41 = vld [vmem:[%s8530_s1 + $0x140] sm:$0xff]  ;;  %v7029_v61 = vld [vmem:[#allocation3 + $0x3d0] sm:$0xf0] }
 0x16e   : > { %v5180_v7 = vpop.f32.mrf.mxu3  ;;  %5339 = vmatpush.bf16.msra.mxu1 %v7091_v41  ;;  %865 = vst [vmem:[#allocation3 + $0x43c] sm:$0xf] %v833_v47  ;;  %v6519_v37 = vld [vmem:[#allocation3 + $0x3d4] sm:$0xf0]  ;;  %v1894_v45 = vld [vmem:[#allocation2 + $0x14] sm:$0xf] }
 0x16f   : > { %v5181_v4 = vadd.f32 %v5180_v7, %v5092_v42  ;;  %v1284_v16 = vrot.slane %v1282_v30, 5  ;;  %v6525_v8 = vld [vmem:[#allocation3 + $0x3b8] sm:$0xf] }
 0x170   : > { %v1895_v9 = vld [vmem:[#allocation2 + $0x18] sm:$0xf] }
 0x171   : > { %v5272_v27 = vpop.f32.mrf.mxu0  ;;  %5133 = vmatmul.bf16.gmra.mxu2 %v6482_v50  ;;  %v7872_v20 = vadd.f32 %v5269_v59, %v5181_v4  ;;  %v7107_v59 = vld [vmem:[%s8530_s1 + $0x1c0] sm:$0xff]  ;;  %v1285_v42 = vor.u32 %v1284_v16, %v1281_v52  ;;  %v1294_v50 = vrot.slane %v1292_v15, 4  ;;  %v1300_v4 = vrot.slane %v1298_v17, 5 }
 0x172   : > { %5517 = vmatpush.bf16.msra.mxu3 %v7107_v59 }
 0x173   : > { %8540 = vst [vmem:[#allocation7_spill] sm:$0xff] %v7872_v20  ;;  %5222 = vmatmul.bf16.gmra.mxu3 %v6486_v55  ;;  %v7876_v33 = vpop.f32.mrf.mxu1  ;;  %v1286_v29 = vrot.slane %v1285_v42, 4  ;;  %v1295_v7 = vor.u32 %v1294_v50, %v1290_v63  ;;  %v6517_v55 = vld [vmem:[#allocation3 + $0x3b0] sm:$0xf]  ;;  %v6547_v20 = vld [vmem:[#allocation3 + $0x414] sm:$0xf0] }
 0x174   : > { %5311 = vmatmul.bf16.gmra.mxu0 %v6490_v56  ;;  %v5094_v5 = vpop.f32.mrf.mxu2  ;;  %v834_v56 = vld [vmem:[#allocation2 + $0xf8] sm:$0xf]  ;;  %v1412_v52 = vld [vmem:[#allocation2 + $0x104] sm:$0xf]  ;;  %v1413_v59 = vld [vmem:[#allocation2 + $0x108] sm:$0xf] }
 0x175   : > { %v5095_v21 = vadd.f32 %v5094_v5, %v5006_v3  ;;  %v1291_v14 = vsel %vm7558_vm5, %v1286_v29, %v1290_v63  ;;  %v1296_v30 = vrot.slane %v1295_v7, 4  ;;  %v7025_v3 = vld [vmem:[#allocation3 + $0x3b4] sm:$0xf]  ;;  %v7030_v5 = vld [vmem:[#allocation3 + $0x3d8] sm:$0xf0]  ;;  %v1750_v42 = vshrl.u32 %v1412_v52, 16 }
 0x176   : > { %v5183_v34 = vpop.f32.mrf.mxu3  ;;  %5049 = vmatmul.bf16.gmra.mxu1 %v6514_v18  ;;  %v7115_v18 = vld [vmem:[%s8530_s1 + $0x200] sm:$0xff]  ;;  %866 = vst [vmem:[#allocation3 + $0x460] sm:$0xf] %v834_v56  ;;  %v1753_v50 = vshll.u32 %v1412_v52, 16  ;;  %v1762_v2 = vshll.u32 %v1413_v59, 16  ;;  %v6022_v7 = vrot.slane %v1745_v39, 11 }
 0x177   : > { %v5184_v43 = vadd.f32 %v5183_v34, %v5095_v21  ;;  %v1301_v63 = vsel %vm7558_vm5, %v1296_v30, %v1300_v4  ;;  %v5008_v21 = vadd.f32 %v7864_v22, %v7641_v54  ;;  %5606 = vmatpush.bf16.msra.mxu0 %v7115_v18  ;;  %1364 = vst [vmem:[#allocation3 + $0x440] sm:$0xf] %v1291_v14  ;;  %v1860_v34 = vld [vmem:[#allocation2 + $0x104] sm:$0xf]  ;;  %v1861_v41 = vld [vmem:[#allocation2 + $0x108] sm:$0xf] }
 0x178   : > { %1365 = vst [vmem:[#allocation3 + $0x464] sm:$0xf] %v1301_v63  ;;  %v6518_v4 = vor.u32 %v7029_v61, %v6517_v55  ;;  %v7033_v52 = vld [vmem:[#allocation3 + $0x3f4] sm:$0xf]  ;;  %v6522_v18 = vor.u32 %v7025_v3, %v6519_v37  ;;  %v6526_v14 = vor.u32 %v7030_v5, %v6525_v8  ;;  %v1943_v63 = vshrl.u32 %v1894_v45, 16 }
 0x179   : > { %v5274_v15 = vpop.f32.mrf.mxu0  ;;  %v7892_v16 = vadd.f32 %v5272_v27, %v5184_v43  ;;  %v1759_v27 = vshrl.u32 %v1413_v59, 16  ;;  %v1752_v43 = vrot.slane %v1750_v42, 7  ;;  %1892 = vst [vmem:[#allocation3 + $0x448] sm:$0xf] %v1860_v34  ;;  %v1946_v42 = vshll.u32 %v1894_v45, 16 }
 0x17a   : > { %1893 = vst [vmem:[#allocation3 + $0x46c] sm:$0xf] %v1861_v41  ;;  %v1952_v55 = vshll.u32 %v1895_v9, 16  ;;  %v6550_v3 = vor.u32 %v7033_v52, %v6547_v20  ;;  %v1945_v37 = vrot.slane %v1943_v63, 4  ;;  %v5011_v5 = vadd.f32 %v7876_v33, %v7653_v35  ;;  %v1896_v45 = vld [vmem:[#allocation2 + $0x1c] sm:$0x1] }
 0x17b   : > { %8541 = vst [vmem:[#allocation8_spill] sm:$0xff] %v7892_v16  ;;  %v7898_v17 = vpop.f32.mrf.mxu1  ;;  %v1761_v56 = vrot.slane %v1759_v27, 7  ;;  %v1755_v16 = vor.u32 %v1753_v50, %v1752_v43  ;;  %v1757_v54 = vrot.slane %v1752_v43, 4  ;;  %v1948_v8 = vrot.slane %v1946_v42, 5  ;;  %v2392_v20 = vld [vmem:[#allocation2 + $0x24] sm:$0xf] }
 0x17c   : > { %v5096_v29 = vpop.f32.mrf.mxu2  ;;  %v1962_v43 = vshll.u32 %v1896_v45, 16  ;;  %v2919_v33 = vld [vmem:[#allocation2 + $0x24] sm:$0xf]  ;;  %v7034_v45 = vld [vmem:[#allocation3 + $0x3fc] sm:$0xf] }
 0x17d   : > { %v5097_v47 = vadd.f32 %v5096_v29, %v5008_v21  ;;  %v1764_v59 = vor.u32 %v1762_v2, %v1761_v56  ;;  %v1756_v39 = vsel %vm7270_vm2, %v6022_v7, %v1755_v16  ;;  %v1956_v21 = vshrl.u32 %v1895_v9, 16  ;;  %v2391_v9 = vld [vmem:[#allocation2 + $0x20] sm:$0x8] }
 0x17e   : > { %v5185_v30 = vpop.f32.mrf.mxu3  ;;  %1828 = vst [vmem:[#allocation3 + $0x444] sm:$0xf] %v1756_v39  ;;  %v1954_v2 = vrot.slane %v1952_v55, 5  ;;  %v1949_v7 = vor.u32 %v1948_v8, %v1945_v37  ;;  %v2440_v35 = vshrl.u32 %v2391_v9, 16  ;;  %v2920_v37 = vld [vmem:[#allocation2 + $0x28] sm:$0xf] }
 0x17f   : > { %v5186_v22 = vadd.f32 %v5185_v30, %v5097_v47  ;;  %v1765_v50 = vsel %vm7270_vm2, %v1757_v54, %v1764_v59  ;;  %v1958_v34 = vrot.slane %v1956_v21, 4  ;;  %v2393_v47 = vld [vmem:[#allocation2 + $0x28] sm:$0xf]  ;;  %v1964_v30 = vrot.slane %v1962_v43, 5  ;;  %v6553_v54 = vld [vmem:[#allocation3 + $0x3f8] sm:$0xf] }
 0x180   : > { %1829 = vst [vmem:[#allocation3 + $0x468] sm:$0xf] %v1765_v50  ;;  %v1950_v56 = vrot.slane %v1949_v7, 4  ;;  %v2448_v59 = vshll.u32 %v2392_v20, 16  ;;  %v6023_v63 = vrot.slane %v2440_v35, 11  ;;  %v2454_v42 = vshrl.u32 %v2393_v47, 16 }
 0x181   : > { %v5277_v61 = vpop.f32.mrf.mxu0  ;;  %5138 = vmatmul.bf16.gmra.mxu2 %v6518_v4  ;;  %v7904_v27 = vadd.f32 %v5274_v15, %v5186_v22  ;;  %v1959_v41 = vor.u32 %v1958_v34, %v1954_v2  ;;  %v2457_v55 = vshll.u32 %v2393_v47, 16  ;;  %v2968_v8 = vshrl.u32 %v2919_v33, 16  ;;  %v6555_v34 = vld [vmem:[#allocation3 + $0x41c] sm:$0xf0]  ;;  %v2855_v7 = vld [vmem:[#allocation2 + $0x24] sm:$0xf] }
 0x182   : > { %v1955_v39 = vsel %vm7558_vm5, %v1950_v56, %v1954_v2  ;;  %v2971_v43 = vshll.u32 %v2919_v33, 16  ;;  %v5013_v2 = vadd.f32 %v7898_v17, %v7673_v6  ;;  %v6561_v9 = vld [vmem:[#allocation3 + $0x400] sm:$0xf]  ;;  %v2856_v47 = vld [vmem:[#allocation2 + $0x28] sm:$0xf]  ;;  %v2981_v17 = vshrl.u32 %v2920_v37, 16 }
 0x183   : > { %8542 = vst [vmem:[#allocation9_spill] sm:$0xff] %v7904_v27  ;;  %5227 = vmatmul.bf16.gmra.mxu3 %v6522_v18  ;;  %v7908_v16 = vpop.f32.mrf.mxu1  ;;  %v1960_v22 = vrot.slane %v1959_v41, 4  ;;  %v2445_v18 = vshrl.u32 %v2392_v20, 16  ;;  %v2921_v35 = vld [vmem:[#allocation2 + $0x2c] sm:$0x1] }
 0x184   : > { %5316 = vmatmul.bf16.gmra.mxu0 %v6526_v14  ;;  %v5099_v29 = vpop.f32.mrf.mxu2  ;;  %v7038_v14 = vld [vmem:[#allocation3 + $0x418] sm:$0xf0]  ;;  %2358 = vst [vmem:[#allocation3 + $0x14] sm:$0xf] %v1955_v39  ;;  %v7039_v33 = vld [vmem:[#allocation3 + $0x420] sm:$0xf0] }
 0x185   : > { %v5100_v15 = vadd.f32 %v5099_v29, %v5011_v5  ;;  %v1965_v21 = vsel %vm7558_vm5, %v1960_v22, %v1964_v30  ;;  %v2456_v29 = vrot.slane %v2454_v42, 7  ;;  %2887 = vst [vmem:[#allocation3 + $0x1c] sm:$0xf] %v2855_v7  ;;  %v2977_v22 = vshll.u32 %v2920_v37, 16  ;;  %v7042_v39 = vld [vmem:[#allocation3 + $0x43c] sm:$0xf] }
 0x186   : > { %v5188_v4 = vpop.f32.mrf.mxu3  ;;  %5054 = vmatmul.bf16.gmra.mxu1 %v6550_v3  ;;  %v2447_v3 = vrot.slane %v2445_v18, 7  ;;  %2359 = vst [vmem:[#allocation3 + $0x38] sm:$0xf] %v1965_v21  ;;  %v2987_v42 = vshll.u32 %v2921_v35, 16  ;;  %v6583_v21 = vld [vmem:[#allocation3 + $0x45c] sm:$0xf0] }
 0x187   : > { %v5189_v52 = vadd.f32 %v5188_v4, %v5100_v15  ;;  %v2970_v4 = vrot.slane %v2968_v8, 4  ;;  %v2459_v30 = vor.u32 %v2457_v55, %v2456_v29  ;;  %2888 = vst [vmem:[#allocation3 + $0x40] sm:$0xf] %v2856_v47  ;;  %v6558_v8 = vor.u32 %v7034_v45, %v6555_v34  ;;  %v1897_v7 = vld [vmem:[#allocation2 + $0x24] sm:$0xf] }
 0x188   : > { %v2450_v41 = vor.u32 %v2448_v59, %v2447_v3  ;;  %v2452_v20 = vrot.slane %v2447_v3, 4  ;;  %v2983_v29 = vrot.slane %v2981_v17, 4  ;;  %v2989_v47 = vrot.slane %v2987_v42, 5  ;;  %v2394_v17 = vld [vmem:[#allocation2 + $0x30] sm:$0x8] }
 0x189   : > { %v5279_v50 = vpop.f32.mrf.mxu0  ;;  %v7914_v5 = vadd.f32 %v5277_v61, %v5189_v52  ;;  %v6554_v61 = vor.u32 %v7038_v14, %v6553_v54  ;;  %v2973_v52 = vrot.slane %v2971_v43, 5  ;;  %v2979_v14 = vrot.slane %v2977_v22, 5  ;;  %v2395_v22 = vld [vmem:[#allocation2 + $0x34] sm:$0xf] }
 0x18a   : > { %v2451_v6 = vsel %vm7270_vm2, %v6023_v63, %v2450_v41  ;;  %v2460_v3 = vsel %vm7270_vm2, %v2452_v20, %v2459_v30  ;;  %v6562_v43 = vor.u32 %v7039_v33, %v6561_v9  ;;  %v1967_v63 = vshrl.u32 %v1897_v7, 16  ;;  %v1899_v33 = vld [vmem:[#allocation2 + $0x2c] sm:$0x1] }
 0x18b   : > { %8543 = vst [vmem:[#allocation10_spill] sm:$0xff] %v7914_v5  ;;  %v7918_v15 = vpop.f32.mrf.mxu1  ;;  %v2974_v54 = vor.u32 %v2973_v52, %v2970_v4  ;;  %v2984_v41 = vor.u32 %v2983_v29, %v2979_v14  ;;  %v1970_v35 = vshll.u32 %v1897_v7, 16  ;;  %v6586_v20 = vor.u32 %v7042_v39, %v6583_v21  ;;  %v7047_v29 = vld [vmem:[#allocation3 + $0x460] sm:$0xf0] }
 0x18c   : > { %v5101_v56 = vpop.f32.mrf.mxu2  ;;  %2823 = vst [vmem:[#allocation3 + $0x18] sm:$0xf] %v2451_v6  ;;  %v1969_v30 = vrot.slane %v1967_v63, 4  ;;  %v5016_v34 = vadd.f32 %v7908_v16, %v7687_v44  ;;  %v1986_v21 = vshll.u32 %v1899_v33, 16 }
 0x18d   : > { %v5102_v18 = vadd.f32 %v5101_v56, %v5013_v2  ;;  %2824 = vst [vmem:[#allocation3 + $0x3c] sm:$0xf] %v2460_v3  ;;  %v2975_v2 = vrot.slane %v2974_v54, 4  ;;  %v1898_v56 = vld [vmem:[#allocation2 + $0x28] sm:$0xf]  ;;  %v2985_v52 = vrot.slane %v2984_v41, 4 }
 0x18e   : > { %v5190_v59 = vpop.f32.mrf.mxu3  ;;  %v1976_v5 = vshll.u32 %v1898_v56, 16  ;;  %v1980_v27 = vshrl.u32 %v1898_v56, 16  ;;  %v2396_v3 = vld [vmem:[#allocation2 + $0x38] sm:$0xf]  ;;  %v2462_v54 = vshrl.u32 %v2394_v17, 16 }
 0x18f   : > { %v5191_v55 = vadd.f32 %v5190_v59, %v5102_v18  ;;  %v2980_v4 = vsel %vm7558_vm5, %v2975_v2, %v2979_v14  ;;  %v2467_v14 = vshrl.u32 %v2395_v22, 16  ;;  %v2857_v41 = vld [vmem:[#allocation2 + $0x34] sm:$0xf] }
 0x190   : > { %3383 = vst [vmem:[#allocation3 + $0x20] sm:$0xf] %v2980_v4  ;;  %v1978_v39 = vrot.slane %v1976_v5, 5  ;;  %v1982_v6 = vrot.slane %v1980_v27, 4  ;;  %v1988_v5 = vrot.slane %v1986_v21, 5  ;;  %v6024_v56 = vrot.slane %v2462_v54, 11 }
 0x191   : > { %v5282_v37 = vpop.f32.mrf.mxu0  ;;  %5143 = vmatmul.bf16.gmra.mxu2 %v6554_v61  ;;  %v7926_v45 = vadd.f32 %v5279_v50, %v5191_v55  ;;  %v1972_v61 = vrot.slane %v1970_v35, 5  ;;  %v2990_v50 = vsel %vm7558_vm5, %v2985_v52, %v2989_v47  ;;  %v2922_v27 = vld [vmem:[#allocation2 + $0x34] sm:$0xf]  ;;  %v2469_v63 = vrot.slane %v2467_v14, 7  ;;  %v7043_v4 = vld [vmem:[#allocation3 + $0x444] sm:$0xf] }
 0x192   : > { %3384 = vst [vmem:[#allocation3 + $0x44] sm:$0xf] %v2990_v50  ;;  %v1983_v16 = vor.u32 %v1982_v6, %v1978_v39  ;;  %v2470_v47 = vshll.u32 %v2395_v22, 16  ;;  %v2858_v52 = vld [vmem:[#allocation2 + $0x38] sm:$0xf]  ;;  %v2992_v22 = vshrl.u32 %v2922_v27, 16 }
 0x193   : > { %5232 = vmatmul.bf16.gmra.mxu3 %v6558_v8  ;;  %v7930_v9 = vpop.f32.mrf.mxu1  ;;  %v1973_v59 = vor.u32 %v1972_v61, %v1969_v30  ;;  %v6589_v8 = vld [vmem:[#allocation3 + $0x440] sm:$0xf]  ;;  %v2476_v30 = vshrl.u32 %v2396_v3, 16  ;;  %2889 = vst [vmem:[#allocation3 + $0x64] sm:$0xf] %v2857_v41  ;;  %v2474_v17 = vrot.slane %v2469_v63, 4 }
 0x194   : > { %5321 = vmatmul.bf16.gmra.mxu0 %v6562_v43  ;;  %v5104_v18 = vpop.f32.mrf.mxu2  ;;  %v2923_v43 = vld [vmem:[#allocation2 + $0x38] sm:$0xf]  ;;  %v1984_v2 = vrot.slane %v1983_v16, 4  ;;  %v2472_v6 = vor.u32 %v2470_v47, %v2469_v63  ;;  %v2995_v21 = vshll.u32 %v2922_v27, 16  ;;  %v6597_v16 = vld [vmem:[#allocation3 + $0x448] sm:$0xf] }
 0x195   : > { %v5105_v42 = vadd.f32 %v5104_v18, %v5016_v34  ;;  %v1974_v7 = vrot.slane %v1973_v59, 4  ;;  %v2479_v34 = vshll.u32 %v2396_v3, 16  ;;  %v6591_v18 = vld [vmem:[#allocation3 + $0x464] sm:$0xf0]  ;;  %v2924_v59 = vld [vmem:[#allocation2 + $0x3c] sm:$0x1] }
 0x196   : > { %v5193_v44 = vpop.f32.mrf.mxu3  ;;  %5059 = vmatmul.bf16.gmra.mxu1 %v6586_v20  ;;  %v1989_v33 = vsel %vm7558_vm5, %v1984_v2, %v1988_v5  ;;  %v2473_v3 = vsel %vm7270_vm2, %v6024_v56, %v2472_v6  ;;  %2890 = vst [vmem:[#allocation3 + $0x88] sm:$0xf] %v2858_v52  ;;  %v2994_v54 = vrot.slane %v2992_v22, 4  ;;  %v3001_v14 = vshll.u32 %v2923_v43, 16  ;;  %v6909_v47 = vld [vmem:[#allocation3 + $0x14] sm:$0xf] }
 0x197   : > { %v5194_v55 = vadd.f32 %v5193_v44, %v5105_v42  ;;  %v1979_v20 = vsel %vm7558_vm5, %v1974_v7, %v1978_v39  ;;  %v5018_v42 = vadd.f32 %v7918_v15, %v7701_v25  ;;  %2361 = vst [vmem:[#allocation3 + $0x80] sm:$0xf] %v1989_v33  ;;  %v2478_v39 = vrot.slane %v2476_v30, 7  ;;  %v7048_v7 = vld [vmem:[#allocation3 + $0x468] sm:$0xf0] }
 0x198   : > { %2360 = vst [vmem:[#allocation3 + $0x5c] sm:$0xf] %v1979_v20  ;;  %v2997_v25 = vrot.slane %v2995_v21, 5  ;;  %v3005_v15 = vshrl.u32 %v2923_v43, 16  ;;  %v6594_v63 = vor.u32 %v7043_v4, %v6591_v18  ;;  %v6059_v41 = vld [vmem:[#allocation3 + $0x34] sm:$0xf0]  ;;  %v6598_v6 = vor.u32 %v7048_v7, %v6597_v16 }
 0x199   : > { %v5284_v35 = vpop.f32.mrf.mxu0  ;;  %v7936_v61 = vadd.f32 %v5282_v37, %v5194_v55  ;;  %v6590_v37 = vor.u32 %v7047_v29, %v6589_v8  ;;  %v2481_v5 = vor.u32 %v2479_v34, %v2478_v39  ;;  %2825 = vst [vmem:[#allocation3 + $0x60] sm:$0xf] %v2473_v3  ;;  %v3003_v27 = vrot.slane %v3001_v14, 5  ;;  %v1900_v52 = vld [vmem:[#allocation2 + $0x34] sm:$0xf] }
 0x19a   : > { %v3011_v20 = vshll.u32 %v2924_v59, 16  ;;  %v2998_v56 = vor.u32 %v2997_v25, %v2994_v54  ;;  %v3007_v30 = vrot.slane %v3005_v15, 4  ;;  %v1901_v33 = vld [vmem:[#allocation2 + $0x38] sm:$0xf]  ;;  %v1991_v22 = vshrl.u32 %v1900_v52, 16 }
 0x19b   : > { %v7942_v50 = vpop.f32.mrf.mxu1  ;;  %v2482_v29 = vsel %vm7270_vm2, %v2474_v17, %v2481_v5  ;;  %v1994_v18 = vshll.u32 %v1900_v52, 16  ;;  %v2000_v39 = vshll.u32 %v1901_v33, 16  ;;  %v6062_v21 = vor.u32 %v6909_v47, %v6059_v41  ;;  %v2398_v7 = vld [vmem:[#allocation2 + $0x44] sm:$0xf]  ;;  %v2399_v47 = vld [vmem:[#allocation2 + $0x48] sm:$0xf] }
 0x19c   : > { %v5106_v44 = vpop.f32.mrf.mxu2  ;;  %2826 = vst [vmem:[#allocation3 + $0x84] sm:$0xf] %v2482_v29  ;;  %v3013_v34 = vrot.slane %v3011_v20, 5  ;;  %v2999_v43 = vrot.slane %v2998_v56, 4  ;;  %v3008_v4 = vor.u32 %v3007_v30, %v3003_v27  ;;  %v1993_v59 = vrot.slane %v1991_v22, 4 }
 0x19d   : > { %v5107_v55 = vadd.f32 %v5106_v44, %v5018_v42  ;;  %v2004_v44 = vshrl.u32 %v1901_v33, 16  ;;  %v5021_v17 = vadd.f32 %v7930_v9, %v7711_v57  ;;  %v2002_v25 = vrot.slane %v2000_v39, 5  ;;  %v7960_v20 = vld [vmem:[#allocation3 + $0x3c] sm:$0xf0]  ;;  %v6065_v33 = vld [vmem:[#allocation3 + $0x18] sm:$0xf] }
 0x19e   : > { %v5195_v2 = vpop.f32.mrf.mxu3  ;;  %v3004_v16 = vsel %vm7558_vm5, %v2999_v43, %v3003_v27  ;;  %v3009_v14 = vrot.slane %v3008_v4, 4  ;;  %v7958_v27 = vld [vmem:[#allocation3 + $0x1c] sm:$0xf]  ;;  %v2489_v56 = vshrl.u32 %v2398_v7, 16  ;;  %v2492_v30 = vshll.u32 %v2398_v7, 16 }
 0x19f   : > { %v5196_v8 = vadd.f32 %v5195_v2, %v5107_v55  ;;  %v1996_v55 = vrot.slane %v1994_v18, 5  ;;  %3385 = vst [vmem:[#allocation3 + $0x68] sm:$0xf] %v3004_v16  ;;  %v2006_v15 = vrot.slane %v2004_v44, 4  ;;  %v2498_v43 = vshrl.u32 %v2399_v47, 16 }
 0x1a0   : > { %v3014_v2 = vsel %vm7558_vm5, %v3009_v14, %v3013_v34  ;;  %v2491_v39 = vrot.slane %v2489_v56, 7  ;;  %v7962_v44 = vld [vmem:[#allocation3 + $0x20] sm:$0xf] }
 0x1a1   : > { %v5287_v42 = vpop.f32.mrf.mxu0  ;;  %5148 = vmatmul.bf16.gmra.mxu2 %v6590_v37  ;;  %v7948_v3 = vadd.f32 %v5284_v35, %v5196_v8  ;;  %v1902_v37 = vld [vmem:[#allocation2 + $0x3c] sm:$0x1]  ;;  %v1997_v57 = vor.u32 %v1996_v55, %v1993_v59  ;;  %3386 = vst [vmem:[#allocation3 + $0x8c] sm:$0xf] %v3014_v2  ;;  %v2007_v8 = vor.u32 %v2006_v15, %v2002_v25  ;;  %v2859_v59 = vld [vmem:[#allocation2 + $0x44] sm:$0xf] }
 0x1a2   : > { %v2010_v9 = vshll.u32 %v1902_v37, 16  ;;  %v2500_v14 = vrot.slane %v2498_v43, 7  ;;  %v2501_v37 = vshll.u32 %v2399_v47, 16  ;;  %v2860_v55 = vld [vmem:[#allocation2 + $0x48] sm:$0xf]  ;;  %v2496_v2 = vrot.slane %v2491_v39, 4 }
 0x1a3   : > { %5237 = vmatmul.bf16.gmra.mxu3 %v6594_v63  ;;  %v7952_v54 = vpop.f32.mrf.mxu1  ;;  %v2397_v63 = vld [vmem:[#allocation2 + $0x40] sm:$0x8]  ;;  %v1998_v22 = vrot.slane %v1997_v57, 4  ;;  %v2008_v4 = vrot.slane %v2007_v8, 4  ;;  %2891 = vst [vmem:[#allocation3 + $0xac] sm:$0xf] %v2859_v59 }
 0x1a4   : > { %5326 = vmatmul.bf16.gmra.mxu0 %v6598_v6  ;;  %v5109_v5 = vpop.f32.mrf.mxu2  ;;  %v2484_v29 = vshrl.u32 %v2397_v63, 16  ;;  %v6914_v6 = vld [vmem:[#allocation3 + $0x38] sm:$0xf0]  ;;  %v2012_v34 = vrot.slane %v2010_v9, 5  ;;  %v2925_v57 = vld [vmem:[#allocation2 + $0x44] sm:$0xf]  ;;  %v5023_v9 = vadd.f32 %v7942_v50, %v7735_v49 }
 0x1a5   : > { %v5110_v35 = vadd.f32 %v5109_v5, %v5021_v17  ;;  %v7964_v17 = vld [vmem:[#allocation3 + $0x40] sm:$0xf0]  ;;  %v2003_v16 = vsel %vm7558_vm5, %v1998_v22, %v2002_v25  ;;  %v7970_v5 = vld [vmem:[#allocation3 + $0x5c] sm:$0xf]  ;;  %v6070_v25 = vor.u32 %v7958_v27, %v7960_v20  ;;  %v6095_v47 = vld [vmem:[#allocation3 + $0x7c] sm:$0xf0] }
 0x1a6   : > { %v5198_v41 = vpop.f32.mrf.mxu3  ;;  %5340 = vmatmul.bf16.vlgmr.msra.gmra.mxu1 %v6062_v21  ;;  %v6025_v18 = vrot.slane %v2484_v29, 11  ;;  %v2013_v15 = vsel %vm7558_vm5, %v2008_v4, %v2012_v34  ;;  %2362 = vst [vmem:[#allocation3 + $0xa4] sm:$0xf] %v2003_v16  ;;  %v6066_v29 = vor.u32 %v6914_v6, %v6065_v33  ;;  %v3019_v22 = vshll.u32 %v2925_v57, 16 }
 0x1a7   : > { %v5199_v52 = vadd.f32 %v5198_v41, %v5110_v35  ;;  %v2494_v35 = vor.u32 %v2492_v30, %v2491_v39  ;;  %2363 = vst [vmem:[#allocation3 + $0xc8] sm:$0xf] %v2013_v15  ;;  %v2926_v41 = vld [vmem:[#allocation2 + $0x48] sm:$0xf]  ;;  %v2927_v30 = vld [vmem:[#allocation2 + $0x4c] sm:$0x1]  ;;  %v6074_v43 = vor.u32 %v7964_v17, %v7962_v44  ;;  %v6098_v39 = vor.u32 %v7970_v5, %v6095_v47 }
 0x1a8   : > { %2892 = vst [vmem:[#allocation3 + $0xd0] sm:$0xf] %v2860_v55  ;;  %v3025_v50 = vshll.u32 %v2926_v41, 16  ;;  %v3029_v27 = vshrl.u32 %v2926_v41, 16  ;;  %v3021_v6 = vrot.slane %v3019_v22, 5  ;;  %v3035_v4 = vshll.u32 %v2927_v30, 16 }
 0x1a9   : > { %v5289_v21 = vpop.f32.mrf.mxu0  ;;  %v7968_v7 = vadd.f32 %v5287_v42, %v5199_v52  ;;  %v2503_v42 = vor.u32 %v2501_v37, %v2500_v14  ;;  %v2495_v56 = vsel %vm7270_vm2, %v6025_v18, %v2494_v35  ;;  %v3016_v52 = vshrl.u32 %v2925_v57, 16  ;;  %v1903_v14 = vld [vmem:[#allocation2 + $0x44] sm:$0xf]  ;;  %v1904_v37 = vld [vmem:[#allocation2 + $0x48] sm:$0xf] }
 0x1aa   : > { %2827 = vst [vmem:[#allocation3 + $0xa8] sm:$0xf] %v2495_v56  ;;  %v3027_v59 = vrot.slane %v3025_v50, 5  ;;  %v3031_v16 = vrot.slane %v3029_v27, 4  ;;  %v3037_v15 = vrot.slane %v3035_v4, 5  ;;  %v2015_v35 = vshrl.u32 %v1903_v14, 16 }
 0x1ab   : > { %v7978_v63 = vpop.f32.mrf.mxu1  ;;  %v2504_v49 = vsel %vm7270_vm2, %v2496_v2, %v2503_v42  ;;  %v3018_v33 = vrot.slane %v3016_v52, 4  ;;  %v2018_v2 = vshll.u32 %v1903_v14, 16  ;;  %v2024_v42 = vshll.u32 %v1904_v37, 16  ;;  %v2401_v17 = vld [vmem:[#allocation2 + $0x54] sm:$0xf] }
 0x1ac   : > { %v5111_v8 = vpop.f32.mrf.mxu2  ;;  %2828 = vst [vmem:[#allocation3 + $0xcc] sm:$0xf] %v2504_v49  ;;  %v2028_v44 = vshrl.u32 %v1904_v37, 16  ;;  %v2017_v56 = vrot.slane %v2015_v35, 4  ;;  %v2511_v5 = vshrl.u32 %v2401_v17, 16  ;;  %v5026_v47 = vadd.f32 %v7952_v54, %v7658_v10 }
 0x1ad   : > { %v5112_v34 = vadd.f32 %v5111_v8, %v5023_v9  ;;  %v3022_v55 = vor.u32 %v3021_v6, %v3018_v33  ;;  %v3032_v9 = vor.u32 %v3031_v16, %v3027_v59  ;;  %v2020_v30 = vrot.slane %v2018_v2, 5  ;;  %v2400_v27 = vld [vmem:[#allocation2 + $0x50] sm:$0x8]  ;;  %v2402_v54 = vld [vmem:[#allocation2 + $0x58] sm:$0xf] }
 0x1ae   : > { %v5200_v20 = vpop.f32.mrf.mxu3  ;;  %v2026_v49 = vrot.slane %v2024_v42, 5  ;;  %v2030_v6 = vrot.slane %v2028_v44, 4  ;;  %v6101_v35 = vld [vmem:[#allocation3 + $0x60] sm:$0xf]  ;;  %v6923_v2 = vld [vmem:[#allocation3 + $0x80] sm:$0xf0] }
 0x1af   : > { %v5201_v18 = vadd.f32 %v5200_v20, %v5112_v34  ;;  %v3023_v8 = vrot.slane %v3022_v55, 4  ;;  %v3033_v22 = vrot.slane %v3032_v9, 4  ;;  %v1905_v34 = vld [vmem:[#allocation2 + $0x4c] sm:$0x1]  ;;  %v2928_v55 = vld [vmem:[#allocation2 + $0x54] sm:$0xf] }
 0x1b0   : > { %v2034_v10 = vshll.u32 %v1905_v34, 16  ;;  %v2031_v14 = vor.u32 %v2030_v6, %v2026_v49  ;;  %v2520_v42 = vshrl.u32 %v2402_v54, 16  ;;  %v2861_v44 = vld [vmem:[#allocation2 + $0x54] sm:$0xf]  ;;  %v6919_v34 = vld [vmem:[#allocation3 + $0x64] sm:$0xf] }
 0x1b1   : > { %v5292_v57 = vpop.f32.mrf.mxu0  ;;  %5429 = vmatmul.bf16.vlgmr.msra.gmra.mxu2 %v6066_v29  ;;  %v7987_v41 = vadd.f32 %v5289_v21, %v5201_v18  ;;  %v3028_v50 = vsel %vm7558_vm5, %v3023_v8, %v3027_v59  ;;  %v2021_v21 = vor.u32 %v2020_v30, %v2017_v56  ;;  %v3038_v33 = vsel %vm7558_vm5, %v3033_v22, %v3037_v15  ;;  %v2929_v8 = vld [vmem:[#allocation2 + $0x58] sm:$0xf] }
 0x1b2   : > { %3387 = vst [vmem:[#allocation3 + $0xb0] sm:$0xf] %v3028_v50  ;;  %v2506_v18 = vshrl.u32 %v2400_v27, 16  ;;  %v2036_v37 = vrot.slane %v2034_v10, 5  ;;  %v2514_v59 = vshll.u32 %v2401_v17, 16  ;;  %v5028_v17 = vadd.f32 %v7978_v63, %v7677_v13 }
 0x1b3   : > { %5518 = vmatmul.bf16.vlgmr.msra.gmra.mxu3 %v6070_v25  ;;  %v7991_v52 = vpop.f32.mrf.mxu1  ;;  %3388 = vst [vmem:[#allocation3 + $0xd4] sm:$0xf] %v3038_v33  ;;  %v2022_v4 = vrot.slane %v2021_v21, 4  ;;  %v6109_v50 = vld [vmem:[#allocation3 + $0x68] sm:$0xf]  ;;  %v3040_v27 = vshrl.u32 %v2928_v55, 16 }
 0x1b4   : > { %5607 = vmatmul.bf16.vlgmr.msra.gmra.mxu0 %v6074_v43  ;;  %v5114_v29 = vpop.f32.mrf.mxu2  ;;  %v2513_v43 = vrot.slane %v2511_v5, 7  ;;  %v6026_v9 = vrot.slane %v2506_v18, 11  ;;  %v2862_v5 = vld [vmem:[#allocation2 + $0x58] sm:$0xf]  ;;  %2893 = vst [vmem:[#allocation3 + $0xf4] sm:$0xf] %v2861_v44 }
 0x1b5   : > { %v5115_v20 = vadd.f32 %v5114_v29, %v5026_v47  ;;  %v2027_v15 = vsel %vm7558_vm5, %v2022_v4, %v2026_v49  ;;  %v2523_v47 = vshll.u32 %v2402_v54, 16  ;;  %v6103_v29 = vld [vmem:[#allocation3 + $0x84] sm:$0xf0]  ;;  %v2522_v49 = vrot.slane %v2520_v42, 7  ;;  %2894 = vst [vmem:[#allocation3 + $0x118] sm:$0xf] %v2862_v5 }
 0x1b6   : > { %v5203_v25 = vpop.f32.mrf.mxu3  ;;  %5345 = vmatmul.bf16.gmra.mxu1 %v6098_v39  ;;  %v2032_v39 = vrot.slane %v2031_v14, 4  ;;  %2364 = vst [vmem:[#allocation3 + $0xec] sm:$0xf] %v2027_v15  ;;  %v2516_v30 = vor.u32 %v2514_v59, %v2513_v43  ;;  %v2518_v21 = vrot.slane %v2513_v43, 4  ;;  %v3043_v10 = vshll.u32 %v2928_v55, 16 }
 0x1b7   : > { %v5204_v16 = vadd.f32 %v5203_v25, %v5115_v20  ;;  %v3049_v54 = vshll.u32 %v2929_v8, 16  ;;  %v6924_v63 = vld [vmem:[#allocation3 + $0x88] sm:$0xf0]  ;;  %v2525_v25 = vor.u32 %v2523_v47, %v2522_v49  ;;  %v3042_v4 = vrot.slane %v3040_v27, 4  ;;  %v6131_v42 = vld [vmem:[#allocation3 + $0xc4] sm:$0xf0] }
 0x1b8   : > { %v2037_v33 = vsel %vm7558_vm5, %v2032_v39, %v2036_v37  ;;  %v2517_v6 = vsel %vm7270_vm2, %v6026_v9, %v2516_v30  ;;  %v3053_v18 = vshrl.u32 %v2929_v8, 16  ;;  %v3045_v14 = vrot.slane %v3043_v10, 5  ;;  %v6927_v37 = vld [vmem:[#allocation3 + $0xa4] sm:$0xf]  ;;  %v1906_v49 = vld [vmem:[#allocation2 + $0x54] sm:$0xf] }
 0x1b9   : > { %v5294_v56 = vpop.f32.mrf.mxu0  ;;  %v7999_v22 = vadd.f32 %v5292_v57, %v5204_v16  ;;  %v2930_v57 = vld [vmem:[#allocation2 + $0x5c] sm:$0x1]  ;;  %2365 = vst [vmem:[#allocation3 + $0x110] sm:$0xf] %v2037_v33  ;;  %v6102_v16 = vor.u32 %v6923_v2, %v6101_v35  ;;  %v3051_v59 = vrot.slane %v3049_v54, 5  ;;  %v2526_v9 = vsel %vm7270_vm2, %v2518_v21, %v2525_v25 }
 0x1ba   : > { %2829 = vst [vmem:[#allocation3 + $0xf0] sm:$0xf] %v2517_v6  ;;  %v3055_v44 = vrot.slane %v3053_v18, 4  ;;  %v3059_v55 = vshll.u32 %v2930_v57, 16  ;;  %v6106_v30 = vor.u32 %v6919_v34, %v6103_v29  ;;  %v6110_v5 = vor.u32 %v6924_v63, %v6109_v50  ;;  %v1907_v8 = vld [vmem:[#allocation2 + $0x58] sm:$0xf] }
 0x1bb   : > { %v8003_v20 = vpop.f32.mrf.mxu1  ;;  %2830 = vst [vmem:[#allocation3 + $0x114] sm:$0xf] %v2526_v9  ;;  %v3046_v47 = vor.u32 %v3045_v14, %v3042_v4  ;;  %v2039_v2 = vshrl.u32 %v1906_v49, 16  ;;  %v2042_v27 = vshll.u32 %v1906_v49, 16  ;;  %v2048_v10 = vshll.u32 %v1907_v8, 16 }
 0x1bc   : > { %v5116_v13 = vpop.f32.mrf.mxu2  ;;  %v3061_v35 = vrot.slane %v3059_v55, 5  ;;  %v2052_v54 = vshrl.u32 %v1907_v8, 16  ;;  %v6134_v21 = vor.u32 %v6927_v37, %v6131_v42  ;;  %v5031_v29 = vadd.f32 %v7991_v52, %v7689_v51  ;;  %v1908_v4 = vld [vmem:[#allocation2 + $0x5c] sm:$0x1]  ;;  %v2403_v52 = vld [vmem:[#allocation2 + $0x60] sm:$0x8] }
 0x1bd   : > { %v5117_v43 = vadd.f32 %v5116_v13, %v5028_v17  ;;  %v3056_v17 = vor.u32 %v3055_v44, %v3051_v59  ;;  %v3047_v6 = vrot.slane %v3046_v47, 4  ;;  %v2041_v25 = vrot.slane %v2039_v2, 4  ;;  %v2404_v42 = vld [vmem:[#allocation2 + $0x64] sm:$0xf]  ;;  %v6137_v49 = vld [vmem:[#allocation3 + $0xa8] sm:$0xf] }
 0x1be   : > { %v5205_v15 = vpop.f32.mrf.mxu3  ;;  %v2044_v34 = vrot.slane %v2042_v27, 5  ;;  %v2050_v18 = vrot.slane %v2048_v10, 5  ;;  %v2058_v14 = vshll.u32 %v1908_v4, 16  ;;  %v2528_v55 = vshrl.u32 %v2403_v52, 16  ;;  %v2931_v47 = vld [vmem:[#allocation2 + $0x64] sm:$0xf] }
 0x1bf   : > { %v5206_v39 = vadd.f32 %v5205_v15, %v5117_v43  ;;  %v3057_v57 = vrot.slane %v3056_v17, 4  ;;  %v3052_v63 = vsel %vm7558_vm5, %v3047_v6, %v3051_v59  ;;  %v2054_v43 = vrot.slane %v2052_v54, 4  ;;  %v2405_v59 = vld [vmem:[#allocation2 + $0x68] sm:$0xf]  ;;  %v6932_v8 = vld [vmem:[#allocation3 + $0xc8] sm:$0xf0] }
 0x1c0   : > { %3389 = vst [vmem:[#allocation3 + $0xf8] sm:$0xf] %v3052_v63  ;;  %v2045_v37 = vor.u32 %v2044_v34, %v2041_v25  ;;  %v2060_v44 = vrot.slane %v2058_v14, 5  ;;  %v2533_v17 = vshrl.u32 %v2404_v42, 16  ;;  %v2542_v2 = vshrl.u32 %v2405_v59, 16 }
 0x1c1   : > { %v5297_v33 = vpop.f32.mrf.mxu0  ;;  %5434 = vmatmul.bf16.gmra.mxu2 %v6102_v16  ;;  %v8011_v13 = vadd.f32 %v5294_v56, %v5206_v39  ;;  %v3062_v56 = vsel %vm7558_vm5, %v3057_v57, %v3061_v35  ;;  %v2055_v51 = vor.u32 %v2054_v43, %v2050_v18  ;;  %v2536_v35 = vshll.u32 %v2404_v42, 16  ;;  %v2863_v27 = vld [vmem:[#allocation2 + $0x64] sm:$0xf]  ;;  %v2932_v6 = vld [vmem:[#allocation2 + $0x68] sm:$0xf] }
 0x1c2   : > { %3390 = vst [vmem:[#allocation3 + $0x11c] sm:$0xf] %v3062_v56  ;;  %v2545_v57 = vshll.u32 %v2405_v59, 16  ;;  %v2864_v25 = vld [vmem:[#allocation2 + $0x68] sm:$0xf]  ;;  %v3064_v34 = vshrl.u32 %v2931_v47, 16  ;;  %v5033_v14 = vadd.f32 %v8003_v20, %v7703_v28 }
 0x1c3   : > { %5523 = vmatmul.bf16.gmra.mxu3 %v6106_v30  ;;  %v8015_v50 = vpop.f32.mrf.mxu1  ;;  %v2046_v30 = vrot.slane %v2045_v37, 4  ;;  %2895 = vst [vmem:[#allocation3 + $0x13c] sm:$0xf] %v2863_v27  ;;  %v6139_v63 = vld [vmem:[#allocation3 + $0xcc] sm:$0xf0]  ;;  %v6027_v4 = vrot.slane %v2528_v55, 11 }
 0x1c4   : > { %5612 = vmatmul.bf16.gmra.mxu0 %v6110_v5  ;;  %v5119_v16 = vpop.f32.mrf.mxu2  ;;  %v2056_v5 = vrot.slane %v2055_v51, 4  ;;  %v2535_v43 = vrot.slane %v2533_v17, 7  ;;  %v2933_v37 = vld [vmem:[#allocation2 + $0x6c] sm:$0x1]  ;;  %v3066_v51 = vrot.slane %v3064_v34, 4  ;;  %v3067_v52 = vshll.u32 %v2931_v47, 16 }
 0x1c5   : > { %v5120_v15 = vadd.f32 %v5119_v16, %v5031_v29  ;;  %v2051_v54 = vsel %vm7558_vm5, %v2046_v30, %v2050_v18  ;;  %v6928_v29 = vld [vmem:[#allocation3 + $0xac] sm:$0xf]  ;;  %v2544_v16 = vrot.slane %v2542_v2, 7  ;;  %2896 = vst [vmem:[#allocation3 + $0x160] sm:$0xf] %v2864_v25  ;;  %v3073_v2 = vshll.u32 %v2932_v6, 16 }
 0x1c6   : > { %v5208_v9 = vpop.f32.mrf.mxu3  ;;  %5350 = vmatmul.bf16.gmra.mxu1 %v6134_v21  ;;  %v2061_v21 = vsel %vm7558_vm5, %v2056_v5, %v2060_v44  ;;  %2366 = vst [vmem:[#allocation3 + $0x134] sm:$0xf] %v2051_v54  ;;  %v2538_v44 = vor.u32 %v2536_v35, %v2535_v43  ;;  %v2540_v59 = vrot.slane %v2535_v43, 4  ;;  %v6138_v5 = vor.u32 %v6932_v8, %v6137_v49  ;;  %v1909_v34 = vld [vmem:[#allocation2 + $0x64] sm:$0xf] }
 0x1c7   : > { %v5209_v39 = vadd.f32 %v5208_v9, %v5120_v15  ;;  %v6145_v15 = vld [vmem:[#allocation3 + $0xb0] sm:$0xf]  ;;  %2367 = vst [vmem:[#allocation3 + $0x158] sm:$0xf] %v2061_v21  ;;  %v6933_v9 = vld [vmem:[#allocation3 + $0xd0] sm:$0xf0]  ;;  %v2547_v30 = vor.u32 %v2545_v57, %v2544_v16  ;;  %v6142_v35 = vor.u32 %v6928_v29, %v6139_v63  ;;  %v5036_v63 = vadd.f32 %v8015_v50, %v7716_v62 }
 0x1c8   : > { %v3069_v17 = vrot.slane %v3067_v52, 5  ;;  %v2539_v20 = vsel %vm7270_vm2, %v6027_v4, %v2538_v44  ;;  %v3077_v47 = vshrl.u32 %v2932_v6, 16  ;;  %v3083_v54 = vshll.u32 %v2933_v37, 16  ;;  %v1910_v4 = vld [vmem:[#allocation2 + $0x68] sm:$0xf] }
 0x1c9   : > { %v5299_v10 = vpop.f32.mrf.mxu0  ;;  %v8025_v56 = vadd.f32 %v5297_v33, %v5209_v39  ;;  %v6936_v33 = vld [vmem:[#allocation3 + $0xec] sm:$0xf]  ;;  %v6167_v39 = vld [vmem:[#allocation3 + $0x10c] sm:$0xf0]  ;;  %v2548_v27 = vsel %vm7270_vm2, %v2540_v59, %v2547_v30  ;;  %2831 = vst [vmem:[#allocation3 + $0x138] sm:$0xf] %v2539_v20  ;;  %v6146_v49 = vor.u32 %v6933_v9, %v6145_v15 }
 0x1ca   : > { %v3070_v57 = vor.u32 %v3069_v17, %v3066_v51  ;;  %v3075_v25 = vrot.slane %v3073_v2, 5  ;;  %v6170_v8 = vor.u32 %v6936_v33, %v6167_v39  ;;  %2832 = vst [vmem:[#allocation3 + $0x15c] sm:$0xf] %v2548_v27  ;;  %v3079_v43 = vrot.slane %v3077_v47, 4  ;;  %v1911_v9 = vld [vmem:[#allocation2 + $0x6c] sm:$0x1] }
 0x1cb   : > { %v8029_v18 = vpop.f32.mrf.mxu1  ;;  %v3085_v52 = vrot.slane %v3083_v54, 5  ;;  %v2066_v37 = vshll.u32 %v1909_v34, 16  ;;  %v2072_v59 = vshll.u32 %v1910_v4, 16  ;;  %v2076_v29 = vshrl.u32 %v1910_v4, 16  ;;  %v2406_v33 = vld [vmem:[#allocation2 + $0x70] sm:$0x8] }
 0x1cc   : > { %v5121_v42 = vpop.f32.mrf.mxu2  ;;  %v3080_v6 = vor.u32 %v3079_v43, %v3075_v25  ;;  %v2407_v20 = vld [vmem:[#allocation2 + $0x74] sm:$0xf]  ;;  %v2408_v47 = vld [vmem:[#allocation2 + $0x78] sm:$0xf]  ;;  %v2550_v54 = vshrl.u32 %v2406_v33, 16 }
 0x1cd   : > { %v5122_v55 = vadd.f32 %v5121_v42, %v5033_v14  ;;  %v3071_v14 = vrot.slane %v3070_v57, 4  ;;  %v2063_v42 = vshrl.u32 %v1909_v34, 16  ;;  %v2074_v17 = vrot.slane %v2072_v59, 5  ;;  %v6173_v57 = vld [vmem:[#allocation3 + $0xf0] sm:$0xf] }
 0x1ce   : > { %v5210_v28 = vpop.f32.mrf.mxu3  ;;  %v2078_v2 = vrot.slane %v2076_v29, 4  ;;  %v2558_v43 = vshll.u32 %v2407_v20, 16  ;;  %v6028_v4 = vrot.slane %v2550_v54, 11  ;;  %v6175_v59 = vld [vmem:[#allocation3 + $0x114] sm:$0xf0] }
 0x1cf   : > { %v5211_v21 = vadd.f32 %v5210_v28, %v5122_v55  ;;  %v3076_v51 = vsel %vm7558_vm5, %v3071_v14, %v3075_v25  ;;  %v2065_v30 = vrot.slane %v2063_v42, 4  ;;  %v2082_v28 = vshll.u32 %v1911_v9, 16  ;;  %v6941_v25 = vld [vmem:[#allocation3 + $0x110] sm:$0xf0]  ;;  %v8045_v29 = vld [vmem:[#allocation3 + $0xf8] sm:$0xf] }
 0x1d0   : > { %3391 = vst [vmem:[#allocation3 + $0x140] sm:$0xf] %v3076_v51  ;;  %v2079_v34 = vor.u32 %v2078_v2, %v2074_v17  ;;  %v2564_v51 = vshrl.u32 %v2408_v47, 16  ;;  %v2567_v9 = vshll.u32 %v2408_v47, 16  ;;  %v2934_v2 = vld [vmem:[#allocation2 + $0x74] sm:$0xf] }
 0x1d1   : > { %v5302_v16 = vpop.f32.mrf.mxu0  ;;  %5439 = vmatmul.bf16.gmra.mxu2 %v6138_v5  ;;  %v8035_v44 = vadd.f32 %v5299_v10, %v5211_v21  ;;  %v3081_v5 = vrot.slane %v3080_v6, 4  ;;  %v2068_v10 = vrot.slane %v2066_v37, 5  ;;  %v2555_v21 = vshrl.u32 %v2407_v20, 16  ;;  %v2865_v6 = vld [vmem:[#allocation2 + $0x74] sm:$0xf] }
 0x1d2   : > { %2897 = vst [vmem:[#allocation3 + $0x184] sm:$0xf] %v2865_v6  ;;  %v2935_v47 = vld [vmem:[#allocation2 + $0x78] sm:$0xf] }
 0x1d3   : > { %5528 = vmatmul.bf16.gmra.mxu3 %v6142_v35  ;;  %v8039_v15 = vpop.f32.mrf.mxu1  ;;  %v3086_v50 = vsel %vm7558_vm5, %v3081_v5, %v3085_v52  ;;  %v2069_v27 = vor.u32 %v2068_v10, %v2065_v30  ;;  %v2557_v42 = vrot.slane %v2555_v21, 7  ;;  %v8047_v52 = vld [vmem:[#allocation3 + $0x118] sm:$0xf0]  ;;  %v8053_v5 = vld [vmem:[#allocation3 + $0x134] sm:$0xf]  ;;  %v3097_v6 = vshll.u32 %v2935_v47, 16 }
 0x1d4   : > { %5617 = vmatmul.bf16.gmra.mxu0 %v6146_v49  ;;  %v5124_v55 = vpop.f32.mrf.mxu2  ;;  %3392 = vst [vmem:[#allocation3 + $0x164] sm:$0xf] %v3086_v50  ;;  %v2084_v49 = vrot.slane %v2082_v28, 5  ;;  %v3088_v50 = vshrl.u32 %v2934_v2, 16 }
 0x1d5   : > { %v5125_v39 = vadd.f32 %v5124_v55, %v5036_v63  ;;  %v2070_v14 = vrot.slane %v2069_v27, 4  ;;  %v2080_v63 = vrot.slane %v2079_v34, 4  ;;  %v5038_v55 = vadd.f32 %v8029_v18, %v7739_v11  ;;  %v6203_v18 = vld [vmem:[#allocation3 + $0x154] sm:$0xf0] }
 0x1d6   : > { %v5213_v62 = vpop.f32.mrf.mxu3  ;;  %5355 = vmatmul.bf16.gmra.mxu1 %v6170_v8  ;;  %v6937_v8 = vld [vmem:[#allocation3 + $0xf4] sm:$0xf]  ;;  %v2560_v33 = vor.u32 %v2558_v43, %v2557_v42  ;;  %v6174_v11 = vor.u32 %v6941_v25, %v6173_v57  ;;  %v3090_v34 = vrot.slane %v3088_v50, 4  ;;  %v3091_v43 = vshll.u32 %v2934_v2, 16 }
 0x1d7   : > { %v5214_v35 = vadd.f32 %v5213_v62, %v5125_v39  ;;  %v2075_v10 = vsel %vm7558_vm5, %v2070_v14, %v2074_v17  ;;  %v2866_v39 = vld [vmem:[#allocation2 + $0x78] sm:$0xf]  ;;  %v2085_v20 = vsel %vm7558_vm5, %v2080_v63, %v2084_v49  ;;  %v2566_v62 = vrot.slane %v2564_v51, 7 }
 0x1d8   : > { %2368 = vst [vmem:[#allocation3 + $0x17c] sm:$0xf] %v2075_v10  ;;  %v2561_v17 = vsel %vm7270_vm2, %v6028_v4, %v2560_v33  ;;  %v6178_v49 = vor.u32 %v6937_v8, %v6175_v59  ;;  %v3101_v57 = vshrl.u32 %v2935_v47, 16  ;;  %v6206_v63 = vor.u32 %v8053_v5, %v6203_v18  ;;  %v1914_v47 = vld [vmem:[#allocation2 + $0x7c] sm:$0x1] }
 0x1d9   : > { %v5304_v37 = vpop.f32.mrf.mxu0  ;;  %v8049_v30 = vadd.f32 %v5302_v16, %v5214_v35  ;;  %v2562_v16 = vrot.slane %v2557_v42, 4  ;;  %2369 = vst [vmem:[#allocation3 + $0x1a0] sm:$0xf] %v2085_v20  ;;  %v2569_v21 = vor.u32 %v2567_v9, %v2566_v62  ;;  %v2936_v35 = vld [vmem:[#allocation2 + $0x7c] sm:$0x1]  ;;  %v6182_v42 = vor.u32 %v8047_v52, %v8045_v29 }
 0x1da   : > { %2833 = vst [vmem:[#allocation3 + $0x180] sm:$0xf] %v2561_v17  ;;  %v3093_v51 = vrot.slane %v3091_v43, 5  ;;  %v1912_v9 = vld [vmem:[#allocation2 + $0x74] sm:$0xf]  ;;  %v3099_v10 = vrot.slane %v3097_v6, 5 }
 0x1db   : > { %v8057_v28 = vpop.f32.mrf.mxu1  ;;  %2898 = vst [vmem:[#allocation3 + $0x1a8] sm:$0xf] %v2866_v39  ;;  %v2570_v4 = vsel %vm7270_vm2, %v2562_v16, %v2569_v21  ;;  %v3103_v33 = vrot.slane %v3101_v57, 4  ;;  %v3107_v2 = vshll.u32 %v2936_v35, 16  ;;  %v2087_v8 = vshrl.u32 %v1912_v9, 16 }
 0x1dc   : > { %v5126_v27 = vpop.f32.mrf.mxu2  ;;  %2834 = vst [vmem:[#allocation3 + $0x1a4] sm:$0xf] %v2570_v4  ;;  %v3094_v29 = vor.u32 %v3093_v51, %v3090_v34  ;;  %v2090_v52 = vshll.u32 %v1912_v9, 16  ;;  %v5041_v16 = vadd.f32 %v8039_v15, %v7747_v38  ;;  %v2409_v34 = vld [vmem:[#allocation2 + $0x80] sm:$0x8]  ;;  %v2106_v15 = vshll.u32 %v1914_v47, 16 }
 0x1dd   : > { %v5127_v54 = vadd.f32 %v5126_v27, %v5038_v55  ;;  %v1913_v55 = vld [vmem:[#allocation2 + $0x78] sm:$0xf]  ;;  %v3104_v62 = vor.u32 %v3103_v33, %v3099_v10  ;;  %v3109_v50 = vrot.slane %v3107_v2, 5  ;;  %v2089_v5 = vrot.slane %v2087_v8, 4  ;;  %v2410_v43 = vld [vmem:[#allocation2 + $0x84] sm:$0xf] }
 0x1de   : > { %v5215_v14 = vpop.f32.mrf.mxu3  ;;  %v2096_v39 = vshll.u32 %v1913_v55, 16  ;;  %v2100_v20 = vshrl.u32 %v1913_v55, 16  ;;  %v3095_v17 = vrot.slane %v3094_v29, 4  ;;  %v8078_v51 = vld [vmem:[#allocation3 + $0x138] sm:$0xf]  ;;  %v2108_v8 = vrot.slane %v2106_v15, 5 }
 0x1df   : > { %v5216_v25 = vadd.f32 %v5215_v14, %v5127_v54  ;;  %v2092_v54 = vrot.slane %v2090_v52, 5  ;;  %v3105_v21 = vrot.slane %v3104_v62, 4  ;;  %v8080_v9 = vld [vmem:[#allocation3 + $0x158] sm:$0xf0]  ;;  %v2937_v2 = vld [vmem:[#allocation2 + $0x84] sm:$0xf] }
 0x1e0   : > { %v2098_v35 = vrot.slane %v2096_v39, 5  ;;  %v2102_v57 = vrot.slane %v2100_v20, 4  ;;  %v2867_v52 = vld [vmem:[#allocation2 + $0x84] sm:$0xf]  ;;  %v8082_v20 = vld [vmem:[#allocation3 + $0x13c] sm:$0xf] }
 0x1e1   : > { %v5307_v59 = vpop.f32.mrf.mxu0  ;;  %5444 = vmatmul.bf16.gmra.mxu2 %v6174_v11  ;;  %v8068_v27 = vadd.f32 %v5304_v37, %v5216_v25  ;;  %v3100_v37 = vsel %vm7558_vm5, %v3095_v17, %v3099_v10  ;;  %v2093_v6 = vor.u32 %v2092_v54, %v2089_v5  ;;  %v3110_v38 = vsel %vm7558_vm5, %v3105_v21, %v3109_v50  ;;  %v6211_v62 = vld [vmem:[#allocation3 + $0x15c] sm:$0xf0]  ;;  %v8086_v5 = vld [vmem:[#allocation3 + $0x160] sm:$0xf0] }
 0x1e2   : > { %3393 = vst [vmem:[#allocation3 + $0x188] sm:$0xf] %v3100_v37  ;;  %v2103_v33 = vor.u32 %v2102_v57, %v2098_v35  ;;  %v2577_v10 = vshrl.u32 %v2410_v43, 16  ;;  %v8084_v50 = vld [vmem:[#allocation3 + $0x140] sm:$0xf]  ;;  %v5043_v21 = vadd.f32 %v8057_v28, %v7762_v31  ;;  %v3112_v37 = vshrl.u32 %v2937_v2, 16 }
 0x1e3   : > { %5533 = vmatmul.bf16.gmra.mxu3 %v6178_v49  ;;  %v8072_v18 = vpop.f32.mrf.mxu1  ;;  %v2411_v49 = vld [vmem:[#allocation2 + $0x88] sm:$0xf]  ;;  %3394 = vst [vmem:[#allocation3 + $0x1ac] sm:$0xf] %v3110_v38  ;;  %v2094_v55 = vrot.slane %v2093_v6, 4  ;;  %v6210_v28 = vor.u32 %v8080_v9, %v8078_v51 }
 0x1e4   : > { %5622 = vmatmul.bf16.gmra.mxu0 %v6182_v42  ;;  %v5129_v11 = vpop.f32.mrf.mxu2  ;;  %v2572_v42 = vshrl.u32 %v2409_v34, 16  ;;  %v2104_v17 = vrot.slane %v2103_v33, 4  ;;  %v2579_v47 = vrot.slane %v2577_v10, 7  ;;  %v2586_v54 = vshrl.u32 %v2411_v49, 16  ;;  %v8092_v34 = vld [vmem:[#allocation3 + $0x17c] sm:$0xf] }
 0x1e5   : > { %v5130_v14 = vadd.f32 %v5129_v11, %v5041_v16  ;;  %v2099_v16 = vsel %vm7558_vm5, %v2094_v55, %v2098_v35  ;;  %v2868_v11 = vld [vmem:[#allocation2 + $0x88] sm:$0xf]  ;;  %2899 = vst [vmem:[#allocation3 + $0x1cc] sm:$0xf] %v2867_v52  ;;  %v3115_v55 = vshll.u32 %v2937_v2, 16  ;;  %v6218_v52 = vor.u32 %v8086_v5, %v8084_v50 }
 0x1e6   : > { %v5218_v25 = vpop.f32.mrf.mxu3  ;;  %5360 = vmatmul.bf16.gmra.mxu1 %v6206_v63  ;;  %v6029_v29 = vrot.slane %v2572_v42, 11  ;;  %v2580_v63 = vshll.u32 %v2410_v43, 16  ;;  %2370 = vst [vmem:[#allocation3 + $0x1c4] sm:$0xf] %v2099_v16  ;;  %v2589_v43 = vshll.u32 %v2411_v49, 16  ;;  %v2109_v35 = vsel %vm7558_vm5, %v2104_v17, %v2108_v8 }
 0x1e7   : > { %v5219_v4 = vadd.f32 %v5218_v25, %v5130_v14  ;;  %v2938_v14 = vld [vmem:[#allocation2 + $0x88] sm:$0xf]  ;;  %v8098_v25 = vld [vmem:[#allocation3 + $0x19c] sm:$0xf0]  ;;  %v2584_v15 = vrot.slane %v2579_v47, 4  ;;  %v2588_v42 = vrot.slane %v2586_v54, 7  ;;  %v6214_v17 = vor.u32 %v8082_v20, %v6211_v62 }
 0x1e8   : > { %v2582_v38 = vor.u32 %v2580_v63, %v2579_v47  ;;  %2371 = vst [vmem:[#allocation3 + $0x1e8] sm:$0xf] %v2109_v35  ;;  %v3114_v49 = vrot.slane %v3112_v37, 4  ;;  %v2939_v16 = vld [vmem:[#allocation2 + $0x8c] sm:$0x1]  ;;  %v3125_v8 = vshrl.u32 %v2938_v14, 16  ;;  %v6242_v2 = vor.u32 %v8092_v34, %v8098_v25 }
 0x1e9   : > { %v5309_v39 = vpop.f32.mrf.mxu0  ;;  %v8094_v6 = vadd.f32 %v5307_v59, %v5219_v4  ;;  %v3121_v59 = vshll.u32 %v2938_v14, 16  ;;  %v2591_v10 = vor.u32 %v2589_v43, %v2588_v42  ;;  %2900 = vst [vmem:[#allocation3 + $0x1f0] sm:$0xf] %v2868_v11  ;;  %v3117_v51 = vrot.slane %v3115_v55, 5  ;;  %v1915_v11 = vld [vmem:[#allocation2 + $0x84] sm:$0xf] }
 0x1ea   : > { %v2583_v33 = vsel %vm7270_vm2, %v6029_v29, %v2582_v38  ;;  %v3127_v54 = vrot.slane %v3125_v8, 4  ;;  %v3131_v14 = vshll.u32 %v2939_v16, 16  ;;  %v2111_v20 = vshrl.u32 %v1915_v11, 16  ;;  %v2412_v16 = vld [vmem:[#allocation2 + $0x90] sm:$0x8] }
 0x1eb   : > { %v8096_v57 = vpop.f32.mrf.mxu1  ;;  %2835 = vst [vmem:[#allocation3 + $0x1c8] sm:$0xf] %v2583_v33  ;;  %v3123_v9 = vrot.slane %v3121_v59, 5  ;;  %v2592_v29 = vsel %vm7270_vm2, %v2584_v15, %v2591_v10  ;;  %v3118_v43 = vor.u32 %v3117_v51, %v3114_v49  ;;  %v2114_v62 = vshll.u32 %v1915_v11, 16  ;;  %v1917_v59 = vld [vmem:[#allocation2 + $0x8c] sm:$0x1] }
 0x1ec   : > { %v5131_v31 = vpop.f32.mrf.mxu2  ;;  %2836 = vst [vmem:[#allocation3 + $0x1ec] sm:$0xf] %v2592_v29  ;;  %v3133_v34 = vrot.slane %v3131_v14, 5  ;;  %v2113_v25 = vrot.slane %v2111_v20, 4  ;;  %v5046_v15 = vadd.f32 %v8072_v18, %v7663_v48  ;;  %v2413_v33 = vld [vmem:[#allocation2 + $0x94] sm:$0xf] }
 0x1ed   : > { %v5132_v4 = vadd.f32 %v5131_v31, %v5043_v21  ;;  %v1916_v21 = vld [vmem:[#allocation2 + $0x88] sm:$0xf]  ;;  %v3128_v50 = vor.u32 %v3127_v54, %v3123_v9  ;;  %v3119_v42 = vrot.slane %v3118_v43, 4  ;;  %v2116_v31 = vrot.slane %v2114_v62, 5  ;;  %v2414_v8 = vld [vmem:[#allocation2 + $0x98] sm:$0xf] }
 0x1ee   : > { %v5220_v63 = vpop.f32.mrf.mxu3  ;;  %v2120_v5 = vshll.u32 %v1916_v21, 16  ;;  %v2124_v35 = vshrl.u32 %v1916_v21, 16  ;;  %v2594_v29 = vshrl.u32 %v2412_v16, 16  ;;  %v6245_v11 = vld [vmem:[#allocation3 + $0x180] sm:$0xf]  ;;  %v2602_v43 = vshll.u32 %v2413_v33, 16 }
 0x1ef   : > { %v5221_v47 = vadd.f32 %v5220_v63, %v5132_v4  ;;  %v3129_v49 = vrot.slane %v3128_v50, 4  ;;  %v2117_v10 = vor.u32 %v2116_v31, %v2113_v25  ;;  %v6959_v21 = vld [vmem:[#allocation3 + $0x1a0] sm:$0xf0]  ;;  %v2608_v14 = vshrl.u32 %v2414_v8, 16  ;;  %v2940_v20 = vld [vmem:[#allocation2 + $0x94] sm:$0xf] }
 0x1f0   : > { %v2122_v4 = vrot.slane %v2120_v5, 5  ;;  %v2126_v48 = vrot.slane %v2124_v35, 4  ;;  %v6030_v5 = vrot.slane %v2594_v29, 11  ;;  %v2869_v35 = vld [vmem:[#allocation2 + $0x94] sm:$0xf] }
 0x1f1   : > { %v5312_v37 = vpop.f32.mrf.mxu0  ;;  %5449 = vmatmul.bf16.gmra.mxu2 %v6210_v28  ;;  %v8113_v38 = vadd.f32 %v5309_v39, %v5221_v47  ;;  %v3124_v39 = vsel %vm7558_vm5, %v3119_v42, %v3123_v9  ;;  %v3134_v51 = vsel %vm7558_vm5, %v3129_v49, %v3133_v34  ;;  %v2130_v47 = vshll.u32 %v1917_v59, 16  ;;  %v2870_v42 = vld [vmem:[#allocation2 + $0x98] sm:$0xf]  ;;  %v6955_v34 = vld [vmem:[#allocation3 + $0x184] sm:$0xf] }
 0x1f2   : > { %3395 = vst [vmem:[#allocation3 + $0x1d0] sm:$0xf] %v3124_v39  ;;  %v2127_v9 = vor.u32 %v2126_v48, %v2122_v4  ;;  %v6247_v25 = vld [vmem:[#allocation3 + $0x1a4] sm:$0xf0]  ;;  %v2610_v49 = vrot.slane %v2608_v14, 7  ;;  %v2611_v59 = vshll.u32 %v2414_v8, 16  ;;  %v6246_v8 = vor.u32 %v6959_v21, %v6245_v11 }
 0x1f3   : > { %5538 = vmatmul.bf16.gmra.mxu3 %v6214_v17  ;;  %v8117_v55 = vpop.f32.mrf.mxu1  ;;  %3396 = vst [vmem:[#allocation3 + $0x1f4] sm:$0xf] %v3134_v51  ;;  %v2118_v17 = vrot.slane %v2117_v10, 4  ;;  %v2132_v50 = vrot.slane %v2130_v47, 5  ;;  %v2941_v39 = vld [vmem:[#allocation2 + $0x98] sm:$0xf] }
 0x1f4   : > { %5627 = vmatmul.bf16.gmra.mxu0 %v6218_v52  ;;  %v5134_v28 = vpop.f32.mrf.mxu2  ;;  %v2599_v52 = vshrl.u32 %v2413_v33, 16  ;;  %v2128_v31 = vrot.slane %v2127_v9, 4  ;;  %v5048_v33 = vadd.f32 %v8096_v57, %v7681_v24  ;;  %2901 = vst [vmem:[#allocation3 + $0x214] sm:$0xf] %v2869_v35  ;;  %v2942_v47 = vld [vmem:[#allocation2 + $0x9c] sm:$0x1] }
 0x1f5   : > { %v5135_v63 = vadd.f32 %v5134_v28, %v5046_v15  ;;  %v2123_v62 = vsel %vm7558_vm5, %v2118_v17, %v2122_v4  ;;  %v6253_v28 = vld [vmem:[#allocation3 + $0x188] sm:$0xf]  ;;  %v6960_v4 = vld [vmem:[#allocation3 + $0x1a8] sm:$0xf0]  ;;  %2902 = vst [vmem:[#allocation3 + $0x238] sm:$0xf] %v2870_v42 }
 0x1f6   : > { %v5223_v18 = vpop.f32.mrf.mxu3  ;;  %5365 = vmatmul.bf16.gmra.mxu1 %v6242_v2  ;;  %2372 = vst [vmem:[#allocation3 + $0x20c] sm:$0xf] %v2123_v62  ;;  %v2601_v15 = vrot.slane %v2599_v52, 7  ;;  %v3136_v24 = vshrl.u32 %v2940_v20, 16  ;;  %v3139_v57 = vshll.u32 %v2940_v20, 16  ;;  %v3145_v14 = vshll.u32 %v2941_v39, 16 }
 0x1f7   : > { %v5224_v54 = vadd.f32 %v5223_v18, %v5135_v63  ;;  %v2133_v63 = vsel %vm7558_vm5, %v2128_v31, %v2132_v50  ;;  %v2613_v18 = vor.u32 %v2611_v59, %v2610_v49  ;;  %v6963_v52 = vld [vmem:[#allocation3 + $0x1c4] sm:$0xf]  ;;  %v6250_v62 = vor.u32 %v6955_v34, %v6247_v25 }
 0x1f8   : > { %v2604_v51 = vor.u32 %v2602_v43, %v2601_v15  ;;  %v2606_v48 = vrot.slane %v2601_v15, 4  ;;  %2373 = vst [vmem:[#allocation3 + $0x230] sm:$0xf] %v2133_v63  ;;  %v3138_v50 = vrot.slane %v3136_v24, 4  ;;  %v3141_v35 = vrot.slane %v3139_v57, 5 }
 0x1f9   : > { %v5314_v2 = vpop.f32.mrf.mxu0  ;;  %v8127_v10 = vadd.f32 %v5312_v37, %v5224_v54  ;;  %v6275_v37 = vld [vmem:[#allocation3 + $0x1e4] sm:$0xf0]  ;;  %v3149_v11 = vshrl.u32 %v2941_v39, 16  ;;  %v6254_v42 = vor.u32 %v6960_v4, %v6253_v28  ;;  %v3147_v20 = vrot.slane %v3145_v14, 5  ;;  %v1918_v15 = vld [vmem:[#allocation2 + $0x94] sm:$0xf] }
 0x1fa   : > { %v2605_v54 = vsel %vm7270_vm2, %v6030_v5, %v2604_v51  ;;  %v2614_v9 = vsel %vm7270_vm2, %v2606_v48, %v2613_v18  ;;  %v3155_v31 = vshll.u32 %v2942_v47, 16  ;;  %v6278_v49 = vor.u32 %v6963_v52, %v6275_v37  ;;  %v1919_v5 = vld [vmem:[#allocation2 + $0x98] sm:$0xf]  ;;  %v1920_v47 = vld [vmem:[#allocation2 + $0x9c] sm:$0x1] }
 0x1fb   : > { %v8129_v16 = vpop.f32.mrf.mxu1  ;;  %2837 = vst [vmem:[#allocation3 + $0x210] sm:$0xf] %v2605_v54  ;;  %v3142_v59 = vor.u32 %v3141_v35, %v3138_v50  ;;  %v2135_v63 = vshrl.u32 %v1918_v15, 16  ;;  %v2138_v18 = vshll.u32 %v1918_v15, 16  ;;  %v2144_v34 = vshll.u32 %v1919_v5, 16 }
 0x1fc   : > { %v5136_v17 = vpop.f32.mrf.mxu2  ;;  %2838 = vst [vmem:[#allocation3 + $0x234] sm:$0xf] %v2614_v9  ;;  %v3157_v48 = vrot.slane %v3155_v31, 5  ;;  %v2148_v25 = vshrl.u32 %v1919_v5, 16  ;;  %v5051_v28 = vadd.f32 %v8117_v55, %v7693_v60  ;;  %v2416_v37 = vld [vmem:[#allocation2 + $0xa4] sm:$0xf] }
 0x1fd   : > { %v5137_v29 = vadd.f32 %v5136_v17, %v5048_v33  ;;  %v3151_v33 = vrot.slane %v3149_v11, 4  ;;  %v3143_v17 = vrot.slane %v3142_v59, 4  ;;  %v2137_v39 = vrot.slane %v2135_v63, 4  ;;  %v2415_v14 = vld [vmem:[#allocation2 + $0xa0] sm:$0x8] }
 0x1fe   : > { %v5225_v43 = vpop.f32.mrf.mxu3  ;;  %v2146_v52 = vrot.slane %v2144_v34, 5  ;;  %v2150_v50 = vrot.slane %v2148_v25, 4  ;;  %v2154_v35 = vshll.u32 %v1920_v47, 16  ;;  %v2417_v60 = vld [vmem:[#allocation2 + $0xa8] sm:$0xf]  ;;  %v2616_v11 = vshrl.u32 %v2415_v14, 16 }
 0x1ff   : > { %v5226_v21 = vadd.f32 %v5225_v43, %v5137_v29  ;;  %v3152_v24 = vor.u32 %v3151_v33, %v3147_v20  ;;  %v2140_v29 = vrot.slane %v2138_v18, 5  ;;  %v3148_v54 = vsel %vm7558_vm5, %v3143_v17, %v3147_v20  ;;  %v6281_v15 = vld [vmem:[#allocation3 + $0x1c8] sm:$0xf]  ;;  %v6968_v59 = vld [vmem:[#allocation3 + $0x1e8] sm:$0xf0] }
 0x200   : > { %3397 = vst [vmem:[#allocation3 + $0x218] sm:$0xf] %v3148_v54  ;;  %v2151_v33 = vor.u32 %v2150_v50, %v2146_v52  ;;  %v2943_v5 = vld [vmem:[#allocation2 + $0xa4] sm:$0xf]  ;;  %v2156_v63 = vrot.slane %v2154_v35, 5  ;;  %v6031_v18 = vrot.slane %v2616_v11, 11 }
 0x201   : > { %v5317_v51 = vpop.f32.mrf.mxu0  ;;  %5454 = vmatmul.bf16.gmra.mxu2 %v6246_v8  ;;  %v8137_v57 = vadd.f32 %v5314_v2, %v5226_v21  ;;  %v3153_v9 = vrot.slane %v3152_v24, 4  ;;  %v2141_v2 = vor.u32 %v2140_v29, %v2137_v39  ;;  %v2621_v21 = vshrl.u32 %v2416_v37, 16  ;;  %v2871_v17 = vld [vmem:[#allocation2 + $0xa4] sm:$0xf]  ;;  %v6964_v29 = vld [vmem:[#allocation3 + $0x1cc] sm:$0xf] }
 0x202   : > { %v2630_v25 = vshrl.u32 %v2417_v60, 16  ;;  %v2633_v39 = vshll.u32 %v2417_v60, 16  ;;  %2903 = vst [vmem:[#allocation3 + $0x25c] sm:$0xf] %v2871_v17  ;;  %v2944_v14 = vld [vmem:[#allocation2 + $0xa8] sm:$0xf] }
 0x203   : > { %5543 = vmatmul.bf16.gmra.mxu3 %v6250_v62  ;;  %v8141_v4 = vpop.f32.mrf.mxu1  ;;  %v3158_v62 = vsel %vm7558_vm5, %v3153_v9, %v3157_v48  ;;  %v2142_v20 = vrot.slane %v2141_v2, 4  ;;  %v2623_v34 = vrot.slane %v2621_v21, 7  ;;  %v2152_v48 = vrot.slane %v2151_v33, 4  ;;  %v6289_v2 = vld [vmem:[#allocation3 + $0x1d0] sm:$0xf] }
 0x204   : > { %5632 = vmatmul.bf16.gmra.mxu0 %v6254_v42  ;;  %v5139_v8 = vpop.f32.mrf.mxu2  ;;  %v2624_v42 = vshll.u32 %v2416_v37, 16  ;;  %3398 = vst [vmem:[#allocation3 + $0x23c] sm:$0xf] %v3158_v62  ;;  %v6283_v37 = vld [vmem:[#allocation3 + $0x1ec] sm:$0xf0]  ;;  %v2632_v9 = vrot.slane %v2630_v25, 7  ;;  %v6282_v62 = vor.u32 %v6968_v59, %v6281_v15 }
 0x205   : > { %v5140_v43 = vadd.f32 %v5139_v8, %v5051_v28  ;;  %v2872_v28 = vld [vmem:[#allocation2 + $0xa8] sm:$0xf]  ;;  %v2628_v54 = vrot.slane %v2623_v34, 4  ;;  %v2945_v35 = vld [vmem:[#allocation2 + $0xac] sm:$0x1]  ;;  %v3163_v60 = vshll.u32 %v2943_v5, 16 }
 0x206   : > { %v5228_v55 = vpop.f32.mrf.mxu3  ;;  %5370 = vmatmul.bf16.gmra.mxu1 %v6278_v49  ;;  %v2147_v49 = vsel %vm7558_vm5, %v2142_v20, %v2146_v52  ;;  %v2626_v8 = vor.u32 %v2624_v42, %v2623_v34  ;;  %v2157_v52 = vsel %vm7558_vm5, %v2152_v48, %v2156_v63  ;;  %2904 = vst [vmem:[#allocation3 + $0x280] sm:$0xf] %v2872_v28  ;;  %v6969_v11 = vld [vmem:[#allocation3 + $0x1f0] sm:$0xf0]  ;;  %v3173_v33 = vshrl.u32 %v2944_v14, 16 }
 0x207   : > { %v5229_v31 = vadd.f32 %v5228_v55, %v5140_v43  ;;  %2374 = vst [vmem:[#allocation3 + $0x254] sm:$0xf] %v2147_v49  ;;  %v5053_v43 = vadd.f32 %v8129_v16, %v7707_v36  ;;  %v2635_v42 = vor.u32 %v2633_v39, %v2632_v9  ;;  %v3165_v20 = vrot.slane %v3163_v60, 5  ;;  %v6972_v63 = vld [vmem:[#allocation3 + $0x20c] sm:$0xf] }
 0x208   : > { %2375 = vst [vmem:[#allocation3 + $0x278] sm:$0xf] %v2157_v52  ;;  %v2627_v21 = vsel %vm7270_vm2, %v6031_v18, %v2626_v8  ;;  %v6311_v25 = vld [vmem:[#allocation3 + $0x22c] sm:$0xf0]  ;;  %v3179_v15 = vshll.u32 %v2945_v35, 16  ;;  %v6286_v49 = vor.u32 %v6964_v29, %v6283_v37  ;;  %v3175_v18 = vrot.slane %v3173_v33, 4 }
 0x209   : > { %v5319_v24 = vpop.f32.mrf.mxu0  ;;  %v8149_v47 = vadd.f32 %v5317_v51, %v5229_v31  ;;  %v3160_v51 = vshrl.u32 %v2943_v5, 16  ;;  %v3169_v31 = vshll.u32 %v2944_v14, 16  ;;  %2839 = vst [vmem:[#allocation3 + $0x258] sm:$0xf] %v2627_v21  ;;  %v2636_v5 = vsel %vm7270_vm2, %v2628_v54, %v2635_v42  ;;  %v1921_v39 = vld [vmem:[#allocation2 + $0xa4] sm:$0xf] }
 0x20a   : > { %2840 = vst [vmem:[#allocation3 + $0x27c] sm:$0xf] %v2636_v5  ;;  %v6290_v28 = vor.u32 %v6969_v11, %v6289_v2  ;;  %v3181_v8 = vrot.slane %v3179_v15, 5  ;;  %v1922_v9 = vld [vmem:[#allocation2 + $0xa8] sm:$0xf]  ;;  %v2162_v60 = vshll.u32 %v1921_v39, 16  ;;  %v6314_v21 = vor.u32 %v6972_v63, %v6311_v25 }
 0x20b   : > { %8544 = vst [vmem:[#allocation11_spill] sm:$0xff] %v8149_v47  ;;  %v8153_v50 = vpop.f32.mrf.mxu1  ;;  %v3162_v16 = vrot.slane %v3160_v51, 4  ;;  %v3171_v17 = vrot.slane %v3169_v31, 5  ;;  %v2172_v42 = vshrl.u32 %v1922_v9, 16  ;;  %v5056_v29 = vadd.f32 %v8141_v4, %v7721_v12  ;;  %v2418_v63 = vld [vmem:[#allocation2 + $0xb0] sm:$0x8] }
 0x20c   : > { %v5141_v55 = vpop.f32.mrf.mxu2  ;;  %v2164_v31 = vrot.slane %v2162_v60, 5  ;;  %v2638_v15 = vshrl.u32 %v2418_v63, 16  ;;  %v6977_v60 = vld [vmem:[#allocation3 + $0x230] sm:$0xf0] }
 0x20d   : > { %v5142_v36 = vadd.f32 %v5141_v55, %v5053_v43  ;;  %v3166_v48 = vor.u32 %v3165_v20, %v3162_v16  ;;  %v2159_v43 = vshrl.u32 %v1921_v39, 16  ;;  %v3176_v51 = vor.u32 %v3175_v18, %v3171_v17  ;;  %v2946_v39 = vld [vmem:[#allocation2 + $0xb4] sm:$0xf] }
 0x20e   : > { %v5230_v34 = vpop.f32.mrf.mxu3  ;;  %v2168_v55 = vshll.u32 %v1922_v9, 16  ;;  %v2174_v33 = vrot.slane %v2172_v42, 4  ;;  %v1924_v47 = vld [vmem:[#allocation2 + $0xb4] sm:$0xf] }
 0x20f   : > { %v5231_v59 = vadd.f32 %v5230_v34, %v5142_v36  ;;  %v3167_v14 = vrot.slane %v3166_v48, 4  ;;  %v2161_v54 = vrot.slane %v2159_v43, 4  ;;  %v3177_v11 = vrot.slane %v3176_v51, 4  ;;  %v2419_v36 = vld [vmem:[#allocation2 + $0xb4] sm:$0xf] }
 0x210   : > { %v2170_v20 = vrot.slane %v2168_v55, 5  ;;  %v6032_v43 = vrot.slane %v2638_v15, 11  ;;  %v2646_v51 = vshll.u32 %v2419_v36, 16  ;;  %v6973_v55 = vld [vmem:[#allocation3 + $0x214] sm:$0xf] }
 0x211   : > { %v5322_v52 = vpop.f32.mrf.mxu0  ;;  %5459 = vmatmul.bf16.gmra.mxu2 %v6282_v62  ;;  %v8161_v35 = vadd.f32 %v5319_v24, %v5231_v59  ;;  %v3172_v2 = vsel %vm7558_vm5, %v3167_v14, %v3171_v17  ;;  %v1923_v62 = vld [vmem:[#allocation2 + $0xac] sm:$0x1]  ;;  %v3182_v34 = vsel %vm7558_vm5, %v3177_v11, %v3181_v8  ;;  %v2165_v12 = vor.u32 %v2164_v31, %v2161_v54  ;;  %v2420_v17 = vld [vmem:[#allocation2 + $0xb8] sm:$0xf] }
 0x212   : > { %3399 = vst [vmem:[#allocation3 + $0x260] sm:$0xf] %v3172_v2  ;;  %v2178_v4 = vshll.u32 %v1923_v62, 16  ;;  %v2175_v5 = vor.u32 %v2174_v33, %v2170_v20  ;;  %v2643_v59 = vshrl.u32 %v2419_v36, 16  ;;  %v6319_v54 = vld [vmem:[#allocation3 + $0x234] sm:$0xf0] }
 0x213   : > { %8545 = vst [vmem:[#allocation12_spill] sm:$0xff] %v8161_v35  ;;  %5548 = vmatmul.bf16.gmra.mxu3 %v6286_v49  ;;  %v8165_v37 = vpop.f32.mrf.mxu1  ;;  %v2166_v48 = vrot.slane %v2165_v12, 4  ;;  %v2652_v42 = vshrl.u32 %v2420_v17, 16  ;;  %v6325_v11 = vld [vmem:[#allocation3 + $0x218] sm:$0xf]  ;;  %v2655_v33 = vshll.u32 %v2420_v17, 16 }
 0x214   : > { %5637 = vmatmul.bf16.gmra.mxu0 %v6290_v28  ;;  %v5144_v16 = vpop.f32.mrf.mxu2  ;;  %3400 = vst [vmem:[#allocation3 + $0x284] sm:$0xf] %v3182_v34  ;;  %v2180_v18 = vrot.slane %v2178_v4, 5  ;;  %v6317_v28 = vld [vmem:[#allocation3 + $0x210] sm:$0xf]  ;;  %v2176_v9 = vrot.slane %v2175_v5, 4  ;;  %v5058_v34 = vadd.f32 %v8153_v50, %v7743_v0 }
 0x215   : > { %v5145_v24 = vadd.f32 %v5144_v16, %v5056_v29  ;;  %v2645_v14 = vrot.slane %v2643_v59, 7  ;;  %v2873_v29 = vld [vmem:[#allocation2 + $0xb4] sm:$0xf]  ;;  %v6978_v62 = vld [vmem:[#allocation3 + $0x238] sm:$0xf0] }
 0x216   : > { %v5233_v25 = vpop.f32.mrf.mxu3  ;;  %5375 = vmatmul.bf16.gmra.mxu1 %v6314_v21  ;;  %v2171_v21 = vsel %vm7558_vm5, %v2166_v48, %v2170_v20  ;;  %v2181_v31 = vsel %vm7558_vm5, %v2176_v9, %v2180_v18  ;;  %v2947_v36 = vld [vmem:[#allocation2 + $0xb8] sm:$0xf]  ;;  %v6981_v20 = vld [vmem:[#allocation3 + $0x254] sm:$0xf]  ;;  %2905 = vst [vmem:[#allocation3 + $0x2a4] sm:$0xf] %v2873_v29  ;;  %v6322_v9 = vor.u32 %v6973_v55, %v6319_v54 }
 0x217   : > { %v5234_v49 = vadd.f32 %v5233_v25, %v5145_v24  ;;  %2376 = vst [vmem:[#allocation3 + $0x29c] sm:$0xf] %v2171_v21  ;;  %v2648_v16 = vor.u32 %v2646_v51, %v2645_v14  ;;  %v3184_v24 = vshrl.u32 %v2946_v39, 16  ;;  %v2874_v4 = vld [vmem:[#allocation2 + $0xb8] sm:$0xf]  ;;  %v6318_v25 = vor.u32 %v6977_v60, %v6317_v28 }
 0x218   : > { %2377 = vst [vmem:[#allocation3 + $0x2c0] sm:$0xf] %v2181_v31  ;;  %v6347_v5 = vld [vmem:[#allocation3 + $0x274] sm:$0xf0]  ;;  %v2650_v59 = vrot.slane %v2645_v14, 4  ;;  %v3187_v18 = vshll.u32 %v2946_v39, 16  ;;  %v6326_v28 = vor.u32 %v6978_v62, %v6325_v11 }
 0x219   : > { %v5324_v8 = vpop.f32.mrf.mxu0  ;;  %v8173_v2 = vadd.f32 %v5322_v52, %v5234_v49  ;;  %v2948_v52 = vld [vmem:[#allocation2 + $0xbc] sm:$0x1]  ;;  %v2649_v15 = vsel %vm7270_vm2, %v6032_v43, %v2648_v16  ;;  %v2654_v49 = vrot.slane %v2652_v42, 7  ;;  %v3186_v48 = vrot.slane %v3184_v24, 4  ;;  %2906 = vst [vmem:[#allocation3 + $0x2c8] sm:$0xf] %v2874_v4 }
 0x21a   : > { %2841 = vst [vmem:[#allocation3 + $0x2a0] sm:$0xf] %v2649_v15  ;;  %v3193_v0 = vshll.u32 %v2947_v36, 16  ;;  %v3197_v21 = vshrl.u32 %v2947_v36, 16  ;;  %v3203_v31 = vshll.u32 %v2948_v52, 16  ;;  %v3189_v60 = vrot.slane %v3187_v18, 5 }
 0x21b   : > { %8546 = vst [vmem:[#allocation13_spill] sm:$0xff] %v8173_v2  ;;  %v8179_v12 = vpop.f32.mrf.mxu1  ;;  %v2657_v51 = vor.u32 %v2655_v33, %v2654_v49  ;;  %v1925_v43 = vld [vmem:[#allocation2 + $0xb8] sm:$0xf]  ;;  %v6350_v14 = vor.u32 %v6981_v20, %v6347_v5  ;;  %v2183_v16 = vshrl.u32 %v1924_v47, 16  ;;  %v2186_v54 = vshll.u32 %v1924_v47, 16 }
 0x21c   : > { %v5146_v63 = vpop.f32.mrf.mxu2  ;;  %v3195_v35 = vrot.slane %v3193_v0, 5  ;;  %v3199_v29 = vrot.slane %v3197_v21, 4  ;;  %v3190_v55 = vor.u32 %v3189_v60, %v3186_v48  ;;  %v2192_v33 = vshll.u32 %v1925_v43, 16  ;;  %v2421_v18 = vld [vmem:[#allocation2 + $0xc0] sm:$0x8] }
 0x21d   : > { %v5147_v17 = vadd.f32 %v5146_v63, %v5058_v34  ;;  %v2658_v42 = vsel %vm7270_vm2, %v2650_v59, %v2657_v51  ;;  %v3205_v11 = vrot.slane %v3203_v31, 5  ;;  %v2185_v62 = vrot.slane %v2183_v16, 4  ;;  %v1926_v63 = vld [vmem:[#allocation2 + $0xbc] sm:$0x1]  ;;  %v8195_v21 = vld [vmem:[#allocation3 + $0x258] sm:$0xf] }
 0x21e   : > { %v5235_v50 = vpop.f32.mrf.mxu3  ;;  %2842 = vst [vmem:[#allocation3 + $0x2c4] sm:$0xf] %v2658_v42  ;;  %v3200_v24 = vor.u32 %v3199_v29, %v3195_v35  ;;  %v2196_v34 = vshrl.u32 %v1925_v43, 16  ;;  %v5061_v20 = vadd.f32 %v8165_v37, %v7752_v53  ;;  %v3191_v52 = vrot.slane %v3190_v55, 4  ;;  %v8197_v55 = vld [vmem:[#allocation3 + $0x25c] sm:$0xf] }
 0x21f   : > { %v5236_v2 = vadd.f32 %v5235_v50, %v5147_v17  ;;  %v2188_v5 = vrot.slane %v2186_v54, 5  ;;  %v2194_v47 = vrot.slane %v2192_v33, 5  ;;  %v2202_v48 = vshll.u32 %v1926_v63, 16  ;;  %v2423_v50 = vld [vmem:[#allocation2 + $0xc8] sm:$0xf] }
 0x220   : > { %v3201_v15 = vrot.slane %v3200_v24, 4  ;;  %v2198_v59 = vrot.slane %v2196_v34, 4  ;;  %v3196_v49 = vsel %vm7558_vm5, %v3191_v52, %v3195_v35  ;;  %v6986_v35 = vld [vmem:[#allocation3 + $0x278] sm:$0xf0]  ;;  %v2674_v16 = vshrl.u32 %v2423_v50, 16 }
 0x221   : > { %v5327_v39 = vpop.f32.mrf.mxu0  ;;  %5464 = vmatmul.bf16.gmra.mxu2 %v6318_v25  ;;  %v8185_v36 = vadd.f32 %v5324_v8, %v5236_v2  ;;  %v2422_v8 = vld [vmem:[#allocation2 + $0xc4] sm:$0xf]  ;;  %v2189_v17 = vor.u32 %v2188_v5, %v2185_v62  ;;  %3401 = vst [vmem:[#allocation3 + $0x2a8] sm:$0xf] %v3196_v49  ;;  %v6355_v54 = vld [vmem:[#allocation3 + $0x27c] sm:$0xf0] }
 0x222   : > { %v3206_v37 = vsel %vm7558_vm5, %v3201_v15, %v3205_v11  ;;  %v2199_v0 = vor.u32 %v2198_v59, %v2194_v47  ;;  %v2665_v60 = vshrl.u32 %v2422_v8, 16  ;;  %v2668_v29 = vshll.u32 %v2422_v8, 16  ;;  %v2875_v62 = vld [vmem:[#allocation2 + $0xc4] sm:$0xf]  ;;  %v2876_v34 = vld [vmem:[#allocation2 + $0xc8] sm:$0xf] }
 0x223   : > { %5553 = vmatmul.bf16.gmra.mxu3 %v6322_v9  ;;  %v8189_v4 = vpop.f32.mrf.mxu1  ;;  %v2660_v9 = vshrl.u32 %v2421_v18, 16  ;;  %3402 = vst [vmem:[#allocation3 + $0x2cc] sm:$0xf] %v3206_v37  ;;  %v2190_v31 = vrot.slane %v2189_v17, 4  ;;  %v2677_v11 = vshll.u32 %v2423_v50, 16  ;;  %v2676_v5 = vrot.slane %v2674_v16, 7 }
 0x224   : > { %5642 = vmatmul.bf16.gmra.mxu0 %v6326_v28  ;;  %v5149_v25 = vpop.f32.mrf.mxu2  ;;  %v2204_v28 = vrot.slane %v2202_v48, 5  ;;  %v2200_v43 = vrot.slane %v2199_v0, 4  ;;  %v2667_v24 = vrot.slane %v2665_v60, 7  ;;  %v6987_v52 = vld [vmem:[#allocation3 + $0x280] sm:$0xf0]  ;;  %v5063_v59 = vadd.f32 %v8179_v12, %v7769_v46 }
 0x225   : > { %v5150_v2 = vadd.f32 %v5149_v25, %v5061_v20  ;;  %v6033_v42 = vrot.slane %v2660_v9, 11  ;;  %v2195_v33 = vsel %vm7558_vm5, %v2190_v31, %v2194_v47  ;;  %v6361_v20 = vld [vmem:[#allocation3 + $0x260] sm:$0xf]  ;;  %v2949_v25 = vld [vmem:[#allocation2 + $0xc4] sm:$0xf]  ;;  %v2679_v37 = vor.u32 %v2677_v11, %v2676_v5 }
 0x226   : > { %v5238_v53 = vpop.f32.mrf.mxu3  ;;  %5380 = vmatmul.bf16.gmra.mxu1 %v6350_v14  ;;  %v2205_v63 = vsel %vm7558_vm5, %v2200_v43, %v2204_v28  ;;  %2378 = vst [vmem:[#allocation3 + $0x2e4] sm:$0xf] %v2195_v33  ;;  %v8209_v47 = vld [vmem:[#allocation3 + $0x29c] sm:$0xf]  ;;  %v2672_v49 = vrot.slane %v2667_v24, 4  ;;  %v3208_v48 = vshrl.u32 %v2949_v25, 16  ;;  %v6358_v60 = vor.u32 %v8197_v55, %v6355_v54 }
 0x227   : > { %v5239_v51 = vadd.f32 %v5238_v53, %v5150_v2  ;;  %2379 = vst [vmem:[#allocation3 + $0x308] sm:$0xf] %v2205_v63  ;;  %v2670_v2 = vor.u32 %v2668_v29, %v2667_v24  ;;  %v2950_v17 = vld [vmem:[#allocation2 + $0xc8] sm:$0xf]  ;;  %v6354_v53 = vor.u32 %v6986_v35, %v8195_v21  ;;  %v2951_v0 = vld [vmem:[#allocation2 + $0xcc] sm:$0x1]  ;;  %v6362_v16 = vor.u32 %v6987_v52, %v6361_v20 }
 0x228   : > { %2907 = vst [vmem:[#allocation3 + $0x2ec] sm:$0xf] %v2875_v62  ;;  %v3217_v50 = vshll.u32 %v2950_v17, 16  ;;  %v3210_v12 = vrot.slane %v3208_v48, 4  ;;  %v3221_v31 = vshrl.u32 %v2950_v17, 16  ;;  %v2680_v43 = vsel %vm7270_vm2, %v2672_v49, %v2679_v37 }
 0x229   : > { %v5329_v14 = vpop.f32.mrf.mxu0  ;;  %v8203_v15 = vadd.f32 %v5327_v39, %v5239_v51  ;;  %v3211_v39 = vshll.u32 %v2949_v25, 16  ;;  %v6383_v51 = vld [vmem:[#allocation3 + $0x2bc] sm:$0xf0]  ;;  %v2671_v46 = vsel %vm7270_vm2, %v6033_v42, %v2670_v2  ;;  %2908 = vst [vmem:[#allocation3 + $0x310] sm:$0xf] %v2876_v34  ;;  %v3227_v24 = vshll.u32 %v2951_v0, 16 }
 0x22a   : > { %2843 = vst [vmem:[#allocation3 + $0x2e8] sm:$0xf] %v2671_v46  ;;  %v3219_v35 = vrot.slane %v3217_v50, 5  ;;  %v3223_v33 = vrot.slane %v3221_v31, 4  ;;  %v1927_v11 = vld [vmem:[#allocation2 + $0xc4] sm:$0xf]  ;;  %v6386_v42 = vor.u32 %v8209_v47, %v6383_v51  ;;  %v5342_v52 = vadd.f32 %v8189_v4, %v7789_v23 }
 0x22b   : > { %v8207_v8 = vpop.f32.mrf.mxu1  ;;  %v3213_v21 = vrot.slane %v3211_v39, 5  ;;  %2844 = vst [vmem:[#allocation3 + $0x30c] sm:$0xf] %v2680_v43  ;;  %v1928_v34 = vld [vmem:[#allocation2 + $0xc8] sm:$0xf]  ;;  %v2207_v63 = vshrl.u32 %v1927_v11, 16 }
 0x22c   : > { %v5151_v18 = vpop.f32.mrf.mxu2  ;;  %v2210_v5 = vshll.u32 %v1927_v11, 16  ;;  %v3224_v55 = vor.u32 %v3223_v33, %v3219_v35  ;;  %v3229_v54 = vrot.slane %v3227_v24, 5  ;;  %v2220_v2 = vshrl.u32 %v1928_v34, 16  ;;  %v1929_v37 = vld [vmem:[#allocation2 + $0xcc] sm:$0x1] }
 0x22d   : > { %v5152_v9 = vadd.f32 %v5151_v18, %v5063_v59  ;;  %v3214_v62 = vor.u32 %v3213_v21, %v3210_v12  ;;  %v2216_v59 = vshll.u32 %v1928_v34, 16  ;;  %v2209_v17 = vrot.slane %v2207_v63, 4  ;;  %v2424_v51 = vld [vmem:[#allocation2 + $0xd0] sm:$0x8]  ;;  %v8231_v12 = vld [vmem:[%s8531_s2] ss:$0 sm:$0xff] }
 0x22e   : > { %v5240_v28 = vpop.f32.mrf.mxu3  ;;  %v2212_v48 = vrot.slane %v2210_v5, 5  ;;  %v3225_v18 = vrot.slane %v3224_v55, 4  ;;  %v2226_v23 = vshll.u32 %v1929_v37, 16  ;;  %v8236_v21 = vld [vmem:[%s8532_s3] ss:$0 sm:$0xff] }
 0x22f   : > { %v5241_v29 = vadd.f32 %v5240_v28, %v5152_v9  ;;  %v3215_v49 = vrot.slane %v3214_v62, 4  ;;  %v2218_v0 = vrot.slane %v2216_v59, 5  ;;  %v2222_v9 = vrot.slane %v2220_v2, 4  ;;  %v6389_v33 = vld [vmem:[#allocation3 + $0x2a0] sm:$0xf] }
 0x230   : > { %v2213_v50 = vor.u32 %v2212_v48, %v2209_v17  ;;  %v6995_v24 = vld [vmem:[#allocation3 + $0x2c0] sm:$0xf0]  ;;  %v2877_v34 = vld [vmem:[#allocation2 + $0xd4] sm:$0xf] }
 0x231   : > { %v5608_v25 = vpop.f32.mrf.mxu0  ;;  %5469 = vmatmul.bf16.gmra.mxu2 %v6354_v53  ;;  %v8218_v20 = vadd.f32 %v5329_v14, %v5241_v29  ;;  %v3220_v39 = vsel %vm7558_vm5, %v3215_v49, %v3219_v35  ;;  %v3230_v14 = vsel %vm7558_vm5, %v3225_v18, %v3229_v54  ;;  %v2223_v28 = vor.u32 %v2222_v9, %v2218_v0  ;;  %v2425_v29 = vld [vmem:[#allocation2 + $0xd4] sm:$0xf]  ;;  %v8240_v55 = vld [vmem:[#allocation3 + $0x2a4] sm:$0xf]  ;;  %v6391_v54 = vld [vmem:[#allocation3 + $0x2c4] sm:$0xf0] }
 0x232   : > { %3403 = vst [vmem:[#allocation3 + $0x2f0] sm:$0xf] %v3220_v39  ;;  %v2214_v31 = vrot.slane %v2213_v50, 4  ;;  %v2228_v35 = vrot.slane %v2226_v23, 5  ;;  %v2690_v59 = vshll.u32 %v2425_v29, 16 }
 0x233   : > { %5558 = vmatmul.bf16.gmra.mxu3 %v6358_v60  ;;  %v8222_v47 = vpop.f32.mrf.mxu1  ;;  %3404 = vst [vmem:[#allocation3 + $0x314] sm:$0xf] %v3230_v14  ;;  %v2682_v60 = vshrl.u32 %v2424_v51, 16  ;;  %v2224_v62 = vrot.slane %v2223_v28, 4  ;;  %v2878_v18 = vld [vmem:[#allocation2 + $0xd8] sm:$0xf] }
 0x234   : > { %5647 = vmatmul.bf16.gmra.mxu0 %v6362_v16  ;;  %v5430_v53 = vpop.f32.mrf.mxu2  ;;  %v2426_v16 = vld [vmem:[#allocation2 + $0xd8] sm:$0xf]  ;;  %v2219_v11 = vsel %vm7558_vm5, %v2214_v31, %v2218_v0  ;;  %2909 = vst [vmem:[#allocation3 + $0x334] sm:$0xf] %v2877_v34  ;;  %v2952_v39 = vld [vmem:[#allocation2 + $0xd4] sm:$0xf]  ;;  %v6390_v31 = vor.u32 %v6995_v24, %v6389_v33 }
 0x235   : > { %v5431_v46 = vadd.f32 %v5430_v53, %v5342_v52  ;;  %2380 = vst [vmem:[#allocation3 + $0x32c] sm:$0xf] %v2219_v11  ;;  %v2696_v2 = vshrl.u32 %v2426_v16, 16  ;;  %v2699_v49 = vshll.u32 %v2426_v16, 16  ;;  %v2229_v17 = vsel %vm7558_vm5, %v2224_v62, %v2228_v35  ;;  %v6397_v9 = vld [vmem:[#allocation3 + $0x2a8] sm:$0xf] }
 0x236   : > { %v5519_v4 = vpop.f32.mrf.mxu3  ;;  %5385 = vmatmul.bf16.gmra.mxu1 %v6386_v42  ;;  %v2687_v42 = vshrl.u32 %v2425_v29, 16  ;;  %v6034_v48 = vrot.slane %v2682_v60, 11  ;;  %2381 = vst [vmem:[#allocation3 + $0x350] sm:$0xf] %v2229_v17  ;;  %v3232_v14 = vshrl.u32 %v2952_v39, 16 }
 0x237   : > { %v5520_v43 = vadd.f32 %v5519_v4, %v5431_v46  ;;  %v2698_v53 = vrot.slane %v2696_v2, 7  ;;  %2910 = vst [vmem:[#allocation3 + $0x358] sm:$0xf] %v2878_v18  ;;  %v6996_v28 = vld [vmem:[#allocation3 + $0x2c8] sm:$0xf0] }
 0x238   : > { %v2689_v52 = vrot.slane %v2687_v42, 7  ;;  %v6999_v60 = vld [vmem:[#allocation3 + $0x2e4] sm:$0xf]  ;;  %v2953_v35 = vld [vmem:[#allocation2 + $0xd8] sm:$0xf]  ;;  %v3234_v62 = vrot.slane %v3232_v14, 4  ;;  %v6398_v2 = vor.u32 %v6996_v28, %v6397_v9  ;;  %v5347_v14 = vadd.f32 %v8222_v47, %v7811_v32 }
 0x239   : > { %v5609_v63 = vadd.f32 %v5608_v25, %v5520_v43  ;;  %v5610_v5 = vpop.f32.mrf.mxu0  ;;  %v5344_v25 = vadd.f32 %v8207_v8, %v7801_v26  ;;  %v2701_v43 = vor.u32 %v2699_v49, %v2698_v53  ;;  %v6394_v8 = vor.u32 %v8240_v55, %v6391_v54  ;;  %v6419_v29 = vld [vmem:[#allocation3 + $0x304] sm:$0xf0]  ;;  %v2954_v11 = vld [vmem:[#allocation2 + $0xdc] sm:$0x1]  ;;  %v1930_v24 = vld [vmem:[#allocation2 + $0xd4] sm:$0xf] }
 0x23a   : > { %v2692_v51 = vor.u32 %v2690_v59, %v2689_v52  ;;  %v2694_v46 = vrot.slane %v2689_v52, 4  ;;  %v3235_v42 = vshll.u32 %v2952_v39, 16  ;;  %v3241_v33 = vshll.u32 %v2953_v35, 16  ;;  %v8255_v49 = vld [vmem:[#allocation3 + $0x2ec] sm:$0xf] }
 0x23b   : > { %v5692_v37 = vmul.f32 %v8231_v12, %v5609_v63  ;;  %v8247_v0 = vpop.f32.mrf.mxu1  ;;  %v3245_v54 = vshrl.u32 %v2953_v35, 16  ;;  %v8257_v52 = vld [vmem:[#allocation3 + $0x30c] sm:$0xf0]  ;;  %v6422_v53 = vor.u32 %v6999_v60, %v6419_v29 }
 0x23c   : > { %v5432_v50 = vpop.f32.mrf.mxu2  ;;  %v2693_v16 = vsel %vm7270_vm2, %v6034_v48, %v2692_v51  ;;  %v2702_v59 = vsel %vm7270_vm2, %v2694_v46, %v2701_v43  ;;  %v3237_v55 = vrot.slane %v3235_v42, 5  ;;  %v3243_v18 = vrot.slane %v3241_v33, 5  ;;  %v1931_v51 = vld [vmem:[#allocation2 + $0xd8] sm:$0xf] }
 0x23d   : > { %v5728_v23 = vadd.f32 %v8236_v21, %v5692_v37  ;;  %v5433_v4 = vadd.f32 %v5432_v50, %v5344_v25  ;;  %2845 = vst [vmem:[#allocation3 + $0x330] sm:$0xf] %v2693_v16  ;;  %v3251_v37 = vshll.u32 %v2954_v11, 16  ;;  %v2231_v25 = vshrl.u32 %v1930_v24, 16 }
 0x23e   : > { %v5521_v26 = vpop.f32.mrf.mxu3  ;;  %2846 = vst [vmem:[#allocation3 + $0x354] sm:$0xf] %v2702_v59  ;;  %v3238_v39 = vor.u32 %v3237_v55, %v3234_v62  ;;  %v3247_v50 = vrot.slane %v3245_v54, 4  ;;  %v2234_v46 = vshll.u32 %v1930_v24, 16  ;;  %v6430_v28 = vor.u32 %v8255_v49, %v8257_v52  ;;  %v2427_v62 = vld [vmem:[#allocation2 + $0xe0] sm:$0x8] }
 0x23f   : > { %v5760_v34 = vmax.f32 %v5728_v23, 0.0  ;;  %v5522_v63 = vadd.f32 %v5521_v26, %v5433_v4  ;;  %v2233_v4 = vrot.slane %v2231_v25, 4  ;;  %v3253_v35 = vrot.slane %v3251_v37, 5  ;;  %v8269_v24 = vld [vmem:[#allocation3 + $0x2e8] sm:$0xf] }
 0x240   : > { %v3239_v60 = vrot.slane %v3238_v39, 4  ;;  %v3248_v43 = vor.u32 %v3247_v50, %v3243_v18  ;;  %v2236_v16 = vrot.slane %v2234_v46, 5  ;;  %v2240_v11 = vshll.u32 %v1931_v51, 16  ;;  %v2879_v39 = vld [vmem:[#allocation2 + $0xe4] sm:$0xf] }
 0x241   : > { %5792 = vst [vmem:[#allocation4] sm:$0xff] %v5760_v34  ;;  %v5611_v17 = vadd.f32 %v5610_v5, %v5522_v63  ;;  %v5613_v48 = vpop.f32.mrf.mxu0  ;;  %5474 = vmatmul.bf16.gmra.mxu2 %v6390_v31  ;;  %v1932_v5 = vld [vmem:[#allocation2 + $0xdc] sm:$0x1]  ;;  %v2244_v42 = vshrl.u32 %v1931_v51, 16  ;;  %v2428_v63 = vld [vmem:[#allocation2 + $0xe4] sm:$0xf]  ;;  %v5349_v37 = vadd.f32 %v8247_v0, %v7821_v40 }
 0x242   : > { %v3244_v47 = vsel %vm7558_vm5, %v3239_v60, %v3243_v18  ;;  %v2250_v34 = vshll.u32 %v1932_v5, 16  ;;  %v2237_v55 = vor.u32 %v2236_v16, %v2233_v4  ;;  %v2242_v54 = vrot.slane %v2240_v11, 5  ;;  %v2955_v50 = vld [vmem:[#allocation2 + $0xe4] sm:$0xf]  ;;  %v6433_v0 = vld [vmem:[#allocation3 + $0x2f0] sm:$0xf] }
 0x243   : > { %v5693_v9 = vmul.f32 %v8231_v12, %v5611_v17  ;;  %5563 = vmatmul.bf16.gmra.mxu3 %v6394_v8  ;;  %v8262_v23 = vpop.f32.mrf.mxu1  ;;  %v3249_v8 = vrot.slane %v3248_v43, 4  ;;  %3405 = vst [vmem:[#allocation3 + $0x338] sm:$0xf] %v3244_v47  ;;  %v2429_v17 = vld [vmem:[#allocation2 + $0xe8] sm:$0xf]  ;;  %v2246_v18 = vrot.slane %v2244_v42, 4 }
 0x244   : > { %5652 = vmatmul.bf16.gmra.mxu0 %v6398_v2  ;;  %v5435_v31 = vpop.f32.mrf.mxu2  ;;  %v7004_v2 = vld [vmem:[#allocation3 + $0x308] sm:$0xf0]  ;;  %v2709_v5 = vshrl.u32 %v2428_v63, 16  ;;  %v2712_v60 = vshll.u32 %v2428_v63, 16  ;;  %v2718_v43 = vshrl.u32 %v2429_v17, 16  ;;  %v3256_v42 = vshrl.u32 %v2955_v50, 16 }
 0x245   : > { %v5729_v26 = vadd.f32 %v8236_v21, %v5693_v9  ;;  %v5436_v29 = vadd.f32 %v5435_v31, %v5347_v14  ;;  %v3254_v25 = vsel %vm7558_vm5, %v3249_v8, %v3253_v35  ;;  %v2238_v9 = vrot.slane %v2237_v55, 4  ;;  %v2880_v31 = vld [vmem:[#allocation2 + $0xe8] sm:$0xf]  ;;  %2911 = vst [vmem:[#allocation3 + $0x37c] sm:$0xf] %v2879_v39 }
 0x246   : > { %v5524_v32 = vpop.f32.mrf.mxu3  ;;  %5390 = vmatmul.bf16.gmra.mxu1 %v6422_v53  ;;  %v2252_v53 = vrot.slane %v2250_v34, 5  ;;  %v2704_v14 = vshrl.u32 %v2427_v62, 16  ;;  %3406 = vst [vmem:[#allocation3 + $0x35c] sm:$0xf] %v3254_v25  ;;  %v2247_v4 = vor.u32 %v2246_v18, %v2242_v54  ;;  %v2956_v11 = vld [vmem:[#allocation2 + $0xe8] sm:$0xf] }
 0x247   : > { %v5761_v59 = vmax.f32 %v5729_v26, 0.0  ;;  %v5525_v33 = vadd.f32 %v5524_v32, %v5436_v29  ;;  %v2721_v26 = vshll.u32 %v2429_v17, 16  ;;  %v2243_v29 = vsel %vm7558_vm5, %v2238_v9, %v2242_v54  ;;  %2912 = vst [vmem:[#allocation3 + $0x3a0] sm:$0xf] %v2880_v31  ;;  %v7008_v54 = vld [vmem:[#allocation3 + $0x32c] sm:$0xf] }
 0x248   : > { %v6035_v16 = vrot.slane %v2704_v14, 11  ;;  %v6426_v32 = vor.u32 %v7004_v2, %v8269_v24  ;;  %v2248_v47 = vrot.slane %v2247_v4, 4  ;;  %2382 = vst [vmem:[#allocation3 + $0x374] sm:$0xf] %v2243_v29  ;;  %v2720_v8 = vrot.slane %v2718_v43, 7 }
 0x249   : > { %5793 = vst [vmem:[#allocation4 + $0x8] sm:$0xff] %v5761_v59  ;;  %v5614_v51 = vadd.f32 %v5613_v48, %v5525_v33  ;;  %v5615_v46 = vpop.f32.mrf.mxu0  ;;  %v2711_v48 = vrot.slane %v2709_v5, 7  ;;  %v7005_v59 = vld [vmem:[#allocation3 + $0x310] sm:$0xf0]  ;;  %v6455_v25 = vld [vmem:[#allocation3 + $0x34c] sm:$0xf0] }
 0x24a   : > { %v2253_v18 = vsel %vm7558_vm5, %v2248_v47, %v2252_v53  ;;  %v2723_v39 = vor.u32 %v2721_v26, %v2720_v8  ;;  %v3259_v24 = vshll.u32 %v2955_v50, 16  ;;  %v3265_v5 = vshll.u32 %v2956_v11, 16  ;;  %v1933_v26 = vld [vmem:[#allocation2 + $0xe4] sm:$0xf]  ;;  %v2430_v49 = vld [vmem:[#allocation2 + $0xf0] sm:$0x8] }
 0x24b   : > { %v5694_v40 = vmul.f32 %v8231_v12, %v5614_v51  ;;  %v8276_v35 = vpop.f32.mrf.mxu1  ;;  %v2714_v33 = vor.u32 %v2712_v60, %v2711_v48  ;;  %v2716_v55 = vrot.slane %v2711_v48, 4  ;;  %v3258_v51 = vrot.slane %v3256_v42, 4  ;;  %2383 = vst [vmem:[#allocation3 + $0x398] sm:$0xf] %v2253_v18 }
 0x24c   : > { %v5437_v62 = vpop.f32.mrf.mxu2  ;;  %v6434_v4 = vor.u32 %v7005_v59, %v6433_v0  ;;  %v3261_v53 = vrot.slane %v3259_v24, 5  ;;  %v6458_v50 = vor.u32 %v7008_v54, %v6455_v25  ;;  %v3269_v29 = vshrl.u32 %v2956_v11, 16  ;;  %v8299_v59 = vld [vmem:[#allocation3 + $0x354] sm:$0xf0]  ;;  %v2431_v25 = vld [vmem:[#allocation2 + $0xf4] sm:$0xf] }
 0x24d   : > { %v5730_v34 = vadd.f32 %v8236_v21, %v5694_v40  ;;  %v5438_v63 = vadd.f32 %v5437_v62, %v5349_v37  ;;  %v2715_v14 = vsel %vm7270_vm2, %v6035_v16, %v2714_v33  ;;  %v2957_v37 = vld [vmem:[#allocation2 + $0xec] sm:$0x1]  ;;  %v2724_v31 = vsel %vm7270_vm2, %v2716_v55, %v2723_v39  ;;  %v7013_v24 = vld [vmem:[#allocation3 + $0x350] sm:$0xf0] }
 0x24e   : > { %v5526_v17 = vpop.f32.mrf.mxu3  ;;  %2847 = vst [vmem:[#allocation3 + $0x378] sm:$0xf] %v2715_v14  ;;  %v3267_v40 = vrot.slane %v3265_v5, 5  ;;  %v3275_v48 = vshll.u32 %v2957_v37, 16  ;;  %v5352_v0 = vadd.f32 %v8262_v23, %v7841_v58  ;;  %v3271_v8 = vrot.slane %v3269_v29, 4 }
 0x24f   : > { %v5762_v2 = vmax.f32 %v5730_v34, 0.0  ;;  %v5527_v9 = vadd.f32 %v5526_v17, %v5438_v63  ;;  %2848 = vst [vmem:[#allocation3 + $0x39c] sm:$0xf] %v2724_v31  ;;  %v2255_v42 = vshrl.u32 %v1933_v26, 16  ;;  %v8297_v63 = vld [vmem:[#allocation3 + $0x334] sm:$0xf] }
 0x250   : > { %v3277_v23 = vrot.slane %v3275_v48, 5  ;;  %v1935_v33 = vld [vmem:[#allocation2 + $0xec] sm:$0x1]  ;;  %v2258_v17 = vshll.u32 %v1933_v26, 16  ;;  %v2726_v26 = vshrl.u32 %v2430_v49, 16  ;;  %v6466_v29 = vor.u32 %v8297_v63, %v8299_v59 }
 0x251   : > { %5794 = vst [vmem:[#allocation4 + $0x10] sm:$0xff] %v5762_v2  ;;  %v5616_v60 = vadd.f32 %v5615_v46, %v5527_v9  ;;  %v5618_v43 = vpop.f32.mrf.mxu0  ;;  %5479 = vmatmul.bf16.gmra.mxu2 %v6426_v32  ;;  %v3262_v46 = vor.u32 %v3261_v53, %v3258_v51  ;;  %v1934_v32 = vld [vmem:[#allocation2 + $0xe8] sm:$0xf]  ;;  %v2257_v55 = vrot.slane %v2255_v42, 4  ;;  %v8301_v51 = vld [vmem:[#allocation3 + $0x330] sm:$0xf] }
 0x252   : > { %v2264_v54 = vshll.u32 %v1934_v32, 16  ;;  %v2260_v14 = vrot.slane %v2258_v17, 5  ;;  %v2268_v5 = vshrl.u32 %v1934_v32, 16  ;;  %v2432_v53 = vld [vmem:[#allocation2 + $0xf8] sm:$0xf]  ;;  %v8547_v32 = vld [vmem:[#allocation5_spill] sm:$0xff] }
 0x253   : > { %v5695_v16 = vmul.f32 %v8231_v12, %v5616_v60  ;;  %5568 = vmatmul.bf16.gmra.mxu3 %v6430_v28  ;;  %v8294_v62 = vpop.f32.mrf.mxu1  ;;  %v3263_v58 = vrot.slane %v3262_v46, 4  ;;  %v3272_v28 = vor.u32 %v3271_v8, %v3267_v40  ;;  %v2274_v60 = vshll.u32 %v1935_v33, 16  ;;  %v2882_v46 = vld [vmem:[#allocation2 + $0xf8] sm:$0xf] }
 0x254   : > { %5657 = vmatmul.bf16.gmra.mxu0 %v6434_v4  ;;  %v5440_v47 = vpop.f32.mrf.mxu2  ;;  %v2266_v37 = vrot.slane %v2264_v54, 5  ;;  %v6462_v8 = vor.u32 %v7013_v24, %v8301_v51  ;;  %v6469_v42 = vld [vmem:[#allocation3 + $0x338] sm:$0xf]  ;;  %v2734_v49 = vshll.u32 %v2431_v25, 16  ;;  %v6036_v17 = vrot.slane %v2726_v26, 11 }
 0x255   : > { %v5731_v11 = vadd.f32 %v8236_v21, %v5695_v16  ;;  %v5441_v34 = vadd.f32 %v5440_v47, %v5352_v0  ;;  %v3268_v2 = vsel %vm7558_vm5, %v3263_v58, %v3267_v40  ;;  %v3273_v9 = vrot.slane %v3272_v28, 4  ;;  %v2881_v0 = vld [vmem:[#allocation2 + $0xf4] sm:$0xf]  ;;  %2914 = vst [vmem:[#allocation3 + $0x3e8] sm:$0xf] %v2882_v46 }
 0x256   : > { %v5529_v52 = vpop.f32.mrf.mxu3  ;;  %5395 = vmatmul.bf16.gmra.mxu1 %v6458_v50  ;;  %3407 = vst [vmem:[#allocation3 + $0x380] sm:$0xf] %v3268_v2  ;;  %v2731_v50 = vshrl.u32 %v2431_v25, 16  ;;  %v2261_v16 = vor.u32 %v2260_v14, %v2257_v55  ;;  %v2270_v40 = vrot.slane %v2268_v5, 4  ;;  %v2276_v33 = vrot.slane %v2274_v60, 5 }
 0x257   : > { %v5763_v18 = vmax.f32 %v5731_v11, 0.0  ;;  %v5530_v39 = vadd.f32 %v5529_v52, %v5441_v34  ;;  %v3278_v48 = vsel %vm7558_vm5, %v3273_v9, %v3277_v23  ;;  %v7014_v11 = vld [vmem:[#allocation3 + $0x358] sm:$0xf0]  ;;  %2913 = vst [vmem:[#allocation3 + $0x3c4] sm:$0xf] %v2881_v0  ;;  %v2743_v9 = vshll.u32 %v2432_v53, 16 }
 0x258   : > { %3408 = vst [vmem:[#allocation3 + $0x3a4] sm:$0xf] %v3278_v48  ;;  %v2733_v63 = vrot.slane %v2731_v50, 7  ;;  %v2262_v58 = vrot.slane %v2261_v16, 4  ;;  %v2271_v23 = vor.u32 %v2270_v40, %v2266_v37  ;;  %v7017_v55 = vld [vmem:[#allocation3 + $0x374] sm:$0xf]  ;;  %v6470_v48 = vor.u32 %v7014_v11, %v6469_v42 }
 0x259   : > { %5795 = vst [vmem:[#allocation4 + $0x18] sm:$0xff] %v5763_v18  ;;  %v5619_v4 = vadd.f32 %v5618_v43, %v5530_v39  ;;  %v5620_v31 = vpop.f32.mrf.mxu0  ;;  %v5354_v43 = vadd.f32 %v8276_v35, %v8547_v32  ;;  %v2740_v35 = vshrl.u32 %v2432_v53, 16  ;;  %v2958_v54 = vld [vmem:[#allocation2 + $0xf4] sm:$0xf]  ;;  %v6491_v39 = vld [vmem:[#allocation3 + $0x394] sm:$0xf0] }
 0x25a   : > { %v2267_v51 = vsel %vm7558_vm5, %v2262_v58, %v2266_v37  ;;  %v2272_v24 = vrot.slane %v2271_v23, 4  ;;  %v2736_v2 = vor.u32 %v2734_v49, %v2733_v63  ;;  %v2959_v14 = vld [vmem:[#allocation2 + $0xf8] sm:$0xf]  ;;  %v8318_v50 = vld [vmem:[#allocation4] ss:$2 sm:$0xff]  ;;  %v3280_v40 = vshrl.u32 %v2958_v54, 16 }
 0x25b   : > { %v5696_v47 = vmul.f32 %v8231_v12, %v5619_v4  ;;  %v8313_v34 = vpop.f32.mrf.mxu1  ;;  %2384 = vst [vmem:[#allocation3 + $0x3bc] sm:$0xf] %v2267_v51  ;;  %v2738_v4 = vrot.slane %v2733_v63, 4  ;;  %v2742_v60 = vrot.slane %v2740_v35, 7  ;;  %v8320_v26 = vld [vmem:[#allocation4 + $0x1] ss:$2 sm:$0xff] }
 0x25c   : > { %v5442_v59 = vpop.f32.mrf.mxu2  ;;  %v2277_v16 = vsel %vm7558_vm5, %v2272_v24, %v2276_v33  ;;  %v3283_v0 = vshll.u32 %v2958_v54, 16  ;;  %v8324_v53 = vld [vmem:[#allocation3 + $0x37c] sm:$0xf]  ;;  %v2737_v32 = vsel %vm7270_vm2, %v6036_v17, %v2736_v2  ;;  %v3289_v63 = vshll.u32 %v2959_v14, 16  ;;  %v8548_v33 = vld [vmem:[#allocation6_spill] sm:$0xff] }
 0x25d   : > { %v5732_v52 = vadd.f32 %v8236_v21, %v5696_v47  ;;  %v5443_v28 = vadd.f32 %v5442_v59, %v5354_v43  ;;  %v8326_v47 = vld [vmem:[#allocation3 + $0x39c] sm:$0xf0]  ;;  %v2745_v43 = vor.u32 %v2743_v9, %v2742_v60  ;;  %v6494_v59 = vor.u32 %v7017_v55, %v6491_v39  ;;  %2385 = vst [vmem:[#allocation3 + $0x3e0] sm:$0xf] %v2277_v16  ;;  %v2960_v42 = vld [vmem:[#allocation2 + $0xfc] sm:$0x1] }
 0x25e   : > { %v5531_v18 = vpop.f32.mrf.mxu3  ;;  %v3282_v11 = vrot.slane %v3280_v40, 4  ;;  %v3285_v58 = vrot.slane %v3283_v0, 5  ;;  %2849 = vst [vmem:[#allocation3 + $0x3c0] sm:$0xf] %v2737_v32  ;;  %v3291_v35 = vrot.slane %v3289_v63, 5  ;;  %v3293_v54 = vshrl.u32 %v2959_v14, 16 }
 0x25f   : > { %v5764_v5 = vmax.f32 %v5732_v52, 0.0  ;;  %v5532_v25 = vadd.f32 %v5531_v18, %v5443_v28  ;;  %v2746_v49 = vsel %vm7270_vm2, %v2738_v4, %v2745_v43  ;;  %v1936_v52 = vld [vmem:[#allocation2 + $0xf4] sm:$0xf]  ;;  %v1937_v18 = vld [vmem:[#allocation2 + $0xf8] sm:$0xf]  ;;  %v3299_v2 = vshll.u32 %v2960_v42, 16 }
 0x260   : > { %v3286_v17 = vor.u32 %v3285_v58, %v3282_v11  ;;  %v8342_v51 = vld [vmem:[#allocation3 + $0x398] sm:$0xf0]  ;;  %2850 = vst [vmem:[#allocation3 + $0x3e4] sm:$0xf] %v2746_v49  ;;  %v2279_v60 = vshrl.u32 %v1936_v52, 16  ;;  %v2282_v14 = vshll.u32 %v1936_v52, 16 }
 0x261   : > { %5796 = vst [vmem:[#allocation4 + $0x20] sm:$0xff] %v5764_v5  ;;  %v5621_v37 = vadd.f32 %v5620_v31, %v5532_v25  ;;  %v5623_v46 = vpop.f32.mrf.mxu0  ;;  %5484 = vmatmul.bf16.gmra.mxu2 %v6462_v8  ;;  %v5357_v31 = vadd.f32 %v8294_v62, %v8548_v33  ;;  %v3295_v25 = vrot.slane %v3293_v54, 4  ;;  %v1938_v4 = vld [vmem:[#allocation2 + $0xfc] sm:$0x1]  ;;  %v3301_v0 = vrot.slane %v3299_v2, 5 }
 0x262   : > { %v3287_v5 = vrot.slane %v3286_v17, 4  ;;  %v2433_v32 = vld [vmem:[#allocation2 + $0x100] sm:$0x8]  ;;  %v8348_v43 = vld [vmem:[#allocation4 + $0x11] ss:$2 sm:$0xff]  ;;  %v2281_v11 = vrot.slane %v2279_v60, 4 }
 0x263   : > { %v5697_v23 = vmul.f32 %v8231_v12, %v5621_v37  ;;  %5573 = vmatmul.bf16.gmra.mxu3 %v6466_v29  ;;  %v8333_v8 = vpop.f32.mrf.mxu1  ;;  %v8340_v29 = vld [vmem:[#allocation3 + $0x378] sm:$0xf]  ;;  %v2288_v37 = vshll.u32 %v1937_v18, 16  ;;  %v3296_v42 = vor.u32 %v3295_v25, %v3291_v35  ;;  %v2434_v58 = vld [vmem:[#allocation2 + $0x104] sm:$0xf]  ;;  %v2292_v49 = vshrl.u32 %v1937_v18, 16 }
 0x264   : > { %5662 = vmatmul.bf16.gmra.mxu0 %v6470_v48  ;;  %v5445_v55 = vpop.f32.mrf.mxu2  ;;  %v8346_v48 = vld [vmem:[#allocation4 + $0x10] ss:$2 sm:$0xff]  ;;  %v3292_v63 = vsel %vm7558_vm5, %v3287_v5, %v3291_v35  ;;  %v2298_v52 = vshll.u32 %v1938_v4, 16  ;;  %v6498_v17 = vor.u32 %v8342_v51, %v8340_v29  ;;  %v6505_v5 = vld [vmem:[#allocation3 + $0x380] sm:$0xf]  ;;  %v2753_v4 = vshrl.u32 %v2434_v58, 16 }
 0x265   : > { %v5733_v39 = vadd.f32 %v8236_v21, %v5697_v23  ;;  %v5446_v62 = vadd.f32 %v5445_v55, %v5357_v31  ;;  %v2290_v31 = vrot.slane %v2288_v37, 5  ;;  %v2883_v55 = vld [vmem:[#allocation2 + $0x104] sm:$0xf]  ;;  %v3297_v54 = vrot.slane %v3296_v42, 4  ;;  %3409 = vst [vmem:[#allocation3 + $0x3c8] sm:$0xf] %v3292_v63 }
 0x266   : > { %v5534_v9 = vpop.f32.mrf.mxu3  ;;  %5400 = vmatmul.bf16.gmra.mxu1 %v6494_v59  ;;  %v2284_v59 = vrot.slane %v2282_v14, 5  ;;  %v8549_v35 = vld [vmem:[#allocation7_spill] sm:$0xff]  ;;  %v7023_v25 = vld [vmem:[#allocation3 + $0x3a0] sm:$0xf0]  ;;  %v2294_v60 = vrot.slane %v2292_v49, 4  ;;  %v5888_v29 = vmax.f32 %v8346_v48, %v8348_v43  ;;  %v2755_v43 = vrot.slane %v2753_v4, 7 }
 0x267   : > { %v5765_v16 = vmax.f32 %v5733_v39, 0.0  ;;  %v5535_v40 = vadd.f32 %v5534_v9, %v5446_v62  ;;  %v2748_v62 = vshrl.u32 %v2433_v32, 16  ;;  %v5359_v9 = vadd.f32 %v8313_v34, %v8549_v35  ;;  %v2435_v18 = vld [vmem:[#allocation2 + $0x108] sm:$0xf]  ;;  %2915 = vst [vmem:[#allocation3 + $0x40c] sm:$0xf] %v2883_v55 }
 0x268   : > { %v2285_v39 = vor.u32 %v2284_v59, %v2281_v11  ;;  %v2884_v14 = vld [vmem:[#allocation2 + $0x108] sm:$0xf]  ;;  %v3302_v37 = vsel %vm7558_vm5, %v3297_v54, %v3301_v0  ;;  %v2300_v34 = vrot.slane %v2298_v52, 5  ;;  %v2961_v63 = vld [vmem:[#allocation2 + $0x104] sm:$0xf]  ;;  %v2295_v59 = vor.u32 %v2294_v60, %v2290_v31 }
 0x269   : > { %5797 = vst [vmem:[#allocation4 + $0x28] sm:$0xff] %v5765_v16  ;;  %v5624_v23 = vadd.f32 %v5623_v46, %v5535_v40  ;;  %v5625_v33 = vpop.f32.mrf.mxu0  ;;  %v8361_v16 = vld [vmem:[#allocation3 + $0x3bc] sm:$0xf]  ;;  %v6527_v40 = vld [vmem:[#allocation3 + $0x3dc] sm:$0xf0]  ;;  %v2756_v28 = vshll.u32 %v2434_v58, 16 }
 0x26a   : > { %v2286_v32 = vrot.slane %v2285_v39, 4  ;;  %3410 = vst [vmem:[#allocation3 + $0x3ec] sm:$0xf] %v3302_v37  ;;  %v2962_v49 = vld [vmem:[#allocation2 + $0x108] sm:$0xf]  ;;  %v2762_v24 = vshrl.u32 %v2435_v18, 16  ;;  %v6506_v39 = vor.u32 %v7023_v25, %v6505_v5  ;;  %v6530_v37 = vor.u32 %v8361_v16, %v6527_v40 }
 0x26b   : > { %v5698_v2 = vmul.f32 %v8231_v12, %v5624_v23  ;;  %v8357_v46 = vpop.f32.mrf.mxu1  ;;  %v6037_v23 = vrot.slane %v2748_v62, 11  ;;  %2916 = vst [vmem:[#allocation3 + $0x430] sm:$0xf] %v2884_v14  ;;  %v2296_v52 = vrot.slane %v2295_v59, 4  ;;  %v2765_v55 = vshll.u32 %v2435_v18, 16  ;;  %v8550_v18 = vld [vmem:[#allocation8_spill] sm:$0xff] }
 0x26c   : > { %v5447_v51 = vpop.f32.mrf.mxu2  ;;  %v2291_v48 = vsel %vm7558_vm5, %v2286_v32, %v2290_v31  ;;  %v8369_v31 = vld [vmem:[#allocation3 + $0x3c4] sm:$0xf]  ;;  %v8371_v58 = vld [vmem:[#allocation3 + $0x3e4] sm:$0xf0]  ;;  %v3304_v14 = vshrl.u32 %v2961_v63, 16  ;;  %v3307_v25 = vshll.u32 %v2961_v63, 16  ;;  %v5362_v16 = vadd.f32 %v8333_v8, %v8550_v18 }
 0x26d   : > { %v5734_v42 = vadd.f32 %v8236_v21, %v5698_v2  ;;  %v5448_v11 = vadd.f32 %v5447_v51, %v5359_v9  ;;  %2386 = vst [vmem:[#allocation3 + $0x404] sm:$0xf] %v2291_v48  ;;  %v2758_v2 = vor.u32 %v2756_v28, %v2755_v43  ;;  %v2760_v9 = vrot.slane %v2755_v43, 4 }
 0x26e   : > { %v5536_v35 = vpop.f32.mrf.mxu3  ;;  %v2764_v51 = vrot.slane %v2762_v24, 7  ;;  %v2301_v4 = vsel %vm7558_vm5, %v2296_v52, %v2300_v34  ;;  %v2963_v24 = vld [vmem:[#allocation2 + $0x10c] sm:$0x1]  ;;  %v8551_v40 = vor.u32 %v8324_v53, %v8326_v47  ;;  %v3306_v34 = vrot.slane %v3304_v14, 4 }
 0x26f   : > { %v5766_v0 = vmax.f32 %v5734_v42, 0.0  ;;  %v5537_v54 = vadd.f32 %v5536_v35, %v5448_v11  ;;  %2387 = vst [vmem:[#allocation3 + $0x428] sm:$0xf] %v2301_v4  ;;  %v2759_v28 = vsel %vm7270_vm2, %v6037_v23, %v2758_v2  ;;  %v3317_v42 = vshrl.u32 %v2962_v49, 16  ;;  %v1939_v11 = vld [vmem:[#allocation2 + $0x104] sm:$0xf] }
 0x270   : > { %v2767_v5 = vor.u32 %v2765_v55, %v2764_v51  ;;  %2851 = vst [vmem:[#allocation3 + $0x408] sm:$0xf] %v2759_v28  ;;  %v3309_v23 = vrot.slane %v3307_v25, 5  ;;  %v8552_v48 = vmax.f32 %v8318_v50, %v8320_v26  ;;  %v3323_v55 = vshll.u32 %v2963_v24, 16  ;;  %v8393_v2 = vld [vmem:[#allocation4 + $0x20] ss:$2 sm:$0xff] }
 0x271   : > { %5798 = vst [vmem:[#allocation4 + $0x30] sm:$0xff] %v5766_v0  ;;  %v5626_v62 = vadd.f32 %v5625_v33, %v5537_v54  ;;  %v5628_v60 = vpop.f32.mrf.mxu0  ;;  %5489 = vmatmul.bf16.gmra.mxu2 %v6498_v17  ;;  %v3313_v33 = vshll.u32 %v2962_v49, 16  ;;  %v3319_v43 = vrot.slane %v3317_v42, 4  ;;  %v1940_v0 = vld [vmem:[#allocation2 + $0x108] sm:$0xf]  ;;  %v6538_v54 = vor.u32 %v8369_v31, %v8371_v58 }
 0x272   : > { %v2768_v63 = vsel %vm7270_vm2, %v2760_v9, %v2767_v5  ;;  %v8388_v8 = vmax.f32 %v8552_v48, %v5888_v29  ;;  %v3310_v52 = vor.u32 %v3309_v23, %v3306_v34  ;;  %v8395_v26 = vld [vmem:[#allocation3 + $0x3c0] sm:$0xf]  ;;  %v8397_v29 = vld [vmem:[#allocation3 + $0x3e0] sm:$0xf0]  ;;  %v2306_v4 = vshll.u32 %v1939_v11, 16 }
 0x273   : > { %v5699_v17 = vmul.f32 %v8231_v12, %v5626_v62  ;;  %5578 = vmatmul.bf16.gmra.mxu3 %v8551_v40  ;;  %v5366_v32 = vpop.f32.mrf.mxu1  ;;  %v3315_v35 = vrot.slane %v3313_v33, 5  ;;  %2852 = vst [vmem:[#allocation3 + $0x42c] sm:$0xf] %v2768_v63  ;;  %v1941_v62 = vld [vmem:[#allocation2 + $0x10c] sm:$0x1]  ;;  %v3325_v28 = vrot.slane %v3323_v55, 5 }
 0x274   : > { %5667 = vmatmul.bf16.gmra.mxu0 %v6506_v39  ;;  %v5450_v59 = vpop.f32.mrf.mxu2  ;;  %v2303_v39 = vshrl.u32 %v1939_v11, 16  ;;  %v8399_v14 = vld [vmem:[#allocation4 + $0x21] ss:$2 sm:$0xff]  ;;  %v2312_v25 = vshll.u32 %v1940_v0, 16  ;;  %v2308_v18 = vrot.slane %v2306_v4, 5  ;;  %v2322_v63 = vshll.u32 %v1941_v62, 16 }
 0x275   : > { %v5735_v53 = vadd.f32 %v8236_v21, %v5699_v17  ;;  %v5451_v47 = vadd.f32 %v5450_v59, %v5362_v16  ;;  %v3320_v51 = vor.u32 %v3319_v43, %v3315_v35  ;;  %v2316_v16 = vshrl.u32 %v1940_v0, 16  ;;  %v2436_v40 = vld [vmem:[#allocation2 + $0x110] sm:$0x8]  ;;  %v8553_v34 = vld [vmem:[#allocation9_spill] sm:$0xff]  ;;  %v2437_v23 = vld [vmem:[#allocation2 + $0x114] sm:$0xf] }
 0x276   : > { %v5539_v49 = vpop.f32.mrf.mxu3  ;;  %5405 = vmatmul.bf16.gmra.mxu1 %v6530_v37  ;;  %v3311_v37 = vrot.slane %v3310_v52, 4  ;;  %v2305_v5 = vrot.slane %v2303_v39, 4  ;;  %v5364_v42 = vadd.f32 %v8357_v46, %v8553_v34  ;;  %v2314_v11 = vrot.slane %v2312_v25, 5  ;;  %v2885_v48 = vld [vmem:[#allocation2 + $0x114] sm:$0xf] }
 0x277   : > { %v5767_v9 = vmax.f32 %v5735_v53, 0.0  ;;  %v5540_v50 = vadd.f32 %v5539_v49, %v5451_v47  ;;  %v3321_v17 = vrot.slane %v3320_v51, 4  ;;  %v6541_v47 = vld [vmem:[#allocation3 + $0x3c8] sm:$0xf]  ;;  %v7032_v43 = vld [vmem:[#allocation3 + $0x3e8] sm:$0xf0]  ;;  %v6534_v51 = vor.u32 %v8397_v29, %v8395_v26 }
 0x278   : > { %v3316_v59 = vsel %vm7558_vm5, %v3311_v37, %v3315_v35  ;;  %v8408_v49 = vld [vmem:[#allocation3 + $0x404] sm:$0xf]  ;;  %v2309_v46 = vor.u32 %v2308_v18, %v2305_v5  ;;  %v2318_v52 = vrot.slane %v2316_v16, 4  ;;  %v2886_v55 = vld [vmem:[#allocation2 + $0x118] sm:$0xf]  ;;  %v5889_v35 = vmax.f32 %v8393_v2, %v8399_v14 }
 0x279   : > { %5799 = vst [vmem:[#allocation4 + $0x38] sm:$0xff] %v5767_v9  ;;  %v5629_v24 = vadd.f32 %v5628_v60, %v5540_v50  ;;  %v5630_v33 = vpop.f32.mrf.mxu0  ;;  %v3326_v0 = vsel %vm7558_vm5, %v3321_v17, %v3325_v28  ;;  %v8554_v9 = vld [vmem:[#allocation10_spill] sm:$0xff]  ;;  %v2438_v62 = vld [vmem:[#allocation2 + $0x118] sm:$0xf]  ;;  %v2770_v4 = vshrl.u32 %v2436_v40, 16  ;;  %v2324_v5 = vrot.slane %v2322_v63, 5 }
 0x27a   : > { %3411 = vst [vmem:[#allocation3 + $0x410] sm:$0xf] %v3316_v59  ;;  %v5367_v50 = vadd.f32 %v5366_v32, %v8554_v9  ;;  %v6563_v28 = vld [vmem:[#allocation3 + $0x424] sm:$0xf0]  ;;  %v2319_v18 = vor.u32 %v2318_v52, %v2314_v11  ;;  %v2775_v14 = vshrl.u32 %v2437_v23, 16  ;;  %v2778_v16 = vshll.u32 %v2437_v23, 16 }
 0x27b   : > { %v5700_v53 = vmul.f32 %v8231_v12, %v5629_v24  ;;  %v8406_v60 = vpop.f32.mrf.mxu1  ;;  %3412 = vst [vmem:[#allocation3 + $0x434] sm:$0xf] %v3326_v0  ;;  %v2310_v24 = vrot.slane %v2309_v46, 4  ;;  %v6038_v2 = vrot.slane %v2770_v4, 11  ;;  %v2784_v29 = vshrl.u32 %v2438_v62, 16 }
 0x27c   : > { %v5452_v39 = vpop.f32.mrf.mxu2  ;;  %2917 = vst [vmem:[#allocation3 + $0x454] sm:$0xf] %v2885_v48  ;;  %v2964_v40 = vld [vmem:[#allocation2 + $0x114] sm:$0xf]  ;;  %v6566_v63 = vor.u32 %v8408_v49, %v6563_v28  ;;  %v2320_v48 = vrot.slane %v2319_v18, 4  ;;  %v2777_v0 = vrot.slane %v2775_v14, 7 }
 0x27d   : > { %v5736_v37 = vadd.f32 %v8236_v21, %v5700_v53  ;;  %v5453_v25 = vadd.f32 %v5452_v39, %v5364_v42  ;;  %2918 = vst [vmem:[#allocation3 + $0x478] sm:$0xf] %v2886_v55  ;;  %v2315_v26 = vsel %vm7558_vm5, %v2310_v24, %v2314_v11  ;;  %v6542_v53 = vor.u32 %v7032_v43, %v6541_v47  ;;  %v7040_v19 = vld [vmem:[#allocation3 + $0x428] sm:$0xf0] }
 0x27e   : > { %v5541_v17 = vpop.f32.mrf.mxu3  ;;  %v2786_v55 = vrot.slane %v2784_v29, 7  ;;  %v2787_v39 = vshll.u32 %v2438_v62, 16  ;;  %v2325_v11 = vsel %vm7558_vm5, %v2320_v48, %v2324_v5  ;;  %2388 = vst [vmem:[#allocation3 + $0x44c] sm:$0xf] %v2315_v26  ;;  %v2780_v9 = vor.u32 %v2778_v16, %v2777_v0  ;;  %v6569_v29 = vld [vmem:[#allocation3 + $0x408] sm:$0xf] }
 0x27f   : > { %v5768_v32 = vmax.f32 %v5736_v37, 0.0  ;;  %v5542_v34 = vadd.f32 %v5541_v17, %v5453_v25  ;;  %v2782_v4 = vrot.slane %v2777_v0, 4  ;;  %v3328_v37 = vshrl.u32 %v2964_v40, 16  ;;  %2389 = vst [vmem:[#allocation3 + $0x470] sm:$0xf] %v2325_v11 }
 0x280   : > { %v5830_v59 = vld [vmem:[#allocation4 + $0x30] ss:$2 sm:$0xff]  ;;  %v5862_v42 = vld [vmem:[#allocation4 + $0x31] ss:$2 sm:$0xff]  ;;  %v3331_v62 = vshll.u32 %v2964_v40, 16  ;;  %v5369_v48 = vadd.f32 %v8406_v60, %v7926_v45 }
 0x281   : > { %v5890_v46 = vmax.f32 %v5830_v59, %v5862_v42  ;;  %5800 = vst [vmem:[#allocation4 + $0x40] sm:$0xff] %v5768_v32  ;;  %v5631_v52 = vadd.f32 %v5630_v33, %v5542_v34  ;;  %v5633_v23 = vpop.f32.mrf.mxu0  ;;  %5494 = vmatmul.bf16.gmra.mxu2 %v6534_v51  ;;  %v2789_v33 = vor.u32 %v2787_v39, %v2786_v55  ;;  %v2965_v51 = vld [vmem:[#allocation2 + $0x118] sm:$0xf]  ;;  %v2966_v25 = vld [vmem:[#allocation2 + $0x11c] sm:$0x1]  ;;  %v3330_v31 = vrot.slane %v3328_v37, 4 }
 0x282   : > { %v3333_v17 = vrot.slane %v3331_v62, 5  ;;  %v3337_v18 = vshll.u32 %v2965_v51, 16  ;;  %v3341_v14 = vshrl.u32 %v2965_v51, 16  ;;  %v3347_v32 = vshll.u32 %v2966_v25, 16  ;;  %v8455_v11 = vld [vmem:[%s8532_s3] ss:$0 sm:$0xff] }
 0x283   : > { %v5904_v47 = vmax.f32 %v5889_v35, %v5890_v46  ;;  %v5701_v43 = vmul.f32 %v8231_v12, %v5631_v52  ;;  %5583 = vmatmul.bf16.gmra.mxu3 %v6538_v54  ;;  %v8428_v49 = vpop.f32.mrf.mxu1  ;;  %v2781_v12 = vsel %vm7270_vm2, %v6038_v2, %v2780_v9  ;;  %v2790_v24 = vsel %vm7270_vm2, %v2782_v4, %v2789_v33  ;;  %v7036_v52 = vld [vmem:[#allocation3 + $0x40c] sm:$0xf] }
 0x284   : > { %5672 = vmatmul.bf16.gmra.mxu0 %v6542_v53  ;;  %v5455_v35 = vpop.f32.mrf.mxu2  ;;  %2853 = vst [vmem:[#allocation3 + $0x450] sm:$0xf] %v2781_v12  ;;  %v3334_v34 = vor.u32 %v3333_v17, %v3330_v31  ;;  %v3339_v26 = vrot.slane %v3337_v18, 5  ;;  %v3349_v42 = vrot.slane %v3347_v32, 5  ;;  %v8445_v53 = vld [vmem:[%s8531_s2] ss:$0 sm:$0xff]  ;;  %v6570_v37 = vor.u32 %v7040_v19, %v6569_v29 }
 0x285   : > { %v7126_v58 = vpack.c.bf16 %v5904_v47, %v8388_v8  ;;  %v5737_v54 = vadd.f32 %v8236_v21, %v5701_v43  ;;  %v5456_v28 = vadd.f32 %v5455_v35, %v5367_v50  ;;  %2854 = vst [vmem:[#allocation3 + $0x474] sm:$0xf] %v2790_v24  ;;  %v3343_v8 = vrot.slane %v3341_v14, 4  ;;  %v6577_v47 = vld [vmem:[#allocation3 + $0x410] sm:$0xf] }
 0x286   : > { %v5544_v5 = vpop.f32.mrf.mxu3  ;;  %5410 = vmatmul.bf16.gmra.mxu1 %v6566_v63  ;;  %v3335_v40 = vrot.slane %v3334_v34, 4  ;;  %v7041_v43 = vld [vmem:[#allocation3 + $0x430] sm:$0xf0]  ;;  %v7044_v60 = vld [vmem:[#allocation3 + $0x44c] sm:$0xf]  ;;  %v5372_v24 = vadd.f32 %v8428_v49, %v7936_v61 }
 0x287   : > { %7127 = vst [vmem:[%s8433_s6] sm:$0xff] %v7126_v58   ;;  %v5769_v16 = vmax.f32 %v5737_v54, 0.0  ;;  %v5545_v2 = vadd.f32 %v5544_v5, %v5456_v28  ;;  %v3344_v59 = vor.u32 %v3343_v8, %v3339_v26  ;;  %v6599_v12 = vld [vmem:[#allocation3 + $0x46c] sm:$0xf0]  ;;  %v6578_v25 = vor.u32 %v7041_v43, %v6577_v47  ;;  %v7045_v29 = vld [vmem:[#allocation3 + $0x454] sm:$0xf] }
 0x288   : > { %v3340_v55 = vsel %vm7558_vm5, %v3335_v40, %v3339_v26  ;;  %v6602_v54 = vor.u32 %v7044_v60, %v6599_v12  ;;  %v6607_v19 = vld [vmem:[#allocation3 + $0x474] sm:$0xf0] }
 0x289   : > { %5801 = vst [vmem:[#allocation4 + $0x48] sm:$0xff] %v5769_v16  ;;  %v5634_v21 = vadd.f32 %v5633_v23, %v5545_v2  ;;  %v5635_v50 = vpop.f32.mrf.mxu0  ;;  %v6571_v23 = vld [vmem:[#allocation3 + $0x42c] sm:$0xf0]  ;;  %v3345_v39 = vrot.slane %v3344_v59, 4 }
 0x28a   : > { %3413 = vst [vmem:[#allocation3 + $0x458] sm:$0xf] %v3340_v55  ;;  %v6574_v35 = vor.u32 %v7036_v52, %v6571_v23  ;;  %v6610_v55 = vor.u32 %v7045_v29, %v6607_v19 }
 0x28b   : > { %v5702_v63 = vmul.f32 %v8445_v53, %v5634_v21  ;;  %v5373_v0 = vpop.f32.mrf.mxu1  ;;  %v3350_v33 = vsel %vm7558_vm5, %v3345_v39, %v3349_v42  ;;  %v6605_v26 = vld [vmem:[#allocation3 + $0x450] sm:$0xf] }
 0x28c   : > { %v5457_v46 = vpop.f32.mrf.mxu2  ;;  %3414 = vst [vmem:[#allocation3 + $0x47c] sm:$0xf] %v3350_v33  ;;  %v7049_v8 = vld [vmem:[#allocation3 + $0x470] sm:$0xf0]  ;;  %v5374_v61 = vadd.f32 %v5373_v0, %v7948_v3 }
 0x28d   : > { %v5738_v9 = vadd.f32 %v8455_v11, %v5702_v63  ;;  %v5458_v4 = vadd.f32 %v5457_v46, %v5369_v48  ;;  %v6606_v42 = vor.u32 %v7049_v8, %v6605_v26 }
 0x28e   : > { %v5546_v45 = vpop.f32.mrf.mxu3 }
 0x28f   : > { %v5770_v51 = vmax.f32 %v5738_v9, 0.0  ;;  %v5547_v62 = vadd.f32 %v5546_v45, %v5458_v4 }
 0x291   : > { %5802 = vst [vmem:[#allocation4 + $0x50] sm:$0xff] %v5770_v51  ;;  %v5636_v31 = vadd.f32 %v5635_v50, %v5547_v62  ;;  %v5638_v58 = vpop.f32.mrf.mxu0  ;;  %5499 = vmatmul.bf16.gmra.mxu2 %v6570_v37  ;;  %v6613_v63 = vld [vmem:[#allocation3 + $0x458] sm:$0xf] }
 0x293   : > { %v5703_v28 = vmul.f32 %v8445_v53, %v5636_v31  ;;  %5588 = vmatmul.bf16.gmra.mxu3 %v6574_v35  ;;  %v5376_v5 = vpop.f32.mrf.mxu1  ;;  %v7050_v48 = vld [vmem:[#allocation3 + $0x478] sm:$0xf0] }
 0x294   : > { %5677 = vmatmul.bf16.gmra.mxu0 %v6578_v25  ;;  %v5460_v1 = vpop.f32.mrf.mxu2  ;;  %v6614_v39 = vor.u32 %v7050_v48, %v6613_v63  ;;  %v5377_v0 = vadd.f32 %v5376_v5, %v7968_v7  ;;  %v5864_v48 = vld [vmem:[#allocation4 + $0x41] ss:$2 sm:$0xff] }
 0x295   : > { %v5739_v17 = vadd.f32 %v8455_v11, %v5703_v28  ;;  %v5461_v18 = vadd.f32 %v5460_v1, %v5372_v24 }
 0x296   : > { %v5549_v14 = vpop.f32.mrf.mxu3  ;;  %5415 = vmatmul.bf16.gmra.mxu1 %v6602_v54 }
 0x297   : > { %v5771_v16 = vmax.f32 %v5739_v17, 0.0  ;;  %v5550_v2 = vadd.f32 %v5549_v14, %v5461_v18 }
 0x299   : > { %5803 = vst [vmem:[#allocation4 + $0x58] sm:$0xff] %v5771_v16  ;;  %v5639_v32 = vadd.f32 %v5638_v58, %v5550_v2  ;;  %v5640_v34 = vpop.f32.mrf.mxu0 }
 0x29b   : > { %v5704_v21 = vmul.f32 %v8445_v53, %v5639_v32  ;;  %v5378_v49 = vpop.f32.mrf.mxu1 }
 0x29c   : > { %v5462_v50 = vpop.f32.mrf.mxu2  ;;  %v5379_v25 = vadd.f32 %v5378_v49, %v7987_v41 }
 0x29d   : > { %v5740_v40 = vadd.f32 %v8455_v11, %v5704_v21  ;;  %v5463_v59 = vadd.f32 %v5462_v50, %v5374_v61 }
 0x29e   : > { %v5551_v46 = vpop.f32.mrf.mxu3 }
 0x29f   : > { %v5772_v52 = vmax.f32 %v5740_v40, 0.0  ;;  %v5552_v23 = vadd.f32 %v5551_v46, %v5463_v59 }
 0x2a0   : > { %v5834_v19 = vld [vmem:[#allocation4 + $0x50] ss:$2 sm:$0xff]  ;;  %v5866_v40 = vld [vmem:[#allocation4 + $0x51] ss:$2 sm:$0xff] }
 0x2a1   : > { %5804 = vst [vmem:[#allocation4 + $0x60] sm:$0xff] %v5772_v52  ;;  %v5641_v9 = vadd.f32 %v5640_v34, %v5552_v23  ;;  %v5643_v4 = vpop.f32.mrf.mxu0  ;;  %5504 = vmatmul.bf16.gmra.mxu2 %v6606_v42 }
 0x2a3   : > { %v5705_v3 = vmul.f32 %v8445_v53, %v5641_v9  ;;  %5593 = vmatmul.bf16.gmra.mxu3 %v6610_v55  ;;  %v5381_v37 = vpop.f32.mrf.mxu1  ;;  %v5892_v55 = vmax.f32 %v5834_v19, %v5866_v40 }
 0x2a4   : > { %5682 = vmatmul.bf16.gmra.mxu0 %v6614_v39  ;;  %v5465_v47 = vpop.f32.mrf.mxu2  ;;  %v5382_v14 = vadd.f32 %v5381_v37, %v7999_v22  ;;  %v5832_v22 = vld [vmem:[#allocation4 + $0x40] ss:$2 sm:$0xff] }
 0x2a5   : > { %v5741_v43 = vadd.f32 %v8455_v11, %v5705_v3  ;;  %v5466_v45 = vadd.f32 %v5465_v47, %v5377_v0  ;;  %v5891_v0 = vmax.f32 %v5832_v22, %v5864_v48 }
 0x2a6   : > { %v5554_v60 = vpop.f32.mrf.mxu3 }
 0x2a7   : > { %v5773_v33 = vmax.f32 %v5741_v43, 0.0  ;;  %v5555_v51 = vadd.f32 %v5554_v60, %v5466_v45  ;;  %v5905_v45 = vmax.f32 %v5891_v0, %v5892_v55 }
 0x2a9   : > { %5805 = vst [vmem:[#allocation4 + $0x68] sm:$0xff] %v5773_v33  ;;  %v5644_v62 = vadd.f32 %v5643_v4, %v5555_v51  ;;  %v5645_v35 = vpop.f32.mrf.mxu0 }
 0x2ab   : > { %v5706_v12 = vmul.f32 %v8445_v53, %v5644_v62  ;;  %v5383_v31 = vpop.f32.mrf.mxu1 }
 0x2ac   : > { %v5467_v58 = vpop.f32.mrf.mxu2  ;;  %v5384_v50 = vadd.f32 %v5383_v31, %v8011_v13 }
 0x2ad   : > { %v5742_v7 = vadd.f32 %v8455_v11, %v5706_v12  ;;  %v5468_v54 = vadd.f32 %v5467_v58, %v5379_v25 }
 0x2ae   : > { %v5556_v28 = vpop.f32.mrf.mxu3 }
 0x2af   : > { %v5774_v24 = vmax.f32 %v5742_v7, 0.0  ;;  %v5557_v5 = vadd.f32 %v5556_v28, %v5468_v54 }
 0x2b0   : > { %v5836_v46 = vld [vmem:[#allocation4 + $0x60] ss:$2 sm:$0xff]  ;;  %v5868_v52 = vld [vmem:[#allocation4 + $0x61] ss:$2 sm:$0xff] }
 0x2b1   : > { %5806 = vst [vmem:[#allocation4 + $0x70] sm:$0xff] %v5774_v24  ;;  %v5646_v1 = vadd.f32 %v5645_v35, %v5557_v5  ;;  %v5648_v17 = vpop.f32.mrf.mxu0  ;;  %v5893_v13 = vmax.f32 %v5836_v46, %v5868_v52 }
 0x2b3   : > { %v5707_v18 = vmul.f32 %v8445_v53, %v5646_v1  ;;  %v5386_v16 = vpop.f32.mrf.mxu1 }
 0x2b4   : > { %v5470_v2 = vpop.f32.mrf.mxu2  ;;  %v5387_v51 = vadd.f32 %v5386_v16, %v8025_v56 }
 0x2b5   : > { %v5743_v32 = vadd.f32 %v8455_v11, %v5707_v18  ;;  %v5471_v41 = vadd.f32 %v5470_v2, %v5382_v14 }
 0x2b6   : > { %v5559_v34 = vpop.f32.mrf.mxu3 }
 0x2b7   : > { %v5775_v26 = vmax.f32 %v5743_v32, 0.0  ;;  %v5560_v8 = vadd.f32 %v5559_v34, %v5471_v41 }
 0x2b9   : > { %5807 = vst [vmem:[#allocation4 + $0x78] sm:$0xff] %v5775_v26  ;;  %v5649_v21 = vadd.f32 %v5648_v17, %v5560_v8  ;;  %v5650_v61 = vpop.f32.mrf.mxu0 }
 0x2bb   : > { %v5708_v49 = vmul.f32 %v8445_v53, %v5649_v21  ;;  %v5388_v29 = vpop.f32.mrf.mxu1 }
 0x2bc   : > { %v5472_v59 = vpop.f32.mrf.mxu2  ;;  %v5389_v1 = vadd.f32 %v5388_v29, %v8035_v44 }
 0x2bd   : > { %v5744_v42 = vadd.f32 %v8455_v11, %v5708_v49  ;;  %v5473_v63 = vadd.f32 %v5472_v59, %v5384_v50 }
 0x2be   : > { %v5561_v23 = vpop.f32.mrf.mxu3 }
 0x2bf   : > { %v5776_v39 = vmax.f32 %v5744_v42, 0.0  ;;  %v5562_v9 = vadd.f32 %v5561_v23, %v5473_v63 }
 0x2c0   : > { %v5838_v4 = vld [vmem:[#allocation4 + $0x70] ss:$2 sm:$0xff]  ;;  %v5870_v3 = vld [vmem:[#allocation4 + $0x71] ss:$2 sm:$0xff] }
 0x2c1   : > { %v5894_v37 = vmax.f32 %v5838_v4, %v5870_v3  ;;  %5808 = vst [vmem:[#allocation4 + $0x80] sm:$0xff] %v5776_v39  ;;  %v5651_v47 = vadd.f32 %v5650_v61, %v5562_v9  ;;  %v5653_v43 = vpop.f32.mrf.mxu0 }
 0x2c3   : > { %v5906_v60 = vmax.f32 %v5893_v13, %v5894_v37  ;;  %v5709_v33 = vmul.f32 %v8445_v53, %v5651_v47  ;;  %v5391_v62 = vpop.f32.mrf.mxu1 }
 0x2c4   : > { %v5475_v35 = vpop.f32.mrf.mxu2  ;;  %v5392_v8 = vadd.f32 %v5391_v62, %v8049_v30 }
 0x2c5   : > { %v7131_v12 = vpack.c.bf16 %v5906_v60, %v5905_v45  ;;  %v5745_v25 = vadd.f32 %v8455_v11, %v5709_v33  ;;  %v5476_v31 = vadd.f32 %v5475_v35, %v5387_v51 }
 0x2c6   : > { %v5564_v58 = vpop.f32.mrf.mxu3 }
 0x2c7   : > { %7143 = vst [vmem:[%s8433_s6 + $0x8] sm:$0xff] %v7131_v12   ;;  %v5777_v7 = vmax.f32 %v5745_v25, 0.0  ;;  %v5565_v54 = vadd.f32 %v5564_v58, %v5476_v31 }
 0x2c9   : > { %5809 = vst [vmem:[#allocation4 + $0x88] sm:$0xff] %v5777_v7  ;;  %v5654_v28 = vadd.f32 %v5653_v43, %v5565_v54  ;;  %v5655_v24 = vpop.f32.mrf.mxu0 }
 0x2cb   : > { %v5710_v5 = vmul.f32 %v8445_v53, %v5654_v28  ;;  %v5393_v17 = vpop.f32.mrf.mxu1 }
 0x2cc   : > { %v5477_v18 = vpop.f32.mrf.mxu2  ;;  %v5394_v42 = vadd.f32 %v5393_v17, %v8068_v27 }
 0x2cd   : > { %v5746_v56 = vadd.f32 %v8455_v11, %v5710_v5  ;;  %v5478_v14 = vadd.f32 %v5477_v18, %v5389_v1 }
 0x2ce   : > { %v5566_v16 = vpop.f32.mrf.mxu3 }
 0x2cf   : > { %v5778_v2 = vmax.f32 %v5746_v56, 0.0  ;;  %v5567_v32 = vadd.f32 %v5566_v16, %v5478_v14 }
 0x2d1   : > { %5810 = vst [vmem:[#allocation4 + $0x90] sm:$0xff] %v5778_v2  ;;  %v5656_v41 = vadd.f32 %v5655_v24, %v5567_v32  ;;  %v5658_v34 = vpop.f32.mrf.mxu0 }
 0x2d3   : > { %v5711_v26 = vmul.f32 %v8445_v53, %v5656_v41  ;;  %v5396_v21 = vpop.f32.mrf.mxu1 }
 0x2d4   : > { %v5480_v61 = vpop.f32.mrf.mxu2  ;;  %v5397_v3 = vadd.f32 %v5396_v21, %v8094_v6 }
 0x2d5   : > { %v5747_v49 = vadd.f32 %v8455_v11, %v5711_v26  ;;  %v5481_v44 = vadd.f32 %v5480_v61, %v5392_v8  ;;  %v5840_v61 = vld [vmem:[#allocation4 + $0x80] ss:$2 sm:$0xff] }
 0x2d6   : > { %v5569_v50 = vpop.f32.mrf.mxu3 }
 0x2d7   : > { %v5779_v29 = vmax.f32 %v5747_v49, 0.0  ;;  %v5570_v19 = vadd.f32 %v5569_v50, %v5481_v44  ;;  %v5872_v44 = vld [vmem:[#allocation4 + $0x81] ss:$2 sm:$0xff] }
 0x2d9   : > { %5811 = vst [vmem:[#allocation4 + $0x98] sm:$0xff] %v5779_v29  ;;  %v5659_v40 = vadd.f32 %v5658_v34, %v5570_v19  ;;  %v5660_v59 = vpop.f32.mrf.mxu0 }
 0x2db   : > { %v5712_v22 = vmul.f32 %v8445_v53, %v5659_v40  ;;  %v5398_v63 = vpop.f32.mrf.mxu1 }
 0x2dc   : > { %v5482_v48 = vpop.f32.mrf.mxu2  ;;  %v5399_v62 = vadd.f32 %v5398_v63, %v8113_v38 }
 0x2dd   : > { %v5748_v46 = vadd.f32 %v8455_v11, %v5712_v22  ;;  %v5483_v30 = vadd.f32 %v5482_v48, %v5394_v42 }
 0x2de   : > { %v5571_v52 = vpop.f32.mrf.mxu3 }
 0x2df   : > { %v5780_v23 = vmax.f32 %v5748_v46, 0.0  ;;  %v5572_v55 = vadd.f32 %v5571_v52, %v5483_v30  ;;  %v5895_v46 = vmax.f32 %v5840_v61, %v5872_v44 }
 0x2e0   : > { %v5842_v26 = vld [vmem:[#allocation4 + $0x90] ss:$2 sm:$0xff]  ;;  %v5874_v8 = vld [vmem:[#allocation4 + $0x91] ss:$2 sm:$0xff] }
 0x2e1   : > { %5812 = vst [vmem:[#allocation4 + $0xa0] sm:$0xff] %v5780_v23  ;;  %v5661_v39 = vadd.f32 %v5660_v59, %v5572_v55  ;;  %v5663_v9 = vpop.f32.mrf.mxu0  ;;  %v5896_v40 = vmax.f32 %v5842_v26, %v5874_v8 }
 0x2e3   : > { %v5713_v4 = vmul.f32 %v8445_v53, %v5661_v39  ;;  %v5401_v0 = vpop.f32.mrf.mxu1  ;;  %v5907_v55 = vmax.f32 %v5895_v46, %v5896_v40 }
 0x2e4   : > { %v5485_v13 = vpop.f32.mrf.mxu2  ;;  %v5402_v5 = vadd.f32 %v5401_v0, %v8127_v10 }
 0x2e5   : > { %v5749_v37 = vadd.f32 %v8455_v11, %v5713_v4  ;;  %v5486_v27 = vadd.f32 %v5485_v13, %v5397_v3  ;;  %v8555_v4 = vld [vmem:[#allocation11_spill] sm:$0xff] }
 0x2e6   : > { %v5574_v47 = vpop.f32.mrf.mxu3 }
 0x2e7   : > { %v5781_v43 = vmax.f32 %v5749_v37, 0.0  ;;  %v5575_v45 = vadd.f32 %v5574_v47, %v5486_v27 }
 0x2e9   : > { %5813 = vst [vmem:[#allocation4 + $0xa8] sm:$0xff] %v5781_v43  ;;  %v5664_v60 = vadd.f32 %v5663_v9, %v5575_v45  ;;  %v5665_v33 = vpop.f32.mrf.mxu0 }
 0x2eb   : > { %v5714_v51 = vmul.f32 %v8445_v53, %v5664_v60  ;;  %v5403_v12 = vpop.f32.mrf.mxu1 }
 0x2ec   : > { %v5487_v35 = vpop.f32.mrf.mxu2  ;;  %v5404_v34 = vadd.f32 %v5403_v12, %v8137_v57 }
 0x2ed   : > { %v5750_v25 = vadd.f32 %v8455_v11, %v5714_v51  ;;  %v5488_v6 = vadd.f32 %v5487_v35, %v5399_v62  ;;  %v8556_v35 = vld [vmem:[#allocation12_spill] sm:$0xff] }
 0x2ee   : > { %v5576_v31 = vpop.f32.mrf.mxu3 }
 0x2ef   : > { %v5782_v58 = vmax.f32 %v5750_v25, 0.0  ;;  %v5577_v7 = vadd.f32 %v5576_v31, %v5488_v6 }
 0x2f0   : > { %v5844_v50 = vld [vmem:[#allocation4 + $0xa0] ss:$2 sm:$0xff]  ;;  %v5876_v29 = vld [vmem:[#allocation4 + $0xa1] ss:$2 sm:$0xff] }
 0x2f1   : > { %5814 = vst [vmem:[#allocation4 + $0xb0] sm:$0xff] %v5782_v58  ;;  %v5666_v54 = vadd.f32 %v5665_v33, %v5577_v7  ;;  %v5668_v28 = vpop.f32.mrf.mxu0  ;;  %v5897_v57 = vmax.f32 %v5844_v50, %v5876_v29 }
 0x2f3   : > { %v5715_v24 = vmul.f32 %v8445_v53, %v5666_v54  ;;  %v5406_v56 = vpop.f32.mrf.mxu1 }
 0x2f4   : > { %v5490_v1 = vpop.f32.mrf.mxu2  ;;  %v5407_v3 = vadd.f32 %v5406_v56, %v8555_v4 }
 0x2f5   : > { %v5751_v17 = vadd.f32 %v8455_v11, %v5715_v24  ;;  %v5491_v18 = vadd.f32 %v5490_v1, %v5402_v5  ;;  %v8557_v1 = vld [vmem:[#allocation13_spill] sm:$0xff] }
 0x2f6   : > { %v5579_v38 = vpop.f32.mrf.mxu3 }
 0x2f7   : > { %v5783_v14 = vmax.f32 %v5751_v17, 0.0  ;;  %v5580_v16 = vadd.f32 %v5579_v38, %v5491_v18 }
 0x2f9   : > { %5815 = vst [vmem:[#allocation4 + $0xb8] sm:$0xff] %v5783_v14  ;;  %v5669_v2 = vadd.f32 %v5668_v28, %v5580_v16  ;;  %v5670_v32 = vpop.f32.mrf.mxu0 }
 0x2fb   : > { %v5716_v41 = vmul.f32 %v8445_v53, %v5669_v2  ;;  %v5408_v48 = vpop.f32.mrf.mxu1 }
 0x2fc   : > { %v5492_v21 = vpop.f32.mrf.mxu2  ;;  %v5409_v12 = vadd.f32 %v5408_v48, %v8556_v35 }
 0x2fd   : > { %v5752_v10 = vadd.f32 %v8455_v11, %v5716_v41  ;;  %v5493_v49 = vadd.f32 %v5492_v21, %v5404_v34 }
 0x2fe   : > { %v5581_v19 = vpop.f32.mrf.mxu3 }
 0x2ff   : > { %v5784_v59 = vmax.f32 %v5752_v10, 0.0  ;;  %v5582_v22 = vadd.f32 %v5581_v19, %v5493_v49 }
 0x300   : > { %v5846_v42 = vld [vmem:[#allocation4 + $0xb0] ss:$2 sm:$0xff]  ;;  %v5878_v63 = vld [vmem:[#allocation4 + $0xb1] ss:$2 sm:$0xff] }
 0x301   : > { %v5898_v30 = vmax.f32 %v5846_v42, %v5878_v63  ;;  %5816 = vst [vmem:[#allocation4 + $0xc0] sm:$0xff] %v5784_v59  ;;  %v5671_v52 = vadd.f32 %v5670_v32, %v5582_v22  ;;  %v5673_v23 = vpop.f32.mrf.mxu0 }
 0x303   : > { %v5908_v39 = vmax.f32 %v5897_v57, %v5898_v30  ;;  %v5717_v9 = vmul.f32 %v8445_v53, %v5671_v52  ;;  %v5411_v51 = vpop.f32.mrf.mxu1 }
 0x304   : > { %v5495_v0 = vpop.f32.mrf.mxu2  ;;  %v5412_v17 = vadd.f32 %v5411_v51, %v8557_v1 }
 0x305   : > { %v7136_v13 = vpack.c.bf16 %v5908_v39, %v5907_v55  ;;  %v5753_v37 = vadd.f32 %v8455_v11, %v5717_v9  ;;  %v5496_v27 = vadd.f32 %v5495_v0, %v5407_v3 }
 0x306   : > { %v5584_v47 = vpop.f32.mrf.mxu3 }
 0x307   : > { %7144 = vst [vmem:[%s8433_s6 + $0x10] sm:$0xff] %v7136_v13   ;;  %v5785_v43 = vmax.f32 %v5753_v37, 0.0  ;;  %v5585_v45 = vadd.f32 %v5584_v47, %v5496_v27 }
 0x309   : > { %5817 = vst [vmem:[#allocation4 + $0xc8] sm:$0xff] %v5785_v43  ;;  %v5674_v60 = vadd.f32 %v5673_v23, %v5585_v45  ;;  %v5675_v33 = vpop.f32.mrf.mxu0 }
 0x30b   : > { %v5718_v62 = vmul.f32 %v8445_v53, %v5674_v60  ;;  %v5413_v38 = vpop.f32.mrf.mxu1 }
 0x30c   : > { %v5497_v25 = vpop.f32.mrf.mxu2  ;;  %v5414_v26 = vadd.f32 %v5413_v38, %v8185_v36 }
 0x30d   : > { %v5754_v6 = vadd.f32 %v8455_v11, %v5718_v62  ;;  %v5498_v31 = vadd.f32 %v5497_v25, %v5409_v12 }
 0x30e   : > { %v5586_v58 = vpop.f32.mrf.mxu3 }
 0x30f   : > { %v5786_v7 = vmax.f32 %v5754_v6, 0.0  ;;  %v5587_v54 = vadd.f32 %v5586_v58, %v5498_v31 }
 0x311   : > { %5818 = vst [vmem:[#allocation4 + $0xd0] sm:$0xff] %v5786_v7  ;;  %v5676_v28 = vadd.f32 %v5675_v33, %v5587_v54  ;;  %v5678_v24 = vpop.f32.mrf.mxu0  ;;  %v5880_v33 = vld [vmem:[#allocation4 + $0xc1] ss:$2 sm:$0xff] }
 0x313   : > { %v5719_v5 = vmul.f32 %v8445_v53, %v5676_v28  ;;  %v5416_v44 = vpop.f32.mrf.mxu1 }
 0x314   : > { %v5500_v18 = vpop.f32.mrf.mxu2  ;;  %v5417_v59 = vadd.f32 %v5416_v44, %v8203_v15 }
 0x315   : > { %v5755_v56 = vadd.f32 %v8455_v11, %v5719_v5  ;;  %v5501_v14 = vadd.f32 %v5500_v18, %v5412_v17 }
 0x316   : > { %v5589_v16 = vpop.f32.mrf.mxu3 }
 0x317   : > { %v5787_v2 = vmax.f32 %v5755_v56, 0.0  ;;  %v5590_v32 = vadd.f32 %v5589_v16, %v5501_v14 }
 0x319   : > { %5819 = vst [vmem:[#allocation4 + $0xd8] sm:$0xff] %v5787_v2  ;;  %v5679_v41 = vadd.f32 %v5678_v24, %v5590_v32  ;;  %v5680_v8 = vpop.f32.mrf.mxu0 }
 0x31b   : > { %v5720_v34 = vmul.f32 %v8445_v53, %v5679_v41  ;;  %v5418_v30 = vpop.f32.mrf.mxu1 }
 0x31c   : > { %v5502_v21 = vpop.f32.mrf.mxu2  ;;  %v5419_v55 = vadd.f32 %v5418_v30, %v8218_v20  ;;  %v5848_v20 = vld [vmem:[#allocation4 + $0xc0] ss:$2 sm:$0xff] }
 0x31d   : > { %v5756_v61 = vadd.f32 %v8455_v11, %v5720_v34  ;;  %v5503_v10 = vadd.f32 %v5502_v21, %v5414_v26  ;;  %v5899_v6 = vmax.f32 %v5848_v20, %v5880_v33 }
 0x31e   : > { %v5591_v49 = vpop.f32.mrf.mxu3 }
 0x31f   : > { %v5788_v50 = vmax.f32 %v5756_v61, 0.0  ;;  %v5592_v29 = vadd.f32 %v5591_v49, %v5503_v10 }
 0x320   : > { %v5850_v45 = vld [vmem:[#allocation4 + $0xd0] ss:$2 sm:$0xff]  ;;  %v5882_v60 = vld [vmem:[#allocation4 + $0xd1] ss:$2 sm:$0xff] }
 0x321   : > { %5820 = vst [vmem:[#allocation4 + $0xe0] sm:$0xff] %v5788_v50  ;;  %v5681_v19 = vadd.f32 %v5680_v8, %v5592_v29  ;;  %v5683_v36 = vpop.f32.mrf.mxu0  ;;  %v5900_v35 = vmax.f32 %v5850_v45, %v5882_v60 }
 0x323   : > { %v5721_v40 = vmul.f32 %v8445_v53, %v5681_v19  ;;  %v5909_v7 = vmax.f32 %v5899_v6, %v5900_v35 }
 0x324   : > { %v5505_v22 = vpop.f32.mrf.mxu2 }
 0x325   : > { %v5757_v42 = vadd.f32 %v8455_v11, %v5721_v40  ;;  %v5506_v63 = vadd.f32 %v5505_v22, %v5417_v59 }
 0x326   : > { %v5594_v48 = vpop.f32.mrf.mxu3 }
 0x327   : > { %v5789_v46 = vmax.f32 %v5757_v42, 0.0  ;;  %v5595_v57 = vadd.f32 %v5594_v48, %v5506_v63 }
 0x329   : > { %5821 = vst [vmem:[#allocation4 + $0xe8] sm:$0xff] %v5789_v46  ;;  %v5684_v52 = vadd.f32 %v5683_v36, %v5595_v57  ;;  %v5685_v13 = vpop.f32.mrf.mxu0 }
 0x32b   : > { %v5722_v23 = vmul.f32 %v8445_v53, %v5684_v52 }
 0x32c   : > { %v5507_v39 = vpop.f32.mrf.mxu2 }
 0x32d   : > { %v5758_v9 = vadd.f32 %v8455_v11, %v5722_v23  ;;  %v5508_v4 = vadd.f32 %v5507_v39, %v5419_v55 }
 0x32e   : > { %v5596_v15 = vpop.f32.mrf.mxu3 }
 0x32f   : > { %v5790_v3 = vmax.f32 %v5758_v9, 0.0  ;;  %v5597_v0 = vadd.f32 %v5596_v15, %v5508_v4 }
 0x330   : > { %v5852_v51 = vld [vmem:[#allocation4 + $0xe0] ss:$2 sm:$0xff]  ;;  %v5884_v62 = vld [vmem:[#allocation4 + $0xe1] ss:$2 sm:$0xff] }
 0x331   : > { %5822 = vst [vmem:[#allocation4 + $0xf0] sm:$0xff] %v5790_v3  ;;  %v5686_v37 = vadd.f32 %v5685_v13, %v5597_v0  ;;  %v5901_v31 = vmax.f32 %v5852_v51, %v5884_v62 }
 0x333   : > { %v5723_v27 = vmul.f32 %v8445_v53, %v5686_v37 }
 0x335   : > { %v5759_v47 = vadd.f32 %v8455_v11, %v5723_v27 }
 0x337   : > { %v5791_v43 = vmax.f32 %v5759_v47, 0.0 }
 0x339   : > { %5823 = vst [vmem:[#allocation4 + $0xf8] sm:$0xff] %v5791_v43 }
 0x340   : > { %v5854_v12 = vld [vmem:[#allocation4 + $0xf0] ss:$2 sm:$0xff]  ;;  %v5886_v25 = vld [vmem:[#allocation4 + $0xf1] ss:$2 sm:$0xff] }
 0x341   : > { %v5902_v58 = vmax.f32 %v5854_v12, %v5886_v25 }
 0x343   : > { %v5910_v54 = vmax.f32 %v5901_v31, %v5902_v58 }
 0x345   : > { %v7141_v53 = vpack.c.bf16 %v5910_v54, %v5909_v7 }
 0x347   : > { %7145 = vst [vmem:[%s8433_s6 + $0x18] sm:$0xff] %v7141_v53  }
 0x348 PF: > { %s14_s15 = sadd.s32 1, %s7189_s15  }
 0x349   : > { %p11_p4 = scmp.ge.s32.totalorder %s14_s15, 4  }
 0x34b   :  { %13 = sbr.rel (!%p11_p4) target bundleno = 1 (0x1), region = 99 }

</bundles_post_ra>
